<compile_context>
chip_gen: v7x
topology: tpu7x:2x2x1
jax: 0.10.0
libtpu: 0.0.40
codegen_flags: <defaults>
</compile_context>

<pallas_src>
import functools
import math

import numpy as np
import jax
import jax.numpy as jnp
from jax import lax
from jax.experimental import pallas as pl
from jax.experimental.pallas import tpu as pltpu

EPS = 1e-6  # timm ViT LayerNorm eps


def _erf(x):
    # Abramowitz & Stegun 7.1.26 rational approximation (max abs err ~1.5e-7,
    # i.e. f32-exact).  Uses only exp / mul / add / div / select so it is
    # guaranteed to lower in Mosaic (no dependence on an erf primitive rule).
    a1, a2, a3, a4, a5 = (0.254829592, -0.284496736, 1.421413741,
                          -1.453152027, 1.061405429)
    p = 0.3275911
    sgn = jnp.where(x >= 0.0, 1.0, -1.0)
    ax = jnp.abs(x)
    t = 1.0 / (1.0 + p * ax)
    poly = ((((a5 * t + a4) * t + a3) * t + a2) * t + a1) * t
    return sgn * (1.0 - poly * jnp.exp(-ax * ax))


def _gelu_exact(x):
    # Matches torch nn.GELU (exact erf) to f32 precision.
    return 0.5 * x * (1.0 + _erf(x * (1.0 / math.sqrt(2.0))))


# --------------------------------------------------------------------------
# Fused encoder kernel: one grid step == block_batch images
# --------------------------------------------------------------------------
def _encoder_kernel(xp_ref, w_pe_ref, seq_bias_ref, mask_ref,
                    ln1_g_ref, ln1_b_ref, qkv_w_ref, qkv_b_ref,
                    proj_w_ref, proj_b_ref,
                    ln2_g_ref, ln2_b_ref, fc1_w_ref, fc1_b_ref,
                    fc2_w_ref, fc2_b_ref,
                    lnf_g_ref, lnf_b_ref,
                    o_ref, *, depth, num_heads, head_dim, block_batch, t_pad):
    D = num_heads * head_dim
    M = block_batch * t_pad                      # stacked token rows

    def layer_norm(x, g, b):
        mu = jnp.mean(x, axis=-1, keepdims=True)
        var = jnp.mean(jnp.square(x - mu), axis=-1, keepdims=True)
        return (x - mu) * lax.rsqrt(var + EPS) * g + b

    # --- patch embed (conv-as-matmul) on the whole stacked block -------------
    # t_pad is a multiple of 8, so merging (Bt, Tpad) -> M is sublane-aligned.
    xp = xp_ref[...].reshape(M, xp_ref.shape[-1])
    x = jnp.dot(xp, w_pe_ref[...], preferred_element_type=jnp.float32)
    x = x + seq_bias_ref[...]                    # cls + pos + conv-bias folded

    # Additive score bias: 0 where (same image, valid key), -1e30 elsewhere.
    # Precomputed in the wrapper; one VPU add per head instead of mul+select.
    mask = mask_ref[...]

    for d in range(depth):                       # depth is small -> unrolled
        # TODO(synk): at depth=12 use lax.fori_loop over d (dynamic ref index)
        # or move depth onto an "arbitrary" grid axis with streamed weights.

        # ---------------- attention ----------------
        y = layer_norm(x, ln1_g_ref[d], ln1_b_ref[d])
        qkv = jnp.dot(y, qkv_w_ref[d],
                      preferred_element_type=jnp.float32) + qkv_b_ref[d]
        attn = jnp.zeros((M, D), jnp.float32) + proj_b_ref[d]
        for h in range(num_heads):
            q = qkv[:, h * head_dim:(h + 1) * head_dim]        # scale folded in
            k = qkv[:, D + h * head_dim:D + (h + 1) * head_dim]
            v = qkv[:, 2 * D + h * head_dim:2 * D + (h + 1) * head_dim]
            s = lax.dot_general(q, k, (((1,), (1,)), ((), ())),
                                preferred_element_type=jnp.float32) + mask
            s = s - jnp.max(s, axis=-1, keepdims=True)
            p = jnp.exp(s)
            p = p / jnp.sum(p, axis=-1, keepdims=True)   # exact div (parity)
            o_h = jnp.dot(p, v, preferred_element_type=jnp.float32)
            # Per-head output projection accumulate -> no lane concatenation.
            attn = attn + jnp.dot(o_h, proj_w_ref[d, h],
                                  preferred_element_type=jnp.float32)
        x = x + attn

        # ---------------- MLP ----------------
        y = layer_norm(x, ln2_g_ref[d], ln2_b_ref[d])
        h1 = jnp.dot(y, fc1_w_ref[d],
                     preferred_element_type=jnp.float32) + fc1_b_ref[d]
        h1 = _gelu_exact(h1)
        x = x + jnp.dot(h1, fc2_w_ref[d],
                        preferred_element_type=jnp.float32) + fc2_b_ref[d]

    # ---------------- final norm + store ----------------
    x = layer_norm(x, lnf_g_ref[...], lnf_b_ref[...])
    # TODO(synk): for tiny D a lane-dense (Bt, Tpad*D) store layout would avoid
    # masked partial stores; real ViT-small D=384 is already lane-dense.
    o_ref[...] = x.reshape(block_batch, t_pad, D).astype(o_ref.dtype)


# --------------------------------------------------------------------------
# Parameter construction (deterministic, synthetic, kernel-ready layout)
# --------------------------------------------------------------------------
def init_params(key, *, c_in, patch, embed_dim, depth, num_heads, mlp_ratio,
                img_size):
    D = embed_dim
    hd = D // num_heads
    hidden = mlp_ratio * D
    gh = img_size // patch
    T = gh * gh + 1
    Tpad = ((T + 7) // 8) * 8
    CPP = c_in * patch * patch
    scale = 1.0 / math.sqrt(hd)

    keys = iter(jax.random.split(key, 8 + 8 * depth))

    def nrm(shape, std):
        return jax.random.normal(next(keys), shape, jnp.float32) * std

    # Conv2d(C, D, k=p, s=p): kaiming_normal_(fan_out, relu), bias = 0.
    fan_out = D * patch * patch
    conv_w = nrm((D, c_in, patch, patch), math.sqrt(2.0 / fan_out))
    conv_b = jnp.zeros((D,), jnp.float32)
    cls_token = nrm((1, 1, D), 0.02)
    pos_embed = nrm((1, T, D), 0.02)

    # Kernel-ready: flattened conv weight (c,kh,kw order) + folded seq bias.
    w_pe = conv_w.reshape(D, CPP).T                              # (CPP, D)
    seq_bias = jnp.zeros((Tpad, D), jnp.float32)
    seq_bias = seq_bias.at[0].set(cls_token[0, 0] + pos_embed[0, 0])
    seq_bias = seq_bias.at[1:T].set(pos_embed[0, 1:] + conv_b)

    blk = {n: [] for n in ("ln1_g", "ln1_b", "qkv_w", "qkv_b", "proj_w",
                           "proj_b", "ln2_g", "ln2_b", "fc1_w", "fc1_b",
                           "fc2_w", "fc2_b")}
    for _ in range(depth):
        qkv_w = nrm((D, 3 * D), 0.02)
        qkv_b = jnp.zeros((1, 3 * D), jnp.float32)
        # Fold 1/sqrt(head_dim) into the Q columns (weights AND bias).
        qkv_w = qkv_w.at[:, :D].multiply(scale)
        qkv_b = qkv_b.at[:, :D].multiply(scale)
        # Output projection split per head along its input dim at init time.
        proj_w = nrm((D, D), 0.02).reshape(num_heads, hd, D)    # (H, hd, D)

        blk["ln1_g"].append(jnp.ones((1, D), jnp.float32))
        blk["ln1_b"].append(jnp.zeros((1, D), jnp.float32))
        blk["qkv_w"].append(qkv_w)
        blk["qkv_b"].append(qkv_b)
        blk["proj_w"].append(proj_w)
        blk["proj_b"].append(jnp.zeros((1, D), jnp.float32))
        blk["ln2_g"].append(jnp.ones((1, D), jnp.float32))
        blk["ln2_b"].append(jnp.zeros((1, D), jnp.float32))
        blk["fc1_w"].append(nrm((D, hidden), 0.02))
        blk["fc1_b"].append(jnp.zeros((1, hidden), jnp.float32))
        blk["fc2_w"].append(nrm((hidden, D), 0.02))
        blk["fc2_b"].append(jnp.zeros((1, D), jnp.float32))

    params = {name: jnp.stack(vals) for name, vals in blk.items()}
    params.update(
        w_pe=w_pe,
        seq_bias=seq_bias,
        lnf_g=jnp.ones((1, D), jnp.float32),
        lnf_b=jnp.zeros((1, D), jnp.float32),
        cfg=dict(patch=patch, embed_dim=D, num_heads=num_heads, depth=depth,
                 hidden=hidden, seq_len=T, t_pad=Tpad),
    )
    return params


# --------------------------------------------------------------------------
# MAEEncoder.forward == vit.forward_features(x)
# --------------------------------------------------------------------------
def mae_encoder_forward(params, x, *, block_batch=None):
    cfg = params["cfg"]
    B, C, H, W = x.shape
    p = cfg["patch"]
    D = cfg["embed_dim"]
    nh = cfg["num_heads"]
    depth = cfg["depth"]
    hidden = cfg["hidden"]
    T = cfg["seq_len"]
    Tpad = cfg["t_pad"]
    CPP = C * p * p
    gh, gw = H // p, W // p
    N = gh * gw

    if block_batch is None:
        # Stack several images per grid step to fill the MXU M dim, but keep
        # >= 2 grid steps so the "parallel" axis can split across v7x's 2 TCs.
        block_batch = max(1, min(8, B // 2)) if B >= 2 else 1
    bt = block_batch
    G = pl.cdiv(B, bt)
    Bp = G * bt
    M = bt * Tpad

    # Patchify with (c, kh, kw) channel-major flattening (matches Conv2d weight
    # layout); prepend one zero row (cls slot), pad T->Tpad and B->Bp.
    xp = x.reshape(B, C, gh, p, gw, p).transpose(0, 2, 4, 1, 3, 5)
    xp = xp.reshape(B, N, CPP)
    xp = jnp.pad(xp, ((0, Bp - B), (1, Tpad - T), (0, 0)))    # (Bp, Tpad, CPP)

    # seq bias tiled for the stacked block.
    seq_bias = jnp.tile(params["seq_bias"], (bt, 1))          # (M, D)

    # Additive attention-mask bias for the stacked layout: 0 where the query
    # and key come from the same image AND the key is a real (non-pad) token.
    img = np.repeat(np.arange(bt), Tpad)
    tok = np.tile(np.arange(Tpad), bt)
    valid = (img[:, None] == img[None, :]) & (tok[None, :] < T)
    # -1e30 is safe in f32.  TODO(synk): dtype-aware constant if compute->bf16.
    mask_bias = jnp.asarray(np.where(valid, 0.0, -1e30), dtype=jnp.float32)

    def rep(shape):
        z = (0,) * len(shape)
        return pl.BlockSpec(shape, lambda b, _z=z: _z)        # VMEM-resident
    # TODO(synk): at scaled-up dims mark these constant specs
    # pipeline_mode=pl.Buffered(1) (or DMA once into scratch) to avoid useless
    # double-buffering of weights.

    in_specs = [
        pl.BlockSpec((bt, Tpad, CPP), lambda b: (b, 0, 0)),   # xp (per block)
        rep((CPP, D)),                                        # w_pe
        rep((M, D)),                                          # seq_bias
        rep((M, M)),                                          # mask bias
        rep((depth, 1, D)), rep((depth, 1, D)),               # ln1 g/b
        rep((depth, D, 3 * D)), rep((depth, 1, 3 * D)),       # qkv w/b
        rep((depth, nh, D // nh, D)), rep((depth, 1, D)),     # proj w/b
        rep((depth, 1, D)), rep((depth, 1, D)),               # ln2 g/b
        rep((depth, D, hidden)), rep((depth, 1, hidden)),     # fc1 w/b
        rep((depth, hidden, D)), rep((depth, 1, D)),          # fc2 w/b
        rep((1, D)), rep((1, D)),                             # final norm g/b
    ]

    out = pl.pallas_call(
        functools.partial(_encoder_kernel, depth=depth, num_heads=nh,
                          head_dim=D // nh, block_batch=bt, t_pad=Tpad),
        grid=(G,),
        in_specs=in_specs,
        out_specs=pl.BlockSpec((bt, Tpad, D), lambda b: (b, 0, 0)),
        out_shape=jax.ShapeDtypeStruct((Bp, Tpad, D), jnp.float32),
        compiler_params=pltpu.CompilerParams(
            dimension_semantics=("parallel",)),
    )(xp, params["w_pe"], seq_bias, mask_bias,
      params["ln1_g"], params["ln1_b"], params["qkv_w"], params["qkv_b"],
      params["proj_w"], params["proj_b"],
      params["ln2_g"], params["ln2_b"], params["fc1_w"], params["fc1_b"],
      params["fc2_w"], params["fc2_b"],
      params["lnf_g"], params["lnf_b"])

    return out[:B, :T, :]   # drop batch / sublane padding


if __name__ == "__main__":
    B, C_in, IMG, PATCH = 8, 4, 16, 4
    EMBED, DEPTH, HEADS, MLP_RATIO = 32, 2, 2, 4   # vit_small structure, tiny dims

    key = jax.random.PRNGKey(0)
    kp, kx = jax.random.split(key)
    params = init_params(kp, c_in=C_in, patch=PATCH, embed_dim=EMBED,
                         depth=DEPTH, num_heads=HEADS, mlp_ratio=MLP_RATIO,
                         img_size=IMG)
    x = jax.random.normal(kx, (B, C_in, IMG, IMG), jnp.float32)

    out = mae_encoder_forward(params, x)
    jax.block_until_ready(out)
    assert out.shape == (B, (IMG // PATCH) ** 2 + 1, EMBED), out.shape
    assert bool(jnp.all(jnp.isfinite(out)))
    print("KERNEL_OK")
</pallas_src>

<mosaic_0001>
module attributes {stable_mosaic.version = 11 : i64} {
  func.func @_encoder_kernel(%arg0: i32, %arg1: memref<4x24x64xf32, #tpu.memory_space<vmem>>, %arg2: memref<64x32xf32, #tpu.memory_space<vmem>>, %arg3: memref<96x32xf32, #tpu.memory_space<vmem>>, %arg4: memref<96x96xf32, #tpu.memory_space<vmem>>, %arg5: memref<2x1x32xf32, #tpu.memory_space<vmem>>, %arg6: memref<2x1x32xf32, #tpu.memory_space<vmem>>, %arg7: memref<2x32x96xf32, #tpu.memory_space<vmem>>, %arg8: memref<2x1x96xf32, #tpu.memory_space<vmem>>, %arg9: memref<2x2x16x32xf32, #tpu.memory_space<vmem>>, %arg10: memref<2x1x32xf32, #tpu.memory_space<vmem>>, %arg11: memref<2x1x32xf32, #tpu.memory_space<vmem>>, %arg12: memref<2x1x32xf32, #tpu.memory_space<vmem>>, %arg13: memref<2x32x128xf32, #tpu.memory_space<vmem>>, %arg14: memref<2x1x128xf32, #tpu.memory_space<vmem>>, %arg15: memref<2x128x32xf32, #tpu.memory_space<vmem>>, %arg16: memref<2x1x32xf32, #tpu.memory_space<vmem>>, %arg17: memref<1x32xf32, #tpu.memory_space<vmem>>, %arg18: memref<1x32xf32, #tpu.memory_space<vmem>>, %arg19: memref<4x24x32xf32, #tpu.memory_space<vmem>>) attributes {dimension_semantics = [#tpu.dimension_semantics<parallel>], iteration_bounds = array<i64: 2>, scalar_prefetch = 0 : i64, scratch_operands = 0 : i64, tpu.core_type = #tpu.core_type<tc>, window_params = [{transform_indices = @transform_0, window_bounds = array<i64: 4, 24, 64>}, {pipeline_mode = #tpu.pipeline_mode<synchronous>, transform_indices = @transform_1, window_bounds = array<i64: 64, 32>}, {pipeline_mode = #tpu.pipeline_mode<synchronous>, transform_indices = @transform_2, window_bounds = array<i64: 96, 32>}, {pipeline_mode = #tpu.pipeline_mode<synchronous>, transform_indices = @transform_3, window_bounds = array<i64: 96, 96>}, {pipeline_mode = #tpu.pipeline_mode<synchronous>, transform_indices = @transform_4, window_bounds = array<i64: 2, 1, 32>}, {pipeline_mode = #tpu.pipeline_mode<synchronous>, transform_indices = @transform_5, window_bounds = array<i64: 2, 1, 32>}, {pipeline_mode = #tpu.pipeline_mode<synchronous>, transform_indices = @transform_6, window_bounds = array<i64: 2, 32, 96>}, {pipeline_mode = #tpu.pipeline_mode<synchronous>, transform_indices = @transform_7, window_bounds = array<i64: 2, 1, 96>}, {pipeline_mode = #tpu.pipeline_mode<synchronous>, transform_indices = @transform_8, window_bounds = array<i64: 2, 2, 16, 32>}, {pipeline_mode = #tpu.pipeline_mode<synchronous>, transform_indices = @transform_9, window_bounds = array<i64: 2, 1, 32>}, {pipeline_mode = #tpu.pipeline_mode<synchronous>, transform_indices = @transform_10, window_bounds = array<i64: 2, 1, 32>}, {pipeline_mode = #tpu.pipeline_mode<synchronous>, transform_indices = @transform_11, window_bounds = array<i64: 2, 1, 32>}, {pipeline_mode = #tpu.pipeline_mode<synchronous>, transform_indices = @transform_12, window_bounds = array<i64: 2, 32, 128>}, {pipeline_mode = #tpu.pipeline_mode<synchronous>, transform_indices = @transform_13, window_bounds = array<i64: 2, 1, 128>}, {pipeline_mode = #tpu.pipeline_mode<synchronous>, transform_indices = @transform_14, window_bounds = array<i64: 2, 128, 32>}, {pipeline_mode = #tpu.pipeline_mode<synchronous>, transform_indices = @transform_15, window_bounds = array<i64: 2, 1, 32>}, {pipeline_mode = #tpu.pipeline_mode<synchronous>, transform_indices = @transform_16, window_bounds = array<i64: 1, 32>}, {pipeline_mode = #tpu.pipeline_mode<synchronous>, transform_indices = @transform_17, window_bounds = array<i64: 1, 32>}, {transform_indices = @transform_18, window_bounds = array<i64: 4, 24, 32>}]} {
    %c0 = arith.constant 0 : index
    %c0_0 = arith.constant 0 : index
    %c0_1 = arith.constant 0 : index
    %0 = vector.load %arg1[%c0, %c0_0, %c0_1] : memref<4x24x64xf32, #tpu.memory_space<vmem>>, vector<4x24x64xf32>
    %1 = vector.shape_cast %0 : vector<4x24x64xf32> to vector<96x64xf32>
    %c0_2 = arith.constant 0 : index
    %c0_3 = arith.constant 0 : index
    %2 = vector.load %arg2[%c0_2, %c0_3] : memref<64x32xf32, #tpu.memory_space<vmem>>, vector<64x32xf32>
    %cst = arith.constant dense<0.000000e+00> : vector<96x32xf32>
    %3 = tpu.matmul %1, %2, %cst {dimension_numbers = #tpu.dot_dimension_numbers<[1], [0], [0], [1], [0, 0, 1, 1], [], []>} : vector<96x64xf32>, vector<64x32xf32>, vector<96x32xf32> -> vector<96x32xf32>
    %c0_4 = arith.constant 0 : index
    %c0_5 = arith.constant 0 : index
    %4 = vector.load %arg3[%c0_4, %c0_5] : memref<96x32xf32, #tpu.memory_space<vmem>>, vector<96x32xf32>
    %5 = arith.addf %3, %4 : vector<96x32xf32>
    %c0_6 = arith.constant 0 : index
    %c0_7 = arith.constant 0 : index
    %6 = vector.load %arg4[%c0_6, %c0_7] : memref<96x96xf32, #tpu.memory_space<vmem>>, vector<96x96xf32>
    %c0_8 = arith.constant 0 : index
    %c0_9 = arith.constant 0 : index
    %c0_10 = arith.constant 0 : index
    %7 = vector.load %arg5[%c0_8, %c0_9, %c0_10] : memref<2x1x32xf32, #tpu.memory_space<vmem>>, vector<1x1x32xf32>
    %8 = vector.shape_cast %7 : vector<1x1x32xf32> to vector<1x32xf32>
    %c0_11 = arith.constant 0 : index
    %c0_12 = arith.constant 0 : index
    %c0_13 = arith.constant 0 : index
    %9 = vector.load %arg6[%c0_11, %c0_12, %c0_13] : memref<2x1x32xf32, #tpu.memory_space<vmem>>, vector<1x1x32xf32>
    %10 = vector.shape_cast %9 : vector<1x1x32xf32> to vector<1x32xf32>
    %cst_14 = arith.constant dense<0.000000e+00> : vector<96xf32>
    %11 = vector.multi_reduction <add>, %5, %cst_14 [1] : vector<96x32xf32> to vector<96xf32>
    %12 = vector.shape_cast %11 : vector<96xf32> to vector<96x1xf32>
    %cst_15 = arith.constant 3.200000e+01 : f32
    %13 = vector.broadcast %cst_15 : f32 to vector<96x1xf32>
    %14 = arith.divf %12, %13 : vector<96x1xf32>
    %15 = vector.broadcast %14 : vector<96x1xf32> to vector<96x32xf32>
    %16 = arith.subf %5, %15 : vector<96x32xf32>
    %17 = arith.mulf %16, %16 : vector<96x32xf32>
    %cst_16 = arith.constant dense<0.000000e+00> : vector<96xf32>
    %18 = vector.multi_reduction <add>, %17, %cst_16 [1] : vector<96x32xf32> to vector<96xf32>
    %19 = vector.shape_cast %18 : vector<96xf32> to vector<96x1xf32>
    %cst_17 = arith.constant 3.200000e+01 : f32
    %20 = vector.broadcast %cst_17 : f32 to vector<96x1xf32>
    %21 = arith.divf %19, %20 : vector<96x1xf32>
    %22 = vector.broadcast %14 : vector<96x1xf32> to vector<96x32xf32>
    %23 = arith.subf %5, %22 : vector<96x32xf32>
    %cst_18 = arith.constant 9.99999997E-7 : f32
    %24 = vector.broadcast %cst_18 : f32 to vector<96x1xf32>
    %25 = arith.addf %21, %24 : vector<96x1xf32>
    %26 = math.rsqrt %25 : vector<96x1xf32>
    %27 = vector.broadcast %26 : vector<96x1xf32> to vector<96x32xf32>
    %28 = arith.mulf %23, %27 : vector<96x32xf32>
    %29 = vector.broadcast %8 : vector<1x32xf32> to vector<96x32xf32>
    %30 = arith.mulf %28, %29 : vector<96x32xf32>
    %31 = vector.broadcast %10 : vector<1x32xf32> to vector<96x32xf32>
    %32 = arith.addf %30, %31 : vector<96x32xf32>
    %c0_19 = arith.constant 0 : index
    %c0_20 = arith.constant 0 : index
    %c0_21 = arith.constant 0 : index
    %33 = vector.load %arg7[%c0_19, %c0_20, %c0_21] : memref<2x32x96xf32, #tpu.memory_space<vmem>>, vector<1x32x96xf32>
    %34 = vector.shape_cast %33 : vector<1x32x96xf32> to vector<32x96xf32>
    %cst_22 = arith.constant dense<0.000000e+00> : vector<96x96xf32>
    %35 = tpu.matmul %32, %34, %cst_22 {dimension_numbers = #tpu.dot_dimension_numbers<[1], [0], [0], [1], [0, 0, 1, 1], [], []>} : vector<96x32xf32>, vector<32x96xf32>, vector<96x96xf32> -> vector<96x96xf32>
    %c0_23 = arith.constant 0 : index
    %c0_24 = arith.constant 0 : index
    %c0_25 = arith.constant 0 : index
    %36 = vector.load %arg8[%c0_23, %c0_24, %c0_25] : memref<2x1x96xf32, #tpu.memory_space<vmem>>, vector<1x1x96xf32>
    %37 = vector.shape_cast %36 : vector<1x1x96xf32> to vector<1x96xf32>
    %38 = vector.broadcast %37 : vector<1x96xf32> to vector<96x96xf32>
    %39 = arith.addf %35, %38 : vector<96x96xf32>
    %cst_26 = arith.constant 0.000000e+00 : f32
    %40 = vector.broadcast %cst_26 : f32 to vector<96x32xf32>
    %c0_27 = arith.constant 0 : index
    %c0_28 = arith.constant 0 : index
    %c0_29 = arith.constant 0 : index
    %41 = vector.load %arg10[%c0_27, %c0_28, %c0_29] : memref<2x1x32xf32, #tpu.memory_space<vmem>>, vector<1x1x32xf32>
    %42 = vector.shape_cast %41 : vector<1x1x32xf32> to vector<1x32xf32>
    %43 = vector.broadcast %42 : vector<1x32xf32> to vector<96x32xf32>
    %44 = arith.addf %40, %43 : vector<96x32xf32>
    %45 = vector.extract_strided_slice %39 {offsets = [0, 0], sizes = [96, 16], strides = [1, 1]} : vector<96x96xf32> to vector<96x16xf32>
    %46 = vector.extract_strided_slice %39 {offsets = [0, 32], sizes = [96, 16], strides = [1, 1]} : vector<96x96xf32> to vector<96x16xf32>
    %47 = vector.extract_strided_slice %39 {offsets = [0, 64], sizes = [96, 16], strides = [1, 1]} : vector<96x96xf32> to vector<96x16xf32>
    %cst_30 = arith.constant dense<0.000000e+00> : vector<96x96xf32>
    %48 = tpu.matmul %45, %46, %cst_30 {dimension_numbers = #tpu.dot_dimension_numbers<[1], [1], [0], [0], [0, 0, 1, 0], [], []>} : vector<96x16xf32>, vector<96x16xf32>, vector<96x96xf32> -> vector<96x96xf32>
    %49 = arith.addf %48, %6 : vector<96x96xf32>
    %cst_31 = arith.constant dense<0xFF800000> : vector<96xf32>
    %50 = vector.multi_reduction <maximumf>, %49, %cst_31 [1] : vector<96x96xf32> to vector<96xf32>
    %51 = vector.shape_cast %50 : vector<96xf32> to vector<96x1xf32>
    %52 = vector.broadcast %51 : vector<96x1xf32> to vector<96x96xf32>
    %53 = arith.subf %49, %52 : vector<96x96xf32>
    %54 = math.exp %53 : vector<96x96xf32>
    %cst_32 = arith.constant dense<0.000000e+00> : vector<96xf32>
    %55 = vector.multi_reduction <add>, %54, %cst_32 [1] : vector<96x96xf32> to vector<96xf32>
    %56 = vector.shape_cast %55 : vector<96xf32> to vector<96x1xf32>
    %57 = vector.broadcast %56 : vector<96x1xf32> to vector<96x96xf32>
    %58 = arith.divf %54, %57 : vector<96x96xf32>
    %cst_33 = arith.constant dense<0.000000e+00> : vector<96x16xf32>
    %59 = tpu.matmul %58, %47, %cst_33 {dimension_numbers = #tpu.dot_dimension_numbers<[1], [0], [0], [1], [0, 0, 1, 1], [], []>} : vector<96x96xf32>, vector<96x16xf32>, vector<96x16xf32> -> vector<96x16xf32>
    %c0_34 = arith.constant 0 : index
    %c0_35 = arith.constant 0 : index
    %c0_36 = arith.constant 0 : index
    %c0_37 = arith.constant 0 : index
    %60 = vector.load %arg9[%c0_34, %c0_35, %c0_36, %c0_37] : memref<2x2x16x32xf32, #tpu.memory_space<vmem>>, vector<1x1x16x32xf32>
    %61 = vector.shape_cast %60 : vector<1x1x16x32xf32> to vector<16x32xf32>
    %cst_38 = arith.constant dense<0.000000e+00> : vector<96x32xf32>
    %62 = tpu.matmul %59, %61, %cst_38 {dimension_numbers = #tpu.dot_dimension_numbers<[1], [0], [0], [1], [0, 0, 1, 1], [], []>} : vector<96x16xf32>, vector<16x32xf32>, vector<96x32xf32> -> vector<96x32xf32>
    %63 = arith.addf %44, %62 : vector<96x32xf32>
    %64 = vector.extract_strided_slice %39 {offsets = [0, 16], sizes = [96, 16], strides = [1, 1]} : vector<96x96xf32> to vector<96x16xf32>
    %65 = vector.extract_strided_slice %39 {offsets = [0, 48], sizes = [96, 16], strides = [1, 1]} : vector<96x96xf32> to vector<96x16xf32>
    %66 = vector.extract_strided_slice %39 {offsets = [0, 80], sizes = [96, 16], strides = [1, 1]} : vector<96x96xf32> to vector<96x16xf32>
    %cst_39 = arith.constant dense<0.000000e+00> : vector<96x96xf32>
    %67 = tpu.matmul %64, %65, %cst_39 {dimension_numbers = #tpu.dot_dimension_numbers<[1], [1], [0], [0], [0, 0, 1, 0], [], []>} : vector<96x16xf32>, vector<96x16xf32>, vector<96x96xf32> -> vector<96x96xf32>
    %68 = arith.addf %67, %6 : vector<96x96xf32>
    %cst_40 = arith.constant dense<0xFF800000> : vector<96xf32>
    %69 = vector.multi_reduction <maximumf>, %68, %cst_40 [1] : vector<96x96xf32> to vector<96xf32>
    %70 = vector.shape_cast %69 : vector<96xf32> to vector<96x1xf32>
    %71 = vector.broadcast %70 : vector<96x1xf32> to vector<96x96xf32>
    %72 = arith.subf %68, %71 : vector<96x96xf32>
    %73 = math.exp %72 : vector<96x96xf32>
    %cst_41 = arith.constant dense<0.000000e+00> : vector<96xf32>
    %74 = vector.multi_reduction <add>, %73, %cst_41 [1] : vector<96x96xf32> to vector<96xf32>
    %75 = vector.shape_cast %74 : vector<96xf32> to vector<96x1xf32>
    %76 = vector.broadcast %75 : vector<96x1xf32> to vector<96x96xf32>
    %77 = arith.divf %73, %76 : vector<96x96xf32>
    %cst_42 = arith.constant dense<0.000000e+00> : vector<96x16xf32>
    %78 = tpu.matmul %77, %66, %cst_42 {dimension_numbers = #tpu.dot_dimension_numbers<[1], [0], [0], [1], [0, 0, 1, 1], [], []>} : vector<96x96xf32>, vector<96x16xf32>, vector<96x16xf32> -> vector<96x16xf32>
    %c0_43 = arith.constant 0 : index
    %c1 = arith.constant 1 : index
    %c0_44 = arith.constant 0 : index
    %c0_45 = arith.constant 0 : index
    %79 = vector.load %arg9[%c0_43, %c1, %c0_44, %c0_45] : memref<2x2x16x32xf32, #tpu.memory_space<vmem>>, vector<1x1x16x32xf32>
    %80 = vector.shape_cast %79 : vector<1x1x16x32xf32> to vector<16x32xf32>
    %cst_46 = arith.constant dense<0.000000e+00> : vector<96x32xf32>
    %81 = tpu.matmul %78, %80, %cst_46 {dimension_numbers = #tpu.dot_dimension_numbers<[1], [0], [0], [1], [0, 0, 1, 1], [], []>} : vector<96x16xf32>, vector<16x32xf32>, vector<96x32xf32> -> vector<96x32xf32>
    %82 = arith.addf %63, %81 : vector<96x32xf32>
    %83 = arith.addf %5, %82 : vector<96x32xf32>
    %c0_47 = arith.constant 0 : index
    %c0_48 = arith.constant 0 : index
    %c0_49 = arith.constant 0 : index
    %84 = vector.load %arg11[%c0_47, %c0_48, %c0_49] : memref<2x1x32xf32, #tpu.memory_space<vmem>>, vector<1x1x32xf32>
    %85 = vector.shape_cast %84 : vector<1x1x32xf32> to vector<1x32xf32>
    %c0_50 = arith.constant 0 : index
    %c0_51 = arith.constant 0 : index
    %c0_52 = arith.constant 0 : index
    %86 = vector.load %arg12[%c0_50, %c0_51, %c0_52] : memref<2x1x32xf32, #tpu.memory_space<vmem>>, vector<1x1x32xf32>
    %87 = vector.shape_cast %86 : vector<1x1x32xf32> to vector<1x32xf32>
    %cst_53 = arith.constant dense<0.000000e+00> : vector<96xf32>
    %88 = vector.multi_reduction <add>, %83, %cst_53 [1] : vector<96x32xf32> to vector<96xf32>
    %89 = vector.shape_cast %88 : vector<96xf32> to vector<96x1xf32>
    %cst_54 = arith.constant 3.200000e+01 : f32
    %90 = vector.broadcast %cst_54 : f32 to vector<96x1xf32>
    %91 = arith.divf %89, %90 : vector<96x1xf32>
    %92 = vector.broadcast %91 : vector<96x1xf32> to vector<96x32xf32>
    %93 = arith.subf %83, %92 : vector<96x32xf32>
    %94 = arith.mulf %93, %93 : vector<96x32xf32>
    %cst_55 = arith.constant dense<0.000000e+00> : vector<96xf32>
    %95 = vector.multi_reduction <add>, %94, %cst_55 [1] : vector<96x32xf32> to vector<96xf32>
    %96 = vector.shape_cast %95 : vector<96xf32> to vector<96x1xf32>
    %cst_56 = arith.constant 3.200000e+01 : f32
    %97 = vector.broadcast %cst_56 : f32 to vector<96x1xf32>
    %98 = arith.divf %96, %97 : vector<96x1xf32>
    %99 = vector.broadcast %91 : vector<96x1xf32> to vector<96x32xf32>
    %100 = arith.subf %83, %99 : vector<96x32xf32>
    %cst_57 = arith.constant 9.99999997E-7 : f32
    %101 = vector.broadcast %cst_57 : f32 to vector<96x1xf32>
    %102 = arith.addf %98, %101 : vector<96x1xf32>
    %103 = math.rsqrt %102 : vector<96x1xf32>
    %104 = vector.broadcast %103 : vector<96x1xf32> to vector<96x32xf32>
    %105 = arith.mulf %100, %104 : vector<96x32xf32>
    %106 = vector.broadcast %85 : vector<1x32xf32> to vector<96x32xf32>
    %107 = arith.mulf %105, %106 : vector<96x32xf32>
    %108 = vector.broadcast %87 : vector<1x32xf32> to vector<96x32xf32>
    %109 = arith.addf %107, %108 : vector<96x32xf32>
    %c0_58 = arith.constant 0 : index
    %c0_59 = arith.constant 0 : index
    %c0_60 = arith.constant 0 : index
    %110 = vector.load %arg13[%c0_58, %c0_59, %c0_60] : memref<2x32x128xf32, #tpu.memory_space<vmem>>, vector<1x32x128xf32>
    %111 = vector.shape_cast %110 : vector<1x32x128xf32> to vector<32x128xf32>
    %cst_61 = arith.constant dense<0.000000e+00> : vector<96x128xf32>
    %112 = tpu.matmul %109, %111, %cst_61 {dimension_numbers = #tpu.dot_dimension_numbers<[1], [0], [0], [1], [0, 0, 1, 1], [], []>} : vector<96x32xf32>, vector<32x128xf32>, vector<96x128xf32> -> vector<96x128xf32>
    %c0_62 = arith.constant 0 : index
    %c0_63 = arith.constant 0 : index
    %c0_64 = arith.constant 0 : index
    %113 = vector.load %arg14[%c0_62, %c0_63, %c0_64] : memref<2x1x128xf32, #tpu.memory_space<vmem>>, vector<1x1x128xf32>
    %114 = vector.shape_cast %113 : vector<1x1x128xf32> to vector<1x128xf32>
    %115 = vector.broadcast %114 : vector<1x128xf32> to vector<96x128xf32>
    %116 = arith.addf %112, %115 : vector<96x128xf32>
    %cst_65 = arith.constant 5.000000e-01 : f32
    %117 = vector.broadcast %cst_65 : f32 to vector<96x128xf32>
    %118 = arith.mulf %117, %116 : vector<96x128xf32>
    %cst_66 = arith.constant 0.707106769 : f32
    %119 = vector.broadcast %cst_66 : f32 to vector<96x128xf32>
    %120 = arith.mulf %116, %119 : vector<96x128xf32>
    %cst_67 = arith.constant 0.000000e+00 : f32
    %121 = vector.broadcast %cst_67 : f32 to vector<96x128xf32>
    %122 = arith.cmpf oge, %120, %121 : vector<96x128xf32>
    %cst_68 = arith.constant 1.000000e+00 : f32
    %cst_69 = arith.constant -1.000000e+00 : f32
    %123 = vector.broadcast %cst_68 : f32 to vector<96x128xf32>
    %124 = vector.broadcast %cst_69 : f32 to vector<96x128xf32>
    %125 = arith.select %122, %123, %124 : vector<96x128xi1>, vector<96x128xf32>
    %126 = math.absf %120 : vector<96x128xf32>
    %cst_70 = arith.constant 0.327591091 : f32
    %127 = vector.broadcast %cst_70 : f32 to vector<96x128xf32>
    %128 = arith.mulf %127, %126 : vector<96x128xf32>
    %cst_71 = arith.constant 1.000000e+00 : f32
    %129 = vector.broadcast %cst_71 : f32 to vector<96x128xf32>
    %130 = arith.addf %129, %128 : vector<96x128xf32>
    %cst_72 = arith.constant 1.000000e+00 : f32
    %131 = vector.broadcast %cst_72 : f32 to vector<96x128xf32>
    %132 = arith.divf %131, %130 : vector<96x128xf32>
    %cst_73 = arith.constant 1.06140542 : f32
    %133 = vector.broadcast %cst_73 : f32 to vector<96x128xf32>
    %134 = arith.mulf %133, %132 : vector<96x128xf32>
    %cst_74 = arith.constant -1.45315206 : f32
    %135 = vector.broadcast %cst_74 : f32 to vector<96x128xf32>
    %136 = arith.addf %134, %135 : vector<96x128xf32>
    %137 = arith.mulf %136, %132 : vector<96x128xf32>
    %cst_75 = arith.constant 1.42141378 : f32
    %138 = vector.broadcast %cst_75 : f32 to vector<96x128xf32>
    %139 = arith.addf %137, %138 : vector<96x128xf32>
    %140 = arith.mulf %139, %132 : vector<96x128xf32>
    %cst_76 = arith.constant -0.284496725 : f32
    %141 = vector.broadcast %cst_76 : f32 to vector<96x128xf32>
    %142 = arith.addf %140, %141 : vector<96x128xf32>
    %143 = arith.mulf %142, %132 : vector<96x128xf32>
    %cst_77 = arith.constant 0.254829586 : f32
    %144 = vector.broadcast %cst_77 : f32 to vector<96x128xf32>
    %145 = arith.addf %143, %144 : vector<96x128xf32>
    %146 = arith.mulf %145, %132 : vector<96x128xf32>
    %cst_78 = arith.constant 0.000000e+00 : f32
    %147 = vector.broadcast %cst_78 : f32 to vector<96x128xf32>
    %148 = arith.subf %147, %126 : vector<96x128xf32>
    %149 = arith.mulf %148, %126 : vector<96x128xf32>
    %150 = math.exp %149 : vector<96x128xf32>
    %151 = arith.mulf %146, %150 : vector<96x128xf32>
    %cst_79 = arith.constant 1.000000e+00 : f32
    %152 = vector.broadcast %cst_79 : f32 to vector<96x128xf32>
    %153 = arith.subf %152, %151 : vector<96x128xf32>
    %154 = arith.mulf %125, %153 : vector<96x128xf32>
    %cst_80 = arith.constant 1.000000e+00 : f32
    %155 = vector.broadcast %cst_80 : f32 to vector<96x128xf32>
    %156 = arith.addf %155, %154 : vector<96x128xf32>
    %157 = arith.mulf %118, %156 : vector<96x128xf32>
    %c0_81 = arith.constant 0 : index
    %c0_82 = arith.constant 0 : index
    %c0_83 = arith.constant 0 : index
    %158 = vector.load %arg15[%c0_81, %c0_82, %c0_83] : memref<2x128x32xf32, #tpu.memory_space<vmem>>, vector<1x128x32xf32>
    %159 = vector.shape_cast %158 : vector<1x128x32xf32> to vector<128x32xf32>
    %cst_84 = arith.constant dense<0.000000e+00> : vector<96x32xf32>
    %160 = tpu.matmul %157, %159, %cst_84 {dimension_numbers = #tpu.dot_dimension_numbers<[1], [0], [0], [1], [0, 0, 1, 1], [], []>} : vector<96x128xf32>, vector<128x32xf32>, vector<96x32xf32> -> vector<96x32xf32>
    %161 = arith.addf %83, %160 : vector<96x32xf32>
    %c0_85 = arith.constant 0 : index
    %c0_86 = arith.constant 0 : index
    %c0_87 = arith.constant 0 : index
    %162 = vector.load %arg16[%c0_85, %c0_86, %c0_87] : memref<2x1x32xf32, #tpu.memory_space<vmem>>, vector<1x1x32xf32>
    %163 = vector.shape_cast %162 : vector<1x1x32xf32> to vector<1x32xf32>
    %164 = vector.broadcast %163 : vector<1x32xf32> to vector<96x32xf32>
    %165 = arith.addf %161, %164 : vector<96x32xf32>
    %c1_88 = arith.constant 1 : index
    %c0_89 = arith.constant 0 : index
    %c0_90 = arith.constant 0 : index
    %166 = vector.load %arg5[%c1_88, %c0_89, %c0_90] : memref<2x1x32xf32, #tpu.memory_space<vmem>>, vector<1x1x32xf32>
    %167 = vector.shape_cast %166 : vector<1x1x32xf32> to vector<1x32xf32>
    %c1_91 = arith.constant 1 : index
    %c0_92 = arith.constant 0 : index
    %c0_93 = arith.constant 0 : index
    %168 = vector.load %arg6[%c1_91, %c0_92, %c0_93] : memref<2x1x32xf32, #tpu.memory_space<vmem>>, vector<1x1x32xf32>
    %169 = vector.shape_cast %168 : vector<1x1x32xf32> to vector<1x32xf32>
    %cst_94 = arith.constant dense<0.000000e+00> : vector<96xf32>
    %170 = vector.multi_reduction <add>, %165, %cst_94 [1] : vector<96x32xf32> to vector<96xf32>
    %171 = vector.shape_cast %170 : vector<96xf32> to vector<96x1xf32>
    %cst_95 = arith.constant 3.200000e+01 : f32
    %172 = vector.broadcast %cst_95 : f32 to vector<96x1xf32>
    %173 = arith.divf %171, %172 : vector<96x1xf32>
    %174 = vector.broadcast %173 : vector<96x1xf32> to vector<96x32xf32>
    %175 = arith.subf %165, %174 : vector<96x32xf32>
    %176 = arith.mulf %175, %175 : vector<96x32xf32>
    %cst_96 = arith.constant dense<0.000000e+00> : vector<96xf32>
    %177 = vector.multi_reduction <add>, %176, %cst_96 [1] : vector<96x32xf32> to vector<96xf32>
    %178 = vector.shape_cast %177 : vector<96xf32> to vector<96x1xf32>
    %cst_97 = arith.constant 3.200000e+01 : f32
    %179 = vector.broadcast %cst_97 : f32 to vector<96x1xf32>
    %180 = arith.divf %178, %179 : vector<96x1xf32>
    %181 = vector.broadcast %173 : vector<96x1xf32> to vector<96x32xf32>
    %182 = arith.subf %165, %181 : vector<96x32xf32>
    %cst_98 = arith.constant 9.99999997E-7 : f32
    %183 = vector.broadcast %cst_98 : f32 to vector<96x1xf32>
    %184 = arith.addf %180, %183 : vector<96x1xf32>
    %185 = math.rsqrt %184 : vector<96x1xf32>
    %186 = vector.broadcast %185 : vector<96x1xf32> to vector<96x32xf32>
    %187 = arith.mulf %182, %186 : vector<96x32xf32>
    %188 = vector.broadcast %167 : vector<1x32xf32> to vector<96x32xf32>
    %189 = arith.mulf %187, %188 : vector<96x32xf32>
    %190 = vector.broadcast %169 : vector<1x32xf32> to vector<96x32xf32>
    %191 = arith.addf %189, %190 : vector<96x32xf32>
    %c1_99 = arith.constant 1 : index
    %c0_100 = arith.constant 0 : index
    %c0_101 = arith.constant 0 : index
    %192 = vector.load %arg7[%c1_99, %c0_100, %c0_101] : memref<2x32x96xf32, #tpu.memory_space<vmem>>, vector<1x32x96xf32>
    %193 = vector.shape_cast %192 : vector<1x32x96xf32> to vector<32x96xf32>
    %cst_102 = arith.constant dense<0.000000e+00> : vector<96x96xf32>
    %194 = tpu.matmul %191, %193, %cst_102 {dimension_numbers = #tpu.dot_dimension_numbers<[1], [0], [0], [1], [0, 0, 1, 1], [], []>} : vector<96x32xf32>, vector<32x96xf32>, vector<96x96xf32> -> vector<96x96xf32>
    %c1_103 = arith.constant 1 : index
    %c0_104 = arith.constant 0 : index
    %c0_105 = arith.constant 0 : index
    %195 = vector.load %arg8[%c1_103, %c0_104, %c0_105] : memref<2x1x96xf32, #tpu.memory_space<vmem>>, vector<1x1x96xf32>
    %196 = vector.shape_cast %195 : vector<1x1x96xf32> to vector<1x96xf32>
    %197 = vector.broadcast %196 : vector<1x96xf32> to vector<96x96xf32>
    %198 = arith.addf %194, %197 : vector<96x96xf32>
    %cst_106 = arith.constant 0.000000e+00 : f32
    %199 = vector.broadcast %cst_106 : f32 to vector<96x32xf32>
    %c1_107 = arith.constant 1 : index
    %c0_108 = arith.constant 0 : index
    %c0_109 = arith.constant 0 : index
    %200 = vector.load %arg10[%c1_107, %c0_108, %c0_109] : memref<2x1x32xf32, #tpu.memory_space<vmem>>, vector<1x1x32xf32>
    %201 = vector.shape_cast %200 : vector<1x1x32xf32> to vector<1x32xf32>
    %202 = vector.broadcast %201 : vector<1x32xf32> to vector<96x32xf32>
    %203 = arith.addf %199, %202 : vector<96x32xf32>
    %204 = vector.extract_strided_slice %198 {offsets = [0, 0], sizes = [96, 16], strides = [1, 1]} : vector<96x96xf32> to vector<96x16xf32>
    %205 = vector.extract_strided_slice %198 {offsets = [0, 32], sizes = [96, 16], strides = [1, 1]} : vector<96x96xf32> to vector<96x16xf32>
    %206 = vector.extract_strided_slice %198 {offsets = [0, 64], sizes = [96, 16], strides = [1, 1]} : vector<96x96xf32> to vector<96x16xf32>
    %cst_110 = arith.constant dense<0.000000e+00> : vector<96x96xf32>
    %207 = tpu.matmul %204, %205, %cst_110 {dimension_numbers = #tpu.dot_dimension_numbers<[1], [1], [0], [0], [0, 0, 1, 0], [], []>} : vector<96x16xf32>, vector<96x16xf32>, vector<96x96xf32> -> vector<96x96xf32>
    %208 = arith.addf %207, %6 : vector<96x96xf32>
    %cst_111 = arith.constant dense<0xFF800000> : vector<96xf32>
    %209 = vector.multi_reduction <maximumf>, %208, %cst_111 [1] : vector<96x96xf32> to vector<96xf32>
    %210 = vector.shape_cast %209 : vector<96xf32> to vector<96x1xf32>
    %211 = vector.broadcast %210 : vector<96x1xf32> to vector<96x96xf32>
    %212 = arith.subf %208, %211 : vector<96x96xf32>
    %213 = math.exp %212 : vector<96x96xf32>
    %cst_112 = arith.constant dense<0.000000e+00> : vector<96xf32>
    %214 = vector.multi_reduction <add>, %213, %cst_112 [1] : vector<96x96xf32> to vector<96xf32>
    %215 = vector.shape_cast %214 : vector<96xf32> to vector<96x1xf32>
    %216 = vector.broadcast %215 : vector<96x1xf32> to vector<96x96xf32>
    %217 = arith.divf %213, %216 : vector<96x96xf32>
    %cst_113 = arith.constant dense<0.000000e+00> : vector<96x16xf32>
    %218 = tpu.matmul %217, %206, %cst_113 {dimension_numbers = #tpu.dot_dimension_numbers<[1], [0], [0], [1], [0, 0, 1, 1], [], []>} : vector<96x96xf32>, vector<96x16xf32>, vector<96x16xf32> -> vector<96x16xf32>
    %c1_114 = arith.constant 1 : index
    %c0_115 = arith.constant 0 : index
    %c0_116 = arith.constant 0 : index
    %c0_117 = arith.constant 0 : index
    %219 = vector.load %arg9[%c1_114, %c0_115, %c0_116, %c0_117] : memref<2x2x16x32xf32, #tpu.memory_space<vmem>>, vector<1x1x16x32xf32>
    %220 = vector.shape_cast %219 : vector<1x1x16x32xf32> to vector<16x32xf32>
    %cst_118 = arith.constant dense<0.000000e+00> : vector<96x32xf32>
    %221 = tpu.matmul %218, %220, %cst_118 {dimension_numbers = #tpu.dot_dimension_numbers<[1], [0], [0], [1], [0, 0, 1, 1], [], []>} : vector<96x16xf32>, vector<16x32xf32>, vector<96x32xf32> -> vector<96x32xf32>
    %222 = arith.addf %203, %221 : vector<96x32xf32>
    %223 = vector.extract_strided_slice %198 {offsets = [0, 16], sizes = [96, 16], strides = [1, 1]} : vector<96x96xf32> to vector<96x16xf32>
    %224 = vector.extract_strided_slice %198 {offsets = [0, 48], sizes = [96, 16], strides = [1, 1]} : vector<96x96xf32> to vector<96x16xf32>
    %225 = vector.extract_strided_slice %198 {offsets = [0, 80], sizes = [96, 16], strides = [1, 1]} : vector<96x96xf32> to vector<96x16xf32>
    %cst_119 = arith.constant dense<0.000000e+00> : vector<96x96xf32>
    %226 = tpu.matmul %223, %224, %cst_119 {dimension_numbers = #tpu.dot_dimension_numbers<[1], [1], [0], [0], [0, 0, 1, 0], [], []>} : vector<96x16xf32>, vector<96x16xf32>, vector<96x96xf32> -> vector<96x96xf32>
    %227 = arith.addf %226, %6 : vector<96x96xf32>
    %cst_120 = arith.constant dense<0xFF800000> : vector<96xf32>
    %228 = vector.multi_reduction <maximumf>, %227, %cst_120 [1] : vector<96x96xf32> to vector<96xf32>
    %229 = vector.shape_cast %228 : vector<96xf32> to vector<96x1xf32>
    %230 = vector.broadcast %229 : vector<96x1xf32> to vector<96x96xf32>
    %231 = arith.subf %227, %230 : vector<96x96xf32>
    %232 = math.exp %231 : vector<96x96xf32>
    %cst_121 = arith.constant dense<0.000000e+00> : vector<96xf32>
    %233 = vector.multi_reduction <add>, %232, %cst_121 [1] : vector<96x96xf32> to vector<96xf32>
    %234 = vector.shape_cast %233 : vector<96xf32> to vector<96x1xf32>
    %235 = vector.broadcast %234 : vector<96x1xf32> to vector<96x96xf32>
    %236 = arith.divf %232, %235 : vector<96x96xf32>
    %cst_122 = arith.constant dense<0.000000e+00> : vector<96x16xf32>
    %237 = tpu.matmul %236, %225, %cst_122 {dimension_numbers = #tpu.dot_dimension_numbers<[1], [0], [0], [1], [0, 0, 1, 1], [], []>} : vector<96x96xf32>, vector<96x16xf32>, vector<96x16xf32> -> vector<96x16xf32>
    %c1_123 = arith.constant 1 : index
    %c1_124 = arith.constant 1 : index
    %c0_125 = arith.constant 0 : index
    %c0_126 = arith.constant 0 : index
    %238 = vector.load %arg9[%c1_123, %c1_124, %c0_125, %c0_126] : memref<2x2x16x32xf32, #tpu.memory_space<vmem>>, vector<1x1x16x32xf32>
    %239 = vector.shape_cast %238 : vector<1x1x16x32xf32> to vector<16x32xf32>
    %cst_127 = arith.constant dense<0.000000e+00> : vector<96x32xf32>
    %240 = tpu.matmul %237, %239, %cst_127 {dimension_numbers = #tpu.dot_dimension_numbers<[1], [0], [0], [1], [0, 0, 1, 1], [], []>} : vector<96x16xf32>, vector<16x32xf32>, vector<96x32xf32> -> vector<96x32xf32>
    %241 = arith.addf %222, %240 : vector<96x32xf32>
    %242 = arith.addf %165, %241 : vector<96x32xf32>
    %c1_128 = arith.constant 1 : index
    %c0_129 = arith.constant 0 : index
    %c0_130 = arith.constant 0 : index
    %243 = vector.load %arg11[%c1_128, %c0_129, %c0_130] : memref<2x1x32xf32, #tpu.memory_space<vmem>>, vector<1x1x32xf32>
    %244 = vector.shape_cast %243 : vector<1x1x32xf32> to vector<1x32xf32>
    %c1_131 = arith.constant 1 : index
    %c0_132 = arith.constant 0 : index
    %c0_133 = arith.constant 0 : index
    %245 = vector.load %arg12[%c1_131, %c0_132, %c0_133] : memref<2x1x32xf32, #tpu.memory_space<vmem>>, vector<1x1x32xf32>
    %246 = vector.shape_cast %245 : vector<1x1x32xf32> to vector<1x32xf32>
    %cst_134 = arith.constant dense<0.000000e+00> : vector<96xf32>
    %247 = vector.multi_reduction <add>, %242, %cst_134 [1] : vector<96x32xf32> to vector<96xf32>
    %248 = vector.shape_cast %247 : vector<96xf32> to vector<96x1xf32>
    %cst_135 = arith.constant 3.200000e+01 : f32
    %249 = vector.broadcast %cst_135 : f32 to vector<96x1xf32>
    %250 = arith.divf %248, %249 : vector<96x1xf32>
    %251 = vector.broadcast %250 : vector<96x1xf32> to vector<96x32xf32>
    %252 = arith.subf %242, %251 : vector<96x32xf32>
    %253 = arith.mulf %252, %252 : vector<96x32xf32>
    %cst_136 = arith.constant dense<0.000000e+00> : vector<96xf32>
    %254 = vector.multi_reduction <add>, %253, %cst_136 [1] : vector<96x32xf32> to vector<96xf32>
    %255 = vector.shape_cast %254 : vector<96xf32> to vector<96x1xf32>
    %cst_137 = arith.constant 3.200000e+01 : f32
    %256 = vector.broadcast %cst_137 : f32 to vector<96x1xf32>
    %257 = arith.divf %255, %256 : vector<96x1xf32>
    %258 = vector.broadcast %250 : vector<96x1xf32> to vector<96x32xf32>
    %259 = arith.subf %242, %258 : vector<96x32xf32>
    %cst_138 = arith.constant 9.99999997E-7 : f32
    %260 = vector.broadcast %cst_138 : f32 to vector<96x1xf32>
    %261 = arith.addf %257, %260 : vector<96x1xf32>
    %262 = math.rsqrt %261 : vector<96x1xf32>
    %263 = vector.broadcast %262 : vector<96x1xf32> to vector<96x32xf32>
    %264 = arith.mulf %259, %263 : vector<96x32xf32>
    %265 = vector.broadcast %244 : vector<1x32xf32> to vector<96x32xf32>
    %266 = arith.mulf %264, %265 : vector<96x32xf32>
    %267 = vector.broadcast %246 : vector<1x32xf32> to vector<96x32xf32>
    %268 = arith.addf %266, %267 : vector<96x32xf32>
    %c1_139 = arith.constant 1 : index
    %c0_140 = arith.constant 0 : index
    %c0_141 = arith.constant 0 : index
    %269 = vector.load %arg13[%c1_139, %c0_140, %c0_141] : memref<2x32x128xf32, #tpu.memory_space<vmem>>, vector<1x32x128xf32>
    %270 = vector.shape_cast %269 : vector<1x32x128xf32> to vector<32x128xf32>
    %cst_142 = arith.constant dense<0.000000e+00> : vector<96x128xf32>
    %271 = tpu.matmul %268, %270, %cst_142 {dimension_numbers = #tpu.dot_dimension_numbers<[1], [0], [0], [1], [0, 0, 1, 1], [], []>} : vector<96x32xf32>, vector<32x128xf32>, vector<96x128xf32> -> vector<96x128xf32>
    %c1_143 = arith.constant 1 : index
    %c0_144 = arith.constant 0 : index
    %c0_145 = arith.constant 0 : index
    %272 = vector.load %arg14[%c1_143, %c0_144, %c0_145] : memref<2x1x128xf32, #tpu.memory_space<vmem>>, vector<1x1x128xf32>
    %273 = vector.shape_cast %272 : vector<1x1x128xf32> to vector<1x128xf32>
    %274 = vector.broadcast %273 : vector<1x128xf32> to vector<96x128xf32>
    %275 = arith.addf %271, %274 : vector<96x128xf32>
    %cst_146 = arith.constant 5.000000e-01 : f32
    %276 = vector.broadcast %cst_146 : f32 to vector<96x128xf32>
    %277 = arith.mulf %276, %275 : vector<96x128xf32>
    %cst_147 = arith.constant 0.707106769 : f32
    %278 = vector.broadcast %cst_147 : f32 to vector<96x128xf32>
    %279 = arith.mulf %275, %278 : vector<96x128xf32>
    %cst_148 = arith.constant 0.000000e+00 : f32
    %280 = vector.broadcast %cst_148 : f32 to vector<96x128xf32>
    %281 = arith.cmpf oge, %279, %280 : vector<96x128xf32>
    %cst_149 = arith.constant 1.000000e+00 : f32
    %cst_150 = arith.constant -1.000000e+00 : f32
    %282 = vector.broadcast %cst_149 : f32 to vector<96x128xf32>
    %283 = vector.broadcast %cst_150 : f32 to vector<96x128xf32>
    %284 = arith.select %281, %282, %283 : vector<96x128xi1>, vector<96x128xf32>
    %285 = math.absf %279 : vector<96x128xf32>
    %cst_151 = arith.constant 0.327591091 : f32
    %286 = vector.broadcast %cst_151 : f32 to vector<96x128xf32>
    %287 = arith.mulf %286, %285 : vector<96x128xf32>
    %cst_152 = arith.constant 1.000000e+00 : f32
    %288 = vector.broadcast %cst_152 : f32 to vector<96x128xf32>
    %289 = arith.addf %288, %287 : vector<96x128xf32>
    %cst_153 = arith.constant 1.000000e+00 : f32
    %290 = vector.broadcast %cst_153 : f32 to vector<96x128xf32>
    %291 = arith.divf %290, %289 : vector<96x128xf32>
    %cst_154 = arith.constant 1.06140542 : f32
    %292 = vector.broadcast %cst_154 : f32 to vector<96x128xf32>
    %293 = arith.mulf %292, %291 : vector<96x128xf32>
    %cst_155 = arith.constant -1.45315206 : f32
    %294 = vector.broadcast %cst_155 : f32 to vector<96x128xf32>
    %295 = arith.addf %293, %294 : vector<96x128xf32>
    %296 = arith.mulf %295, %291 : vector<96x128xf32>
    %cst_156 = arith.constant 1.42141378 : f32
    %297 = vector.broadcast %cst_156 : f32 to vector<96x128xf32>
    %298 = arith.addf %296, %297 : vector<96x128xf32>
    %299 = arith.mulf %298, %291 : vector<96x128xf32>
    %cst_157 = arith.constant -0.284496725 : f32
    %300 = vector.broadcast %cst_157 : f32 to vector<96x128xf32>
    %301 = arith.addf %299, %300 : vector<96x128xf32>
    %302 = arith.mulf %301, %291 : vector<96x128xf32>
    %cst_158 = arith.constant 0.254829586 : f32
    %303 = vector.broadcast %cst_158 : f32 to vector<96x128xf32>
    %304 = arith.addf %302, %303 : vector<96x128xf32>
    %305 = arith.mulf %304, %291 : vector<96x128xf32>
    %cst_159 = arith.constant 0.000000e+00 : f32
    %306 = vector.broadcast %cst_159 : f32 to vector<96x128xf32>
    %307 = arith.subf %306, %285 : vector<96x128xf32>
    %308 = arith.mulf %307, %285 : vector<96x128xf32>
    %309 = math.exp %308 : vector<96x128xf32>
    %310 = arith.mulf %305, %309 : vector<96x128xf32>
    %cst_160 = arith.constant 1.000000e+00 : f32
    %311 = vector.broadcast %cst_160 : f32 to vector<96x128xf32>
    %312 = arith.subf %311, %310 : vector<96x128xf32>
    %313 = arith.mulf %284, %312 : vector<96x128xf32>
    %cst_161 = arith.constant 1.000000e+00 : f32
    %314 = vector.broadcast %cst_161 : f32 to vector<96x128xf32>
    %315 = arith.addf %314, %313 : vector<96x128xf32>
    %316 = arith.mulf %277, %315 : vector<96x128xf32>
    %c1_162 = arith.constant 1 : index
    %c0_163 = arith.constant 0 : index
    %c0_164 = arith.constant 0 : index
    %317 = vector.load %arg15[%c1_162, %c0_163, %c0_164] : memref<2x128x32xf32, #tpu.memory_space<vmem>>, vector<1x128x32xf32>
    %318 = vector.shape_cast %317 : vector<1x128x32xf32> to vector<128x32xf32>
    %cst_165 = arith.constant dense<0.000000e+00> : vector<96x32xf32>
    %319 = tpu.matmul %316, %318, %cst_165 {dimension_numbers = #tpu.dot_dimension_numbers<[1], [0], [0], [1], [0, 0, 1, 1], [], []>} : vector<96x128xf32>, vector<128x32xf32>, vector<96x32xf32> -> vector<96x32xf32>
    %320 = arith.addf %242, %319 : vector<96x32xf32>
    %c1_166 = arith.constant 1 : index
    %c0_167 = arith.constant 0 : index
    %c0_168 = arith.constant 0 : index
    %321 = vector.load %arg16[%c1_166, %c0_167, %c0_168] : memref<2x1x32xf32, #tpu.memory_space<vmem>>, vector<1x1x32xf32>
    %322 = vector.shape_cast %321 : vector<1x1x32xf32> to vector<1x32xf32>
    %323 = vector.broadcast %322 : vector<1x32xf32> to vector<96x32xf32>
    %324 = arith.addf %320, %323 : vector<96x32xf32>
    %c0_169 = arith.constant 0 : index
    %c0_170 = arith.constant 0 : index
    %325 = vector.load %arg17[%c0_169, %c0_170] : memref<1x32xf32, #tpu.memory_space<vmem>>, vector<1x32xf32>
    %c0_171 = arith.constant 0 : index
    %c0_172 = arith.constant 0 : index
    %326 = vector.load %arg18[%c0_171, %c0_172] : memref<1x32xf32, #tpu.memory_space<vmem>>, vector<1x32xf32>
    %cst_173 = arith.constant dense<0.000000e+00> : vector<96xf32>
    %327 = vector.multi_reduction <add>, %324, %cst_173 [1] : vector<96x32xf32> to vector<96xf32>
    %328 = vector.shape_cast %327 : vector<96xf32> to vector<96x1xf32>
    %cst_174 = arith.constant 3.200000e+01 : f32
    %329 = vector.broadcast %cst_174 : f32 to vector<96x1xf32>
    %330 = arith.divf %328, %329 : vector<96x1xf32>
    %331 = vector.broadcast %330 : vector<96x1xf32> to vector<96x32xf32>
    %332 = arith.subf %324, %331 : vector<96x32xf32>
    %333 = arith.mulf %332, %332 : vector<96x32xf32>
    %cst_175 = arith.constant dense<0.000000e+00> : vector<96xf32>
    %334 = vector.multi_reduction <add>, %333, %cst_175 [1] : vector<96x32xf32> to vector<96xf32>
    %335 = vector.shape_cast %334 : vector<96xf32> to vector<96x1xf32>
    %cst_176 = arith.constant 3.200000e+01 : f32
    %336 = vector.broadcast %cst_176 : f32 to vector<96x1xf32>
    %337 = arith.divf %335, %336 : vector<96x1xf32>
    %338 = vector.broadcast %330 : vector<96x1xf32> to vector<96x32xf32>
    %339 = arith.subf %324, %338 : vector<96x32xf32>
    %cst_177 = arith.constant 9.99999997E-7 : f32
    %340 = vector.broadcast %cst_177 : f32 to vector<96x1xf32>
    %341 = arith.addf %337, %340 : vector<96x1xf32>
    %342 = math.rsqrt %341 : vector<96x1xf32>
    %343 = vector.broadcast %342 : vector<96x1xf32> to vector<96x32xf32>
    %344 = arith.mulf %339, %343 : vector<96x32xf32>
    %345 = vector.broadcast %325 : vector<1x32xf32> to vector<96x32xf32>
    %346 = arith.mulf %344, %345 : vector<96x32xf32>
    %347 = vector.broadcast %326 : vector<1x32xf32> to vector<96x32xf32>
    %348 = arith.addf %346, %347 : vector<96x32xf32>
    %349 = vector.shape_cast %348 : vector<96x32xf32> to vector<4x24x32xf32>
    %c0_178 = arith.constant 0 : index
    %c0_179 = arith.constant 0 : index
    %c0_180 = arith.constant 0 : index
    %350 = vector.load %arg19[%c0_178, %c0_179, %c0_180] : memref<4x24x32xf32, #tpu.memory_space<vmem>>, vector<4x24x32xf32>
    tpu.vector_store %arg19[%c0_178, %c0_179, %c0_180], %349 {strides = array<i32>} : memref<4x24x32xf32, #tpu.memory_space<vmem>>, vector<4x24x32xf32>,
    return
  }
  func.func @transform_0(%arg0: i32) -> (i32, i32, i32) {
    %c0_i32 = arith.constant 0 : i32
    %c0_i32_0 = arith.constant 0 : i32
    %c0_i32_1 = arith.constant 0 : i32
    return %arg0, %c0_i32, %c0_i32_0 : i32, i32, i32
  }
  func.func @transform_1(%arg0: i32) -> (i32, i32) {
    %c0_i32 = arith.constant 0 : i32
    %c0_i32_0 = arith.constant 0 : i32
    %c0_i32_1 = arith.constant 0 : i32
    return %c0_i32, %c0_i32_0 : i32, i32
  }
  func.func @transform_2(%arg0: i32) -> (i32, i32) {
    %c0_i32 = arith.constant 0 : i32
    %c0_i32_0 = arith.constant 0 : i32
    %c0_i32_1 = arith.constant 0 : i32
    return %c0_i32, %c0_i32_0 : i32, i32
  }
  func.func @transform_3(%arg0: i32) -> (i32, i32) {
    %c0_i32 = arith.constant 0 : i32
    %c0_i32_0 = arith.constant 0 : i32
    %c0_i32_1 = arith.constant 0 : i32
    return %c0_i32, %c0_i32_0 : i32, i32
  }
  func.func @transform_4(%arg0: i32) -> (i32, i32, i32) {
    %c0_i32 = arith.constant 0 : i32
    %c0_i32_0 = arith.constant 0 : i32
    %c0_i32_1 = arith.constant 0 : i32
    %c0_i32_2 = arith.constant 0 : i32
    return %c0_i32, %c0_i32_0, %c0_i32_1 : i32, i32, i32
  }
  func.func @transform_5(%arg0: i32) -> (i32, i32, i32) {
    %c0_i32 = arith.constant 0 : i32
    %c0_i32_0 = arith.constant 0 : i32
    %c0_i32_1 = arith.constant 0 : i32
    %c0_i32_2 = arith.constant 0 : i32
    return %c0_i32, %c0_i32_0, %c0_i32_1 : i32, i32, i32
  }
  func.func @transform_6(%arg0: i32) -> (i32, i32, i32) {
    %c0_i32 = arith.constant 0 : i32
    %c0_i32_0 = arith.constant 0 : i32
    %c0_i32_1 = arith.constant 0 : i32
    %c0_i32_2 = arith.constant 0 : i32
    return %c0_i32, %c0_i32_0, %c0_i32_1 : i32, i32, i32
  }
  func.func @transform_7(%arg0: i32) -> (i32, i32, i32) {
    %c0_i32 = arith.constant 0 : i32
    %c0_i32_0 = arith.constant 0 : i32
    %c0_i32_1 = arith.constant 0 : i32
    %c0_i32_2 = arith.constant 0 : i32
    return %c0_i32, %c0_i32_0, %c0_i32_1 : i32, i32, i32
  }
  func.func @transform_8(%arg0: i32) -> (i32, i32, i32, i32) {
    %c0_i32 = arith.constant 0 : i32
    %c0_i32_0 = arith.constant 0 : i32
    %c0_i32_1 = arith.constant 0 : i32
    %c0_i32_2 = arith.constant 0 : i32
    %c0_i32_3 = arith.constant 0 : i32
    return %c0_i32, %c0_i32_0, %c0_i32_1, %c0_i32_2 : i32, i32, i32, i32
  }
  func.func @transform_9(%arg0: i32) -> (i32, i32, i32) {
    %c0_i32 = arith.constant 0 : i32
    %c0_i32_0 = arith.constant 0 : i32
    %c0_i32_1 = arith.constant 0 : i32
    %c0_i32_2 = arith.constant 0 : i32
    return %c0_i32, %c0_i32_0, %c0_i32_1 : i32, i32, i32
  }
  func.func @transform_10(%arg0: i32) -> (i32, i32, i32) {
    %c0_i32 = arith.constant 0 : i32
    %c0_i32_0 = arith.constant 0 : i32
    %c0_i32_1 = arith.constant 0 : i32
    %c0_i32_2 = arith.constant 0 : i32
    return %c0_i32, %c0_i32_0, %c0_i32_1 : i32, i32, i32
  }
  func.func @transform_11(%arg0: i32) -> (i32, i32, i32) {
    %c0_i32 = arith.constant 0 : i32
    %c0_i32_0 = arith.constant 0 : i32
    %c0_i32_1 = arith.constant 0 : i32
    %c0_i32_2 = arith.constant 0 : i32
    return %c0_i32, %c0_i32_0, %c0_i32_1 : i32, i32, i32
  }
  func.func @transform_12(%arg0: i32) -> (i32, i32, i32) {
    %c0_i32 = arith.constant 0 : i32
    %c0_i32_0 = arith.constant 0 : i32
    %c0_i32_1 = arith.constant 0 : i32
    %c0_i32_2 = arith.constant 0 : i32
    return %c0_i32, %c0_i32_0, %c0_i32_1 : i32, i32, i32
  }
  func.func @transform_13(%arg0: i32) -> (i32, i32, i32) {
    %c0_i32 = arith.constant 0 : i32
    %c0_i32_0 = arith.constant 0 : i32
    %c0_i32_1 = arith.constant 0 : i32
    %c0_i32_2 = arith.constant 0 : i32
    return %c0_i32, %c0_i32_0, %c0_i32_1 : i32, i32, i32
  }
  func.func @transform_14(%arg0: i32) -> (i32, i32, i32) {
    %c0_i32 = arith.constant 0 : i32
    %c0_i32_0 = arith.constant 0 : i32
    %c0_i32_1 = arith.constant 0 : i32
    %c0_i32_2 = arith.constant 0 : i32
    return %c0_i32, %c0_i32_0, %c0_i32_1 : i32, i32, i32
  }
  func.func @transform_15(%arg0: i32) -> (i32, i32, i32) {
    %c0_i32 = arith.constant 0 : i32
    %c0_i32_0 = arith.constant 0 : i32
    %c0_i32_1 = arith.constant 0 : i32
    %c0_i32_2 = arith.constant 0 : i32
    return %c0_i32, %c0_i32_0, %c0_i32_1 : i32, i32, i32
  }
  func.func @transform_16(%arg0: i32) -> (i32, i32) {
    %c0_i32 = arith.constant 0 : i32
    %c0_i32_0 = arith.constant 0 : i32
    %c0_i32_1 = arith.constant 0 : i32
    return %c0_i32, %c0_i32_0 : i32, i32
  }
  func.func @transform_17(%arg0: i32) -> (i32, i32) {
    %c0_i32 = arith.constant 0 : i32
    %c0_i32_0 = arith.constant 0 : i32
    %c0_i32_1 = arith.constant 0 : i32
    return %c0_i32, %c0_i32_0 : i32, i32
  }
  func.func @transform_18(%arg0: i32) -> (i32, i32, i32) {
    %c0_i32 = arith.constant 0 : i32
    %c0_i32_0 = arith.constant 0 : i32
    %c0_i32_1 = arith.constant 0 : i32
    return %arg0, %c0_i32, %c0_i32_0 : i32, i32, i32
  }
}

</mosaic_0001>

<bundles_post_ra>
// kernel: tpu_custom_call.1
= control target key start
LH: loop header
LB: loop body
LE: loop exit
PB: predicated region body
PF: predicated region fallthrough
CT: control target
= control target key end

     0   :  { %s12179_s0 = inlined_call_operand.vmem [shape: f32[8,24,64], index: 0, kind: input, shape index: {}]   ;;  %s12180_s1 = inlined_call_operand.vmem [shape: f32[64,32], index: 1, kind: input, shape index: {}]   ;;  %s12181_s2 = inlined_call_operand.vmem [shape: f32[96,32], index: 2, kind: input, shape index: {}]   ;;  %s12182_s3 = inlined_call_operand.vmem [shape: f32[96,96], index: 3, kind: input, shape index: {}]   ;;  %s12183_s4 = inlined_call_operand.vmem [shape: f32[2,1,32], index: 4, kind: input, shape index: {}]   ;;  %s12184_s5 = inlined_call_operand.vmem [shape: f32[2,1,32], index: 5, kind: input, shape index: {}]   ;;  %s12185_s6 = inlined_call_operand.vmem [shape: f32[2,32,96], index: 6, kind: input, shape index: {}]   ;;  %s12186_s7 = inlined_call_operand.vmem [shape: f32[2,1,96], index: 7, kind: input, shape index: {}]   ;;  %s12187_s8 = inlined_call_operand.vmem [shape: f32[2,2,16,32], index: 8, kind: input, shape index: {}]   ;;  %s12188_s9 = inlined_call_operand.vmem [shape: f32[2,1,32], index: 9, kind: input, shape index: {}]   ;;  %s12189_s10 = inlined_call_operand.vmem [shape: f32[2,1,32], index: 10, kind: input, shape index: {}]   ;;  %s12190_s11 = inlined_call_operand.vmem [shape: f32[2,1,32], index: 11, kind: input, shape index: {}]   ;;  %s12191_s12 = inlined_call_operand.vmem [shape: f32[2,32,128], index: 12, kind: input, shape index: {}]   ;;  %s12192_s13 = inlined_call_operand.vmem [shape: f32[2,1,128], index: 13, kind: input, shape index: {}]   ;;  %s12193_s14 = inlined_call_operand.vmem [shape: f32[2,128,32], index: 14, kind: input, shape index: {}]   ;;  %s12194_s15 = inlined_call_operand.vmem [shape: f32[2,1,32], index: 15, kind: input, shape index: {}]   ;;  %s12195_s16 = inlined_call_operand.vmem [shape: f32[1,32], index: 16, kind: input, shape index: {}]   ;;  %s12196_s17 = inlined_call_operand.vmem [shape: f32[1,32], index: 17, kind: input, shape index: {}]   ;;  %s12197_s18 = inlined_call_operand.hbm [shape: f32[8,24,32], index: 18, kind: output, shape index: {}]  }
   0x1   :  { %12255 = sst [smem:[#allocation25_spill]] %s12179_s0 }
   0x2   :  { %12256 = sst [smem:[#allocation26_spill]] %s12180_s1 }
   0x3   :  { %12257 = sst [smem:[#allocation27_spill]] %s12181_s2 }
   0x4   :  { %12258 = sst [smem:[#allocation28_spill]] %s12182_s3 }
   0x5   :  { %23 = vsyncpa [#allocation3], 0 }
   0x6   :  { %25 = vsyncpa [#allocation3 + $0x1], 0  ;;  %s9134_s27 = smov 0   ;;  %s9136_s28 = smov 0  }
   0x7   :  { %s9138_s29 = smov 0   ;;  %s9140_s30 = smov 0  }
   0x8 LB: > { %12259 = sst [smem:[#allocation5_spill]] %s9016_s27  ;;  %s9155_s0 = sadd.s32 4294967295, %s9028_s30   ;;  %s9028_s30 = sphi %s9140_s30, %s12353_s30   ;;  %s9024_s29 = sphi %s9138_s29, %s12355_s29   ;;  %s9020_s28 = sphi %s9136_s28, %s12357_s28   ;;  %s9016_s27 = sphi %s9134_s27, %s12356_s27  }
   0x9   : > { %12260 = sst [smem:[#allocation6_spill]] %s9024_s29  ;;  %s6459_s19 = sadd.s32 4294967294, %s9028_s30  }
   0xa   : > { %12261 = sst [smem:[#allocation7_spill]] %s9028_s30  ;;  %s9159_s1 = sadd.s32 1, %s9028_s30  }
   0xb   : > { %12262 = sst [smem:[#allocation8_spill]] %s9159_s1  ;;  %s421_s20 = sadd.s32 1, %s9024_s29 }
   0xc   : > { %s418_s21 = ssub.s32 %s9028_s30, %s9159_s1  ;;  %p431_p0 = scmp.ne.s32.totalorder %s9024_s29, %s9020_s28 }
   0xd   : > { %p419_p1 = scmp.eq.s32.totalorder %s418_s21, 0  ;;  %p432_p2 = scmp.eq.s32.totalorder %s9155_s0, 1 }
   0xe   : > { %p437_p3 = scmp.ne.s32.totalorder %s9020_s28, %s9016_s27  ;;  %p438_p4 = scmp.eq.s32.totalorder %s6459_s19, 1 }
   0xf   : > { %s9170_s22 = scalar_select %p419_p1, %s9024_s29, %s421_s20  }
  0x10   : > { %p9172_p5 = por %p432_p2, %p431_p0  ;;  %p9176_p6 = por %p438_p4, %p437_p3 }
  0x11   : > { %12263 = sst [smem:[#allocation9_spill]] %s9170_s22  ;;  %p6462_p7 = scmp.ge.s32.totalorder %s9028_s30, 1 }
  0x12   : > { %s12265_s23 = scalar_select %p9176_p6, 1, 0 }
  0x13   : > { %p517_p8 = scmp.lt.s32.totalorder %s9028_s30, 3 }
  0x14   : > { %12266 = sst [smem:[#allocation10_spill]] %s12265_s23 }
  0x15   : > { %p518_p9 = pnand %p6462_p7, %p517_p8 }
  0x17   : > { %521 = sbr.rel (%p518_p9) target bundleno = 6184 (0x1828), region = 92 }
  0x1e   : > { %s12267_s26 = sld [smem:[#allocation26_spill]]  ;;  %s6463_s29 = sshll.u32 %s9155_s0, 2  ;;  %vm612_vm0 = vcmask 523264   ;;  %vm788_vm1 = vcmask 261120   ;;  %vm1198_vm2 = vcmask 130048   ;;  %vm1372_vm4 = vcmask 785408  }
  0x1f   : > { %p573_p10 = scmp.lt.s32.totalorder %s6463_s29, 7  ;;  %s12268_s24 = sld [smem:[#allocation25_spill]]  ;;  %vm9546_vm3 = vmpackc.low %vm1198_vm2, %vm1198_vm2 }
  0x20   : > { %s12280_s3 = sld [smem:[#allocation28_spill]]  ;;  %s12217_s20 = smov 64  }
  0x21   : > { %s12359_s29 = smov (!%p573_p10, %s6463_s29), 7  ;;  %s12215_s27 = smov 48  }
  0x22   : > { %s8257_s22 = smul.u32 24, %s12359_s29  ;;  %s12219_s29 = smov 112  }
  0x23   : > { %s12323_s25 = smov 64   ;;  %s569_s21 = sand.u32 1, %s9020_s28  }
  0x24   : > { %v592_v0 = vld [vmem:[%s12267_s26] sm:$0xff]  ;;  %v593_v1 = vld [vmem:[%s12267_s26 + $0x8] sm:$0xff]  ;;  %v594_v2 = vld [vmem:[%s12267_s26 + $0x10] sm:$0xff]  ;;  %s8258_s19 = smul.u32 1536, %s9155_s0  ;;  %s12138_s0 = scalar_lea.sflag [#allocation3], %s569_s21 }
  0x25   : > { %v7828_v3 = vpack.c.bf16 %v593_v1, %v592_v0  ;;  %v595_v4 = vld [vmem:[%s12267_s26 + $0x18] sm:$0xff]  ;;  %v596_v6 = vld [vmem:[%s12267_s26 + $0x20] sm:$0xff]  ;;  %v597_v7 = vld [vmem:[%s12267_s26 + $0x28] sm:$0xff]  ;;  %s577_s30 = scalar_lea.vmem %s12268_s24, %s8257_s22  ;;  %s12269_s22 = sld [smem:[#allocation27_spill]] }
  0x26   : > { %v7832_v5 = vpack.c.bf16 %v595_v4, %v594_v2  ;;  %v7836_v8 = vpack.c.bf16 %v597_v7, %v596_v6  ;;  %v598_v9 = vld [vmem:[%s12267_s26 + $0x30] sm:$0xff]  ;;  %v599_v10 = vld [vmem:[%s12267_s26 + $0x38] sm:$0xff]  ;;  %v580_v11 = vld [vmem:[%s577_s30] sm:$0xff]  ;;  %s12223_s24 = smov 96  }
  0x27   : > { %7829 = vmatprep.subr.bf16.mxu0 %v7828_v3  ;;  %v7840_v12 = vpack.c.bf16 %v599_v10, %v598_v9  ;;  %7182 = vmatprep.mubr.msk.f32.mxu0 %vm612_vm0, %v580_v11  ;;  %v581_v13 = vld [vmem:[%s577_s30 + $0x8] sm:$0xff]  ;;  %v582_v14 = vld [vmem:[%s577_s30 + $0x10] sm:$0xff]  ;;  %v583_v15 = vld [vmem:[%s577_s30 + $0x18] sm:$0xff] }
  0x28   : > { %7831 = vmatpush3.bf16.msra.mxu0 %v7828_v3  ;;  %v584_v16 = vld [vmem:[%s577_s30 + $0x20] sm:$0xff]  ;;  %v585_v17 = vld [vmem:[%s577_s30 + $0x28] sm:$0xff]  ;;  %v586_v18 = vld [vmem:[%s577_s30 + $0x30] sm:$0xff] }
  0x29   : > { %7833 = vmatprep.subr.bf16.mxu0 %v7832_v5  ;;  %v587_v19 = vld [vmem:[%s577_s30 + $0x38] sm:$0xff]  ;;  %v588_v20 = vld [vmem:[%s577_s30 + $0x40] sm:$0xff]  ;;  %v589_v21 = vld [vmem:[%s577_s30 + $0x48] sm:$0xff] }
  0x2a   : > { %v590_v22 = vld [vmem:[%s577_s30 + $0x50] sm:$0xff]  ;;  %v591_v23 = vld [vmem:[%s577_s30 + $0x58] sm:$0xff]  ;;  %s12221_s30 = smov 80  }
  0x2b   : > { %v600_v24 = vld [vmem:[%s12269_s22] sm:$0xff]  ;;  %v601_v26 = vld [vmem:[%s12269_s22 + $0x8] sm:$0xff]  ;;  %v603_v29 = vld [vmem:[%s12269_s22 + $0x18] sm:$0xff] }
  0x2c   : > { %7835 = vmatpush3.bf16.msra.mxu0 %v7832_v5  ;;  %v602_v30 = vld [vmem:[%s12269_s22 + $0x10] sm:$0xff]  ;;  %v605_v37 = vld [vmem:[%s12269_s22 + $0x28] sm:$0xff]  ;;  %v604_v38 = vld [vmem:[%s12269_s22 + $0x20] sm:$0xff] }
  0x2d   : > { %7837 = vmatprep.subr.bf16.mxu0 %v7836_v8  ;;  %v607_v46 = vld [vmem:[%s12269_s22 + $0x38] sm:$0xff]  ;;  %v606_v47 = vld [vmem:[%s12269_s22 + $0x30] sm:$0xff]  ;;  %v609_v54 = vld [vmem:[%s12269_s22 + $0x48] sm:$0xff] }
  0x2e   : > { %v608_v55 = vld [vmem:[%s12269_s22 + $0x40] sm:$0xff]  ;;  %v611_v62 = vld [vmem:[%s12269_s22 + $0x58] sm:$0xff]  ;;  %v610_v63 = vld [vmem:[%s12269_s22 + $0x50] sm:$0xff] }
  0x30   : > { %7839 = vmatpush3.bf16.msra.mxu0 %v7836_v8 }
  0x31   : > { %7841 = vmatprep.subr.bf16.mxu0 %v7840_v12 }
  0x34   : > { %7843 = vmatpush3.bf16.msra.mxu0 %v7840_v12 }
  0x37   : > { %7183 = vmatmul.mubr.msk.f32.vlgmr.msra.gmra.mrb[0].mxu0 %vm612_vm0, %v581_v13 }
  0x38   : > { %7185 = vmatprep.mubr.msk.f32.mxu0 %vm612_vm0, %v582_v14 }
  0x3b   : > { %7186 = vmatmul.mubr.msk.f32.gmra.mrb[2].mxu0 %vm612_vm0, %v583_v15 }
  0x3c   : > { %7188 = vmatprep.mubr.msk.f32.mxu0 %vm612_vm0, %v584_v16 }
  0x3f   : > { %7189 = vmatmul.mubr.msk.f32.gmra.mrb[4].mxu0 %vm612_vm0, %v585_v17 }
  0x40   : > { %7191 = vmatprep.mubr.msk.f32.mxu0 %vm612_vm0, %v586_v18 }
  0x43   : > { %7192 = vmatmul.mubr.msk.f32.gmra.mrb[6].mxu0 %vm612_vm0, %v587_v19 }
  0x44   : > { %7194 = vmatprep.mubr.msk.f32.mxu0 %vm612_vm0, %v588_v20 }
  0x47   : > { %7195 = vmatmul.mubr.msk.f32.gmra.mrb[8].mxu0 %vm612_vm0, %v589_v21 }
  0x48   : > { %7197 = vmatprep.mubr.msk.f32.mxu0 %vm612_vm0, %v590_v22 }
  0x4b   : > { %7198 = vmatmul.mubr.msk.f32.gmra.mrb[10].mxu0 %vm612_vm0, %v591_v23 }
 0x10a   : > { %v7184_v25 = vpop.f32.mrb[0].mxu0 }
 0x10b   : > { %v715_v27 = vpop.f32.mrb[1].mxu0  ;;  %v9236_v31 = vadd.f32 %v7184_v25, %v601_v26 }
 0x10c   : > { %v9228_v28 = vadd.f32 %v715_v27, %v600_v24 }
 0x10d   : > { %v792_v41 = vsel %vm788_vm1, %v9236_v31, 0.0 }
 0x10e   : > { %v7187_v32 = vpop.f32.mrb[2].mxu0  ;;  %v789_v33 = vsel %vm788_vm1, %v9228_v28, 0.0 }
 0x10f   : > { %v725_v34 = vpop.f32.mrb[3].mxu0  ;;  %790 = vadd.xlane.f32.xlu0 %v789_v33  ;;  %v9240_v35 = vadd.f32 %v7187_v32, %v603_v29 }
 0x110   : > { %v9242_v36 = vadd.f32 %v725_v34, %v602_v30 }
 0x111   : > { %v798_v45 = vsel %vm788_vm1, %v9240_v35, 0.0 }
 0x112   : > { %v7190_v39 = vpop.f32.mrb[4].mxu0  ;;  %v795_v40 = vsel %vm788_vm1, %v9242_v36, 0.0 }
 0x113   : > { %v735_v42 = vpop.f32.mrb[5].mxu0  ;;  %796 = vadd.xlane.f32.xlu1 %v795_v40  ;;  %793 = vadd.xlane.f32.xlu0 %v792_v41  ;;  %v9254_v43 = vadd.f32 %v7190_v39, %v605_v37 }
 0x114   : > { %v9256_v44 = vadd.f32 %v735_v42, %v604_v38 }
 0x115   : > { %v804_v53 = vsel %vm788_vm1, %v9254_v43, 0.0 }
 0x116   : > { %12270 = vst [vmem:[#allocation11_spill] sm:$0xff] %v9256_v44  ;;  %v7193_v48 = vpop.f32.mrb[6].mxu0  ;;  %v801_v49 = vsel %vm788_vm1, %v9256_v44, 0.0 }
 0x117   : > { %v745_v50 = vpop.f32.mrb[7].mxu0  ;;  %799 = vadd.xlane.f32.xlu1 %v798_v45  ;;  %802 = vadd.xlane.f32.xlu0 %v801_v49  ;;  %v9268_v51 = vadd.f32 %v7193_v48, %v607_v46 }
 0x118   : > { %v9270_v52 = vadd.f32 %v745_v50, %v606_v47 }
 0x119   : > { %12271 = vst [vmem:[#allocation12_spill] sm:$0xff] %v9268_v51  ;;  %v810_v61 = vsel %vm788_vm1, %v9268_v51, 0.0 }
 0x11a   : > { %12272 = vst [vmem:[#allocation13_spill] sm:$0xff] %v9270_v52  ;;  %v7196_v56 = vpop.f32.mrb[8].mxu0  ;;  %v807_v57 = vsel %vm788_vm1, %v9270_v52, 0.0 }
 0x11b   : > { %v755_v58 = vpop.f32.mrb[9].mxu0  ;;  %805 = vadd.xlane.f32.xlu1 %v804_v53  ;;  %808 = vadd.xlane.f32.xlu0 %v807_v57  ;;  %v9282_v59 = vadd.f32 %v7196_v56, %v609_v54 }
 0x11c   : > { %v9284_v60 = vadd.f32 %v755_v58, %v608_v55 }
 0x11d   : > { %12273 = vst [vmem:[#allocation14_spill] sm:$0xff] %v9282_v59  ;;  %v816_v5 = vsel %vm788_vm1, %v9282_v59, 0.0 }
 0x11e   : > { %12274 = vst [vmem:[#allocation15_spill] sm:$0xff] %v9284_v60  ;;  %v7199_v0 = vpop.f32.mrb[10].mxu0  ;;  %v813_v1 = vsel %vm788_vm1, %v9284_v60, 0.0 }
 0x11f   : > { %v765_v2 = vpop.f32.mrb[11].mxu0  ;;  %811 = vadd.xlane.f32.xlu1 %v810_v61  ;;  %814 = vadd.xlane.f32.xlu0 %v813_v1  ;;  %v9296_v3 = vadd.f32 %v7199_v0, %v611_v62 }
 0x120   : > { %v9298_v4 = vadd.f32 %v765_v2, %v610_v63 }
 0x121   : > { %12275 = vst [vmem:[#allocation16_spill] sm:$0xff] %v9296_v3  ;;  %v822_v7 = vsel %vm788_vm1, %v9296_v3, 0.0 }
 0x122   : > { %12276 = vst [vmem:[#allocation17_spill] sm:$0xff] %v9298_v4  ;;  %v819_v6 = vsel %vm788_vm1, %v9298_v4, 0.0 }
 0x123   : > { %817 = vadd.xlane.f32.xlu1 %v816_v5  ;;  %820 = vadd.xlane.f32.xlu0 %v819_v6 }
 0x127   : > { %823 = vadd.xlane.f32.xlu1 %v822_v7 }
 0x19c   : > { %v791_v8 = vpop.xlane.xlu0 %790 }
 0x19d   : > { %v826_v9 = vmul.f32 0.03125, %v791_v8 }
 0x19f   : > { %v9307_v10 = vsub.f32 %v9228_v28, %v826_v9 }
 0x1a0   : > { %v797_v11 = vpop.xlane.xlu1 %796  ;;  %v794_v12 = vpop.xlane.xlu0 %793 }
 0x1a1   : > { %v828_v13 = vmul.f32 0.03125, %v797_v11  ;;  %v827_v14 = vmul.f32 0.03125, %v794_v12  ;;  %v850_v15 = vmul.f32 %v9307_v10, %v9307_v10 }
 0x1a3   : > { %v9312_v16 = vsub.f32 %v9242_v36, %v828_v13  ;;  %v9315_v17 = vsub.f32 %v9236_v31, %v827_v14  ;;  %v862_v18 = vsel %vm788_vm1, %v850_v15, 0.0 }
 0x1a4   : > { %v800_v19 = vpop.xlane.xlu1 %799  ;;  %863 = vadd.xlane.f32.xlu0 %v862_v18  ;;  %v803_v20 = vpop.xlane.xlu0 %802 }
 0x1a5   : > { %v829_v21 = vmul.f32 0.03125, %v800_v19  ;;  %v830_v22 = vmul.f32 0.03125, %v803_v20  ;;  %v852_v23 = vmul.f32 %v9312_v16, %v9312_v16  ;;  %v851_v24 = vmul.f32 %v9315_v17, %v9315_v17  ;;  %v982_v19 = vld [vmem:[%s12185_s6] sm:$0xff]  ;;  %v983_v20 = vld [vmem:[%s12185_s6 + $0x8] sm:$0xff] }
 0x1a7   : > { %v9323_v25 = vsub.f32 %v9240_v35, %v829_v21  ;;  %v9326_v26 = vsub.f32 %v9256_v44, %v830_v22  ;;  %v868_v27 = vsel %vm788_vm1, %v852_v23, 0.0  ;;  %v865_v29 = vsel %vm788_vm1, %v851_v24, 0.0  ;;  %v984_v22 = vld [vmem:[%s12185_s6 + $0x10] sm:$0xff]  ;;  %v985_v23 = vld [vmem:[%s12185_s6 + $0x18] sm:$0xff] }
 0x1a8   : > { %v806_v30 = vpop.xlane.xlu1 %805  ;;  %869 = vadd.xlane.f32.xlu0 %v868_v27  ;;  %866 = vadd.xlane.f32.xlu1 %v865_v29  ;;  %v809_v32 = vpop.xlane.xlu0 %808  ;;  %v7844_v21 = vpack.c.bf16 %v983_v20, %v982_v19  ;;  %v7848_v24 = vpack.c.bf16 %v985_v23, %v984_v22 }
 0x1a9   : > { %v831_v33 = vmul.f32 0.03125, %v806_v30  ;;  %v832_v34 = vmul.f32 0.03125, %v809_v32  ;;  %v853_v37 = vmul.f32 %v9323_v25, %v9323_v25  ;;  %v854_v38 = vmul.f32 %v9326_v26, %v9326_v26 }
 0x1aa   : > { %7845 = vmatprep.subr.bf16.mxu1 %v7844_v21 }
 0x1ab   : > { %v9335_v39 = vsub.f32 %v9254_v43, %v831_v33  ;;  %v9338_v40 = vsub.f32 %v9270_v52, %v832_v34  ;;  %v871_v41 = vsel %vm788_vm1, %v853_v37, 0.0  ;;  %v874_v42 = vsel %vm788_vm1, %v854_v38, 0.0  ;;  %7847 = vmatpush3.bf16.msra.mxu1 %v7844_v21 }
 0x1ac   : > { %v812_v45 = vpop.xlane.xlu1 %811  ;;  %872 = vadd.xlane.f32.xlu1 %v871_v41  ;;  %875 = vadd.xlane.f32.xlu0 %v874_v42  ;;  %v815_v46 = vpop.xlane.xlu0 %814 }
 0x1ad   : > { %v833_v47 = vmul.f32 0.03125, %v812_v45  ;;  %v834_v48 = vmul.f32 0.03125, %v815_v46  ;;  %v855_v49 = vmul.f32 %v9335_v39, %v9335_v39  ;;  %v856_v50 = vmul.f32 %v9338_v40, %v9338_v40  ;;  %7849 = vmatprep.subr.bf16.mxu1 %v7848_v24 }
 0x1af   : > { %v9347_v53 = vsub.f32 %v9268_v51, %v833_v47  ;;  %v9350_v54 = vsub.f32 %v9284_v60, %v834_v48  ;;  %v877_v55 = vsel %vm788_vm1, %v855_v49, 0.0  ;;  %v880_v56 = vsel %vm788_vm1, %v856_v50, 0.0  ;;  %7851 = vmatpush3.bf16.msra.mxu1 %v7848_v24 }
 0x1b0   : > { %v818_v57 = vpop.xlane.xlu1 %817  ;;  %878 = vadd.xlane.f32.xlu1 %v877_v55  ;;  %881 = vadd.xlane.f32.xlu0 %v880_v56  ;;  %v821_v58 = vpop.xlane.xlu0 %820 }
 0x1b1   : > { %v835_v61 = vmul.f32 0.03125, %v818_v57  ;;  %v836_v62 = vmul.f32 0.03125, %v821_v58  ;;  %v857_v63 = vmul.f32 %v9347_v53, %v9347_v53  ;;  %v858_v0 = vmul.f32 %v9350_v54, %v9350_v54 }
 0x1b3   : > { %v9359_v1 = vsub.f32 %v9282_v59, %v835_v61  ;;  %v9362_v2 = vsub.f32 %v9298_v4, %v836_v62  ;;  %v883_v5 = vsel %vm788_vm1, %v857_v63, 0.0  ;;  %v886_v6 = vsel %vm788_vm1, %v858_v0, 0.0  ;;  %v9393_v63 = vld [vmem:[%s12183_s4] ss:$0 sm:$0xff] }
 0x1b4   : > { %v824_v7 = vpop.xlane.xlu1 %823  ;;  %884 = vadd.xlane.f32.xlu1 %v883_v5  ;;  %887 = vadd.xlane.f32.xlu0 %v886_v6 }
 0x1b5   : > { %v837_v8 = vmul.f32 0.03125, %v824_v7  ;;  %v859_v9 = vmul.f32 %v9359_v1, %v9359_v1  ;;  %v860_v11 = vmul.f32 %v9362_v2, %v9362_v2 }
 0x1b7   : > { %v9371_v12 = vsub.f32 %v9296_v3, %v837_v8  ;;  %v889_v13 = vsel %vm788_vm1, %v859_v9, 0.0  ;;  %v892_v14 = vsel %vm788_vm1, %v860_v11, 0.0  ;;  %v9399_v9 = vld [vmem:[%s12184_s5] ss:$0 sm:$0xff] }
 0x1b8   : > { %890 = vadd.xlane.f32.xlu1 %v889_v13  ;;  %893 = vadd.xlane.f32.xlu0 %v892_v14 }
 0x1b9   : > { %v861_v15 = vmul.f32 %v9371_v12, %v9371_v12 }
 0x1bb   : > { %v895_v18 = vsel %vm788_vm1, %v861_v15, 0.0 }
 0x1bc   : > { %896 = vadd.xlane.f32.xlu1 %v895_v18 }
 0x231   : > { %v864_v27 = vpop.xlane.xlu0 %863 }
 0x232   : > { %v898_v29 = vmul.f32 0.03125, %v864_v27 }
 0x234   : > { %v910_v30 = vadd.f32 1e-06, %v898_v29 }
 0x235   : > { %v867_v32 = vpop.xlane.xlu1 %866  ;;  %v870_v33 = vpop.xlane.xlu0 %869 }
 0x236   : > { %8546 = vrsqrt.f32 %v910_v30  ;;  %v899_v34 = vmul.f32 0.03125, %v867_v32  ;;  %v900_v37 = vmul.f32 0.03125, %v870_v33 }
 0x238   : > { %v911_v38 = vadd.f32 1e-06, %v899_v34  ;;  %v912_v41 = vadd.f32 1e-06, %v900_v37 }
 0x239   : > { %v873_v42 = vpop.xlane.xlu1 %872  ;;  %v876_v45 = vpop.xlane.xlu0 %875 }
 0x23a   : > { %8548 = vrsqrt.f32 %v911_v38  ;;  %v901_v46 = vmul.f32 0.03125, %v873_v42  ;;  %v902_v47 = vmul.f32 0.03125, %v876_v45 }
 0x23b   : > { %8550 = vrsqrt.f32 %v912_v41 }
 0x23c   : > { %v913_v48 = vadd.f32 1e-06, %v901_v46  ;;  %v914_v49 = vadd.f32 1e-06, %v902_v47 }
 0x23d   : > { %v879_v50 = vpop.xlane.xlu1 %878  ;;  %v882_v55 = vpop.xlane.xlu0 %881 }
 0x23e   : > { %8552 = vrsqrt.f32 %v913_v48  ;;  %v903_v56 = vmul.f32 0.03125, %v879_v50  ;;  %v904_v57 = vmul.f32 0.03125, %v882_v55 }
 0x23f   : > { %8554 = vrsqrt.f32 %v914_v49 }
 0x240   : > { %v8547_v58 = vpop.eup %8546  ;;  %v915_v61 = vadd.f32 1e-06, %v903_v56  ;;  %v916_v62 = vadd.f32 1e-06, %v904_v57 }
 0x241   : > { %v885_v0 = vpop.xlane.xlu1 %884  ;;  %v888_v5 = vpop.xlane.xlu0 %887  ;;  %v934_v6 = vmul.f32 %v8547_v58, %v9307_v10 }
 0x242   : > { %8556 = vrsqrt.f32 %v915_v61  ;;  %v905_v7 = vmul.f32 0.03125, %v885_v0  ;;  %v906_v8 = vmul.f32 0.03125, %v888_v5 }
 0x243   : > { %8558 = vrsqrt.f32 %v916_v62  ;;  %v952_v11 = vmul.f32 %v9393_v63, %v934_v6 }
 0x244   : > { %v8549_v13 = vpop.eup %8548  ;;  %v917_v14 = vadd.f32 1e-06, %v905_v7  ;;  %v918_v15 = vadd.f32 1e-06, %v906_v8 }
 0x245   : > { %v8551_v18 = vpop.eup %8550  ;;  %v891_v19 = vpop.xlane.xlu1 %890  ;;  %v970_v21 = vadd.f32 %v9399_v9, %v952_v11  ;;  %v935_v10 = vmul.f32 %v8549_v13, %v9315_v17 }
 0x246   : > { %v894_v20 = vpop.xlane.xlu0 %893  ;;  %8560 = vrsqrt.f32 %v917_v14  ;;  %v907_v22 = vmul.f32 0.03125, %v891_v19  ;;  %v936_v24 = vmul.f32 %v8551_v18, %v9312_v16 }
 0x247   : > { %v908_v23 = vmul.f32 0.03125, %v894_v20  ;;  %8562 = vrsqrt.f32 %v918_v15  ;;  %7208 = vmatprep.mubr.msk.f32.mxu1 %vm788_vm1, %v970_v21  ;;  %v953_v27 = vmul.f32 %v9393_v63, %v935_v10  ;;  %v6479_v10 = vld [vmem:[%s12186_s7] ss:$0 sm:$0xff] }
 0x248   : > { %v8553_v29 = vpop.eup %8552  ;;  %v919_v30 = vadd.f32 1e-06, %v907_v22  ;;  %v954_v33 = vmul.f32 %v9393_v63, %v936_v24 }
 0x249   : > { %v920_v32 = vadd.f32 1e-06, %v908_v23  ;;  %v8555_v34 = vpop.eup %8554  ;;  %v897_v37 = vpop.xlane.xlu1 %896  ;;  %v971_v38 = vadd.f32 %v9399_v9, %v953_v27  ;;  %v937_v17 = vmul.f32 %v8553_v29, %v9323_v25 }
 0x24a   : > { %8564 = vrsqrt.f32 %v919_v30  ;;  %v909_v41 = vmul.f32 0.03125, %v897_v37  ;;  %v972_v16 = vadd.f32 %v9399_v9, %v954_v33  ;;  %v938_v42 = vmul.f32 %v8555_v34, %v9326_v26 }
 0x24b   : > { %8566 = vrsqrt.f32 %v920_v32  ;;  %7209 = vmatmul.mubr.msk.f32.vlgmr.msra.gmra.mrb[0].mxu1 %vm788_vm1, %v971_v38  ;;  %v955_v45 = vmul.f32 %v9393_v63, %v937_v17 }
 0x24c   : > { %v8557_v46 = vpop.eup %8556  ;;  %v921_v47 = vadd.f32 1e-06, %v909_v41  ;;  %7211 = vmatprep.mubr.msk.f32.mxu1 %vm788_vm1, %v972_v16  ;;  %v956_v48 = vmul.f32 %v9393_v63, %v938_v42 }
 0x24d   : > { %v8559_v49 = vpop.eup %8558  ;;  %v973_v25 = vadd.f32 %v9399_v9, %v955_v45  ;;  %v939_v50 = vmul.f32 %v8557_v46, %v9335_v39 }
 0x24e   : > { %8568 = vrsqrt.f32 %v921_v47  ;;  %v974_v55 = vadd.f32 %v9399_v9, %v956_v48  ;;  %v940_v26 = vmul.f32 %v8559_v49, %v9338_v40 }
 0x24f   : > { %7212 = vmatmul.mubr.msk.f32.gmra.mrb[2].mxu1 %vm788_vm1, %v973_v25  ;;  %v957_v56 = vmul.f32 %v9393_v63, %v939_v50 }
 0x250   : > { %v8561_v57 = vpop.eup %8560  ;;  %7214 = vmatprep.mubr.msk.f32.mxu1 %vm788_vm1, %v974_v55  ;;  %v958_v58 = vmul.f32 %v9393_v63, %v940_v26 }
 0x251   : > { %v8563_v61 = vpop.eup %8562  ;;  %v975_v62 = vadd.f32 %v9399_v9, %v957_v56  ;;  %v941_v0 = vmul.f32 %v8561_v57, %v9347_v53 }
 0x252   : > { %v976_v39 = vadd.f32 %v9399_v9, %v958_v58  ;;  %v942_v5 = vmul.f32 %v8563_v61, %v9350_v54 }
 0x253   : > { %7215 = vmatmul.mubr.msk.f32.gmra.mrb[4].mxu1 %vm788_vm1, %v975_v62  ;;  %v959_v40 = vmul.f32 %v9393_v63, %v941_v0 }
 0x254   : > { %v8565_v6 = vpop.eup %8564  ;;  %7217 = vmatprep.mubr.msk.f32.mxu1 %vm788_vm1, %v976_v39  ;;  %v960_v7 = vmul.f32 %v9393_v63, %v942_v5  ;;  %v12277_v39 = vmov 0 }
 0x255   : > { %v8567_v8 = vpop.eup %8566  ;;  %v977_v11 = vadd.f32 %v9399_v9, %v959_v40  ;;  %v943_v13 = vmul.f32 %v8565_v6, %v9359_v1  ;;  %v12278_v39 = vsel %vm9546_vm3, 4294967295, %v12277_v39 }
 0x256   : > { %v978_v53 = vadd.f32 %v9399_v9, %v960_v7  ;;  %v944_v14 = vmul.f32 %v8567_v8, %v9362_v2  ;;  %12279 = vst [vmem:[#allocation18_spill] sm:$0xff] %v12278_v39 }
 0x257   : > { %7218 = vmatmul.mubr.msk.f32.gmra.mrb[6].mxu1 %vm788_vm1, %v977_v11  ;;  %v961_v54 = vmul.f32 %v9393_v63, %v943_v13 }
 0x258   : > { %v8569_v15 = vpop.eup %8568  ;;  %7220 = vmatprep.mubr.msk.f32.mxu1 %vm788_vm1, %v978_v53  ;;  %v962_v18 = vmul.f32 %v9393_v63, %v944_v14 }
 0x259   : > { %v979_v19 = vadd.f32 %v9399_v9, %v961_v54  ;;  %v945_v20 = vmul.f32 %v8569_v15, %v9371_v12 }
 0x25a   : > { %v980_v21 = vadd.f32 %v9399_v9, %v962_v18 }
 0x25b   : > { %7221 = vmatmul.mubr.msk.f32.gmra.mrb[8].mxu1 %vm788_vm1, %v979_v19  ;;  %v963_v1 = vmul.f32 %v9393_v63, %v945_v20 }
 0x25c   : > { %7223 = vmatprep.mubr.msk.f32.mxu1 %vm788_vm1, %v980_v21 }
 0x25d   : > { %v981_v2 = vadd.f32 %v9399_v9, %v963_v1 }
 0x25f   : > { %7224 = vmatmul.mubr.msk.f32.gmra.mrb[10].mxu1 %vm788_vm1, %v981_v2 }
 0x31e   : > { %v7210_v22 = vpop.f32.mrb[0].mxu1 }
 0x31f   : > { %v9451_v23 = vadd.f32 %v7210_v22, %v6479_v10  ;;  %v1095_v12 = vpop.f32.mrb[1].mxu1 }
 0x320   : > { %v1096_v24 = vadd.f32 %v6479_v10, %v1095_v12 }
 0x322   : > { %v7213_v27 = vpop.f32.mrb[2].mxu1  ;;  %7250 = vmatprep.mubr.msk.f32.mxu1 %vm1198_vm2, %v1096_v24  ;;  %v9455_v63 = vpack.i.bf16 %v9451_v23, %v1096_v24 }
 0x323   : > { %v9457_v29 = vadd.f32 %v7213_v27, %v6479_v10  ;;  %v1105_v9 = vpop.f32.mrb[3].mxu1 }
 0x324   : > { %v9459_v30 = vadd.f32 %v6479_v10, %v1105_v9  ;;  %8307 = vrot.lane.b32.xlu0 %v9455_v63, %s12223_s24 }
 0x326   : > { %v7216_v32 = vpop.f32.mrb[4].mxu1  ;;  %v9465_v33 = vpack.i.bf16 %v9457_v29, %v9459_v30 }
 0x327   : > { %v9467_v34 = vadd.f32 %v7216_v32, %v6479_v10  ;;  %v1115_v37 = vpop.f32.mrb[5].mxu1 }
 0x328   : > { %v9469_v38 = vadd.f32 %v6479_v10, %v1115_v37  ;;  %8312 = vrot.lane.b32.xlu1 %v9465_v33, %s12223_s24 }
 0x32a   : > { %v7219_v17 = vpop.f32.mrb[6].mxu1  ;;  %v9475_v41 = vpack.i.bf16 %v9467_v34, %v9469_v38 }
 0x32b   : > { %v9477_v16 = vadd.f32 %v7219_v17, %v6479_v10  ;;  %v1125_v42 = vpop.f32.mrb[7].mxu1 }
 0x32c   : > { %v9479_v45 = vadd.f32 %v6479_v10, %v1125_v42  ;;  %8317 = vrot.lane.b32.xlu1 %v9475_v41, %s12223_s24 }
 0x32e   : > { %v7222_v46 = vpop.f32.mrb[8].mxu1  ;;  %v9485_v47 = vpack.i.bf16 %v9477_v16, %v9479_v45 }
 0x32f   : > { %v9487_v48 = vadd.f32 %v7222_v46, %v6479_v10  ;;  %v1135_v49 = vpop.f32.mrb[9].mxu1 }
 0x330   : > { %v9489_v25 = vadd.f32 %v6479_v10, %v1135_v49  ;;  %8322 = vrot.lane.b32.xlu1 %v9485_v47, %s12223_s24 }
 0x332   : > { %v7225_v50 = vpop.f32.mrb[10].mxu1  ;;  %v9495_v55 = vpack.i.bf16 %v9487_v48, %v9489_v25 }
 0x333   : > { %v9497_v26 = vadd.f32 %v7225_v50, %v6479_v10  ;;  %v1145_v56 = vpop.f32.mrb[11].mxu1 }
 0x334   : > { %v9499_v57 = vadd.f32 %v6479_v10, %v1145_v56  ;;  %8327 = vrot.lane.b32.xlu0 %v9495_v55, %s12223_s24 }
 0x336   : > { %v9505_v58 = vpack.i.bf16 %v9497_v26, %v9499_v57 }
 0x338   : > { %8337 = vrot.lane.b32.xlu0 %v9455_v63, %s12221_s30  ;;  %8332 = vrot.lane.b32.xlu1 %v9505_v58, %s12223_s24  ;;  %s12322_s24 = smov 112  }
 0x33c   : > { %8347 = vrot.lane.b32.xlu0 %v9475_v41, %s12221_s30  ;;  %8342 = vrot.lane.b32.xlu1 %v9465_v33, %s12221_s30 }
 0x340   : > { %8357 = vrot.lane.b32.xlu0 %v9495_v55, %s12221_s30  ;;  %8352 = vrot.lane.b32.xlu1 %v9485_v47, %s12221_s30 }
 0x344   : > { %1877 = vrot.lane.b32.xlu0 %v1096_v24, %s12219_s29  ;;  %8362 = vrot.lane.b32.xlu1 %v9505_v58, %s12221_s30  ;;  %s12320_s30 = smov 96  }
 0x348   : > { %1881 = vrot.lane.b32.xlu0 %v9459_v30, %s12219_s29  ;;  %1879 = vrot.lane.b32.xlu1 %v9451_v23, %s12219_s29 }
 0x34c   : > { %1885 = vrot.lane.b32.xlu0 %v9469_v38, %s12219_s29  ;;  %1883 = vrot.lane.b32.xlu1 %v9457_v29, %s12219_s29 }
 0x350   : > { %1889 = vrot.lane.b32.xlu0 %v9479_v45, %s12219_s29  ;;  %1887 = vrot.lane.b32.xlu1 %v9467_v34, %s12219_s29 }
 0x354   : > { %1893 = vrot.lane.b32.xlu0 %v9489_v25, %s12219_s29  ;;  %1891 = vrot.lane.b32.xlu1 %v9477_v16, %s12219_s29 }
 0x358   : > { %1897 = vrot.lane.b32.xlu0 %v9499_v57, %s12219_s29  ;;  %1895 = vrot.lane.b32.xlu1 %v9487_v48, %s12219_s29 }
 0x35c   : > { %1899 = vrot.lane.b32.xlu1 %v9497_v26, %s12219_s29 }
 0x396   : > { %v8308_v61 = vpop.permute.xlu0 %8307 }
 0x397   : > { %v8310_v62 = vunpack.i.h.bf16 %v8308_v61  ;;  %v8309_v0 = vunpack.i.l.bf16 %v8308_v61 }
 0x399   : > { %v7852_v5 = vpack.c.bf16 %v8310_v62, %v8309_v0 }
 0x39a   : > { %v8313_v40 = vpop.permute.xlu1 %8312 }
 0x39b   : > { %v8315_v6 = vunpack.i.h.bf16 %v8313_v40  ;;  %v8314_v7 = vunpack.i.l.bf16 %v8313_v40  ;;  %7854 = vmatprep.subr.msk.bf16.mxu1 %vm9546_vm3, %v7852_v5 }
 0x39c   : > { %7857 = vmatpush3.bf16.xpose.msk.msra.mxu1 %vm9546_vm3, %v7852_v5 }
 0x39d   : > { %v7858_v8 = vpack.c.bf16 %v8315_v6, %v8314_v7 }
 0x39e   : > { %v8318_v11 = vpop.permute.xlu1 %8317 }
 0x39f   : > { %v8320_v13 = vunpack.i.h.bf16 %v8318_v11  ;;  %v8319_v53 = vunpack.i.l.bf16 %v8318_v11  ;;  %7860 = vmatprep.subr.msk.bf16.mxu1 %vm9546_vm3, %v7858_v8 }
 0x3a1   : > { %v7864_v14 = vpack.c.bf16 %v8320_v13, %v8319_v53 }
 0x3a2   : > { %v8323_v54 = vpop.permute.xlu1 %8322 }
 0x3a3   : > { %v8325_v15 = vunpack.i.h.bf16 %v8323_v54  ;;  %v8324_v18 = vunpack.i.l.bf16 %v8323_v54 }
 0x3a4   : > { %7863 = vmatpush3.bf16.xpose.msk.msra.mxu1 %vm9546_vm3, %v7858_v8 }
 0x3a5   : > { %7866 = vmatprep.subr.msk.bf16.mxu1 %vm9546_vm3, %v7864_v14  ;;  %v7870_v19 = vpack.c.bf16 %v8325_v15, %v8324_v18 }
 0x3a6   : > { %v8328_v20 = vpop.permute.xlu0 %8327 }
 0x3a7   : > { %v8330_v21 = vunpack.i.h.bf16 %v8328_v20  ;;  %v8329_v1 = vunpack.i.l.bf16 %v8328_v20  ;;  %v9640_v20 = vld [vmem:[%s12280_s3] sm:$0xff] }
 0x3a9   : > { %v7876_v2 = vpack.c.bf16 %v8330_v21, %v8329_v1 }
 0x3aa   : > { %v8333_v10 = vpop.permute.xlu1 %8332  ;;  %v8338_v27 = vpop.permute.xlu0 %8337 }
 0x3ab   : > { %v8335_v22 = vunpack.i.h.bf16 %v8333_v10  ;;  %v8334_v12 = vunpack.i.l.bf16 %v8333_v10  ;;  %v8340_v9 = vunpack.i.h.bf16 %v8338_v27  ;;  %v8339_v32 = vunpack.i.l.bf16 %v8338_v27 }
 0x3ac   : > { %7869 = vmatpush3.bf16.xpose.msk.msra.mxu1 %vm9546_vm3, %v7864_v14 }
 0x3ad   : > { %7872 = vmatprep.subr.msk.bf16.mxu1 %vm9546_vm3, %v7870_v19  ;;  %v7882_v24 = vpack.c.bf16 %v8335_v22, %v8334_v12  ;;  %v7916_v37 = vpack.c.bf16 %v8340_v9, %v8339_v32  ;;  %v9651_v22 = vld [vmem:[%s12280_s3 + $0x18] sm:$0xff] }
 0x3ae   : > { %v8343_v17 = vpop.permute.xlu1 %8342  ;;  %v8348_v50 = vpop.permute.xlu0 %8347 }
 0x3af   : > { %v8345_v42 = vunpack.i.h.bf16 %v8343_v17  ;;  %v8344_v46 = vunpack.i.l.bf16 %v8343_v17  ;;  %v8350_v56 = vunpack.i.h.bf16 %v8348_v50  ;;  %v8349_v61 = vunpack.i.l.bf16 %v8348_v50 }
 0x3b1   : > { %v7922_v49 = vpack.c.bf16 %v8345_v42, %v8344_v46  ;;  %v7928_v62 = vpack.c.bf16 %v8350_v56, %v8349_v61  ;;  %v9671_v42 = vld [vmem:[%s12280_s3 + $0x28] sm:$0xff]  ;;  %v9676_v46 = vld [vmem:[%s12280_s3 + $0x20] sm:$0xff] }
 0x3b4   : > { %7875 = vmatpush3.bf16.xpose.msk.msra.mxu1 %vm9546_vm3, %v7870_v19  ;;  %v9635_v19 = vld [vmem:[%s12280_s3 + $0x8] sm:$0xff] }
 0x3b5   : > { %7878 = vmatprep.subr.msk.bf16.mxu1 %vm9546_vm3, %v7876_v2 }
 0x3bc   : > { %7881 = vmatpush3.bf16.xpose.msk.msra.mxu1 %vm9546_vm3, %v7876_v2 }
 0x3bd   : > { %7884 = vmatprep.subr.msk.bf16.mxu1 %vm9546_vm3, %v7882_v24 }
 0x3c4   : > { %7887 = vmatpush3.bf16.xpose.msk.msra.mxu1 %vm9546_vm3, %v7882_v24  ;;  %v9658_v24 = vld [vmem:[%s12280_s3 + $0x10] sm:$0xff] }
 0x3c5   : > { %7918 = vmatprep.subr.msk.bf16.mxu1 %vm9546_vm3, %v7916_v37 }
 0x3cb   : > { %7251 = vmatmul.mubr.msk.f32.vlgmr.msra.gmra.mrb[12].mxu1 %vm1198_vm2, %v9451_v23  ;;  %v8353_v23 = vpop.permute.xlu1 %8352 }
 0x3cc   : > { %7253 = vmatprep.mubr.msk.f32.mxu1 %vm1198_vm2, %v9459_v30  ;;  %7921 = vmatpush3.bf16.xpose.msk.msra.mxu1 %vm9546_vm3, %v7916_v37  ;;  %v8355_v30 = vunpack.i.h.bf16 %v8353_v23  ;;  %v8354_v0 = vunpack.i.l.bf16 %v8353_v23 }
 0x3cd   : > { %7924 = vmatprep.subr.msk.bf16.mxu1 %vm9546_vm3, %v7922_v49 }
 0x3cf   : > { %7254 = vmatmul.mubr.msk.f32.gmra.mrb[14].mxu1 %vm1198_vm2, %v9457_v29  ;;  %v8358_v29 = vpop.permute.xlu0 %8357  ;;  %v8363_v5 = vpop.permute.xlu1 %8362 }
 0x3d0   : > { %7256 = vmatprep.mubr.msk.f32.mxu1 %vm1198_vm2, %v9469_v38  ;;  %v8360_v38 = vunpack.i.h.bf16 %v8358_v29 }
 0x3d3   : > { %7257 = vmatmul.mubr.msk.f32.gmra.mrb[16].mxu1 %vm1198_vm2, %v9467_v34  ;;  %v7934_v34 = vpack.c.bf16 %v8355_v30, %v8354_v0 }
 0x3d4   : > { %7259 = vmatprep.mubr.msk.f32.mxu1 %vm1198_vm2, %v9479_v45  ;;  %7927 = vmatpush3.bf16.xpose.msk.msra.mxu1 %vm9546_vm3, %v7922_v49  ;;  %v8359_v45 = vunpack.i.l.bf16 %v8358_v29 }
 0x3d5   : > { %7930 = vmatprep.subr.msk.bf16.mxu1 %vm9546_vm3, %v7928_v62 }
 0x3d7   : > { %7260 = vmatmul.mubr.msk.f32.gmra.mrb[18].mxu1 %vm1198_vm2, %v9477_v16  ;;  %v1878_v16 = vpop.permute.xlu0 %1877 }
 0x3d8   : > { %7262 = vmatprep.mubr.msk.f32.mxu1 %vm1198_vm2, %v9489_v25  ;;  %v7940_v25 = vpack.c.bf16 %v8360_v38, %v8359_v45  ;;  %v9695_v38 = vld [vmem:[%s12280_s3 + $0x48] sm:$0xff] }
 0x3db   : > { %7263 = vmatmul.mubr.msk.f32.gmra.mrb[20].mxu1 %vm1198_vm2, %v9487_v48  ;;  %v8365_v48 = vunpack.i.h.bf16 %v8363_v5  ;;  %v1882_v6 = vpop.permute.xlu0 %1881 }
 0x3dc   : > { %7265 = vmatprep.mubr.msk.f32.mxu1 %vm1198_vm2, %v9499_v57  ;;  %7933 = vmatpush3.bf16.xpose.msk.msra.mxu1 %vm9546_vm3, %v7928_v62  ;;  %v8364_v57 = vunpack.i.l.bf16 %v8363_v5  ;;  %v9703_v5 = vld [vmem:[%s12280_s3 + $0x58] sm:$0xff] }
 0x3dd   : > { %7936 = vmatprep.subr.msk.bf16.mxu1 %vm9546_vm3, %v7934_v34 }
 0x3de   : > { %v7946_v40 = vpack.c.bf16 %v8365_v48, %v8364_v57 }
 0x3df   : > { %7266 = vmatmul.mubr.msk.f32.gmra.mrb[22].mxu1 %vm1198_vm2, %v9497_v26  ;;  %v1880_v26 = vpop.permute.xlu1 %1879  ;;  %v1886_v8 = vpop.permute.xlu0 %1885 }
 0x3e0   : > { %7356 = vmatprep.mubr.msk.f32.mxu1 %vm1198_vm2, %v1878_v16 }
 0x3e3   : > { %v1884_v7 = vpop.permute.xlu1 %1883  ;;  %v1890_v13 = vpop.permute.xlu0 %1889 }
 0x3e4   : > { %7939 = vmatpush3.bf16.xpose.msk.msra.mxu1 %vm9546_vm3, %v7934_v34 }
 0x3e5   : > { %7942 = vmatprep.subr.msk.bf16.mxu1 %vm9546_vm3, %v7940_v25 }
 0x3e7   : > { %v1888_v11 = vpop.permute.xlu1 %1887  ;;  %v1894_v14 = vpop.permute.xlu0 %1893 }
 0x3eb   : > { %v1892_v53 = vpop.permute.xlu1 %1891  ;;  %v1898_v15 = vpop.permute.xlu0 %1897 }
 0x3ec   : > { %7945 = vmatpush3.bf16.xpose.msk.msra.mxu1 %vm9546_vm3, %v7940_v25 }
 0x3ed   : > { %7948 = vmatprep.subr.msk.bf16.mxu1 %vm9546_vm3, %v7946_v40 }
 0x3ef   : > { %v1896_v54 = vpop.permute.xlu1 %1895 }
 0x3f3   : > { %v1900_v18 = vpop.permute.xlu1 %1899 }
 0x3f4   : > { %7951 = vmatpush3.bf16.xpose.msk.msra.mxu1 %vm9546_vm3, %v7946_v40 }
 0x3fb   : > { %7357 = vmatmul.mubr.msk.f32.vlgmr.msra.gmra.mrb[24].mxu1 %vm1198_vm2, %v1880_v26 }
 0x3fc   : > { %7359 = vmatprep.mubr.msk.f32.mxu1 %vm1198_vm2, %v1882_v6 }
 0x3ff   : > { %7360 = vmatmul.mubr.msk.f32.gmra.mrb[26].mxu1 %vm1198_vm2, %v1884_v7 }
 0x400   : > { %7362 = vmatprep.mubr.msk.f32.mxu1 %vm1198_vm2, %v1886_v8 }
 0x403   : > { %7363 = vmatmul.mubr.msk.f32.gmra.mrb[28].mxu1 %vm1198_vm2, %v1888_v11 }
 0x404   : > { %7365 = vmatprep.mubr.msk.f32.mxu1 %vm1198_vm2, %v1890_v13 }
 0x407   : > { %7366 = vmatmul.mubr.msk.f32.gmra.mrb[30].mxu1 %vm1198_vm2, %v1892_v53 }
 0x408   : > { %7368 = vmatprep.mubr.msk.f32.mxu1 %vm1198_vm2, %v1894_v14 }
 0x40b   : > { %7369 = vmatmul.mubr.msk.f32.gmra.mrb[32].mxu1 %vm1198_vm2, %v1896_v54  ;;  %v9733_v54 = vld [vmem:[%s12280_s3 + $0x38] sm:$0xff] }
 0x40c   : > { %7371 = vmatprep.mubr.msk.f32.mxu1 %vm1198_vm2, %v1898_v15 }
 0x40f   : > { %7372 = vmatmul.mubr.msk.f32.gmra.mrb[34].mxu1 %vm1198_vm2, %v1900_v18 }
 0x49e   : > { %v7252_v21 = vpop.f32.mrb[12].mxu1 }
 0x49f   : > { %v9643_v1 = vadd.f32 %v7252_v21, %v9635_v19  ;;  %v1313_v2 = vpop.f32.mrb[13].mxu1 }
 0x4a0   : > { %v9646_v10 = vadd.f32 %v1313_v2, %v9640_v20  ;;  %v9745_v2 = vld [vmem:[%s12280_s3 + $0x30] sm:$0xff] }
 0x4a1   : > { %v1376_v12 = vsel %vm1372_vm4, %v9643_v1, -inf }
 0x4a2   : > { %1377 = vmax.xlane.f32.xlu1 %v1376_v12  ;;  %v7255_v27 = vpop.f32.mrb[14].mxu1  ;;  %v1373_v9 = vsel %vm1372_vm4, %v9646_v10, -inf }
 0x4a3   : > { %v9663_v32 = vadd.f32 %v7255_v27, %v9651_v22  ;;  %v1323_v37 = vpop.f32.mrb[15].mxu1  ;;  %1374 = vmax.xlane.f32.xlu0 %v1373_v9 }
 0x4a4   : > { %v9666_v17 = vadd.f32 %v1323_v37, %v9658_v24 }
 0x4a5   : > { %v1382_v49 = vsel %vm1372_vm4, %v9663_v32, -inf }
 0x4a6   : > { %v7258_v50 = vpop.f32.mrb[16].mxu1  ;;  %v1379_v56 = vsel %vm1372_vm4, %v9666_v17, -inf }
 0x4a7   : > { %v9683_v61 = vadd.f32 %v7258_v50, %v9671_v42  ;;  %v1333_v62 = vpop.f32.mrb[17].mxu1  ;;  %1380 = vmax.xlane.f32.xlu1 %v1379_v56  ;;  %1383 = vmax.xlane.f32.xlu0 %v1382_v49  ;;  %v9759_v49 = vld [vmem:[%s12280_s3 + $0x40] sm:$0xff] }
 0x4a8   : > { %v9686_v23 = vadd.f32 %v1333_v62, %v9676_v46 }
 0x4a9   : > { %v1388_v30 = vsel %vm1372_vm4, %v9683_v61, -inf }
 0x4aa   : > { %v7261_v0 = vpop.f32.mrb[18].mxu1  ;;  %v1385_v29 = vsel %vm1372_vm4, %v9686_v23, -inf }
 0x4ab   : > { %v1343_v34 = vpop.f32.mrb[19].mxu1  ;;  %1386 = vmax.xlane.f32.xlu1 %v1385_v29  ;;  %1389 = vmax.xlane.f32.xlu0 %v1388_v30  ;;  %v9738_v18 = vadd.f32 %v7261_v0, %v9733_v54  ;;  %v9777_v29 = vld [vmem:[%s12280_s3 + $0x50] sm:$0xff] }
 0x4ac   : > { %v9750_v27 = vadd.f32 %v1343_v34, %v9745_v2 }
 0x4ad   : > { %v1394_v37 = vsel %vm1372_vm4, %v9738_v18, -inf }
 0x4ae   : > { %v7264_v45 = vpop.f32.mrb[20].mxu1  ;;  %v1391_v30 = vsel %vm1372_vm4, %v9750_v27, -inf }
 0x4af   : > { %v9698_v16 = vadd.f32 %v7264_v45, %v9695_v38  ;;  %v1353_v25 = vpop.f32.mrb[21].mxu1 }
 0x4b0   : > { %v9764_v56 = vadd.f32 %v1353_v25, %v9759_v49 }
 0x4b1   : > { %v1400_v48 = vsel %vm1372_vm4, %v9698_v16, -inf }
 0x4b2   : > { %v7267_v57 = vpop.f32.mrb[22].mxu1  ;;  %1401 = vmax.xlane.f32.xlu1 %v1400_v48  ;;  %v1397_v0 = vsel %vm1372_vm4, %v9764_v56, -inf }
 0x4b3   : > { %v9708_v40 = vadd.f32 %v7267_v57, %v9703_v5  ;;  %v1363_v26 = vpop.f32.mrb[23].mxu1 }
 0x4b4   : > { %v9780_v34 = vadd.f32 %v1363_v26, %v9777_v29 }
 0x4b5   : > { %v1406_v6 = vsel %vm1372_vm4, %v9708_v40, -inf }
 0x4b6   : > { %1407 = vmax.xlane.f32.xlu1 %v1406_v6  ;;  %v1403_v45 = vsel %vm1372_vm4, %v9780_v34, -inf }
 0x4c1   : > { %8367 = vrot.lane.b32.xlu0 %v9455_v63, %s12217_s20 }
 0x4c7   : > { %8372 = vrot.lane.b32.xlu1 %v9465_v33, %s12217_s20 }
 0x4cb   : > { %8382 = vrot.lane.b32.xlu1 %v9485_v47, %s12217_s20 }
 0x4ce   : > { %v9718_v7 = vpop.f32.mrb[24].mxu1 }
 0x4cf   : > { %v9720_v8 = vpop.f32.mrb[25].mxu1 }
 0x4d2   : > { %v9722_v11 = vpop.f32.mrb[26].mxu1 }
 0x4d3   : > { %v9724_v13 = vpop.f32.mrb[27].mxu1 }
 0x4d6   : > { %v9726_v53 = vpop.f32.mrb[28].mxu1 }
 0x4d7   : > { %v9728_v14 = vpop.f32.mrb[29].mxu1 }
 0x4da   : > { %v9735_v15 = vpop.f32.mrb[30].mxu1 }
 0x4db   : > { %v9740_v21 = vpop.f32.mrb[31].mxu1 }
 0x4de   : > { %v9747_v12 = vpop.f32.mrb[32].mxu1 }
 0x4df   : > { %v9752_v9 = vpop.f32.mrb[33].mxu1 }
 0x4e0   : > { %1395 = vmax.xlane.f32.xlu0 %v1394_v37 }
 0x4e2   : > { %v9761_v50 = vpop.f32.mrb[34].mxu1 }
 0x4e3   : > { %v9766_v62 = vpop.f32.mrb[35].mxu1 }
 0x4e4   : > { %1392 = vmax.xlane.f32.xlu0 %v1391_v30 }
 0x4e8   : > { %1398 = vmax.xlane.f32.xlu0 %v1397_v0 }
 0x4fe   : > { %8377 = vrot.lane.b32.xlu0 %v9475_v41, %s12217_s20 }
 0x51d   : > { %1404 = vmax.xlane.f32.xlu0 %v1403_v45 }
 0x52f   : > { %v1378_v25 = vpop.xlane.xlu1 %1377 }
 0x530   : > { %v1410_v48 = vsub.f32 %v9643_v1, %v1378_v25  ;;  %v1375_v57 = vpop.xlane.xlu0 %1374 }
 0x531   : > { %v1409_v1 = vsub.f32 %v9646_v10, %v1375_v57 }
 0x532   : > { %v1423_v6 = vmul.f32 1.442695, %v1410_v48 }
 0x533   : > { %8387 = vrot.lane.b32.xlu0 %v9495_v55, %s12217_s20 }
 0x534   : > { %8570 = vpow2.f32 %v1423_v6  ;;  %v1381_v37 = vpop.xlane.xlu1 %1380  ;;  %v1384_v30 = vpop.xlane.xlu0 %1383 }
 0x535   : > { %v1411_v0 = vsub.f32 %v9666_v17, %v1381_v37  ;;  %v1412_v26 = vsub.f32 %v9663_v32, %v1384_v30  ;;  %v1421_v37 = vmul.f32 1.442695, %v1409_v1 }
 0x537   : > { %v1427_v39 = vmul.f32 1.442695, %v1412_v26  ;;  %v1425_v4 = vmul.f32 1.442695, %v1411_v0 }
 0x538   : > { %v1390_v3 = vpop.xlane.xlu0 %1389  ;;  %v1387_v60 = vpop.xlane.xlu1 %1386 }
 0x539   : > { %v1414_v45 = vsub.f32 %v9683_v61, %v1390_v3  ;;  %8572 = vpow2.f32 %v1427_v39  ;;  %v1413_v30 = vsub.f32 %v9686_v23, %v1387_v60 }
 0x53a   : > { %8574 = vpow2.f32 %v1425_v4 }
 0x53b   : > { %v1431_v25 = vmul.f32 1.442695, %v1414_v45  ;;  %v1429_v39 = vmul.f32 1.442695, %v1413_v30 }
 0x53c   : > { %v8368_v48 = vpop.permute.xlu0 %8367 }
 0x53d   : > { %v8370_v59 = vunpack.i.h.bf16 %v8368_v48  ;;  %v8369_v6 = vunpack.i.l.bf16 %v8368_v48  ;;  %8576 = vpow2.f32 %v1431_v25 }
 0x53e   : > { %v9791_v52 = vpop.eup %8570  ;;  %8578 = vpow2.f32 %v1421_v37 }
 0x53f   : > { %v1402_v51 = vpop.xlane.xlu1 %1401  ;;  %v1448_v32 = vsel %vm1372_vm4, %v9791_v52, 0.0  ;;  %v7888_v17 = vpack.c.bf16 %v8370_v59, %v8369_v6  ;;  %8580 = vpow2.f32 %v1429_v39 }
 0x540   : > { %1449 = vadd.xlane.f32.xlu1 %v1448_v32  ;;  %v1418_v37 = vsub.f32 %v9698_v16, %v1402_v51 }
 0x541   : > { %7889 = vmatprep.subr.bf16.mxu0 %v7888_v17 }
 0x542   : > { %7891 = vmatpush3.bf16.msra.mxu0 %v7888_v17 }
 0x543   : > { %v9796_v3 = vpop.xlane.xlu1 %1407  ;;  %v9798_v4 = vpop.eup %8572 }
 0x544   : > { %v1454_v10 = vsel %vm1372_vm4, %v9798_v4, 0.0  ;;  %v9802_v61 = vpop.eup %8574 }
 0x545   : > { %1455 = vadd.xlane.f32.xlu1 %v1454_v10  ;;  %v1451_v23 = vsel %vm1372_vm4, %v9802_v61, 0.0 }
 0x547   : > { %v8373_v59 = vpop.permute.xlu1 %8372  ;;  %v9806_v0 = vpop.eup %8576 }
 0x548   : > { %v8375_v57 = vunpack.i.h.bf16 %v8373_v59  ;;  %v8374_v60 = vunpack.i.l.bf16 %v8373_v59  ;;  %v1460_v45 = vsel %vm1372_vm4, %v9806_v0, 0.0  ;;  %v9810_v1 = vpop.eup %8578  ;;  %v1439_v59 = vmul.f32 1.442695, %v1418_v37 }
 0x549   : > { %1452 = vadd.xlane.f32.xlu1 %v1451_v23  ;;  %v1445_v25 = vsel %vm1372_vm4, %v9810_v1, 0.0  ;;  %v9814_v48 = vpop.eup %8580 }
 0x54a   : > { %v7892_v26 = vpack.c.bf16 %v8375_v57, %v8374_v60  ;;  %v1457_v6 = vsel %vm1372_vm4, %v9814_v48, 0.0 }
 0x54b   : > { %v8383_v23 = vpop.permute.xlu1 %8382 }
 0x54c   : > { %7893 = vmatprep.subr.bf16.mxu0 %v7892_v26  ;;  %v8384_v44 = vunpack.i.l.bf16 %v8383_v23 }
 0x54d   : > { %7895 = vmatpush3.bf16.msra.mxu0 %v7892_v26  ;;  %1461 = vadd.xlane.f32.xlu1 %v1460_v45 }
 0x552   : > { %1446 = vadd.xlane.f32.xlu0 %v1445_v25  ;;  %v8385_v25 = vunpack.i.h.bf16 %v8383_v23 }
 0x556   : > { %1458 = vadd.xlane.f32.xlu0 %v1457_v6 }
 0x56d   : > { %v1396_v32 = vpop.xlane.xlu0 %1395 }
 0x56e   : > { %v1416_v17 = vsub.f32 %v9738_v18, %v1396_v32 }
 0x570   : > { %v1435_v30 = vmul.f32 1.442695, %v1416_v17  ;;  %v7900_v17 = vpack.c.bf16 %v8385_v25, %v8384_v44  ;;  %v1420_v44 = vsub.f32 %v9708_v40, %v9796_v3  ;;  %v9851_v40 = vadd.f32 %v9766_v62, %v9777_v29 }
 0x571   : > { %v1393_v39 = vpop.xlane.xlu0 %1392  ;;  %v9869_v29 = vadd.f32 %v9724_v13, %v9658_v24  ;;  %v9887_v13 = vadd.f32 %v9726_v53, %v9671_v42  ;;  %v9901_v42 = vadd.f32 %v9735_v15, %v9733_v54 }
 0x572   : > { %8582 = vpow2.f32 %v1435_v30  ;;  %v1415_v10 = vsub.f32 %v9750_v27, %v1393_v39  ;;  %v1443_v23 = vmul.f32 1.442695, %v1420_v44 }
 0x574   : > { %v1433_v57 = vmul.f32 1.442695, %v1415_v10 }
 0x575   : > { %v1399_v60 = vpop.xlane.xlu0 %1398 }
 0x576   : > { %8584 = vpow2.f32 %v1433_v57  ;;  %v1417_v26 = vsub.f32 %v9764_v56, %v1399_v60 }
 0x577   : > { %8586 = vpow2.f32 %v1439_v59 }
 0x578   : > { %v1437_v45 = vmul.f32 1.442695, %v1417_v26 }
 0x579   : > { %v8378_v6 = vpop.permute.xlu0 %8377 }
 0x57a   : > { %8588 = vpow2.f32 %v1437_v45  ;;  %v8380_v18 = vunpack.i.h.bf16 %v8378_v6  ;;  %v8379_v51 = vunpack.i.l.bf16 %v8378_v6 }
 0x57c   : > { %v9822_v16 = vpop.eup %8582  ;;  %v7896_v32 = vpack.c.bf16 %v8380_v18, %v8379_v51  ;;  %v9845_v51 = vadd.f32 %v9718_v7, %v9635_v19  ;;  %v9861_v19 = vadd.f32 %v9720_v8, %v9640_v20  ;;  %v2128_v7 = vsel %vm1372_vm4, %v9851_v40, -inf }
 0x57d   : > { %v1466_v27 = vsel %vm1372_vm4, %v9822_v16, 0.0  ;;  %v9875_v20 = vadd.f32 %v9722_v11, %v9651_v22  ;;  %v2104_v8 = vsel %vm1372_vm4, %v9869_v29, -inf  ;;  %v9893_v11 = vadd.f32 %v9740_v21, %v9745_v2 }
 0x57e   : > { %1467 = vadd.xlane.f32.xlu1 %v1466_v27  ;;  %7897 = vmatprep.subr.bf16.mxu0 %v7896_v32  ;;  %v2119_v21 = vsel %vm1372_vm4, %v9901_v42, -inf }
 0x57f   : > { %7899 = vmatpush3.bf16.msra.mxu0 %v7896_v32  ;;  %v2107_v24 = vsel %vm1372_vm4, %v9875_v20, -inf  ;;  %v2116_v53 = vsel %vm1372_vm4, %v9893_v11, -inf }
 0x580   : > { %v9826_v37 = vpop.eup %8584  ;;  %7901 = vmatprep.subr.bf16.mxu0 %v7900_v17 }
 0x581   : > { %v1463_v56 = vsel %vm1372_vm4, %v9826_v37, 0.0  ;;  %v9830_v30 = vpop.eup %8586 }
 0x582   : > { %1464 = vadd.xlane.f32.xlu1 %v1463_v56  ;;  %v1472_v10 = vsel %vm1372_vm4, %v9830_v30, 0.0  ;;  %v9881_v56 = vadd.f32 %v9728_v14, %v9676_v46  ;;  %v2113_v46 = vsel %vm1372_vm4, %v9887_v13, -inf  ;;  %v9909_v14 = vadd.f32 %v9752_v9, %v9759_v49 }
 0x583   : > { %7903 = vmatpush3.bf16.msra.mxu0 %v7900_v17  ;;  %v2098_v17 = vsel %vm1372_vm4, %v9861_v19, -inf }
 0x584   : > { %v9832_v39 = vpop.eup %8588  ;;  %v2110_v22 = vsel %vm1372_vm4, %v9881_v56, -inf  ;;  %v2122_v54 = vsel %vm1372_vm4, %v9909_v14, -inf }
 0x585   : > { %v1469_v59 = vsel %vm1372_vm4, %v9832_v39, 0.0 }
 0x586   : > { %1473 = vadd.xlane.f32.xlu1 %v1472_v10  ;;  %1470 = vadd.xlane.f32.xlu0 %v1469_v59 }
 0x59c   : > { %8392 = vrot.lane.b32.xlu0 %v9505_v58, %s12217_s20 }
 0x5aa   : > { %v1405_v57 = vpop.xlane.xlu0 %1404 }
 0x5ab   : > { %v1419_v60 = vsub.f32 %v9780_v34, %v1405_v57  ;;  %v2101_v34 = vsel %vm1372_vm4, %v9845_v51, -inf }
 0x5ad   : > { %v1441_v26 = vmul.f32 1.442695, %v1419_v60 }
 0x5ae   : > { %v8388_v45 = vpop.permute.xlu0 %8387 }
 0x5af   : > { %8590 = vpow2.f32 %v1441_v26  ;;  %v8390_v25 = vunpack.i.h.bf16 %v8388_v45  ;;  %v8389_v6 = vunpack.i.l.bf16 %v8388_v45 }
 0x5b0   : > { %8592 = vpow2.f32 %v1443_v23 }
 0x5b1   : > { %v7904_v18 = vpack.c.bf16 %v8390_v25, %v8389_v6 }
 0x5b3   : > { %7905 = vmatprep.subr.bf16.mxu0 %v7904_v18 }
 0x5b4   : > { %7907 = vmatpush3.bf16.msra.mxu0 %v7904_v18 }
 0x5b9   : > { %v9847_v32 = vpop.eup %8590 }
 0x5ba   : > { %v1475_v3 = vsel %vm1372_vm4, %v9847_v32, 0.0  ;;  %v9857_v27 = vpop.eup %8592 }
 0x5bb   : > { %2102 = vmax.xlane.f32.xlu0 %v2101_v34  ;;  %1476 = vadd.xlane.f32.xlu1 %v1475_v3  ;;  %v1478_v62 = vsel %vm1372_vm4, %v9857_v27, 0.0 }
 0x5bf   : > { %2129 = vmax.xlane.f32.xlu0 %v2128_v7  ;;  %1479 = vadd.xlane.f32.xlu1 %v1478_v62 }
 0x5c3   : > { %2099 = vmax.xlane.f32.xlu1 %v2098_v17 }
 0x5c7   : > { %2105 = vmax.xlane.f32.xlu1 %v2104_v8 }
 0x5cb   : > { %2108 = vmax.xlane.f32.xlu1 %v2107_v24 }
 0x5cd   : > { %v1450_v49 = vpop.xlane.xlu1 %1449 }
 0x5cf   : > { %2111 = vmax.xlane.f32.xlu1 %v2110_v22 }
 0x5d3   : > { %2114 = vmax.xlane.f32.xlu1 %v2113_v46 }
 0x5d5   : > { %8397 = vrot.lane.b32.xlu0 %v9455_v63, %s12215_s27  ;;  %v9915_v63 = vadd.f32 %v9747_v12, %v9695_v38 }
 0x5d7   : > { %2117 = vmax.xlane.f32.xlu1 %v2116_v53  ;;  %v2125_v2 = vsel %vm1372_vm4, %v9915_v63, -inf }
 0x5d9   : > { %8407 = vrot.lane.b32.xlu0 %v9475_v41, %s12215_s27  ;;  %v9921_v41 = vadd.f32 %v9761_v50, %v9703_v5  ;;  %v1456_v5 = vpop.xlane.xlu1 %1455 }
 0x5db   : > { %2120 = vmax.xlane.f32.xlu1 %v2119_v21  ;;  %v2131_v9 = vsel %vm1372_vm4, %v9921_v41, -inf }
 0x5dd   : > { %v1453_v50 = vpop.xlane.xlu1 %1452 }
 0x5df   : > { %2123 = vmax.xlane.f32.xlu1 %v2122_v54  ;;  %v1447_v15 = vpop.xlane.xlu0 %1446 }
 0x5e0   : > { %8594 = vrcp.f32 %v1447_v15 }
 0x5e1   : > { %v1462_v10 = vpop.xlane.xlu1 %1461  ;;  %8596 = vrcp.f32 %v1450_v49 }
 0x5e2   : > { %8598 = vrcp.f32 %v1453_v50 }
 0x5e3   : > { %2126 = vmax.xlane.f32.xlu1 %v2125_v2  ;;  %v1459_v59 = vpop.xlane.xlu0 %1458  ;;  %8600 = vrcp.f32 %v1456_v5 }
 0x5e4   : > { %8602 = vrcp.f32 %v1459_v59 }
 0x5e5   : > { %8604 = vrcp.f32 %v1462_v10 }
 0x5e7   : > { %2132 = vmax.xlane.f32.xlu1 %v2131_v9 }
 0x5ea   : > { %v8595_v38 = vpop.eup %8594 }
 0x5eb   : > { %v1482_v12 = vmul.f32 %v8595_v38, %v9810_v1  ;;  %v8597_v6 = vpop.eup %8596 }
 0x5ec   : > { %v8599_v18 = vpop.eup %8598  ;;  %v1484_v34 = vmul.f32 %v8597_v6, %v9791_v52 }
 0x5ed   : > { %7292 = vmatprep.mubr.msk.f32.mxu0 %vm1372_vm4, %v1482_v12  ;;  %v8601_v7 = vpop.eup %8600  ;;  %v1486_v62 = vmul.f32 %v8599_v18, %v9802_v61 }
 0x5ee   : > { %v8603_v17 = vpop.eup %8602  ;;  %v1488_v8 = vmul.f32 %v8601_v7, %v9798_v4 }
 0x5ef   : > { %v8605_v24 = vpop.eup %8604  ;;  %v1490_v22 = vmul.f32 %v8603_v17, %v9814_v48 }
 0x5f0   : > { %v1492_v52 = vmul.f32 %v8605_v24, %v9806_v0 }
 0x5f8   : > { %8402 = vrot.lane.b32.xlu1 %v9465_v33, %s12215_s27  ;;  %v1702_v33 = vld [vmem:[%s12187_s8] sm:$0xff] }
 0x5fc   : > { %8412 = vrot.lane.b32.xlu1 %v9485_v47, %s12215_s27  ;;  %v1703_v47 = vld [vmem:[%s12187_s8 + $0x8] sm:$0xff] }
 0x5fd   : > { %v7912_v25 = vpack.c.bf16 %v1703_v47, %v1702_v33 }
 0x60b   : > { %v1468_v44 = vpop.xlane.xlu1 %1467 }
 0x60f   : > { %v1465_v1 = vpop.xlane.xlu1 %1464 }
 0x610   : > { %8606 = vrcp.f32 %v1465_v1 }
 0x611   : > { %8608 = vrcp.f32 %v1468_v44 }
 0x613   : > { %v1471_v57 = vpop.xlane.xlu0 %1470  ;;  %v1474_v3 = vpop.xlane.xlu1 %1473 }
 0x614   : > { %8610 = vrcp.f32 %v1471_v57 }
 0x615   : > { %8612 = vrcp.f32 %v1474_v3 }
 0x617   : > { %v8393_v60 = vpop.permute.xlu0 %8392 }
 0x618   : > { %v8395_v23 = vunpack.i.h.bf16 %v8393_v60  ;;  %v8394_v26 = vunpack.i.l.bf16 %v8393_v60 }
 0x61a   : > { %v7908_v45 = vpack.c.bf16 %v8395_v23, %v8394_v26  ;;  %v8607_v46 = vpop.eup %8606 }
 0x61b   : > { %v8609_v61 = vpop.eup %8608  ;;  %v1494_v53 = vmul.f32 %v8607_v46, %v9826_v37 }
 0x61c   : > { %7909 = vmatprep.subr.bf16.mxu0 %v7908_v45  ;;  %v1496_v4 = vmul.f32 %v8609_v61, %v9822_v16 }
 0x61d   : > { %7911 = vmatpush3.bf16.msra.mxu0 %v7908_v45 }
 0x61e   : > { %7913 = vmatprep.subr.bf16.mxu0 %v7912_v25  ;;  %v8611_v21 = vpop.eup %8610 }
 0x61f   : > { %v8613_v54 = vpop.eup %8612  ;;  %v1498_v48 = vmul.f32 %v8611_v21, %v9832_v39 }
 0x620   : > { %7293 = vmatmul.mubr.msk.f32.vlgmr.msra.gmra.mrb[12].mxu0 %vm1372_vm4, %v1484_v34  ;;  %v1500_v15 = vmul.f32 %v8613_v54, %v9830_v30 }
 0x621   : > { %7295 = vmatprep.mubr.msk.f32.mxu0 %vm1372_vm4, %v1486_v62  ;;  %7915 = vmatpush3.bf16.msra.mxu0 %v7912_v25 }
 0x624   : > { %7296 = vmatmul.mubr.msk.f32.gmra.mrb[14].mxu0 %vm1372_vm4, %v1488_v8 }
 0x625   : > { %7298 = vmatprep.mubr.msk.f32.mxu0 %vm1372_vm4, %v1490_v22 }
 0x628   : > { %7299 = vmatmul.mubr.msk.f32.gmra.mrb[16].mxu0 %vm1372_vm4, %v1492_v52 }
 0x629   : > { %7301 = vmatprep.mubr.msk.f32.mxu0 %vm1372_vm4, %v1494_v53 }
 0x62c   : > { %7302 = vmatmul.mubr.msk.f32.gmra.mrb[18].mxu0 %vm1372_vm4, %v1496_v4 }
 0x62d   : > { %7304 = vmatprep.mubr.msk.f32.mxu0 %vm1372_vm4, %v1498_v48 }
 0x630   : > { %7305 = vmatmul.mubr.msk.f32.gmra.mrb[20].mxu0 %vm1372_vm4, %v1500_v15 }
 0x648   : > { %v1477_v0 = vpop.xlane.xlu1 %1476  ;;  %v2103_v37 = vpop.xlane.xlu0 %2102 }
 0x649   : > { %8614 = vrcp.f32 %v1477_v0  ;;  %v2135_v2 = vsub.f32 %v9845_v51, %v2103_v37 }
 0x64b   : > { %v2148_v9 = vmul.f32 1.442695, %v2135_v2 }
 0x64c   : > { %v1480_v38 = vpop.xlane.xlu1 %1479  ;;  %v9958_v12 = vpop.xlane.xlu0 %2129 }
 0x64d   : > { %8616 = vpow2.f32 %v2148_v9 }
 0x64e   : > { %8618 = vrcp.f32 %v1480_v38 }
 0x650   : > { %v2100_v16 = vpop.xlane.xlu1 %2099  ;;  %v8398_v39 = vpop.permute.xlu0 %8397 }
 0x651   : > { %v2134_v49 = vsub.f32 %v9861_v19, %v2100_v16  ;;  %v8400_v5 = vunpack.i.h.bf16 %v8398_v39  ;;  %v8399_v50 = vunpack.i.l.bf16 %v8398_v39 }
 0x653   : > { %v8615_v30 = vpop.eup %8614  ;;  %v2146_v10 = vmul.f32 1.442695, %v2134_v49  ;;  %v9961_v59 = vpack.c.bf16 %v8400_v5, %v8399_v50 }
 0x654   : > { %v2106_v44 = vpop.xlane.xlu1 %2105  ;;  %v1502_v57 = vmul.f32 %v8615_v30, %v9847_v32 }
 0x655   : > { %8620 = vpow2.f32 %v2146_v10  ;;  %v2136_v51 = vsub.f32 %v9869_v29, %v2106_v44  ;;  %7953 = vmatprep.subr.bf16.mxu0 %v9961_v59  ;;  %v8408_v44 = vpop.permute.xlu0 %8407 }
 0x656   : > { %7307 = vmatprep.mubr.msk.f32.mxu0 %vm1372_vm4, %v1502_v57 }
 0x657   : > { %v9967_v1 = vpop.eup %8616  ;;  %v2150_v60 = vmul.f32 1.442695, %v2136_v51 }
 0x658   : > { %v8619_v19 = vpop.eup %8618  ;;  %v2109_v33 = vpop.xlane.xlu1 %2108  ;;  %v2173_v47 = vsel %vm1372_vm4, %v9967_v1, 0.0 }
 0x659   : > { %8622 = vpow2.f32 %v2150_v60  ;;  %v2137_v23 = vsub.f32 %v9875_v20, %v2109_v33  ;;  %2174 = vadd.xlane.f32.xlu1 %v2173_v47  ;;  %v1504_v32 = vmul.f32 %v8619_v19, %v9857_v27  ;;  %v8410_v47 = vunpack.i.h.bf16 %v8408_v44 }
 0x65b   : > { %v2152_v26 = vmul.f32 1.442695, %v2137_v23  ;;  %7308 = vmatmul.mubr.msk.f32.gmra.mrb[22].mxu0 %vm1372_vm4, %v1504_v32  ;;  %v8409_v23 = vunpack.i.l.bf16 %v8408_v44 }
 0x65c   : > { %v2112_v29 = vpop.xlane.xlu1 %2111 }
 0x65d   : > { %8624 = vpow2.f32 %v2152_v26  ;;  %v2138_v45 = vsub.f32 %v9881_v56, %v2112_v29 }
 0x65f   : > { %v9975_v25 = vpop.eup %8620  ;;  %v2154_v6 = vmul.f32 1.442695, %v2138_v45 }
 0x660   : > { %v2115_v18 = vpop.xlane.xlu1 %2114  ;;  %v2170_v34 = vsel %vm1372_vm4, %v9975_v25, 0.0 }
 0x661   : > { %8626 = vpow2.f32 %v2154_v6  ;;  %v2139_v20 = vsub.f32 %v9887_v13, %v2115_v18  ;;  %2171 = vadd.xlane.f32.xlu0 %v2170_v34 }
 0x663   : > { %v9980_v3 = vpop.eup %8622  ;;  %v2156_v27 = vmul.f32 1.442695, %v2139_v20 }
 0x664   : > { %v2176_v7 = vsel %vm1372_vm4, %v9980_v3, 0.0  ;;  %v2118_v22 = vpop.xlane.xlu1 %2117 }
 0x665   : > { %8628 = vpow2.f32 %v2156_v27  ;;  %2177 = vadd.xlane.f32.xlu1 %v2176_v7  ;;  %v2140_v53 = vsub.f32 %v9893_v11, %v2118_v22  ;;  %v7960_v7 = vpack.c.bf16 %v8410_v47, %v8409_v23 }
 0x667   : > { %v9984_v56 = vpop.eup %8624  ;;  %v2158_v4 = vmul.f32 1.442695, %v2140_v53 }
 0x668   : > { %v2179_v62 = vsel %vm1372_vm4, %v9984_v56, 0.0  ;;  %v2121_v46 = vpop.xlane.xlu1 %2120 }
 0x669   : > { %2180 = vadd.xlane.f32.xlu0 %v2179_v62  ;;  %v2141_v21 = vsub.f32 %v9901_v42, %v2121_v46  ;;  %8630 = vpow2.f32 %v2158_v4 }
 0x66b   : > { %v9988_v17 = vpop.eup %8626  ;;  %v2160_v15 = vmul.f32 1.442695, %v2141_v21 }
 0x66c   : > { %v2182_v13 = vsel %vm1372_vm4, %v9988_v17, 0.0  ;;  %v2124_v52 = vpop.xlane.xlu1 %2123 }
 0x66d   : > { %2183 = vadd.xlane.f32.xlu1 %v2182_v13  ;;  %v2142_v0 = vsub.f32 %v9909_v14, %v2124_v52  ;;  %8632 = vpow2.f32 %v2160_v15 }
 0x66f   : > { %v9992_v8 = vpop.eup %8628  ;;  %v2162_v2 = vmul.f32 1.442695, %v2142_v0 }
 0x670   : > { %v2185_v24 = vsel %vm1372_vm4, %v9992_v8, 0.0  ;;  %v2127_v61 = vpop.xlane.xlu1 %2126 }
 0x671   : > { %2186 = vadd.xlane.f32.xlu0 %v2185_v24  ;;  %v2143_v54 = vsub.f32 %v9915_v63, %v2127_v61 }
 0x673   : > { %v2164_v37 = vmul.f32 1.442695, %v2143_v54  ;;  %v10007_v9 = vpop.eup %8630 }
 0x674   : > { %v2133_v48 = vpop.xlane.xlu1 %2132  ;;  %v2188_v14 = vsel %vm1372_vm4, %v10007_v9, 0.0 }
 0x675   : > { %8634 = vpow2.f32 %v2164_v37  ;;  %v6577_v37 = vld [vmem:[%s12187_s8 + $0x10] sm:$0xff] }
 0x676   : > { %8636 = vpow2.f32 %v2162_v2 }
 0x677   : > { %v10009_v63 = vpop.eup %8632 }
 0x678   : > { %v8403_v30 = vpop.permute.xlu1 %8402 }
 0x679   : > { %v8405_v57 = vunpack.i.h.bf16 %v8403_v30  ;;  %v8404_v51 = vunpack.i.l.bf16 %v8403_v30 }
 0x67b   : > { %v7956_v29 = vpack.c.bf16 %v8405_v57, %v8404_v51 }
 0x67c   : > { %v8413_v10 = vpop.permute.xlu1 %8412 }
 0x67d   : > { %v8415_v18 = vunpack.i.h.bf16 %v8413_v10  ;;  %v8414_v34 = vunpack.i.l.bf16 %v8413_v10 }
 0x67e   : > { %8422 = vrot.lane.b32.xlu1 %v9505_v58, %s12215_s27  ;;  %v2145_v58 = vsub.f32 %v9921_v41, %v2133_v48 }
 0x67f   : > { %v10013_v38 = vpop.eup %8634 }
 0x680   : > { %v2168_v11 = vmul.f32 1.442695, %v2145_v58  ;;  %v10015_v41 = vpop.eup %8636  ;;  %v6578_v58 = vld [vmem:[%s12187_s8 + $0x18] sm:$0xff] }
 0x681   : > { %v2194_v39 = vsel %vm1372_vm4, %v10015_v41, 0.0 }
 0x682   : > { %8638 = vpow2.f32 %v2168_v11 }
 0x687   : > { %8417 = vrot.lane.b32.xlu0 %v9495_v55, %s12215_s27  ;;  %v2144_v55 = vsub.f32 %v9851_v40, %v9958_v12  ;;  %v2191_v40 = vsel %vm1372_vm4, %v10009_v63, 0.0  ;;  %v2197_v12 = vsel %vm1372_vm4, %v10013_v38, 0.0  ;;  %s12321_s27 = smov 80  }
 0x689   : > { %v2166_v42 = vmul.f32 1.442695, %v2144_v55  ;;  %v7976_v55 = vpack.c.bf16 %v6578_v58, %v6577_v37 }
 0x68b   : > { %8640 = vpow2.f32 %v2166_v42 }
 0x68c   : > { %v10021_v16 = vpop.eup %8638 }
 0x68d   : > { %v2203_v49 = vsel %vm1372_vm4, %v10021_v16, 0.0 }
 0x695   : > { %v10027_v5 = vpop.eup %8640 }
 0x696   : > { %v2200_v50 = vsel %vm1372_vm4, %v10027_v5, 0.0 }
 0x6a2   : > { %2189 = vadd.xlane.f32.xlu1 %v2188_v14 }
 0x6a6   : > { %2192 = vadd.xlane.f32.xlu0 %v2191_v40  ;;  %2198 = vadd.xlane.f32.xlu1 %v2197_v12 }
 0x6aa   : > { %2195 = vadd.xlane.f32.xlu0 %v2194_v39  ;;  %2204 = vadd.xlane.f32.xlu1 %v2203_v49 }
 0x6ae   : > { %2201 = vadd.xlane.f32.xlu0 %v2200_v50 }
 0x6e6   : > { %v2175_v60 = vpop.xlane.xlu1 %2174 }
 0x6ee   : > { %v2172_v32 = vpop.xlane.xlu0 %2171 }
 0x6ef   : > { %8642 = vrcp.f32 %v2172_v32 }
 0x6f0   : > { %8644 = vrcp.f32 %v2175_v60 }
 0x6f2   : > { %v2178_v26 = vpop.xlane.xlu1 %2177 }
 0x6f3   : > { %v7294_v19 = vpop.f32.mrb[12].mxu0  ;;  %8646 = vrcp.f32 %v2178_v26 }
 0x6f4   : > { %v1643_v33 = vpop.f32.mrb[13].mxu0 }
 0x6f5   : > { %7314 = vmatprep.mubr.msk.f32.mxu0 %vm1198_vm2, %v1643_v33 }
 0x6f6   : > { %7315 = vmatmul.mubr.msk.f32.vlgmr.msra.gmra.mrb[24].mxu0 %vm1198_vm2, %v7294_v19  ;;  %v2181_v20 = vpop.xlane.xlu0 %2180 }
 0x6f7   : > { %7955 = vmatpush3.bf16.msra.mxu0 %v9961_v59  ;;  %v7297_v45 = vpop.f32.mrb[14].mxu0  ;;  %v7964_v59 = vpack.c.bf16 %v8415_v18, %v8414_v34  ;;  %8648 = vrcp.f32 %v2181_v20 }
 0x6f8   : > { %7957 = vmatprep.subr.bf16.mxu0 %v7956_v29  ;;  %v1653_v6 = vpop.f32.mrb[15].mxu0 }
 0x6f9   : > { %7317 = vmatprep.mubr.msk.f32.mxu0 %vm1198_vm2, %v1653_v6  ;;  %v8643_v11 = vpop.eup %8642 }
 0x6fa   : > { %v2184_v27 = vpop.xlane.xlu1 %2183  ;;  %7318 = vmatmul.mubr.msk.f32.gmra.mrb[26].mxu0 %vm1198_vm2, %v7297_v45  ;;  %v8645_v12 = vpop.eup %8644  ;;  %v2207_v39 = vmul.f32 %v8643_v11, %v9975_v25 }
 0x6fb   : > { %7959 = vmatpush3.bf16.msra.mxu0 %v7956_v29  ;;  %v7300_v62 = vpop.f32.mrb[16].mxu0  ;;  %8650 = vrcp.f32 %v2184_v27  ;;  %v2209_v50 = vmul.f32 %v8645_v12, %v9967_v1 }
 0x6fc   : > { %7961 = vmatprep.subr.bf16.mxu0 %v7960_v7  ;;  %v1663_v13 = vpop.f32.mrb[17].mxu0 }
 0x6fd   : > { %7320 = vmatprep.mubr.msk.f32.mxu0 %vm1198_vm2, %v1663_v13  ;;  %v8647_v49 = vpop.eup %8646 }
 0x6fe   : > { %v2187_v24 = vpop.xlane.xlu0 %2186  ;;  %7321 = vmatmul.mubr.msk.f32.gmra.mrb[28].mxu0 %vm1198_vm2, %v7300_v62  ;;  %v8423_v46 = vpop.permute.xlu1 %8422  ;;  %v2211_v57 = vmul.f32 %v8647_v49, %v9980_v3 }
 0x6ff   : > { %7963 = vmatpush3.bf16.msra.mxu0 %v7960_v7  ;;  %v7303_v22 = vpop.f32.mrb[18].mxu0  ;;  %v8425_v53 = vunpack.i.h.bf16 %v8423_v46  ;;  %v8424_v21 = vunpack.i.l.bf16 %v8423_v46  ;;  %8652 = vrcp.f32 %v2187_v24 }
 0x700   : > { %7965 = vmatprep.subr.bf16.mxu0 %v7964_v59  ;;  %v1673_v52 = vpop.f32.mrb[19].mxu0 }
 0x701   : > { %7323 = vmatprep.mubr.msk.f32.mxu0 %vm1198_vm2, %v1673_v52  ;;  %v7972_v2 = vpack.c.bf16 %v8425_v53, %v8424_v21  ;;  %v8649_v44 = vpop.eup %8648 }
 0x702   : > { %v8418_v61 = vpop.permute.xlu0 %8417  ;;  %7324 = vmatmul.mubr.msk.f32.gmra.mrb[30].mxu0 %vm1198_vm2, %v7303_v22  ;;  %v2213_v60 = vmul.f32 %v8649_v44, %v9984_v56  ;;  %v6492_v22 = vld [vmem:[%s12188_s9] ss:$0 sm:$0xff] }
 0x703   : > { %v8420_v4 = vunpack.i.h.bf16 %v8418_v61  ;;  %v8419_v54 = vunpack.i.l.bf16 %v8418_v61  ;;  %7967 = vmatpush3.bf16.msra.mxu0 %v7964_v59  ;;  %v7306_v48 = vpop.f32.mrb[20].mxu0 }
 0x704   : > { %v1683_v15 = vpop.f32.mrb[21].mxu0 }
 0x705   : > { %7326 = vmatprep.mubr.msk.f32.mxu0 %vm1198_vm2, %v1683_v15  ;;  %v7968_v0 = vpack.c.bf16 %v8420_v4, %v8419_v54  ;;  %v8651_v51 = vpop.eup %8650 }
 0x706   : > { %7327 = vmatmul.mubr.msk.f32.gmra.mrb[32].mxu0 %vm1198_vm2, %v7306_v48  ;;  %v2215_v1 = vmul.f32 %v8651_v51, %v9988_v17 }
 0x707   : > { %7969 = vmatprep.subr.bf16.mxu0 %v7968_v0 }
 0x708   : > { %7971 = vmatpush3.bf16.msra.mxu0 %v7968_v0 }
 0x709   : > { %7973 = vmatprep.subr.bf16.mxu0 %v7972_v2  ;;  %v8653_v19 = vpop.eup %8652 }
 0x70a   : > { %v2217_v23 = vmul.f32 %v8653_v19, %v9992_v8 }
 0x70c   : > { %7975 = vmatpush3.bf16.msra.mxu0 %v7972_v2 }
 0x70d   : > { %7977 = vmatprep.subr.bf16.mxu0 %v7976_v55 }
 0x72e   : > { %v7309_v42 = vpop.f32.mrb[22].mxu0 }
 0x72f   : > { %v1693_v14 = vpop.f32.mrb[23].mxu0  ;;  %v2190_v40 = vpop.xlane.xlu1 %2189 }
 0x730   : > { %8654 = vrcp.f32 %v2190_v40  ;;  %7329 = vmatprep.mubr.msk.f32.mxu0 %vm1198_vm2, %v1693_v14 }
 0x731   : > { %7330 = vmatmul.mubr.msk.f32.gmra.mrb[34].mxu0 %vm1198_vm2, %v7309_v42 }
 0x732   : > { %7398 = vmatprep.mubr.msk.f32.mxu0 %vm1372_vm4, %v2207_v39 }
 0x733   : > { %v2199_v30 = vpop.xlane.xlu1 %2198  ;;  %v2193_v10 = vpop.xlane.xlu0 %2192 }
 0x734   : > { %8656 = vrcp.f32 %v2193_v10 }
 0x735   : > { %7399 = vmatmul.mubr.msk.f32.vlgmr.msra.gmra.mrb[36].mxu0 %vm1372_vm4, %v2209_v50  ;;  %8658 = vrcp.f32 %v2199_v30 }
 0x736   : > { %7401 = vmatprep.mubr.msk.f32.mxu0 %vm1372_vm4, %v2211_v57  ;;  %7979 = vmatpush3.bf16.msra.mxu0 %v7976_v55  ;;  %v12288_v57 = vld [vmem:[#allocation12_spill] sm:$0xff] }
 0x737   : > { %v2196_v25 = vpop.xlane.xlu0 %2195  ;;  %v2205_v33 = vpop.xlane.xlu1 %2204 }
 0x738   : > { %8660 = vrcp.f32 %v2196_v25 }
 0x739   : > { %7402 = vmatmul.mubr.msk.f32.gmra.mrb[38].mxu0 %vm1372_vm4, %v2213_v60  ;;  %8662 = vrcp.f32 %v2205_v33 }
 0x73a   : > { %v8655_v47 = vpop.eup %8654  ;;  %7404 = vmatprep.mubr.msk.f32.mxu0 %vm1372_vm4, %v2215_v1 }
 0x73b   : > { %v2202_v3 = vpop.xlane.xlu0 %2201  ;;  %v2219_v32 = vmul.f32 %v8655_v47, %v10007_v9 }
 0x73c   : > { %8664 = vrcp.f32 %v2202_v3 }
 0x73d   : > { %7405 = vmatmul.mubr.msk.f32.gmra.mrb[40].mxu0 %vm1372_vm4, %v2217_v23  ;;  %v12292_v23 = vld [vmem:[#allocation14_spill] sm:$0xff] }
 0x73e   : > { %7407 = vmatprep.mubr.msk.f32.mxu0 %vm1372_vm4, %v2219_v32  ;;  %v8657_v56 = vpop.eup %8656 }
 0x73f   : > { %v2221_v17 = vmul.f32 %v8657_v56, %v10009_v63  ;;  %v8659_v26 = vpop.eup %8658  ;;  %v12294_v56 = vld [vmem:[#allocation15_spill] sm:$0xff] }
 0x740   : > { %v2225_v18 = vmul.f32 %v8659_v26, %v10013_v38 }
 0x741   : > { %7408 = vmatmul.mubr.msk.f32.gmra.mrb[42].mxu0 %vm1372_vm4, %v2221_v17 }
 0x742   : > { %v8661_v29 = vpop.eup %8660 }
 0x743   : > { %v2223_v45 = vmul.f32 %v8661_v29, %v10015_v41  ;;  %v8663_v6 = vpop.eup %8662 }
 0x744   : > { %v2229_v63 = vmul.f32 %v8663_v6, %v10021_v16 }
 0x745   : > { %7410 = vmatprep.mubr.msk.f32.mxu0 %vm1372_vm4, %v2223_v45 }
 0x746   : > { %v8665_v8 = vpop.eup %8664  ;;  %7411 = vmatmul.mubr.msk.f32.gmra.mrb[44].mxu0 %vm1372_vm4, %v2225_v18 }
 0x747   : > { %v2227_v9 = vmul.f32 %v8665_v8, %v10027_v5 }
 0x749   : > { %7413 = vmatprep.mubr.msk.f32.mxu0 %vm1372_vm4, %v2227_v9  ;;  %v12296_v9 = vld [vmem:[#allocation16_spill] sm:$0xff] }
 0x74a   : > { %7414 = vmatmul.mubr.msk.f32.gmra.mrb[46].mxu0 %vm1372_vm4, %v2229_v63 }
 0x808   : > { %v7400_v34 = vpop.f32.mrb[36].mxu0 }
 0x809   : > { %v2368_v20 = vpop.f32.mrb[37].mxu0 }
 0x80a   : > { %7420 = vmatprep.mubr.msk.f32.mxu0 %vm1198_vm2, %v2368_v20 }
 0x80b   : > { %7421 = vmatmul.mubr.msk.f32.vlgmr.msra.gmra.mrb[24].mxu0 %vm1198_vm2, %v7400_v34  ;;  %v12298_v34 = vld [vmem:[#allocation17_spill] sm:$0xff] }
 0x80c   : > { %v7403_v38 = vpop.f32.mrb[38].mxu0 }
 0x80d   : > { %v2378_v41 = vpop.f32.mrb[39].mxu0 }
 0x80e   : > { %7423 = vmatprep.mubr.msk.f32.mxu0 %vm1198_vm2, %v2378_v41 }
 0x80f   : > { %7424 = vmatmul.mubr.msk.f32.gmra.mrb[26].mxu0 %vm1198_vm2, %v7403_v38 }
 0x810   : > { %v7406_v27 = vpop.f32.mrb[40].mxu0 }
 0x811   : > { %v2388_v5 = vpop.f32.mrb[41].mxu0 }
 0x812   : > { %7426 = vmatprep.mubr.msk.f32.mxu0 %vm1198_vm2, %v2388_v5  ;;  %v2810_v5 = vld [vmem:[%s12191_s12 + $0x8] sm:$0xff] }
 0x813   : > { %7427 = vmatmul.mubr.msk.f32.gmra.mrb[28].mxu0 %vm1198_vm2, %v7406_v27  ;;  %v2809_v27 = vld [vmem:[%s12191_s12] sm:$0xff] }
 0x814   : > { %v7409_v16 = vpop.f32.mrb[42].mxu0 }
 0x815   : > { %v2398_v7 = vpop.f32.mrb[43].mxu0 }
 0x816   : > { %7429 = vmatprep.mubr.msk.f32.mxu0 %vm1198_vm2, %v2398_v7 }
 0x817   : > { %7430 = vmatmul.mubr.msk.f32.gmra.mrb[30].mxu0 %vm1198_vm2, %v7409_v16  ;;  %v7980_v16 = vpack.c.bf16 %v2810_v5, %v2809_v27 }
 0x819   : > { %v7412_v62 = vpop.f32.mrb[44].mxu0  ;;  %7981 = vmatprep.subr.bf16.mxu1 %v7980_v16 }
 0x81a   : > { %v2408_v13 = vpop.f32.mrb[45].mxu0  ;;  %7983 = vmatpush3.bf16.msra.mxu1 %v7980_v16 }
 0x81b   : > { %7432 = vmatprep.mubr.msk.f32.mxu0 %vm1198_vm2, %v2408_v13 }
 0x81c   : > { %7433 = vmatmul.mubr.msk.f32.gmra.mrb[32].mxu0 %vm1198_vm2, %v7412_v62 }
 0x81d   : > { %v7415_v24 = vpop.f32.mrb[46].mxu0 }
 0x81e   : > { %v2418_v59 = vpop.f32.mrb[47].mxu0 }
 0x81f   : > { %7435 = vmatprep.mubr.msk.f32.mxu0 %vm1198_vm2, %v2418_v59 }
 0x820   : > { %7436 = vmatmul.mubr.msk.f32.gmra.mrb[34].mxu0 %vm1198_vm2, %v7415_v24 }
 0x8de   : > { %v7422_v46 = vpop.f32.mrb[24].mxu0 }
 0x8df   : > { %v8208_v52 = vadd.f32 %v7422_v46, %v6492_v22  ;;  %v2532_v61 = vpop.f32.mrb[25].mxu0 }
 0x8e0   : > { %v8209_v53 = vadd.f32 %v6492_v22, %v2532_v61 }
 0x8e1   : > { %v10090_v21 = vadd.f32 %v8208_v52, %v9236_v31 }
 0x8e2   : > { %v10093_v4 = vadd.f32 %v8209_v53, %v9228_v28  ;;  %v7425_v54 = vpop.f32.mrb[26].mxu0 }
 0x8e3   : > { %12281 = vst [vmem:[#allocation19_spill] sm:$0xff] %v10090_v21  ;;  %v8210_v48 = vadd.f32 %v7425_v54, %v6492_v22  ;;  %v2542_v15 = vpop.f32.mrb[27].mxu0  ;;  %v2620_v0 = vsel %vm788_vm1, %v10090_v21, 0.0 }
 0x8e4   : > { %12282 = vst [vmem:[#allocation20_spill] sm:$0xff] %v10093_v4  ;;  %v8211_v37 = vadd.f32 %v6492_v22, %v2542_v15  ;;  %2621 = vadd.xlane.f32.xlu1 %v2620_v0  ;;  %v2617_v58 = vsel %vm788_vm1, %v10093_v4, 0.0 }
 0x8e5   : > { %v10100_v2 = vadd.f32 %v8210_v48, %v9240_v35  ;;  %2618 = vadd.xlane.f32.xlu0 %v2617_v58  ;;  %v12286_v35 = vld [vmem:[#allocation11_spill] sm:$0xff] }
 0x8e6   : > { %v10103_v31 = vadd.f32 %v8211_v37, %v9242_v36  ;;  %v7428_v28 = vpop.f32.mrb[28].mxu0 }
 0x8e7   : > { %12283 = vst [vmem:[#allocation21_spill] sm:$0xff] %v10100_v2  ;;  %v8212_v55 = vadd.f32 %v7428_v28, %v6492_v22  ;;  %v2552_v11 = vpop.f32.mrb[29].mxu0  ;;  %v2626_v42 = vsel %vm788_vm1, %v10100_v2, 0.0 }
 0x8e8   : > { %12284 = vst [vmem:[#allocation22_spill] sm:$0xff] %v10103_v31  ;;  %v8213_v14 = vadd.f32 %v6492_v22, %v2552_v11  ;;  %2627 = vadd.xlane.f32.xlu1 %v2626_v42  ;;  %v2623_v40 = vsel %vm788_vm1, %v10103_v31, 0.0 }
 0x8e9   : > { %v10110_v12 = vadd.f32 %v8212_v55, %v9254_v43  ;;  %2624 = vadd.xlane.f32.xlu0 %v2623_v40  ;;  %v12290_v43 = vld [vmem:[#allocation13_spill] sm:$0xff] }
 0x8ea   : > { %v10113_v39 = vadd.f32 %v8213_v14, %v12286_v35  ;;  %v7431_v36 = vpop.f32.mrb[30].mxu0 }
 0x8eb   : > { %12285 = vst [vmem:[#allocation23_spill] sm:$0xff] %v10110_v12  ;;  %v2632_v49 = vsel %vm788_vm1, %v10110_v12, 0.0  ;;  %v8214_v50 = vadd.f32 %v7431_v36, %v6492_v22  ;;  %v2562_v30 = vpop.f32.mrb[31].mxu0 }
 0x8ec   : > { %12287 = vst [vmem:[#allocation11_spill] sm:$0xff] %v10113_v39  ;;  %2633 = vadd.xlane.f32.xlu1 %v2632_v49  ;;  %v2629_v10 = vsel %vm788_vm1, %v10113_v39, 0.0  ;;  %v8215_v44 = vadd.f32 %v6492_v22, %v2562_v30 }
 0x8ed   : > { %2630 = vadd.xlane.f32.xlu0 %v2629_v10  ;;  %v10120_v51 = vadd.f32 %v8214_v50, %v12288_v57 }
 0x8ee   : > { %v10123_v25 = vadd.f32 %v8215_v44, %v12290_v43 }
 0x8ef   : > { %12289 = vst [vmem:[#allocation12_spill] sm:$0xff] %v10120_v51  ;;  %v7434_v60 = vpop.f32.mrb[32].mxu0  ;;  %v2638_v19 = vsel %vm788_vm1, %v10120_v51, 0.0 }
 0x8f0   : > { %12291 = vst [vmem:[#allocation13_spill] sm:$0xff] %v10123_v25  ;;  %v8216_v33 = vadd.f32 %v7434_v60, %v6492_v22  ;;  %2639 = vadd.xlane.f32.xlu1 %v2638_v19  ;;  %v2572_v1 = vpop.f32.mrb[33].mxu0  ;;  %v2635_v47 = vsel %vm788_vm1, %v10123_v25, 0.0 }
 0x8f1   : > { %v8217_v3 = vadd.f32 %v6492_v22, %v2572_v1  ;;  %2636 = vadd.xlane.f32.xlu0 %v2635_v47 }
 0x8f2   : > { %v10130_v32 = vadd.f32 %v8216_v33, %v12292_v23 }
 0x8f3   : > { %v10133_v17 = vadd.f32 %v8217_v3, %v12294_v56  ;;  %v7437_v26 = vpop.f32.mrb[34].mxu0 }
 0x8f4   : > { %12293 = vst [vmem:[#allocation14_spill] sm:$0xff] %v10130_v32  ;;  %v8218_v29 = vadd.f32 %v7437_v26, %v6492_v22  ;;  %v2582_v45 = vpop.f32.mrb[35].mxu0  ;;  %v2644_v6 = vsel %vm788_vm1, %v10130_v32, 0.0 }
 0x8f5   : > { %12295 = vst [vmem:[#allocation15_spill] sm:$0xff] %v10133_v17  ;;  %v8219_v18 = vadd.f32 %v6492_v22, %v2582_v45  ;;  %2645 = vadd.xlane.f32.xlu1 %v2644_v6  ;;  %v2641_v8 = vsel %vm788_vm1, %v10133_v17, 0.0 }
 0x8f6   : > { %v10140_v63 = vadd.f32 %v8218_v29, %v12296_v9  ;;  %2642 = vadd.xlane.f32.xlu0 %v2641_v8 }
 0x8f7   : > { %v10143_v20 = vadd.f32 %v8219_v18, %v12298_v34 }
 0x8f8   : > { %12297 = vst [vmem:[#allocation16_spill] sm:$0xff] %v10140_v63  ;;  %v2650_v38 = vsel %vm788_vm1, %v10140_v63, 0.0 }
 0x8f9   : > { %12299 = vst [vmem:[#allocation17_spill] sm:$0xff] %v10143_v20  ;;  %2651 = vadd.xlane.f32.xlu1 %v2650_v38  ;;  %v2647_v41 = vsel %vm788_vm1, %v10143_v20, 0.0 }
 0x8fa   : > { %2648 = vadd.xlane.f32.xlu0 %v2647_v41 }
 0x971   : > { %v2622_v7 = vpop.xlane.xlu1 %2621 }
 0x972   : > { %v2654_v62 = vmul.f32 0.03125, %v2622_v7  ;;  %v2619_v13 = vpop.xlane.xlu0 %2618 }
 0x973   : > { %v2653_v24 = vmul.f32 0.03125, %v2619_v13 }
 0x974   : > { %v10156_v59 = vsub.f32 %v10090_v21, %v2654_v62 }
 0x975   : > { %v10159_v22 = vsub.f32 %v10093_v4, %v2653_v24  ;;  %v2628_v46 = vpop.xlane.xlu1 %2627 }
 0x976   : > { %v2656_v52 = vmul.f32 0.03125, %v2628_v46  ;;  %v2625_v61 = vpop.xlane.xlu0 %2624  ;;  %v2678_v53 = vmul.f32 %v10156_v59, %v10156_v59 }
 0x977   : > { %v2655_v54 = vmul.f32 0.03125, %v2625_v61  ;;  %v2677_v48 = vmul.f32 %v10159_v22, %v10159_v22 }
 0x978   : > { %v10166_v15 = vsub.f32 %v10100_v2, %v2656_v52  ;;  %v2692_v0 = vsel %vm788_vm1, %v2678_v53, 0.0 }
 0x979   : > { %v10170_v37 = vsub.f32 %v10103_v31, %v2655_v54  ;;  %v2634_v58 = vpop.xlane.xlu1 %2633  ;;  %2693 = vadd.xlane.f32.xlu1 %v2692_v0  ;;  %v2689_v28 = vsel %vm788_vm1, %v2677_v48, 0.0  ;;  %v2811_v54 = vld [vmem:[%s12191_s12 + $0x10] sm:$0xff]  ;;  %v2812_v48 = vld [vmem:[%s12191_s12 + $0x18] sm:$0xff] }
 0x97a   : > { %v2658_v55 = vmul.f32 0.03125, %v2634_v58  ;;  %v2631_v11 = vpop.xlane.xlu0 %2630  ;;  %2690 = vadd.xlane.f32.xlu0 %v2689_v28  ;;  %v2680_v42 = vmul.f32 %v10166_v15, %v10166_v15  ;;  %v7984_v0 = vpack.c.bf16 %v2812_v48, %v2811_v54 }
 0x97b   : > { %v2657_v14 = vmul.f32 0.03125, %v2631_v11  ;;  %v2679_v40 = vmul.f32 %v10170_v37, %v10170_v37 }
 0x97c   : > { %v10178_v35 = vsub.f32 %v10110_v12, %v2658_v55  ;;  %v2698_v36 = vsel %vm788_vm1, %v2680_v42, 0.0  ;;  %7985 = vmatprep.subr.bf16.mxu1 %v7984_v0 }
 0x97d   : > { %v10182_v49 = vsub.f32 %v10113_v39, %v2657_v14  ;;  %2699 = vadd.xlane.f32.xlu1 %v2698_v36  ;;  %v2695_v50 = vsel %vm788_vm1, %v2679_v40, 0.0  ;;  %v2640_v30 = vpop.xlane.xlu1 %2639  ;;  %7987 = vmatpush3.bf16.msra.mxu1 %v7984_v0 }
 0x97e   : > { %2696 = vadd.xlane.f32.xlu0 %v2695_v50  ;;  %v2682_v10 = vmul.f32 %v10178_v35, %v10178_v35  ;;  %v2660_v44 = vmul.f32 0.03125, %v2640_v30  ;;  %v2637_v57 = vpop.xlane.xlu0 %2636 }
 0x97f   : > { %v2681_v43 = vmul.f32 %v10182_v49, %v10182_v49  ;;  %v2659_v60 = vmul.f32 0.03125, %v2637_v57 }
 0x980   : > { %v2704_v19 = vsel %vm788_vm1, %v2682_v10, 0.0  ;;  %v10191_v33 = vsub.f32 %v10120_v51, %v2660_v44 }
 0x981   : > { %2705 = vadd.xlane.f32.xlu1 %v2704_v19  ;;  %v2701_v1 = vsel %vm788_vm1, %v2681_v43, 0.0  ;;  %v10195_v47 = vsub.f32 %v10123_v25, %v2659_v60 }
 0x982   : > { %2702 = vadd.xlane.f32.xlu0 %v2701_v1  ;;  %v2646_v3 = vpop.xlane.xlu1 %2645  ;;  %v2684_v23 = vmul.f32 %v10191_v33, %v10191_v33 }
 0x983   : > { %v2662_v56 = vmul.f32 0.03125, %v2646_v3  ;;  %v2643_v26 = vpop.xlane.xlu0 %2642  ;;  %v2683_v29 = vmul.f32 %v10195_v47, %v10195_v47 }
 0x984   : > { %v2661_v45 = vmul.f32 0.03125, %v2643_v26  ;;  %v2710_v6 = vsel %vm788_vm1, %v2684_v23, 0.0 }
 0x985   : > { %v10203_v18 = vsub.f32 %v10130_v32, %v2662_v56  ;;  %2711 = vadd.xlane.f32.xlu1 %v2710_v6  ;;  %v2707_v8 = vsel %vm788_vm1, %v2683_v29, 0.0 }
 0x986   : > { %v10207_v9 = vsub.f32 %v10133_v17, %v2661_v45  ;;  %v2652_v34 = vpop.xlane.xlu1 %2651  ;;  %2708 = vadd.xlane.f32.xlu0 %v2707_v8  ;;  %v10236_v45 = vld [vmem:[%s12189_s10] ss:$0 sm:$0xff] }
 0x987   : > { %v2664_v38 = vmul.f32 0.03125, %v2652_v34  ;;  %v2649_v41 = vpop.xlane.xlu0 %2648  ;;  %v2686_v27 = vmul.f32 %v10203_v18, %v10203_v18 }
 0x988   : > { %v2663_v5 = vmul.f32 0.03125, %v2649_v41  ;;  %v2685_v16 = vmul.f32 %v10207_v9, %v10207_v9 }
 0x989   : > { %v10214_v7 = vsub.f32 %v10140_v63, %v2664_v38  ;;  %v2716_v62 = vsel %vm788_vm1, %v2686_v27, 0.0 }
 0x98a   : > { %v10218_v13 = vsub.f32 %v10143_v20, %v2663_v5  ;;  %2717 = vadd.xlane.f32.xlu1 %v2716_v62  ;;  %v2713_v24 = vsel %vm788_vm1, %v2685_v16, 0.0  ;;  %v10244_v62 = vld [vmem:[%s12190_s11] ss:$0 sm:$0xff] }
 0x98b   : > { %2714 = vadd.xlane.f32.xlu0 %v2713_v24  ;;  %v2688_v46 = vmul.f32 %v10214_v7, %v10214_v7 }
 0x98c   : > { %v2687_v52 = vmul.f32 %v10218_v13, %v10218_v13 }
 0x98d   : > { %v2722_v61 = vsel %vm788_vm1, %v2688_v46, 0.0 }
 0x98e   : > { %2723 = vadd.xlane.f32.xlu1 %v2722_v61  ;;  %v2719_v53 = vsel %vm788_vm1, %v2687_v52, 0.0 }
 0x98f   : > { %2720 = vadd.xlane.f32.xlu0 %v2719_v53 }
 0xa06   : > { %v2694_v58 = vpop.xlane.xlu1 %2693 }
 0xa07   : > { %v2726_v28 = vmul.f32 0.03125, %v2694_v58  ;;  %v2691_v55 = vpop.xlane.xlu0 %2690 }
 0xa08   : > { %v2725_v11 = vmul.f32 0.03125, %v2691_v55 }
 0xa09   : > { %v2738_v42 = vadd.f32 1e-06, %v2726_v28 }
 0xa0a   : > { %v2737_v14 = vadd.f32 1e-06, %v2725_v11  ;;  %v2700_v40 = vpop.xlane.xlu1 %2699 }
 0xa0b   : > { %8666 = vrsqrt.f32 %v2738_v42  ;;  %v2728_v36 = vmul.f32 0.03125, %v2700_v40  ;;  %v2697_v50 = vpop.xlane.xlu0 %2696 }
 0xa0c   : > { %8668 = vrsqrt.f32 %v2737_v14  ;;  %v2727_v30 = vmul.f32 0.03125, %v2697_v50 }
 0xa0d   : > { %v2740_v10 = vadd.f32 1e-06, %v2728_v36 }
 0xa0e   : > { %v2739_v44 = vadd.f32 1e-06, %v2727_v30  ;;  %v2706_v57 = vpop.xlane.xlu1 %2705 }
 0xa0f   : > { %8670 = vrsqrt.f32 %v2740_v10  ;;  %v2730_v43 = vmul.f32 0.03125, %v2706_v57  ;;  %v2703_v60 = vpop.xlane.xlu0 %2702 }
 0xa10   : > { %8672 = vrsqrt.f32 %v2739_v44  ;;  %v2729_v19 = vmul.f32 0.03125, %v2703_v60 }
 0xa11   : > { %v2742_v1 = vadd.f32 1e-06, %v2730_v43 }
 0xa12   : > { %v2741_v3 = vadd.f32 1e-06, %v2729_v19  ;;  %v2712_v23 = vpop.xlane.xlu1 %2711 }
 0xa13   : > { %8674 = vrsqrt.f32 %v2742_v1  ;;  %v2732_v56 = vmul.f32 0.03125, %v2712_v23  ;;  %v2709_v26 = vpop.xlane.xlu0 %2708 }
 0xa14   : > { %8676 = vrsqrt.f32 %v2741_v3  ;;  %v2731_v6 = vmul.f32 0.03125, %v2709_v26 }
 0xa15   : > { %v8667_v29 = vpop.eup %8666  ;;  %v2744_v38 = vadd.f32 1e-06, %v2732_v56 }
 0xa16   : > { %v8669_v8 = vpop.eup %8668  ;;  %v2762_v34 = vmul.f32 %v8667_v29, %v10156_v59  ;;  %v2743_v41 = vadd.f32 1e-06, %v2731_v6 }
 0xa17   : > { %v2761_v27 = vmul.f32 %v8669_v8, %v10159_v22  ;;  %8678 = vrsqrt.f32 %v2744_v38  ;;  %v2718_v16 = vpop.xlane.xlu1 %2717 }
 0xa18   : > { %v2780_v5 = vmul.f32 %v10236_v45, %v2762_v34  ;;  %8680 = vrsqrt.f32 %v2743_v41  ;;  %v2734_v46 = vmul.f32 0.03125, %v2718_v16  ;;  %v2715_v52 = vpop.xlane.xlu0 %2714 }
 0xa19   : > { %v8671_v24 = vpop.eup %8670  ;;  %v2779_v61 = vmul.f32 %v10236_v45, %v2761_v27  ;;  %v2733_v53 = vmul.f32 0.03125, %v2715_v52 }
 0xa1a   : > { %v8673_v59 = vpop.eup %8672  ;;  %v2764_v54 = vmul.f32 %v8671_v24, %v10166_v15  ;;  %v2746_v22 = vadd.f32 1e-06, %v2734_v46  ;;  %v2798_v55 = vadd.f32 %v10244_v62, %v2780_v5 }
 0xa1b   : > { %v2797_v48 = vadd.f32 %v10244_v62, %v2779_v61  ;;  %v2763_v0 = vmul.f32 %v8673_v59, %v10170_v37  ;;  %v2745_v58 = vadd.f32 1e-06, %v2733_v53  ;;  %v2724_v28 = vpop.xlane.xlu1 %2723 }
 0xa1c   : > { %v2782_v11 = vmul.f32 %v10236_v45, %v2764_v54  ;;  %8682 = vrsqrt.f32 %v2746_v22  ;;  %v2736_v14 = vmul.f32 0.03125, %v2724_v28  ;;  %v2721_v40 = vpop.xlane.xlu0 %2720  ;;  %v3311_v28 = vld [vmem:[%s12193_s14 + $0x30] sm:$0xff] }
 0xa1d   : > { %v8675_v42 = vpop.eup %8674  ;;  %7446 = vmatprep.mubr.msk.f32.mxu1 %vm788_vm1, %v2797_v48  ;;  %v2781_v36 = vmul.f32 %v10236_v45, %v2763_v0  ;;  %8684 = vrsqrt.f32 %v2745_v58  ;;  %v2735_v50 = vmul.f32 0.03125, %v2721_v40  ;;  %v3309_v48 = vld [vmem:[%s12193_s14 + $0x20] sm:$0xff]  ;;  %v3310_v0 = vld [vmem:[%s12193_s14 + $0x28] sm:$0xff] }
 0xa1e   : > { %v8677_v15 = vpop.eup %8676  ;;  %7447 = vmatmul.mubr.msk.f32.vlgmr.msra.gmra.mrb[36].mxu1 %vm788_vm1, %v2798_v55  ;;  %v2766_v37 = vmul.f32 %v8675_v42, %v10178_v35  ;;  %v2748_v30 = vadd.f32 1e-06, %v2736_v14  ;;  %v2800_v43 = vadd.f32 %v10244_v62, %v2782_v11  ;;  %v7996_v58 = vpack.c.bf16 %v3310_v0, %v3309_v48  ;;  %v3312_v55 = vld [vmem:[%s12193_s14 + $0x38] sm:$0xff]  ;;  %v3313_v42 = vld [vmem:[%s12193_s14 + $0x40] sm:$0xff]  ;;  %v3314_v14 = vld [vmem:[%s12193_s14 + $0x48] sm:$0xff] }
 0xa1f   : > { %v2799_v10 = vadd.f32 %v10244_v62, %v2781_v36  ;;  %v2765_v44 = vmul.f32 %v8677_v15, %v10182_v49  ;;  %v2747_v57 = vadd.f32 1e-06, %v2735_v50  ;;  %v8000_v11 = vpack.c.bf16 %v3312_v55, %v3311_v28  ;;  %v3315_v36 = vld [vmem:[%s12193_s14 + $0x50] sm:$0xff]  ;;  %v3316_v15 = vld [vmem:[%s12193_s14 + $0x58] sm:$0xff]  ;;  %v3317_v50 = vld [vmem:[%s12193_s14 + $0x60] sm:$0xff] }
 0xa20   : > { %v2784_v60 = vmul.f32 %v10236_v45, %v2766_v37  ;;  %8686 = vrsqrt.f32 %v2748_v30  ;;  %v8004_v40 = vpack.c.bf16 %v3314_v14, %v3313_v42  ;;  %v8008_v37 = vpack.c.bf16 %v3316_v15, %v3315_v36  ;;  %v3318_v30 = vld [vmem:[%s12193_s14 + $0x68] sm:$0xff] }
 0xa21   : > { %7449 = vmatprep.mubr.msk.f32.mxu1 %vm788_vm1, %v2799_v10  ;;  %v2783_v19 = vmul.f32 %v10236_v45, %v2765_v44  ;;  %v8679_v1 = vpop.eup %8678  ;;  %8688 = vrsqrt.f32 %v2747_v57  ;;  %v8012_v10 = vpack.c.bf16 %v3318_v30, %v3317_v50  ;;  %v3319_v44 = vld [vmem:[%s12193_s14 + $0x70] sm:$0xff]  ;;  %v3320_v57 = vld [vmem:[%s12193_s14 + $0x78] sm:$0xff] }
 0xa22   : > { %7450 = vmatmul.mubr.msk.f32.gmra.mrb[38].mxu1 %vm788_vm1, %v2800_v43  ;;  %v8681_v35 = vpop.eup %8680  ;;  %v2768_v23 = vmul.f32 %v8679_v1, %v10191_v33  ;;  %v2802_v49 = vadd.f32 %v10244_v62, %v2784_v60  ;;  %v8016_v43 = vpack.c.bf16 %v3320_v57, %v3319_v44  ;;  %v10342_v60 = vld [vmem:[%s12192_s13] ss:$0 sm:$0xff] }
 0xa23   : > { %v2801_v3 = vadd.f32 %v10244_v62, %v2783_v19  ;;  %v2767_v56 = vmul.f32 %v8681_v35, %v10195_v47 }
 0xa24   : > { %v2786_v26 = vmul.f32 %v10236_v45, %v2768_v23 }
 0xa25   : > { %7452 = vmatprep.mubr.msk.f32.mxu1 %vm788_vm1, %v2801_v3  ;;  %v2785_v29 = vmul.f32 %v10236_v45, %v2767_v56 }
 0xa26   : > { %7453 = vmatmul.mubr.msk.f32.gmra.mrb[40].mxu1 %vm788_vm1, %v2802_v49  ;;  %v8683_v6 = vpop.eup %8682  ;;  %v2804_v33 = vadd.f32 %v10244_v62, %v2786_v26 }
 0xa27   : > { %v8685_v8 = vpop.eup %8684  ;;  %v2803_v34 = vadd.f32 %v10244_v62, %v2785_v29  ;;  %v2770_v38 = vmul.f32 %v8683_v6, %v10203_v18 }
 0xa28   : > { %v2769_v41 = vmul.f32 %v8685_v8, %v10207_v9 }
 0xa29   : > { %7455 = vmatprep.mubr.msk.f32.mxu1 %vm788_vm1, %v2803_v34  ;;  %v2788_v47 = vmul.f32 %v10236_v45, %v2770_v38 }
 0xa2a   : > { %v8687_v27 = vpop.eup %8686  ;;  %7456 = vmatmul.mubr.msk.f32.gmra.mrb[42].mxu1 %vm788_vm1, %v2804_v33  ;;  %v2787_v5 = vmul.f32 %v10236_v45, %v2769_v41 }
 0xa2b   : > { %v8689_v16 = vpop.eup %8688  ;;  %v2772_v24 = vmul.f32 %v8687_v27, %v10214_v7  ;;  %v2806_v52 = vadd.f32 %v10244_v62, %v2788_v47  ;;  %v3305_v7 = vld [vmem:[%s12193_s14] sm:$0xff] }
 0xa2c   : > { %v2805_v46 = vadd.f32 %v10244_v62, %v2787_v5  ;;  %v2771_v18 = vmul.f32 %v8689_v16, %v10218_v13  ;;  %v3306_v13 = vld [vmem:[%s12193_s14 + $0x8] sm:$0xff] }
 0xa2d   : > { %v2790_v9 = vmul.f32 %v10236_v45, %v2772_v24  ;;  %v7988_v54 = vpack.c.bf16 %v3306_v13, %v3305_v7 }
 0xa2e   : > { %7458 = vmatprep.mubr.msk.f32.mxu1 %vm788_vm1, %v2805_v46  ;;  %v2789_v61 = vmul.f32 %v10236_v45, %v2771_v18  ;;  %v3307_v45 = vld [vmem:[%s12193_s14 + $0x10] sm:$0xff] }
 0xa2f   : > { %7459 = vmatmul.mubr.msk.f32.gmra.mrb[44].mxu1 %vm788_vm1, %v2806_v52  ;;  %v2808_v53 = vadd.f32 %v10244_v62, %v2790_v9  ;;  %7989 = vmatprep.subr.bf16.mxu0 %v7988_v54 }
 0xa30   : > { %v2807_v59 = vadd.f32 %v10244_v62, %v2789_v61  ;;  %7991 = vmatpush3.bf16.msra.mxu0 %v7988_v54  ;;  %v3308_v62 = vld [vmem:[%s12193_s14 + $0x18] sm:$0xff] }
 0xa31   : > { %v7992_v22 = vpack.c.bf16 %v3308_v62, %v3307_v45 }
 0xa32   : > { %7461 = vmatprep.mubr.msk.f32.mxu1 %vm788_vm1, %v2807_v59  ;;  %v12225_v59 = vmov -1.0  }
 0xa33   : > { %7462 = vmatmul.mubr.msk.f32.gmra.mrb[46].mxu1 %vm788_vm1, %v2808_v53  ;;  %7993 = vmatprep.subr.bf16.mxu0 %v7992_v22 }
 0xa34   : > { %7995 = vmatpush3.bf16.msra.mxu0 %v7992_v22 }
 0xa35   : > { %7997 = vmatprep.subr.bf16.mxu0 %v7996_v58 }
 0xa38   : > { %7999 = vmatpush3.bf16.msra.mxu0 %v7996_v58 }
 0xa39   : > { %8001 = vmatprep.subr.bf16.mxu0 %v8000_v11 }
 0xa3c   : > { %8003 = vmatpush3.bf16.msra.mxu0 %v8000_v11 }
 0xa3d   : > { %8005 = vmatprep.subr.bf16.mxu0 %v8004_v40 }
 0xa40   : > { %8007 = vmatpush3.bf16.msra.mxu0 %v8004_v40 }
 0xa41   : > { %8009 = vmatprep.subr.bf16.mxu0 %v8008_v37 }
 0xa44   : > { %8011 = vmatpush3.bf16.msra.mxu0 %v8008_v37 }
 0xa45   : > { %8013 = vmatprep.subr.bf16.mxu0 %v8012_v10 }
 0xa48   : > { %8015 = vmatpush3.bf16.msra.mxu0 %v8012_v10 }
 0xa49   : > { %8017 = vmatprep.subr.bf16.mxu0 %v8016_v43 }
 0xa4c   : > { %8019 = vmatpush3.bf16.msra.mxu0 %v8016_v43 }
 0xaf1   : > { %v7448_v19 = vpop.f32.mrb[36].mxu1 }
 0xaf2   : > { %v2928_v1 = vadd.f32 %v7448_v19, %v10342_v60  ;;  %v2922_v35 = vpop.f32.mrb[37].mxu1 }
 0xaf3   : > { %v2923_v3 = vadd.f32 %v10342_v60, %v2922_v35 }
 0xaf4   : > { %v2994_v23 = vmul.f32 0.70710677, %v2928_v1  ;;  %v10348_v9 = vmul.f32 0.5, %v2928_v1 }
 0xaf5   : > { %v2993_v49 = vmul.f32 0.70710677, %v2923_v3  ;;  %v7451_v56 = vpop.f32.mrb[38].mxu1  ;;  %v10353_v7 = vmul.f32 0.5, %v2923_v3 }
 0xaf6   : > { %v3030_v26 = vand.u32 2147483647, %v2994_v23  ;;  %v2938_v29 = vadd.f32 %v7451_v56, %v10342_v60  ;;  %v2932_v6 = vpop.f32.mrb[39].mxu1  ;;  %vm3006_vm5 = vcmp.ge.f32.partialorder %v2994_v23, 0.0 }
 0xaf7   : > { %v3029_v8 = vand.u32 2147483647, %v2993_v49  ;;  %v2933_v34 = vadd.f32 %v10342_v60, %v2932_v6  ;;  %vm3005_vm6 = vcmp.ge.f32.partialorder %v2993_v49, 0.0  ;;  %v10351_v53 = vsel %vm3006_vm5, 1.0, %v12225_v59 }
 0xaf8   : > { %v3042_v38 = vmul.f32 0.3275911, %v3030_v26  ;;  %v3198_v33 = vsub.f32 0.0, %v3030_v26  ;;  %v2996_v41 = vmul.f32 0.70710677, %v2938_v29  ;;  %v10358_v28 = vsel %vm3005_vm6, 1.0, %v12225_v59 }
 0xaf9   : > { %v2995_v27 = vmul.f32 0.70710677, %v2933_v34  ;;  %v7454_v5 = vpop.f32.mrb[40].mxu1  ;;  %v3041_v24 = vmul.f32 0.3275911, %v3029_v8  ;;  %v3197_v46 = vsub.f32 0.0, %v3029_v8 }
 0xafa   : > { %v3054_v47 = vadd.f32 1.0, %v3042_v38  ;;  %v3210_v16 = vmul.f32 %v3198_v33, %v3030_v26  ;;  %v3032_v18 = vand.u32 2147483647, %v2996_v41  ;;  %v2942_v52 = vpop.f32.mrb[41].mxu1  ;;  %v2948_v54 = vadd.f32 %v7454_v5, %v10342_v60 }
 0xafb   : > { %v3031_v13 = vand.u32 2147483647, %v2995_v27  ;;  %v3053_v22 = vadd.f32 1.0, %v3041_v24  ;;  %v3209_v48 = vmul.f32 %v3197_v46, %v3029_v8  ;;  %v2943_v0 = vadd.f32 %v10342_v60, %v2942_v52 }
 0xafc   : > { %8690 = vrcp.f32 %v3054_v47  ;;  %v3200_v61 = vsub.f32 0.0, %v3032_v18  ;;  %v3223_v62 = vmul.f32 1.442695, %v3210_v16  ;;  %v3044_v55 = vmul.f32 0.3275911, %v3032_v18 }
 0xafd   : > { %v7457_v45 = vpop.f32.mrb[42].mxu1  ;;  %v3199_v11 = vsub.f32 0.0, %v3031_v13  ;;  %v2998_v42 = vmul.f32 0.70710677, %v2948_v54  ;;  %vm3008_vm7 = vcmp.ge.f32.partialorder %v2996_v41, 0.0  ;;  %vm3007_vm8 = vcmp.ge.f32.partialorder %v2995_v27, 0.0 }
 0xafe   : > { %v2952_v58 = vpop.f32.mrb[43].mxu1  ;;  %v3212_v14 = vmul.f32 %v3200_v61, %v3032_v18  ;;  %v10360_v40 = vmul.f32 0.70710677, %v2943_v0  ;;  %v10362_v36 = vmul.f32 0.5, %v2938_v29  ;;  %v10364_v15 = vmul.f32 0.5, %v2933_v34 }
 0xaff   : > { %v3043_v50 = vmul.f32 0.3275911, %v3031_v13  ;;  %v3034_v37 = vand.u32 2147483647, %v2998_v42  ;;  %8692 = vrcp.f32 %v3053_v22  ;;  %v3221_v30 = vmul.f32 1.442695, %v3209_v48 }
 0xb00   : > { %v3211_v10 = vmul.f32 %v3199_v11, %v3031_v13  ;;  %v3033_v44 = vand.u32 2147483647, %v10360_v40  ;;  %8694 = vpow2.f32 %v3223_v62  ;;  %v10368_v43 = vsel %vm3008_vm7, 1.0, %v12225_v59 }
 0xb01   : > { %v3056_v19 = vadd.f32 1.0, %v3044_v55  ;;  %v10371_v1 = vsel %vm3007_vm8, 1.0, %v12225_v59  ;;  %v3227_v3 = vmul.f32 1.442695, %v3212_v14  ;;  %v10373_v23 = vmul.f32 0.5, %v2948_v54 }
 0xb02   : > { %v7460_v57 = vpop.f32.mrb[44].mxu1  ;;  %v3046_v49 = vmul.f32 0.3275911, %v3034_v37  ;;  %v10376_v56 = vadd.f32 %v7457_v45, %v10342_v60  ;;  %v3055_v29 = vadd.f32 1.0, %v3043_v50  ;;  %v3202_v6 = vsub.f32 0.0, %v3034_v37 }
 0xb03   : > { %v2962_v35 = vpop.f32.mrb[45].mxu1  ;;  %v10380_v8 = vmul.f32 0.5, %v2943_v0  ;;  %v2953_v34 = vadd.f32 %v10342_v60, %v2952_v58  ;;  %8696 = vpow2.f32 %v3221_v30  ;;  %v3225_v33 = vmul.f32 1.442695, %v3211_v10 }
 0xb04   : > { %v3201_v41 = vsub.f32 0.0, %v3033_v44  ;;  %8698 = vrcp.f32 %v3056_v19  ;;  %vm3010_vm9 = vcmp.ge.f32.partialorder %v2998_v42, 0.0  ;;  %v3045_v27 = vmul.f32 0.3275911, %v3033_v44 }
 0xb05   : > { %v3000_v5 = vmul.f32 0.70710677, %v10376_v56  ;;  %8700 = vpow2.f32 %v3227_v3  ;;  %v3058_v46 = vadd.f32 1.0, %v3046_v49  ;;  %v10387_v18 = vmul.f32 0.70710677, %v2953_v34 }
 0xb06   : > { %v10378_v26 = vpop.eup %8690  ;;  %v7463_v47 = vpop.f32.mrb[46].mxu1  ;;  %8702 = vrcp.f32 %v3055_v29  ;;  %v3214_v52 = vmul.f32 %v3202_v6, %v3034_v37  ;;  %v10390_v13 = vadd.f32 %v7460_v57, %v10342_v60  ;;  %v10394_v45 = vsel %vm3010_vm9, 1.0, %v12225_v59 }
 0xb07   : > { %v3090_v38 = vmul.f32 1.0614054, %v10378_v26  ;;  %v10385_v16 = vpop.f32.mrb[47].mxu1  ;;  %v3036_v61 = vand.u32 2147483647, %v3000_v5  ;;  %8704 = vpow2.f32 %v3225_v33  ;;  %v3213_v62 = vmul.f32 %v3201_v41, %v3033_v44 }
 0xb08   : > { %v3057_v22 = vadd.f32 1.0, %v3045_v27  ;;  %v3035_v58 = vand.u32 2147483647, %v10387_v18  ;;  %8706 = vrcp.f32 %v3058_v46  ;;  %vm3009_vm10 = vcmp.ge.f32.partialorder %v10360_v40, 0.0 }
 0xb09   : > { %v3102_v24 = vadd.f32 -1.4531521, %v3090_v38  ;;  %v3048_v48 = vmul.f32 0.3275911, %v3036_v61  ;;  %v3204_v0 = vsub.f32 0.0, %v3036_v61  ;;  %v10397_v55 = vpop.eup %8692  ;;  %v2963_v10 = vadd.f32 %v10342_v60, %v2962_v35 }
 0xb0a   : > { %v10401_v42 = vmul.f32 0.70710677, %v10390_v13  ;;  %v8695_v14 = vpop.eup %8694  ;;  %v3231_v50 = vmul.f32 1.442695, %v3214_v52  ;;  %v3047_v37 = vmul.f32 0.3275911, %v3035_v58  ;;  %8708 = vrcp.f32 %v3057_v22 }
 0xb0b   : > { %v3114_v54 = vmul.f32 %v10378_v26, %v3102_v24  ;;  %v3203_v30 = vsub.f32 0.0, %v3035_v58  ;;  %v3229_v57 = vmul.f32 1.442695, %v3213_v62  ;;  %v3216_v19 = vmul.f32 %v3204_v0, %v3036_v61 }
 0xb0c   : > { %v3038_v3 = vand.u32 2147483647, %v10401_v42  ;;  %v10407_v49 = vsel %vm3009_vm10, 1.0, %v12225_v59  ;;  %vm3012_vm11 = vcmp.ge.f32.partialorder %v3000_v5, 0.0  ;;  %v3060_v40 = vadd.f32 1.0, %v3048_v48 }
 0xb0d   : > { %v3126_v11 = vadd.f32 1.4214138, %v3114_v54  ;;  %v10409_v29 = vpop.eup %8696  ;;  %v3059_v38 = vadd.f32 1.0, %v3047_v37  ;;  %v3215_v33 = vmul.f32 %v3203_v30, %v3035_v58  ;;  %8710 = vpow2.f32 %v3231_v50 }
 0xb0e   : > { %v3206_v41 = vsub.f32 0.0, %v3038_v3  ;;  %v10411_v27 = vpop.eup %8698  ;;  %v10413_v35 = vmul.f32 0.5, %v2953_v34  ;;  %v3001_v24 = vmul.f32 0.70710677, %v2963_v10  ;;  %v10416_v46 = vadd.f32 %v7463_v47, %v10342_v60 }
 0xb0f   : > { %v3138_v44 = vmul.f32 %v10378_v26, %v3126_v11  ;;  %v10418_v52 = vpop.eup %8700  ;;  %8712 = vpow2.f32 %v3229_v57  ;;  %v10422_v61 = vsel %vm3012_vm11, 1.0, %v12225_v59  ;;  %v3235_v54 = vmul.f32 1.442695, %v3216_v19 }
 0xb10   : > { %12300 = vst [vmem:[#allocation24_spill] sm:$0xff] %v10416_v46  ;;  %v10424_v62 = vpop.eup %8702  ;;  %8714 = vrcp.f32 %v3060_v40  ;;  %vm3011_vm12 = vcmp.ge.f32.partialorder %v10387_v18, 0.0  ;;  %v3050_v34 = vmul.f32 0.3275911, %v3038_v3  ;;  %v3037_v22 = vand.u32 2147483647, %v3001_v24 }
 0xb11   : > { %v3150_v6 = vadd.f32 -0.28449672, %v3138_v44  ;;  %v10427_v48 = vpop.eup %8704  ;;  %8716 = vrcp.f32 %v3059_v38  ;;  %v3233_v0 = vmul.f32 1.442695, %v3215_v33  ;;  %v3218_v58 = vmul.f32 %v3206_v41, %v3038_v3 }
 0xb12   : > { %v3049_v11 = vmul.f32 0.3275911, %v3037_v22  ;;  %v3205_v50 = vsub.f32 0.0, %v3037_v22  ;;  %v10430_v37 = vmul.f32 0.70710677, %v10416_v46  ;;  %v10434_v30 = vadd.f32 %v10342_v60, %v10385_v16  ;;  %v10436_v44 = vpop.eup %8706 }
 0xb13   : > { %v3162_v5 = vmul.f32 %v10378_v26, %v3150_v6  ;;  %8718 = vpow2.f32 %v3235_v54  ;;  %v10440_v57 = vsel %vm3011_vm12, 1.0, %v12225_v59  ;;  %v3089_v19 = vmul.f32 1.0614054, %v10397_v55 }
 0xb14   : > { %v3062_v3 = vadd.f32 1.0, %v3050_v34  ;;  %v3061_v40 = vadd.f32 1.0, %v3049_v11  ;;  %v3217_v6 = vmul.f32 %v3205_v50, %v3037_v22  ;;  %v3040_v38 = vand.u32 2147483647, %v10430_v37  ;;  %v10447_v16 = vpop.eup %8708 }
 0xb15   : > { %v3174_v47 = vadd.f32 0.2548296, %v3162_v5  ;;  %8720 = vpow2.f32 %v3233_v0  ;;  %v3239_v41 = vmul.f32 1.442695, %v3218_v58  ;;  %v10445_v60 = vmul.f32 0.70710677, %v10434_v30 }
 0xb16   : > { %8722 = vrcp.f32 %v3061_v40  ;;  %v3052_v5 = vmul.f32 0.3275911, %v3040_v38  ;;  %v3091_v54 = vmul.f32 1.0614054, %v10424_v62  ;;  %vm3013_vm13 = vcmp.ge.f32.partialorder %v3001_v24, 0.0 }
 0xb17   : > { %v3186_v18 = vmul.f32 %v10378_v26, %v3174_v47  ;;  %v3237_v26 = vmul.f32 1.442695, %v3217_v6  ;;  %v3039_v34 = vand.u32 2147483647, %v10445_v60  ;;  %v3101_v22 = vadd.f32 -1.4531521, %v3089_v19  ;;  %v10451_v11 = vpop.eup %8710 }
 0xb18   : > { %8724 = vrcp.f32 %v3062_v3  ;;  %v3064_v0 = vadd.f32 1.0, %v3052_v5  ;;  %v3208_v58 = vsub.f32 0.0, %v3040_v38  ;;  %v12301_v24 = vmov -1.0  }
 0xb19   : > { %v3246_v33 = vmul.f32 %v8695_v14, %v3186_v18  ;;  %v10453_v14 = vmul.f32 0.5, %v2963_v10  ;;  %v10455_v50 = vpop.eup %8712  ;;  %v3051_v40 = vmul.f32 0.3275911, %v3039_v34  ;;  %v3207_v6 = vsub.f32 0.0, %v3039_v34 }
 0xb1a   : > { %v3113_v59 = vmul.f32 %v10397_v55, %v3101_v22  ;;  %8726 = vpow2.f32 %v3239_v41  ;;  %v10462_v19 = vsel %vm3013_vm13, 1.0, %v12301_v24  ;;  %v3103_v20 = vadd.f32 -1.4531521, %v3091_v54 }
 0xb1b   : > { %v3258_v47 = vsub.f32 1.0, %v3246_v33  ;;  %v10459_v33 = vpop.eup %8714  ;;  %v3092_v10 = vmul.f32 1.0614054, %v10411_v27  ;;  %8728 = vpow2.f32 %v3237_v26  ;;  %v3063_v63 = vadd.f32 1.0, %v3051_v40 }
 0xb1c   : > { %v10465_v3 = vpop.eup %8716  ;;  %v3125_v17 = vadd.f32 1.4214138, %v3113_v59  ;;  %v3093_v32 = vmul.f32 1.0614054, %v10447_v16  ;;  %8730 = vrcp.f32 %v3064_v0  ;;  %v10476_v54 = vmul.f32 %v3207_v6, %v3039_v34 }
 0xb1d   : > { %v3270_v18 = vmul.f32 %v3258_v47, %v10351_v53  ;;  %v10467_v53 = vmul.f32 %v3208_v58, %v3040_v38  ;;  %v3115_v47 = vmul.f32 %v10424_v62, %v3103_v20  ;;  %v3104_v22 = vadd.f32 -1.4531521, %v3092_v10  ;;  %v10471_v41 = vpop.eup %8718 }
 0xb1e   : > { %v3105_v38 = vadd.f32 -1.4531521, %v3093_v32  ;;  %v3094_v58 = vmul.f32 1.0614054, %v10436_v44  ;;  %8732 = vrcp.f32 %v3063_v63  ;;  %v3095_v10 = vmul.f32 1.0614054, %v10465_v3 }
 0xb1f   : > { %v3282_v5 = vadd.f32 1.0, %v3270_v18  ;;  %v3137_v18 = vmul.f32 %v10397_v55, %v3125_v17  ;;  %v3127_v26 = vadd.f32 1.4214138, %v3115_v47  ;;  %v3116_v59 = vmul.f32 %v10411_v27, %v3104_v22  ;;  %v10481_v20 = vpop.eup %8720 }
 0xb20   : > { %v3117_v17 = vmul.f32 %v10447_v16, %v3105_v38  ;;  %v3106_v6 = vadd.f32 -1.4531521, %v3094_v58  ;;  %v3107_v47 = vadd.f32 -1.4531521, %v3095_v10  ;;  %vm3014_vm14 = vcmp.ge.f32.partialorder %v10401_v42, 0.0 }
 0xb21   : > { %v10474_v25 = vmul.f32 %v3282_v5, %v10348_v9  ;;  %v3149_v40 = vadd.f32 -0.28449672, %v3137_v18  ;;  %v3096_v9 = vmul.f32 1.0614054, %v10459_v33  ;;  %v10485_v5 = vpop.eup %8722  ;;  %v3139_v34 = vmul.f32 %v10424_v62, %v3127_v26 }
 0xb22   : > { %v3128_v0 = vadd.f32 1.4214138, %v3116_v59  ;;  %v3097_v51 = vmul.f32 1.0614054, %v10485_v5  ;;  %v10491_v63 = vpop.eup %8724  ;;  %v3129_v12 = vadd.f32 1.4214138, %v3117_v17  ;;  %v3118_v31 = vmul.f32 %v10436_v44, %v3106_v6 }
 0xb23   : > { %v3161_v32 = vmul.f32 %v10397_v55, %v3149_v40  ;;  %v3108_v22 = vadd.f32 -1.4531521, %v3096_v9  ;;  %v3151_v18 = vadd.f32 -0.28449672, %v3139_v34  ;;  %v3119_v26 = vmul.f32 %v10465_v3, %v3107_v47 }
 0xb24   : > { %v3140_v39 = vmul.f32 %v10411_v27, %v3128_v0  ;;  %v3109_v38 = vadd.f32 -1.4531521, %v3097_v51  ;;  %v10497_v58 = vpop.eup %8726  ;;  %v3141_v9 = vmul.f32 %v10447_v16, %v3129_v12  ;;  %v3130_v4 = vadd.f32 1.4214138, %v3118_v31 }
 0xb25   : > { %v3173_v2 = vadd.f32 0.2548296, %v3161_v32  ;;  %v3120_v59 = vmul.f32 %v10459_v33, %v3108_v22  ;;  %v3163_v40 = vmul.f32 %v10424_v62, %v3151_v18  ;;  %v10501_v34 = vpop.eup %8728  ;;  %v3131_v17 = vadd.f32 1.4214138, %v3119_v26 }
 0xb26   : > { %v3152_v10 = vadd.f32 -0.28449672, %v3140_v39  ;;  %v3121_v32 = vmul.f32 %v10485_v5, %v3109_v38  ;;  %v3153_v51 = vadd.f32 -0.28449672, %v3141_v9  ;;  %v3142_v21 = vmul.f32 %v10436_v44, %v3130_v4  ;;  %v10507_v46 = vpop.eup %8730 }
 0xb27   : > { %v3185_v0 = vmul.f32 %v10397_v55, %v3173_v2  ;;  %v3132_v6 = vadd.f32 1.4214138, %v3120_v59  ;;  %v3175_v47 = vadd.f32 0.2548296, %v3163_v40  ;;  %v3143_v31 = vmul.f32 %v10465_v3, %v3131_v17 }
 0xb28   : > { %v3164_v22 = vmul.f32 %v10411_v27, %v3152_v10  ;;  %v3133_v18 = vadd.f32 1.4214138, %v3121_v32  ;;  %v3165_v26 = vmul.f32 %v10447_v16, %v3153_v51  ;;  %v3154_v59 = vadd.f32 -0.28449672, %v3142_v21  ;;  %v10514_v38 = vpop.eup %8732 }
 0xb29   : > { %v3245_v39 = vmul.f32 %v10409_v29, %v3185_v0  ;;  %v3144_v12 = vmul.f32 %v10459_v33, %v3132_v6  ;;  %v3187_v2 = vmul.f32 %v10424_v62, %v3175_v47  ;;  %v3155_v10 = vadd.f32 -0.28449672, %v3143_v31 }
 0xb2a   : > { %v3176_v55 = vadd.f32 0.2548296, %v3164_v22  ;;  %v3145_v9 = vmul.f32 %v10485_v5, %v3133_v18  ;;  %v3177_v17 = vadd.f32 0.2548296, %v3165_v26  ;;  %v3166_v6 = vmul.f32 %v10436_v44, %v3154_v59 }
 0xb2b   : > { %v3257_v40 = vsub.f32 1.0, %v3245_v39  ;;  %v3156_v4 = vadd.f32 -0.28449672, %v3144_v12  ;;  %v3247_v29 = vmul.f32 %v10427_v48, %v3187_v2  ;;  %v3167_v32 = vmul.f32 %v10465_v3, %v3155_v10 }
 0xb2c   : > { %v3188_v0 = vmul.f32 %v10411_v27, %v3176_v55  ;;  %v3157_v47 = vadd.f32 -0.28449672, %v3145_v9  ;;  %v3189_v39 = vmul.f32 %v10447_v16, %v3177_v17  ;;  %v3178_v31 = vadd.f32 0.2548296, %v3166_v6 }
 0xb2d   : > { %v3269_v62 = vmul.f32 %v3257_v40, %v10358_v28  ;;  %v3168_v21 = vmul.f32 %v10459_v33, %v3156_v4  ;;  %v3259_v22 = vsub.f32 1.0, %v3247_v29  ;;  %v3179_v48 = vadd.f32 0.2548296, %v3167_v32 }
 0xb2e   : > { %v3248_v51 = vmul.f32 %v10418_v52, %v3188_v0  ;;  %v3169_v27 = vmul.f32 %v10485_v5, %v3157_v47  ;;  %v3249_v28 = vmul.f32 %v10455_v50, %v3189_v39  ;;  %v3190_v26 = vmul.f32 %v10436_v44, %v3178_v31 }
 0xb2f   : > { %v3281_v12 = vadd.f32 1.0, %v3269_v62  ;;  %v3180_v18 = vadd.f32 0.2548296, %v3168_v21  ;;  %v3271_v2 = vmul.f32 %v3259_v22, %v10371_v1  ;;  %v3191_v40 = vmul.f32 %v10465_v3, %v3179_v48 }
 0xb30   : > { %v3260_v55 = vsub.f32 1.0, %v3248_v51  ;;  %v3181_v16 = vadd.f32 0.2548296, %v3169_v27  ;;  %v3261_v9 = vsub.f32 1.0, %v3249_v28  ;;  %v3250_v29 = vmul.f32 %v10451_v11, %v3190_v26 }
 0xb31   : > { %v3293_v59 = vmul.f32 %v3281_v12, %v10353_v7  ;;  %v3192_v52 = vmul.f32 %v10459_v33, %v3180_v18  ;;  %v3283_v10 = vadd.f32 1.0, %v3271_v2  ;;  %v3251_v1 = vmul.f32 %v10481_v20, %v3191_v40 }
 0xb32   : > { %v3272_v4 = vmul.f32 %v3260_v55, %v10368_v43  ;;  %v3193_v44 = vmul.f32 %v10485_v5, %v3181_v16  ;;  %v3098_v7 = vmul.f32 1.0614054, %v10491_v63  ;;  %v3273_v0 = vmul.f32 %v3261_v9, %v10407_v49 }
 0xb33   : > { %7496 = vmatprep.mubr.f32.mxu0 %v3293_v59  ;;  %v3252_v50 = vmul.f32 %v10471_v41, %v3192_v52  ;;  %v3295_v33 = vmul.f32 %v3283_v10, %v10364_v15  ;;  %v3262_v43 = vsub.f32 1.0, %v3250_v29  ;;  %v3263_v17 = vsub.f32 1.0, %v3251_v1 }
 0xb34   : > { %7497 = vmatmul.mubr.f32.vlgmr.msra.gmra.mrb[48].mxu0 %v10474_v25  ;;  %v3284_v3 = vadd.f32 1.0, %v3272_v4  ;;  %v3253_v11 = vmul.f32 %v10501_v34, %v3193_v44  ;;  %v3110_v62 = vadd.f32 -1.4531521, %v3098_v7  ;;  %v3285_v20 = vadd.f32 1.0, %v3273_v0 }
 0xb35   : > { %v3264_v6 = vsub.f32 1.0, %v3252_v50  ;;  %7499 = vmatprep.mubr.f32.mxu0 %v3295_v33  ;;  %v3274_v5 = vmul.f32 %v3262_v43, %v10394_v45  ;;  %v3099_v32 = vmul.f32 1.0614054, %v10514_v38  ;;  %v3275_v25 = vmul.f32 %v3263_v17, %v10440_v57 }
 0xb36   : > { %v3296_v41 = vmul.f32 %v3284_v3, %v10362_v36  ;;  %v3265_v21 = vsub.f32 1.0, %v3253_v11  ;;  %v3122_v49 = vmul.f32 %v10491_v63, %v3110_v62  ;;  %v3297_v47 = vmul.f32 %v3285_v20, %v10380_v8 }
 0xb37   : > { %v3276_v15 = vmul.f32 %v3264_v6, %v10422_v61  ;;  %v3286_v34 = vadd.f32 1.0, %v3274_v5  ;;  %v3111_v22 = vadd.f32 -1.4531521, %v3099_v32  ;;  %v3100_v51 = vmul.f32 1.0614054, %v10507_v46  ;;  %v12302_v32 = vld [vmem:[#allocation24_spill] sm:$0xff] }
 0xb38   : > { %7500 = vmatmul.mubr.f32.gmra.mrb[50].mxu0 %v3296_v41  ;;  %v3241_v36 = vmul.f32 1.442695, %v10476_v54  ;;  %v3287_v39 = vadd.f32 1.0, %v3275_v25  ;;  %v3277_v45 = vmul.f32 %v3265_v21, %v10462_v19  ;;  %v3134_v31 = vadd.f32 1.4214138, %v3122_v49 }
 0xb39   : > { %7502 = vmatprep.mubr.f32.mxu0 %v3297_v47  ;;  %v3298_v57 = vmul.f32 %v3286_v34, %v10373_v23  ;;  %v3288_v61 = vadd.f32 1.0, %v3276_v15  ;;  %v3123_v12 = vmul.f32 %v10514_v38, %v3111_v22  ;;  %v3112_v48 = vadd.f32 -1.4531521, %v3100_v51  ;;  %v6606_v49 = vld [vmem:[%s12194_s15] ss:$0 sm:$0xff]  ;;  %v12304_v51 = vld [vmem:[#allocation20_spill] sm:$0xff] }
 0xb3a   : > { %v3243_v18 = vmul.f32 1.442695, %v10467_v53  ;;  %v3299_v8 = vmul.f32 %v3287_v39, %v10413_v35  ;;  %v3289_v27 = vadd.f32 1.0, %v3277_v45  ;;  %v3146_v2 = vmul.f32 %v10491_v63, %v3134_v31  ;;  %v12303_v47 = vld [vmem:[#allocation19_spill] sm:$0xff]  ;;  %v12305_v31 = vld [vmem:[#allocation21_spill] sm:$0xff] }
 0xb3b   : > { %v2988_v54 = vmul.f32 0.5, %v10376_v56  ;;  %v3135_v55 = vadd.f32 1.4214138, %v3123_v12  ;;  %v3124_v19 = vmul.f32 %v10507_v46, %v3112_v48  ;;  %8734 = vpow2.f32 %v3241_v36  ;;  %v12306_v48 = vld [vmem:[#allocation22_spill] sm:$0xff] }
 0xb3c   : > { %7503 = vmatmul.mubr.f32.gmra.mrb[52].mxu0 %v3298_v57  ;;  %v3301_v23 = vmul.f32 %v3289_v27, %v10453_v14  ;;  %v3158_v28 = vadd.f32 -0.28449672, %v3146_v2  ;;  %8736 = vpow2.f32 %v3243_v18  ;;  %v3026_v33 = vsel %vm3014_vm14, 1.0, %v12301_v24 }
 0xb3d   : > { %7505 = vmatprep.mubr.f32.mxu0 %v3299_v8  ;;  %v3300_v26 = vmul.f32 %v3288_v61, %v2988_v54  ;;  %v3147_v59 = vmul.f32 %v10514_v38, %v3135_v55  ;;  %v3136_v53 = vadd.f32 1.4214138, %v3124_v19  ;;  %vm3015_vm15 = vcmp.ge.f32.partialorder %v10445_v60, 0.0  ;;  %v12307_v55 = vld [vmem:[#allocation23_spill] sm:$0xff] }
 0xb3e   : > { %v3170_v35 = vmul.f32 %v10491_v63, %v3158_v28  ;;  %vm3016_vm0 = vcmp.ge.f32.partialorder %v10430_v37, 0.0  ;;  %v2991_v60 = vmul.f32 0.5, %v10434_v30  ;;  %v2992_v25 = vmul.f32 0.5, %v12302_v32 }
 0xb3f   : > { %v3159_v40 = vadd.f32 -0.28449672, %v3147_v59  ;;  %v3148_v56 = vmul.f32 %v10507_v46, %v3136_v53  ;;  %v3028_v41 = vsel %vm3016_vm0, 1.0, %v12301_v24 }
 0xb40   : > { %7506 = vmatmul.mubr.f32.gmra.mrb[54].mxu0 %v3300_v26  ;;  %v3182_v52 = vadd.f32 0.2548296, %v3170_v35  ;;  %v12308_v26 = vld [vmem:[#allocation11_spill] sm:$0xff] }
 0xb41   : > { %7508 = vmatprep.mubr.f32.mxu0 %v3301_v23  ;;  %v3171_v16 = vmul.f32 %v10514_v38, %v3159_v40  ;;  %v3160_v10 = vadd.f32 -0.28449672, %v3148_v56 }
 0xb42   : > { %v3194_v4 = vmul.f32 %v10491_v63, %v3182_v52  ;;  %v12309_v52 = vld [vmem:[#allocation12_spill] sm:$0xff] }
 0xb43   : > { %v3183_v14 = vadd.f32 0.2548296, %v3171_v16  ;;  %v3172_v9 = vmul.f32 %v10507_v46, %v3160_v10 }
 0xb44   : > { %v3254_v29 = vmul.f32 %v10497_v58, %v3194_v4  ;;  %v2990_v58 = vmul.f32 0.5, %v10390_v13 }
 0xb45   : > { %v3195_v1 = vmul.f32 %v10514_v38, %v3183_v14  ;;  %v3184_v50 = vadd.f32 0.2548296, %v3172_v9  ;;  %v8735_v44 = vpop.eup %8734  ;;  %v3027_v38 = vsel %vm3015_vm15, 1.0, %v12301_v24  ;;  %v12310_v14 = vld [vmem:[#allocation13_spill] sm:$0xff] }
 0xb46   : > { %v3266_v7 = vsub.f32 1.0, %v3254_v29  ;;  %v8737_v63 = vpop.eup %8736 }
 0xb47   : > { %v3255_v3 = vmul.f32 %v8735_v44, %v3195_v1  ;;  %v3196_v0 = vmul.f32 %v10507_v46, %v3184_v50 }
 0xb48   : > { %v3278_v43 = vmul.f32 %v3266_v7, %v3026_v33 }
 0xb49   : > { %v3267_v17 = vsub.f32 1.0, %v3255_v3  ;;  %v3256_v42 = vmul.f32 %v8737_v63, %v3196_v0  ;;  %v12312_v3 = vld [vmem:[#allocation14_spill] sm:$0xff] }
 0xb4a   : > { %v3290_v6 = vadd.f32 1.0, %v3278_v43  ;;  %v12313_v43 = vld [vmem:[#allocation15_spill] sm:$0xff] }
 0xb4b   : > { %v3279_v11 = vmul.f32 %v3267_v17, %v3027_v38  ;;  %v3268_v62 = vsub.f32 1.0, %v3256_v42 }
 0xb4c   : > { %v3302_v20 = vmul.f32 %v3290_v6, %v2990_v58 }
 0xb4d   : > { %v3291_v5 = vadd.f32 1.0, %v3279_v11  ;;  %v3280_v46 = vmul.f32 %v3268_v62, %v3028_v41  ;;  %v12316_v11 = vld [vmem:[#allocation16_spill] sm:$0xff] }
 0xb4e   : > { %7509 = vmatmul.mubr.f32.gmra.mrb[56].mxu0 %v3302_v20 }
 0xb4f   : > { %v3303_v37 = vmul.f32 %v3291_v5, %v2991_v60  ;;  %v3292_v15 = vadd.f32 1.0, %v3280_v46  ;;  %v12317_v60 = vld [vmem:[#allocation17_spill] sm:$0xff] }
 0xb51   : > { %7511 = vmatprep.mubr.f32.mxu0 %v3303_v37  ;;  %v3304_v21 = vmul.f32 %v3292_v15, %v2992_v25  ;;  %v6611_v15 = vld [vmem:[%s12185_s6 + $0x20] sm:$0xff] }
 0xb53   : > { %7512 = vmatmul.mubr.f32.gmra.mrb[58].mxu0 %v3304_v21  ;;  %v6612_v21 = vld [vmem:[%s12185_s6 + $0x28] sm:$0xff] }
 0xc07   : > { %v7498_v13 = vpop.f32.mrb[48].mxu0 }
 0xc08   : > { %v3447_v34 = vadd.f32 %v7498_v13, %v12303_v47  ;;  %v3387_v22 = vpop.f32.mrb[49].mxu0  ;;  %v8020_v13 = vpack.c.bf16 %v6612_v21, %v6611_v15 }
 0xc09   : > { %v3446_v30 = vadd.f32 %v3387_v22, %v12304_v51 }
 0xc0a   : > { %v10583_v36 = vadd.f32 %v6606_v49, %v3447_v34  ;;  %8021 = vmatprep.subr.bf16.mxu1 %v8020_v13 }
 0xc0b   : > { %v10585_v39 = vadd.f32 %v6606_v49, %v3446_v30  ;;  %v7501_v45 = vpop.f32.mrb[50].mxu0  ;;  %8023 = vmatpush3.bf16.msra.mxu1 %v8020_v13 }
 0xc0c   : > { %v3449_v57 = vadd.f32 %v7501_v45, %v12305_v31  ;;  %v3397_v61 = vpop.f32.mrb[51].mxu0  ;;  %v3484_v12 = vsel %vm788_vm1, %v10583_v36, 0.0 }
 0xc0d   : > { %v3448_v18 = vadd.f32 %v3397_v61, %v12306_v48  ;;  %3485 = vadd.xlane.f32.xlu1 %v3484_v12  ;;  %v3481_v8 = vsel %vm788_vm1, %v10585_v39, 0.0 }
 0xc0e   : > { %v10593_v27 = vadd.f32 %v6606_v49, %v3449_v57  ;;  %3482 = vadd.xlane.f32.xlu0 %v3481_v8 }
 0xc0f   : > { %v10595_v2 = vadd.f32 %v6606_v49, %v3448_v18  ;;  %v7504_v54 = vpop.f32.mrb[52].mxu0 }
 0xc10   : > { %v3451_v19 = vadd.f32 %v7504_v54, %v12307_v55  ;;  %v3407_v23 = vpop.f32.mrb[53].mxu0  ;;  %v3490_v28 = vsel %vm788_vm1, %v10593_v27, 0.0 }
 0xc11   : > { %v3450_v59 = vadd.f32 %v3407_v23, %v12308_v26  ;;  %3491 = vadd.xlane.f32.xlu1 %v3490_v28  ;;  %v3487_v53 = vsel %vm788_vm1, %v10595_v2, 0.0 }
 0xc12   : > { %v10603_v35 = vadd.f32 %v6606_v49, %v3451_v19  ;;  %3488 = vadd.xlane.f32.xlu0 %v3487_v53 }
 0xc13   : > { %v10605_v40 = vadd.f32 %v6606_v49, %v3450_v59  ;;  %v7507_v56 = vpop.f32.mrb[54].mxu0 }
 0xc14   : > { %v3453_v16 = vadd.f32 %v7507_v56, %v12309_v52  ;;  %v3496_v10 = vsel %vm788_vm1, %v10603_v35, 0.0  ;;  %v3417_v4 = vpop.f32.mrb[55].mxu0 }
 0xc15   : > { %3497 = vadd.xlane.f32.xlu1 %v3496_v10  ;;  %v3452_v9 = vadd.f32 %v3417_v4, %v12310_v14  ;;  %v3493_v29 = vsel %vm788_vm1, %v10605_v40, 0.0 }
 0xc16   : > { %v10613_v1 = vadd.f32 %v6606_v49, %v3453_v16  ;;  %3494 = vadd.xlane.f32.xlu0 %v3493_v29 }
 0xc17   : > { %v10615_v50 = vadd.f32 %v6606_v49, %v3452_v9 }
 0xc18   : > { %v3502_v44 = vsel %vm788_vm1, %v10613_v1, 0.0 }
 0xc19   : > { %12311 = vst [vmem:[#allocation24_spill] sm:$0xff] %v10615_v50  ;;  %3503 = vadd.xlane.f32.xlu1 %v3502_v44  ;;  %v3499_v7 = vsel %vm788_vm1, %v10615_v50, 0.0 }
 0xc1a   : > { %3500 = vadd.xlane.f32.xlu0 %v3499_v7 }
 0xc21   : > { %v7510_v33 = vpop.f32.mrb[56].mxu0 }
 0xc22   : > { %v3455_v0 = vadd.f32 %v7510_v33, %v12312_v3  ;;  %v3427_v63 = vpop.f32.mrb[57].mxu0 }
 0xc23   : > { %v3454_v17 = vadd.f32 %v3427_v63, %v12313_v43 }
 0xc24   : > { %v10623_v42 = vadd.f32 %v6606_v49, %v3455_v0 }
 0xc25   : > { %v10625_v58 = vadd.f32 %v6606_v49, %v3454_v17 }
 0xc26   : > { %12314 = vst [vmem:[#allocation19_spill] sm:$0xff] %v10623_v42  ;;  %v7513_v38 = vpop.f32.mrb[58].mxu0  ;;  %v3508_v6 = vsel %vm788_vm1, %v10623_v42, 0.0 }
 0xc27   : > { %12315 = vst [vmem:[#allocation20_spill] sm:$0xff] %v10625_v58  ;;  %v3457_v62 = vadd.f32 %v7513_v38, %v12316_v11  ;;  %v3437_v41 = vpop.f32.mrb[59].mxu0  ;;  %3509 = vadd.xlane.f32.xlu1 %v3508_v6  ;;  %v3505_v20 = vsel %vm788_vm1, %v10625_v58, 0.0 }
 0xc28   : > { %v3456_v5 = vadd.f32 %v3437_v41, %v12317_v60  ;;  %3506 = vadd.xlane.f32.xlu0 %v3505_v20 }
 0xc29   : > { %v10633_v46 = vadd.f32 %v6606_v49, %v3457_v62 }
 0xc2a   : > { %v10635_v32 = vadd.f32 %v6606_v49, %v3456_v5 }
 0xc2b   : > { %12318 = vst [vmem:[#allocation21_spill] sm:$0xff] %v10633_v46  ;;  %v3514_v25 = vsel %vm788_vm1, %v10633_v46, 0.0 }
 0xc2c   : > { %12319 = vst [vmem:[#allocation22_spill] sm:$0xff] %v10635_v32  ;;  %3515 = vadd.xlane.f32.xlu1 %v3514_v25  ;;  %v3511_v37 = vsel %vm788_vm1, %v10635_v32, 0.0 }
 0xc2d   : > { %3512 = vadd.xlane.f32.xlu0 %v3511_v37 }
 0xc9a   : > { %v3486_v49 = vpop.xlane.xlu1 %3485 }
 0xc9b   : > { %v3518_v47 = vmul.f32 0.03125, %v3486_v49  ;;  %v3483_v34 = vpop.xlane.xlu0 %3482 }
 0xc9c   : > { %v3517_v22 = vmul.f32 0.03125, %v3483_v34 }
 0xc9d   : > { %v10648_v51 = vsub.f32 %v10583_v36, %v3518_v47 }
 0xc9e   : > { %v10651_v30 = vsub.f32 %v10585_v39, %v3517_v22  ;;  %v3492_v45 = vpop.xlane.xlu1 %3491 }
 0xc9f   : > { %v3520_v31 = vmul.f32 0.03125, %v3492_v45  ;;  %v3489_v57 = vpop.xlane.xlu0 %3488  ;;  %v3542_v61 = vmul.f32 %v10648_v51, %v10648_v51 }
 0xca0   : > { %v3519_v12 = vmul.f32 0.03125, %v3489_v57  ;;  %v3541_v48 = vmul.f32 %v10651_v30, %v10651_v30 }
 0xca1   : > { %v10658_v18 = vsub.f32 %v10593_v27, %v3520_v31  ;;  %v3556_v8 = vsel %vm788_vm1, %v3542_v61, 0.0 }
 0xca2   : > { %v10662_v54 = vsub.f32 %v10595_v2, %v3519_v12  ;;  %v3498_v55 = vpop.xlane.xlu1 %3497  ;;  %3557 = vadd.xlane.f32.xlu1 %v3556_v8  ;;  %v3553_v19 = vsel %vm788_vm1, %v3541_v48, 0.0  ;;  %v6613_v12 = vld [vmem:[%s12185_s6 + $0x30] sm:$0xff]  ;;  %v6614_v48 = vld [vmem:[%s12185_s6 + $0x38] sm:$0xff] }
 0xca3   : > { %v3522_v23 = vmul.f32 0.03125, %v3498_v55  ;;  %3554 = vadd.xlane.f32.xlu0 %v3553_v19  ;;  %v3495_v28 = vpop.xlane.xlu0 %3494  ;;  %v3544_v26 = vmul.f32 %v10658_v18, %v10658_v18  ;;  %v8024_v55 = vpack.c.bf16 %v6614_v48, %v6613_v12 }
 0xca4   : > { %v3521_v59 = vmul.f32 0.03125, %v3495_v28  ;;  %v3543_v53 = vmul.f32 %v10662_v54, %v10662_v54 }
 0xca5   : > { %v10670_v56 = vsub.f32 %v10603_v35, %v3522_v23  ;;  %v3562_v52 = vsel %vm788_vm1, %v3544_v26, 0.0  ;;  %8025 = vmatprep.subr.bf16.mxu1 %v8024_v55 }
 0xca6   : > { %v10674_v16 = vsub.f32 %v10605_v40, %v3521_v59  ;;  %3563 = vadd.xlane.f32.xlu1 %v3562_v52  ;;  %v3504_v10 = vpop.xlane.xlu1 %3503  ;;  %v3559_v4 = vsel %vm788_vm1, %v3543_v53, 0.0  ;;  %8027 = vmatpush3.bf16.msra.mxu1 %v8024_v55 }
 0xca7   : > { %v3524_v14 = vmul.f32 0.03125, %v3504_v10  ;;  %3560 = vadd.xlane.f32.xlu0 %v3559_v4  ;;  %v3501_v9 = vpop.xlane.xlu0 %3500  ;;  %v3546_v29 = vmul.f32 %v10670_v56, %v10670_v56 }
 0xca8   : > { %v3523_v44 = vmul.f32 0.03125, %v3501_v9  ;;  %v3545_v7 = vmul.f32 %v10674_v16, %v10674_v16 }
 0xca9   : > { %v10682_v33 = vsub.f32 %v10613_v1, %v3524_v14  ;;  %v3568_v3 = vsel %vm788_vm1, %v3546_v29, 0.0 }
 0xcaa   : > { %v10686_v0 = vsub.f32 %v10615_v50, %v3523_v44  ;;  %3569 = vadd.xlane.f32.xlu1 %v3568_v3  ;;  %v3565_v63 = vsel %vm788_vm1, %v3545_v7, 0.0 }
 0xcab   : > { %3566 = vadd.xlane.f32.xlu0 %v3565_v63  ;;  %v3548_v43 = vmul.f32 %v10682_v33, %v10682_v33 }
 0xcac   : > { %v3547_v17 = vmul.f32 %v10686_v0, %v10686_v0 }
 0xcad   : > { %v3574_v38 = vsel %vm788_vm1, %v3548_v43, 0.0 }
 0xcae   : > { %3575 = vadd.xlane.f32.xlu1 %v3574_v38  ;;  %v3571_v6 = vsel %vm788_vm1, %v3547_v17, 0.0 }
 0xcaf   : > { %3572 = vadd.xlane.f32.xlu0 %v3571_v6 }
 0xcb4   : > { %v3510_v11 = vpop.xlane.xlu1 %3509 }
 0xcb5   : > { %v3526_v62 = vmul.f32 0.03125, %v3510_v11  ;;  %v3507_v41 = vpop.xlane.xlu0 %3506 }
 0xcb6   : > { %v3525_v20 = vmul.f32 0.03125, %v3507_v41 }
 0xcb7   : > { %v10696_v60 = vsub.f32 %v10623_v42, %v3526_v62 }
 0xcb8   : > { %v10699_v5 = vsub.f32 %v10625_v58, %v3525_v20  ;;  %v10728_v20 = vld [vmem:[%s12183_s4 + $0x1] ss:$0 sm:$0xff] }
 0xcb9   : > { %v3516_v25 = vpop.xlane.xlu1 %3515  ;;  %v3550_v37 = vmul.f32 %v10696_v60, %v10696_v60 }
 0xcba   : > { %v3528_v15 = vmul.f32 0.03125, %v3516_v25  ;;  %v3513_v21 = vpop.xlane.xlu0 %3512  ;;  %v3549_v13 = vmul.f32 %v10699_v5, %v10699_v5 }
 0xcbb   : > { %v3527_v49 = vmul.f32 0.03125, %v3513_v21  ;;  %v3580_v47 = vsel %vm788_vm1, %v3550_v37, 0.0 }
 0xcbc   : > { %v10707_v34 = vsub.f32 %v10633_v46, %v3528_v15  ;;  %3581 = vadd.xlane.f32.xlu1 %v3580_v47  ;;  %v3577_v22 = vsel %vm788_vm1, %v3549_v13, 0.0  ;;  %v10736_v47 = vld [vmem:[%s12184_s5 + $0x1] ss:$0 sm:$0xff] }
 0xcbd   : > { %v10711_v45 = vsub.f32 %v10635_v32, %v3527_v49  ;;  %3578 = vadd.xlane.f32.xlu0 %v3577_v22 }
 0xcbe   : > { %v3552_v31 = vmul.f32 %v10707_v34, %v10707_v34 }
 0xcbf   : > { %v3551_v57 = vmul.f32 %v10711_v45, %v10711_v45 }
 0xcc0   : > { %v3586_v61 = vsel %vm788_vm1, %v3552_v31, 0.0 }
 0xcc1   : > { %3587 = vadd.xlane.f32.xlu1 %v3586_v61  ;;  %v3583_v8 = vsel %vm788_vm1, %v3551_v57, 0.0 }
 0xcc2   : > { %3584 = vadd.xlane.f32.xlu0 %v3583_v8 }
 0xd2f   : > { %v3558_v19 = vpop.xlane.xlu1 %3557 }
 0xd30   : > { %v3590_v23 = vmul.f32 0.03125, %v3558_v19  ;;  %v3555_v28 = vpop.xlane.xlu0 %3554 }
 0xd31   : > { %v3589_v26 = vmul.f32 0.03125, %v3555_v28 }
 0xd32   : > { %v3602_v59 = vadd.f32 1e-06, %v3590_v23 }
 0xd33   : > { %v3601_v53 = vadd.f32 1e-06, %v3589_v26  ;;  %v3564_v52 = vpop.xlane.xlu1 %3563 }
 0xd34   : > { %8738 = vrsqrt.f32 %v3602_v59  ;;  %v3592_v10 = vmul.f32 0.03125, %v3564_v52  ;;  %v3561_v4 = vpop.xlane.xlu0 %3560 }
 0xd35   : > { %8740 = vrsqrt.f32 %v3601_v53  ;;  %v3591_v14 = vmul.f32 0.03125, %v3561_v4 }
 0xd36   : > { %v3604_v9 = vadd.f32 1e-06, %v3592_v10 }
 0xd37   : > { %v3603_v29 = vadd.f32 1e-06, %v3591_v14  ;;  %v3570_v44 = vpop.xlane.xlu1 %3569 }
 0xd38   : > { %8742 = vrsqrt.f32 %v3604_v9  ;;  %v3594_v7 = vmul.f32 0.03125, %v3570_v44  ;;  %v3567_v3 = vpop.xlane.xlu0 %3566 }
 0xd39   : > { %8744 = vrsqrt.f32 %v3603_v29  ;;  %v3593_v63 = vmul.f32 0.03125, %v3567_v3 }
 0xd3a   : > { %v3606_v43 = vadd.f32 1e-06, %v3594_v7 }
 0xd3b   : > { %v3605_v17 = vadd.f32 1e-06, %v3593_v63  ;;  %v3576_v38 = vpop.xlane.xlu1 %3575 }
 0xd3c   : > { %8746 = vrsqrt.f32 %v3606_v43  ;;  %v3596_v6 = vmul.f32 0.03125, %v3576_v38  ;;  %v3573_v11 = vpop.xlane.xlu0 %3572 }
 0xd3d   : > { %8748 = vrsqrt.f32 %v3605_v17  ;;  %v3595_v62 = vmul.f32 0.03125, %v3573_v11 }
 0xd3e   : > { %v8739_v41 = vpop.eup %8738  ;;  %v3608_v25 = vadd.f32 1e-06, %v3596_v6 }
 0xd3f   : > { %v8741_v37 = vpop.eup %8740  ;;  %v3626_v15 = vmul.f32 %v8739_v41, %v10648_v51  ;;  %v3607_v21 = vadd.f32 1e-06, %v3595_v62 }
 0xd40   : > { %8750 = vrsqrt.f32 %v3608_v25  ;;  %v3625_v13 = vmul.f32 %v8741_v37, %v10651_v30 }
 0xd41   : > { %v3644_v49 = vmul.f32 %v10728_v20, %v3626_v15  ;;  %8752 = vrsqrt.f32 %v3607_v21 }
 0xd42   : > { %v8743_v22 = vpop.eup %8742  ;;  %v3643_v31 = vmul.f32 %v10728_v20, %v3625_v13 }
 0xd43   : > { %v8745_v57 = vpop.eup %8744  ;;  %v3628_v61 = vmul.f32 %v8743_v22, %v10658_v18  ;;  %v3662_v30 = vadd.f32 %v10736_v47, %v3644_v49 }
 0xd44   : > { %v3661_v51 = vadd.f32 %v10736_v47, %v3643_v31  ;;  %v3627_v12 = vmul.f32 %v8745_v57, %v10662_v54 }
 0xd45   : > { %v3646_v48 = vmul.f32 %v10728_v20, %v3628_v61 }
 0xd46   : > { %v8747_v8 = vpop.eup %8746  ;;  %7522 = vmatprep.mubr.msk.f32.mxu1 %vm788_vm1, %v3661_v51  ;;  %v3645_v55 = vmul.f32 %v10728_v20, %v3627_v12 }
 0xd47   : > { %v8749_v19 = vpop.eup %8748  ;;  %7523 = vmatmul.mubr.msk.f32.vlgmr.msra.gmra.mrb[48].mxu1 %vm788_vm1, %v3662_v30  ;;  %v3630_v23 = vmul.f32 %v8747_v8, %v10670_v56  ;;  %v3664_v54 = vadd.f32 %v10736_v47, %v3646_v48 }
 0xd48   : > { %v3663_v18 = vadd.f32 %v10736_v47, %v3645_v55  ;;  %v3629_v28 = vmul.f32 %v8749_v19, %v10674_v16 }
 0xd49   : > { %v3648_v26 = vmul.f32 %v10728_v20, %v3630_v23  ;;  %v3582_v53 = vpop.xlane.xlu1 %3581 }
 0xd4a   : > { %v8751_v59 = vpop.eup %8750  ;;  %7525 = vmatprep.mubr.msk.f32.mxu1 %vm788_vm1, %v3663_v18  ;;  %v3647_v52 = vmul.f32 %v10728_v20, %v3629_v28  ;;  %v3598_v4 = vmul.f32 0.03125, %v3582_v53  ;;  %v3579_v14 = vpop.xlane.xlu0 %3578 }
 0xd4b   : > { %v8753_v10 = vpop.eup %8752  ;;  %7526 = vmatmul.mubr.msk.f32.gmra.mrb[50].mxu1 %vm788_vm1, %v3664_v54  ;;  %v3632_v56 = vmul.f32 %v8751_v59, %v10682_v33  ;;  %v3597_v9 = vmul.f32 0.03125, %v3579_v14  ;;  %v3666_v7 = vadd.f32 %v10736_v47, %v3648_v26 }
 0xd4c   : > { %v3665_v16 = vadd.f32 %v10736_v47, %v3647_v52  ;;  %v3631_v29 = vmul.f32 %v8753_v10, %v10686_v0  ;;  %v3610_v44 = vadd.f32 1e-06, %v3598_v4 }
 0xd4d   : > { %v3650_v3 = vmul.f32 %v10728_v20, %v3632_v56  ;;  %v3609_v63 = vadd.f32 1e-06, %v3597_v9 }
 0xd4e   : > { %7528 = vmatprep.mubr.msk.f32.mxu1 %vm788_vm1, %v3665_v16  ;;  %v3649_v43 = vmul.f32 %v10728_v20, %v3631_v29  ;;  %8754 = vrsqrt.f32 %v3610_v44  ;;  %v3588_v17 = vpop.xlane.xlu1 %3587 }
 0xd4f   : > { %7529 = vmatmul.mubr.msk.f32.gmra.mrb[52].mxu1 %vm788_vm1, %v3666_v7  ;;  %8756 = vrsqrt.f32 %v3609_v63  ;;  %v3600_v33 = vmul.f32 0.03125, %v3588_v17  ;;  %v3585_v38 = vpop.xlane.xlu0 %3584  ;;  %v3668_v11 = vadd.f32 %v10736_v47, %v3650_v3 }
 0xd50   : > { %v3667_v6 = vadd.f32 %v10736_v47, %v3649_v43  ;;  %v3599_v0 = vmul.f32 0.03125, %v3585_v38 }
 0xd51   : > { %v3612_v62 = vadd.f32 1e-06, %v3600_v33 }
 0xd52   : > { %7531 = vmatprep.mubr.msk.f32.mxu1 %vm788_vm1, %v3667_v6  ;;  %v3611_v41 = vadd.f32 1e-06, %v3599_v0 }
 0xd53   : > { %7532 = vmatmul.mubr.msk.f32.gmra.mrb[54].mxu1 %vm788_vm1, %v3668_v11  ;;  %8758 = vrsqrt.f32 %v3612_v62 }
 0xd54   : > { %8760 = vrsqrt.f32 %v3611_v41 }
 0xd58   : > { %v8755_v25 = vpop.eup %8754 }
 0xd59   : > { %v8757_v37 = vpop.eup %8756  ;;  %v3634_v15 = vmul.f32 %v8755_v25, %v10696_v60 }
 0xd5a   : > { %v3633_v21 = vmul.f32 %v8757_v37, %v10699_v5 }
 0xd5b   : > { %v3652_v13 = vmul.f32 %v10728_v20, %v3634_v15 }
 0xd5c   : > { %v3651_v49 = vmul.f32 %v10728_v20, %v3633_v21 }
 0xd5d   : > { %v8759_v22 = vpop.eup %8758  ;;  %v3670_v51 = vadd.f32 %v10736_v47, %v3652_v13 }
 0xd5e   : > { %v8761_v31 = vpop.eup %8760  ;;  %v3669_v57 = vadd.f32 %v10736_v47, %v3651_v49  ;;  %v3636_v61 = vmul.f32 %v8759_v22, %v10707_v34  ;;  %v6616_v34 = vld [vmem:[%s12186_s7 + $0x1] ss:$0 sm:$0xff] }
 0xd5f   : > { %v3635_v12 = vmul.f32 %v8761_v31, %v10711_v45 }
 0xd60   : > { %7534 = vmatprep.mubr.msk.f32.mxu1 %vm788_vm1, %v3669_v57  ;;  %v3654_v60 = vmul.f32 %v10728_v20, %v3636_v61 }
 0xd61   : > { %7535 = vmatmul.mubr.msk.f32.gmra.mrb[56].mxu1 %vm788_vm1, %v3670_v51  ;;  %v3653_v5 = vmul.f32 %v10728_v20, %v3635_v12 }
 0xd62   : > { %v3672_v48 = vadd.f32 %v10736_v47, %v3654_v60 }
 0xd63   : > { %v3671_v30 = vadd.f32 %v10736_v47, %v3653_v5 }
 0xd65   : > { %7537 = vmatprep.mubr.msk.f32.mxu1 %vm788_vm1, %v3671_v30 }
 0xd66   : > { %7538 = vmatmul.mubr.msk.f32.gmra.mrb[58].mxu1 %vm788_vm1, %v3672_v48 }
 0xe1a   : > { %v7524_v45 = vpop.f32.mrb[48].mxu1 }
 0xe1b   : > { %v10786_v8 = vadd.f32 %v7524_v45, %v6616_v34  ;;  %v3788_v55 = vpop.f32.mrb[49].mxu1 }
 0xe1c   : > { %v3789_v19 = vadd.f32 %v6616_v34, %v3788_v55 }
 0xe1e   : > { %v7527_v23 = vpop.f32.mrb[50].mxu1  ;;  %7564 = vmatprep.mubr.msk.f32.mxu0 %vm1198_vm2, %v3789_v19  ;;  %v10790_v20 = vpack.i.bf16 %v10786_v8, %v3789_v19 }
 0xe1f   : > { %v10792_v47 = vadd.f32 %v7527_v23, %v6616_v34  ;;  %v3798_v18 = vpop.f32.mrb[51].mxu1 }
 0xe20   : > { %v10794_v28 = vadd.f32 %v6616_v34, %v3798_v18  ;;  %8427 = vrot.lane.b32.xlu0 %v10790_v20, %s12320_s30 }
 0xe22   : > { %v7530_v54 = vpop.f32.mrb[52].mxu1  ;;  %v10800_v26 = vpack.i.bf16 %v10792_v47, %v10794_v28 }
 0xe23   : > { %v10802_v59 = vadd.f32 %v7530_v54, %v6616_v34  ;;  %v3808_v53 = vpop.f32.mrb[53].mxu1 }
 0xe24   : > { %v10804_v52 = vadd.f32 %v6616_v34, %v3808_v53  ;;  %8432 = vrot.lane.b32.xlu1 %v10800_v26, %s12320_s30 }
 0xe26   : > { %v7533_v10 = vpop.f32.mrb[54].mxu1  ;;  %v10810_v4 = vpack.i.bf16 %v10802_v59, %v10804_v52 }
 0xe27   : > { %v10812_v14 = vadd.f32 %v7533_v10, %v6616_v34  ;;  %v3818_v56 = vpop.f32.mrb[55].mxu1 }
 0xe28   : > { %8437 = vrot.lane.b32.xlu1 %v10810_v4, %s12320_s30  ;;  %v10816_v9 = vadd.f32 %v6616_v34, %v3818_v56 }
 0xe2a   : > { %v10820_v16 = vpack.i.bf16 %v10812_v14, %v10816_v9 }
 0xe2c   : > { %8442 = vrot.lane.b32.xlu0 %v10820_v16, %s12320_s30 }
 0xe34   : > { %v7536_v29 = vpop.f32.mrb[56].mxu1 }
 0xe35   : > { %v10824_v44 = vadd.f32 %v7536_v29, %v6616_v34  ;;  %v3828_v7 = vpop.f32.mrb[57].mxu1 }
 0xe36   : > { %v10826_v3 = vadd.f32 %v6616_v34, %v3828_v7 }
 0xe38   : > { %v10830_v63 = vpack.i.bf16 %v10824_v44, %v10826_v3 }
 0xe39   : > { %v7539_v43 = vpop.f32.mrb[58].mxu1 }
 0xe3a   : > { %v10832_v17 = vadd.f32 %v7539_v43, %v6616_v34  ;;  %v3838_v33 = vpop.f32.mrb[59].mxu1  ;;  %8447 = vrot.lane.b32.xlu1 %v10830_v63, %s12320_s30 }
 0xe3b   : > { %v10836_v38 = vadd.f32 %v6616_v34, %v3838_v33 }
 0xe3d   : > { %v10840_v6 = vpack.i.bf16 %v10832_v17, %v10836_v38 }
 0xe3e   : > { %8457 = vrot.lane.b32.xlu1 %v10790_v20, %s12321_s27 }
 0xe3f   : > { %8452 = vrot.lane.b32.xlu0 %v10840_v6, %s12320_s30  ;;  %s12130_s30 = scalar_lea.hbm %s12197_s18, %s8258_s19 }
 0xe42   : > { %8467 = vrot.lane.b32.xlu1 %v10810_v4, %s12321_s27 }
 0xe43   : > { %8462 = vrot.lane.b32.xlu0 %v10800_v26, %s12321_s27 }
 0xe46   : > { %8477 = vrot.lane.b32.xlu1 %v10830_v63, %s12321_s27 }
 0xe47   : > { %8472 = vrot.lane.b32.xlu0 %v10820_v16, %s12321_s27 }
 0xe4a   : > { %4570 = vrot.lane.b32.xlu1 %v3789_v19, %s12322_s24 }
 0xe4b   : > { %4572 = vrot.lane.b32.xlu0 %v10786_v8, %s12322_s24 }
 0xe4e   : > { %4574 = vrot.lane.b32.xlu1 %v10794_v28, %s12322_s24 }
 0xe4f   : > { %4576 = vrot.lane.b32.xlu0 %v10792_v47, %s12322_s24 }
 0xe52   : > { %4578 = vrot.lane.b32.xlu1 %v10804_v52, %s12322_s24 }
 0xe53   : > { %4580 = vrot.lane.b32.xlu0 %v10802_v59, %s12322_s24 }
 0xe56   : > { %4582 = vrot.lane.b32.xlu1 %v10816_v9, %s12322_s24 }
 0xe57   : > { %4584 = vrot.lane.b32.xlu0 %v10812_v14, %s12322_s24 }
 0xe5a   : > { %4586 = vrot.lane.b32.xlu1 %v10826_v3, %s12322_s24 }
 0xe5b   : > { %4588 = vrot.lane.b32.xlu0 %v10824_v44, %s12322_s24 }
 0xe5e   : > { %8492 = vrot.lane.b32.xlu1 %v10800_v26, %s12323_s25 }
 0xe5f   : > { %8482 = vrot.lane.b32.xlu0 %v10840_v6, %s12321_s27  ;;  %s8256_s27 = smul.u32 96, %s569_s21 }
 0xe61   : > { %s12071_s20 = scalar_lea.vmem [#allocation2], %s8256_s27 }
 0xe62   : > { %4590 = vrot.lane.b32.xlu1 %v10836_v38, %s12322_s24  ;;  %s6397_s1 = sshll.u32 %s12071_s20, 4  ;;  %s12124_s1 = int_to_ptr.vmem [resolvable:$true] %s6397_s1 }
 0xe63   : > { %4592 = vrot.lane.b32.xlu0 %v10832_v17, %s12322_s24  ;;  %s8966_s27 = scalar_lea.vmem %s12124_s1, 1536  ;;  %s9036_s24 = smov [#allocation2]  }
 0xe64   : > { %p8967_p11 = scmp.ne.s32.totalorder %s12124_s1, %s8966_s27  ;;  %s8970_s29 = sshll.u32 %s9036_s24, 4  ;;  %s8971_s29 = int_to_ptr.vmem [resolvable:$false] %s8970_s29 }
 0xe65   : > { %p8973_p0 = scmp.lt.s32.totalorder %s12124_s1, %s8971_s29 }
 0xe66   : > { %p8968_p12 = pnand %p8967_p11, %p9172_p5 }
 0xe67   : > { %8487 = vrot.lane.b32.xlu0 %v10790_v20, %s12323_s25 }
 0xe68   : > { %p8969_p13 = pneg %p8968_p12 }
 0xe92   : > { %v8428_v0 = vpop.permute.xlu0 %8427 }
 0xe93   : > { %v8430_v11 = vunpack.i.h.bf16 %v8428_v0  ;;  %v8429_v62 = vunpack.i.l.bf16 %v8428_v0 }
 0xe95   : > { %v8028_v41 = vpack.c.bf16 %v8430_v11, %v8429_v62 }
 0xe96   : > { %v8433_v25 = vpop.permute.xlu1 %8432 }
 0xe97   : > { %v8435_v37 = vunpack.i.h.bf16 %v8433_v25  ;;  %v8434_v15 = vunpack.i.l.bf16 %v8433_v25  ;;  %8030 = vmatprep.subr.msk.bf16.mxu0 %vm9546_vm3, %v8028_v41 }
 0xe98   : > { %8033 = vmatpush3.bf16.xpose.msk.msra.mxu0 %vm9546_vm3, %v8028_v41 }
 0xe99   : > { %v8034_v13 = vpack.c.bf16 %v8435_v37, %v8434_v15 }
 0xe9a   : > { %v8438_v49 = vpop.permute.xlu1 %8437 }
 0xe9b   : > { %v8440_v22 = vunpack.i.h.bf16 %v8438_v49  ;;  %v8439_v31 = vunpack.i.l.bf16 %v8438_v49  ;;  %8036 = vmatprep.subr.msk.bf16.mxu0 %vm9546_vm3, %v8034_v13 }
 0xe9d   : > { %v8040_v57 = vpack.c.bf16 %v8440_v22, %v8439_v31 }
 0xe9e   : > { %v8443_v61 = vpop.permute.xlu0 %8442 }
 0xe9f   : > { %v8445_v51 = vunpack.i.h.bf16 %v8443_v61  ;;  %v8444_v12 = vunpack.i.l.bf16 %v8443_v61 }
 0xea0   : > { %8039 = vmatpush3.bf16.xpose.msk.msra.mxu0 %vm9546_vm3, %v8034_v13 }
 0xea1   : > { %8042 = vmatprep.subr.msk.bf16.mxu0 %vm9546_vm3, %v8040_v57  ;;  %v8046_v60 = vpack.c.bf16 %v8445_v51, %v8444_v12 }
 0xea8   : > { %8045 = vmatpush3.bf16.xpose.msk.msra.mxu0 %vm9546_vm3, %v8040_v57 }
 0xea9   : > { %8048 = vmatprep.subr.msk.bf16.mxu0 %vm9546_vm3, %v8046_v60 }
 0xeac   : > { %v8448_v5 = vpop.permute.xlu1 %8447 }
 0xead   : > { %v8450_v30 = vunpack.i.h.bf16 %v8448_v5  ;;  %v8449_v48 = vunpack.i.l.bf16 %v8448_v5 }
 0xeaf   : > { %v8052_v34 = vpack.c.bf16 %v8450_v30, %v8449_v48 }
 0xeb0   : > { %8051 = vmatpush3.bf16.xpose.msk.msra.mxu0 %vm9546_vm3, %v8046_v60  ;;  %v8458_v45 = vpop.permute.xlu1 %8457 }
 0xeb1   : > { %v8453_v55 = vpop.permute.xlu0 %8452  ;;  %8054 = vmatprep.subr.msk.bf16.mxu0 %vm9546_vm3, %v8052_v34  ;;  %v8460_v29 = vunpack.i.h.bf16 %v8458_v45  ;;  %v8459_v7 = vunpack.i.l.bf16 %v8458_v45 }
 0xeb2   : > { %v8455_v19 = vunpack.i.h.bf16 %v8453_v55  ;;  %v8454_v23 = vunpack.i.l.bf16 %v8453_v55 }
 0xeb3   : > { %v8092_v0 = vpack.c.bf16 %v8460_v29, %v8459_v7 }
 0xeb4   : > { %v8468_v18 = vpop.permute.xlu1 %8467  ;;  %v8058_v53 = vpack.c.bf16 %v8455_v19, %v8454_v23 }
 0xeb5   : > { %v8463_v54 = vpop.permute.xlu0 %8462  ;;  %v8470_v22 = vunpack.i.h.bf16 %v8468_v18  ;;  %v8469_v31 = vunpack.i.l.bf16 %v8468_v18  ;;  %v10971_v18 = vld [vmem:[%s12280_s3 + $0x8] sm:$0xff] }
 0xeb6   : > { %v8465_v41 = vunpack.i.h.bf16 %v8463_v54  ;;  %v8464_v25 = vunpack.i.l.bf16 %v8463_v54 }
 0xeb7   : > { %v8104_v61 = vpack.c.bf16 %v8470_v22, %v8469_v31  ;;  %v11019_v31 = vld [vmem:[%s12280_s3 + $0x20] sm:$0xff] }
 0xeb8   : > { %8057 = vmatpush3.bf16.xpose.msk.msra.mxu0 %vm9546_vm3, %v8052_v34  ;;  %v8478_v10 = vpop.permute.xlu1 %8477  ;;  %v8098_v13 = vpack.c.bf16 %v8465_v41, %v8464_v25 }
 0xeb9   : > { %8060 = vmatprep.subr.msk.bf16.mxu0 %vm9546_vm3, %v8058_v53  ;;  %v8473_v56 = vpop.permute.xlu0 %8472  ;;  %v8480_v60 = vunpack.i.h.bf16 %v8478_v10 }
 0xeba   : > { %v8475_v51 = vunpack.i.h.bf16 %v8473_v56  ;;  %v8474_v12 = vunpack.i.l.bf16 %v8473_v56 }
 0xebc   : > { %v4571_v43 = vpop.permute.xlu1 %4570 }
 0xebd   : > { %v10905_v33 = vpop.permute.xlu0 %4572 }
 0xec0   : > { %8063 = vmatpush3.bf16.xpose.msk.msra.mxu0 %vm9546_vm3, %v8058_v53  ;;  %v4575_v11 = vpop.permute.xlu1 %4574 }
 0xec1   : > { %8094 = vmatprep.subr.msk.bf16.mxu0 %vm9546_vm3, %v8092_v0  ;;  %v4577_v62 = vpop.permute.xlu0 %4576 }
 0xec4   : > { %v4579_v37 = vpop.permute.xlu1 %4578 }
 0xec5   : > { %v4581_v15 = vpop.permute.xlu0 %4580 }
 0xec7   : > { %7565 = vmatmul.mubr.msk.f32.vlgmr.msra.gmra.mrb[60].mxu0 %vm1198_vm2, %v10786_v8 }
 0xec8   : > { %7567 = vmatprep.mubr.msk.f32.mxu0 %vm1198_vm2, %v10794_v28  ;;  %8097 = vmatpush3.bf16.xpose.msk.msra.mxu0 %vm9546_vm3, %v8092_v0  ;;  %v4583_v57 = vpop.permute.xlu1 %4582 }
 0xec9   : > { %8100 = vmatprep.subr.msk.bf16.mxu0 %vm9546_vm3, %v8098_v13  ;;  %v4585_v49 = vpop.permute.xlu0 %4584 }
 0xecb   : > { %7568 = vmatmul.mubr.msk.f32.gmra.mrb[62].mxu0 %vm1198_vm2, %v10792_v47 }
 0xecc   : > { %7570 = vmatprep.mubr.msk.f32.mxu0 %vm1198_vm2, %v10804_v52  ;;  %v4587_v28 = vpop.permute.xlu1 %4586  ;;  %v8110_v52 = vpack.c.bf16 %v8475_v51, %v8474_v12 }
 0xecd   : > { %v4589_v8 = vpop.permute.xlu0 %4588 }
 0xecf   : > { %7571 = vmatmul.mubr.msk.f32.gmra.mrb[64].mxu0 %vm1198_vm2, %v10802_v59 }
 0xed0   : > { %7573 = vmatprep.mubr.msk.f32.mxu0 %vm1198_vm2, %v10816_v9  ;;  %8103 = vmatpush3.bf16.xpose.msk.msra.mxu0 %vm9546_vm3, %v8098_v13  ;;  %v8493_v9 = vpop.permute.xlu1 %8492  ;;  %v11011_v13 = vld [vmem:[%s12280_s3 + $0x28] sm:$0xff] }
 0xed1   : > { %8106 = vmatprep.subr.msk.bf16.mxu0 %vm9546_vm3, %v8104_v61  ;;  %v8483_v47 = vpop.permute.xlu0 %8482  ;;  %v8495_v30 = vunpack.i.h.bf16 %v8493_v9 }
 0xed2   : > { %v8485_v55 = vunpack.i.h.bf16 %v8483_v47  ;;  %v8484_v19 = vunpack.i.l.bf16 %v8483_v47  ;;  %v11031_v47 = vld [vmem:[%s12280_s3 + $0x38] sm:$0xff] }
 0xed3   : > { %7574 = vmatmul.mubr.msk.f32.gmra.mrb[66].mxu0 %vm1198_vm2, %v10812_v14  ;;  %v8479_v14 = vunpack.i.l.bf16 %v8478_v10  ;;  %v10979_v10 = vld [vmem:[%s12280_s3] sm:$0xff] }
 0xed4   : > { %7576 = vmatprep.mubr.msk.f32.mxu0 %vm1198_vm2, %v10826_v3  ;;  %v8494_v3 = vunpack.i.l.bf16 %v8493_v9  ;;  %v8122_v23 = vpack.c.bf16 %v8485_v55, %v8484_v19  ;;  %v11071_v55 = vld [vmem:[%s12280_s3 + $0x58] sm:$0xff] }
 0xed5   : > { %v4593_v59 = vpop.permute.xlu0 %4592 }
 0xed6   : > { %v8068_v45 = vpack.c.bf16 %v8495_v30, %v8494_v3 }
 0xed7   : > { %7577 = vmatmul.mubr.msk.f32.gmra.mrb[68].mxu0 %vm1198_vm2, %v10824_v44 }
 0xed8   : > { %7579 = vmatprep.mubr.msk.f32.mxu0 %vm1198_vm2, %v10836_v38  ;;  %8109 = vmatpush3.bf16.xpose.msk.msra.mxu0 %vm9546_vm3, %v8104_v61  ;;  %v8116_v38 = vpack.c.bf16 %v8480_v60, %v8479_v14 }
 0xed9   : > { %8112 = vmatprep.subr.msk.bf16.mxu0 %vm9546_vm3, %v8110_v52  ;;  %v8488_v5 = vpop.permute.xlu0 %8487 }
 0xeda   : > { %v8490_v48 = vunpack.i.h.bf16 %v8488_v5  ;;  %v8489_v34 = vunpack.i.l.bf16 %v8488_v5  ;;  %v11051_v5 = vld [vmem:[%s12280_s3 + $0x48] sm:$0xff] }
 0xedb   : > { %7580 = vmatmul.mubr.msk.f32.gmra.mrb[70].mxu0 %vm1198_vm2, %v10832_v17  ;;  %v4591_v17 = vpop.permute.xlu1 %4590 }
 0xedc   : > { %7670 = vmatprep.mubr.msk.f32.mxu0 %vm1198_vm2, %v4571_v43  ;;  %v8064_v44 = vpack.c.bf16 %v8490_v48, %v8489_v34  ;;  %v11059_v48 = vld [vmem:[%s12280_s3 + $0x40] sm:$0xff] }
 0xede   : > { %8065 = vmatprep.subr.bf16.mxu1 %v8064_v44 }
 0xedf   : > { %8067 = vmatpush3.bf16.msra.mxu1 %v8064_v44 }
 0xee0   : > { %8115 = vmatpush3.bf16.xpose.msk.msra.mxu0 %vm9546_vm3, %v8110_v52  ;;  %8069 = vmatprep.subr.bf16.mxu1 %v8068_v45 }
 0xee1   : > { %8118 = vmatprep.subr.msk.bf16.mxu0 %vm9546_vm3, %v8116_v38 }
 0xee3   : > { %8071 = vmatpush3.bf16.msra.mxu1 %v8068_v45 }
 0xee8   : > { %8121 = vmatpush3.bf16.xpose.msk.msra.mxu0 %vm9546_vm3, %v8116_v38 }
 0xee9   : > { %8124 = vmatprep.subr.msk.bf16.mxu0 %vm9546_vm3, %v8122_v23 }
 0xef0   : > { %8127 = vmatpush3.bf16.xpose.msk.msra.mxu0 %vm9546_vm3, %v8122_v23 }
 0xef7   : > { %7671 = vmatmul.mubr.msk.f32.vlgmr.msra.gmra.mrb[72].mxu0 %vm1198_vm2, %v10905_v33  ;;  %v10991_v33 = vld [vmem:[%s12280_s3 + $0x18] sm:$0xff] }
 0xef8   : > { %7673 = vmatprep.mubr.msk.f32.mxu0 %vm1198_vm2, %v4575_v11 }
 0xefb   : > { %7674 = vmatmul.mubr.msk.f32.gmra.mrb[74].mxu0 %vm1198_vm2, %v4577_v62  ;;  %v10999_v62 = vld [vmem:[%s12280_s3 + $0x10] sm:$0xff] }
 0xefc   : > { %7676 = vmatprep.mubr.msk.f32.mxu0 %vm1198_vm2, %v4579_v37 }
 0xeff   : > { %7677 = vmatmul.mubr.msk.f32.gmra.mrb[76].mxu0 %vm1198_vm2, %v4581_v15 }
 0xf00   : > { %7679 = vmatprep.mubr.msk.f32.mxu0 %vm1198_vm2, %v4583_v57 }
 0xf03   : > { %7680 = vmatmul.mubr.msk.f32.gmra.mrb[78].mxu0 %vm1198_vm2, %v4585_v49 }
 0xf04   : > { %7682 = vmatprep.mubr.msk.f32.mxu0 %vm1198_vm2, %v4587_v28 }
 0xf07   : > { %7683 = vmatmul.mubr.msk.f32.gmra.mrb[80].mxu0 %vm1198_vm2, %v4589_v8 }
 0xf08   : > { %7685 = vmatprep.mubr.msk.f32.mxu0 %vm1198_vm2, %v4591_v17  ;;  %v11079_v17 = vld [vmem:[%s12280_s3 + $0x50] sm:$0xff] }
 0xf0b   : > { %7686 = vmatmul.mubr.msk.f32.gmra.mrb[82].mxu0 %vm1198_vm2, %v4593_v59  ;;  %v11039_v59 = vld [vmem:[%s12280_s3 + $0x30] sm:$0xff]  ;;  %s8972_s3 = scalar_lea.vmem %s8971_s29, 3072 }
 0xf0c   : > { %p8974_p1 = scmp.lt.s32.totalorder %s8972_s3, %s8966_s27 }
 0xf0e   : > { %p8975_p2 = por %p8974_p1, %p8973_p0 }
 0xf10   : > { %p8976_p3 = pnand %p8975_p2, %p8969_p13 }
 0xf9a   : > { %v7566_v21 = vpop.f32.mrb[60].mxu0 }
 0xf9b   : > { %v10974_v54 = vadd.f32 %v10971_v18, %v7566_v21  ;;  %v4006_v53 = vpop.f32.mrb[61].mxu0 }
 0xf9c   : > { %v10982_v56 = vadd.f32 %v10979_v10, %v4006_v53 }
 0xf9d   : > { %v4068_v29 = vsel %vm1372_vm4, %v10974_v54, -inf }
 0xf9e   : > { %4069 = vmax.xlane.f32.xlu0 %v4068_v29  ;;  %v7569_v7 = vpop.f32.mrb[62].mxu0  ;;  %v4065_v43 = vsel %vm1372_vm4, %v10982_v56, -inf }
 0xf9f   : > { %v10994_v0 = vadd.f32 %v10991_v33, %v7569_v7  ;;  %v4016_v11 = vpop.f32.mrb[63].mxu0  ;;  %4066 = vmax.xlane.f32.xlu1 %v4065_v43 }
 0xfa0   : > { %v11002_v41 = vadd.f32 %v10999_v62, %v4016_v11 }
 0xfa1   : > { %v4074_v25 = vsel %vm1372_vm4, %v10994_v0, -inf }
 0xfa2   : > { %v7572_v37 = vpop.f32.mrb[64].mxu0  ;;  %v4071_v15 = vsel %vm1372_vm4, %v11002_v41, -inf }
 0xfa3   : > { %v11014_v49 = vadd.f32 %v11011_v13, %v7572_v37  ;;  %v4026_v22 = vpop.f32.mrb[65].mxu0  ;;  %4072 = vmax.xlane.f32.xlu0 %v4071_v15  ;;  %4075 = vmax.xlane.f32.xlu1 %v4074_v25 }
 0xfa4   : > { %v11022_v57 = vadd.f32 %v11019_v31, %v4026_v22 }
 0xfa5   : > { %v4080_v8 = vsel %vm1372_vm4, %v11014_v49, -inf }
 0xfa6   : > { %v7575_v61 = vpop.f32.mrb[66].mxu0  ;;  %v4077_v28 = vsel %vm1372_vm4, %v11022_v57, -inf }
 0xfa7   : > { %v11034_v51 = vadd.f32 %v11031_v47, %v7575_v61  ;;  %v4036_v12 = vpop.f32.mrb[67].mxu0  ;;  %4078 = vmax.xlane.f32.xlu0 %v4077_v28  ;;  %4081 = vmax.xlane.f32.xlu1 %v4080_v8 }
 0xfa8   : > { %v11042_v52 = vadd.f32 %v11039_v59, %v4036_v12 }
 0xfa9   : > { %v4086_v9 = vsel %vm1372_vm4, %v11034_v51, -inf }
 0xfaa   : > { %v7578_v60 = vpop.f32.mrb[68].mxu0  ;;  %v4083_v14 = vsel %vm1372_vm4, %v11042_v52, -inf }
 0xfab   : > { %v11054_v30 = vadd.f32 %v11051_v5, %v7578_v60  ;;  %v4046_v3 = vpop.f32.mrb[69].mxu0  ;;  %4084 = vmax.xlane.f32.xlu0 %v4083_v14  ;;  %4087 = vmax.xlane.f32.xlu1 %v4086_v9 }
 0xfac   : > { %v11062_v34 = vadd.f32 %v11059_v48, %v4046_v3 }
 0xfad   : > { %v4092_v44 = vsel %vm1372_vm4, %v11054_v30, -inf }
 0xfae   : > { %v7581_v38 = vpop.f32.mrb[70].mxu0  ;;  %v4089_v45 = vsel %vm1372_vm4, %v11062_v34, -inf }
 0xfaf   : > { %v11074_v19 = vadd.f32 %v11071_v55, %v7581_v38  ;;  %v4056_v23 = vpop.f32.mrb[71].mxu0  ;;  %4090 = vmax.xlane.f32.xlu0 %v4089_v45  ;;  %4093 = vmax.xlane.f32.xlu1 %v4092_v44 }
 0xfb0   : > { %v11082_v21 = vadd.f32 %v11079_v17, %v4056_v23 }
 0xfb1   : > { %v4098_v53 = vsel %vm1372_vm4, %v11074_v19, -inf }
 0xfb2   : > { %v4095_v29 = vsel %vm1372_vm4, %v11082_v21, -inf }
 0xfb3   : > { %4096 = vmax.xlane.f32.xlu0 %v4095_v29  ;;  %4099 = vmax.xlane.f32.xlu1 %v4098_v53 }
 0xfc4   : > { %8502 = vrot.lane.b32.xlu1 %v10820_v16, %s12323_s25 }
 0xfc9   : > { %8497 = vrot.lane.b32.xlu0 %v10810_v4, %s12323_s25 }
 0xfca   : > { %v11092_v7 = vpop.f32.mrb[72].mxu0 }
 0xfcb   : > { %v11094_v43 = vpop.f32.mrb[73].mxu0 }
 0xfce   : > { %v11096_v11 = vpop.f32.mrb[74].mxu0 }
 0xfcf   : > { %v11098_v25 = vpop.f32.mrb[75].mxu0 }
 0xfd2   : > { %v11100_v37 = vpop.f32.mrb[76].mxu0 }
 0xfd3   : > { %v11102_v15 = vpop.f32.mrb[77].mxu0 }
 0xfd6   : > { %v11104_v22 = vpop.f32.mrb[78].mxu0 }
 0xfd7   : > { %v11106_v8 = vpop.f32.mrb[79].mxu0 }
 0xfda   : > { %v11108_v61 = vpop.f32.mrb[80].mxu0 }
 0xfdb   : > { %v11110_v28 = vpop.f32.mrb[81].mxu0 }
 0xfde   : > { %v11112_v12 = vpop.f32.mrb[82].mxu0 }
 0xfdf   : > { %v11114_v9 = vpop.f32.mrb[83].mxu0 }
0x102b   : > { %v4070_v60 = vpop.xlane.xlu0 %4069 }
0x102c   : > { %v4102_v14 = vsub.f32 %v10974_v54, %v4070_v60  ;;  %v4067_v3 = vpop.xlane.xlu1 %4066 }
0x102d   : > { %v4101_v44 = vsub.f32 %v10982_v56, %v4067_v3 }
0x102e   : > { %v4115_v38 = vmul.f32 1.442695, %v4102_v14 }
0x102f   : > { %v4113_v45 = vmul.f32 1.442695, %v4101_v44 }
0x1030   : > { %8762 = vpow2.f32 %v4115_v38  ;;  %v4073_v23 = vpop.xlane.xlu0 %4072  ;;  %v4076_v53 = vpop.xlane.xlu1 %4075 }
0x1031   : > { %8764 = vpow2.f32 %v4113_v45  ;;  %v4103_v29 = vsub.f32 %v11002_v41, %v4073_v23  ;;  %v4104_v24 = vsub.f32 %v10994_v0, %v4076_v53 }
0x1033   : > { %v4119_v32 = vmul.f32 1.442695, %v4104_v24  ;;  %v4117_v46 = vmul.f32 1.442695, %v4103_v29 }
0x1034   : > { %v4079_v58 = vpop.xlane.xlu0 %4078  ;;  %v4082_v42 = vpop.xlane.xlu1 %4081 }
0x1035   : > { %v4105_v50 = vsub.f32 %v11022_v57, %v4079_v58  ;;  %v4106_v54 = vsub.f32 %v11014_v49, %v4082_v42  ;;  %8766 = vpow2.f32 %v4119_v32 }
0x1036   : > { %8768 = vpow2.f32 %v4117_v46 }
0x1037   : > { %v4121_v56 = vmul.f32 1.442695, %v4105_v50  ;;  %v4123_v60 = vmul.f32 1.442695, %v4106_v54 }
0x1038   : > { %v4085_v14 = vpop.xlane.xlu0 %4084  ;;  %v4088_v3 = vpop.xlane.xlu1 %4087 }
0x1039   : > { %8770 = vpow2.f32 %v4121_v56  ;;  %v4108_v44 = vsub.f32 %v11034_v51, %v4088_v3  ;;  %v4107_v58 = vsub.f32 %v11042_v52, %v4085_v14 }
0x103a   : > { %v11123_v41 = vpop.eup %8762  ;;  %8772 = vpow2.f32 %v4123_v60 }
0x103b   : > { %v11125_v0 = vpop.eup %8764  ;;  %v4140_v24 = vsel %vm1372_vm4, %v11123_v41, 0.0  ;;  %v4127_v42 = vmul.f32 1.442695, %v4108_v44  ;;  %v4125_v38 = vmul.f32 1.442695, %v4107_v58 }
0x103c   : > { %v4091_v32 = vpop.xlane.xlu0 %4090  ;;  %4141 = vadd.xlane.f32.xlu1 %v4140_v24  ;;  %v4094_v50 = vpop.xlane.xlu1 %4093  ;;  %v4137_v46 = vsel %vm1372_vm4, %v11125_v0, 0.0 }
0x103d   : > { %v4109_v49 = vsub.f32 %v11062_v34, %v4091_v32  ;;  %4138 = vadd.xlane.f32.xlu0 %v4137_v46  ;;  %8774 = vpow2.f32 %v4127_v42  ;;  %v4110_v45 = vsub.f32 %v11054_v30, %v4094_v50 }
0x103f   : > { %v4129_v57 = vmul.f32 1.442695, %v4109_v49  ;;  %v11133_v51 = vpop.eup %8766  ;;  %v4131_v34 = vmul.f32 1.442695, %v4110_v45 }
0x1040   : > { %v4097_v23 = vpop.xlane.xlu0 %4096  ;;  %v4100_v53 = vpop.xlane.xlu1 %4099  ;;  %v4146_v52 = vsel %vm1372_vm4, %v11133_v51, 0.0 }
0x1041   : > { %8776 = vpow2.f32 %v4129_v57  ;;  %v11138_v29 = vpop.eup %8768  ;;  %4147 = vadd.xlane.f32.xlu1 %v4146_v52  ;;  %v4111_v56 = vsub.f32 %v11082_v21, %v4097_v23 }
0x1042   : > { %8778 = vpow2.f32 %v4125_v38  ;;  %v4143_v58 = vsel %vm1372_vm4, %v11138_v29, 0.0 }
0x1043   : > { %v11140_v54 = vpop.eup %8770  ;;  %8780 = vpow2.f32 %v4131_v34  ;;  %v4133_v46 = vmul.f32 1.442695, %v4111_v56 }
0x1044   : > { %v8498_v60 = vpop.permute.xlu0 %8497  ;;  %v8503_v14 = vpop.permute.xlu1 %8502  ;;  %v4149_v30 = vsel %vm1372_vm4, %v11140_v54, 0.0 }
0x1045   : > { %v8500_v3 = vunpack.i.h.bf16 %v8498_v60  ;;  %v8499_v44 = vunpack.i.l.bf16 %v8498_v60  ;;  %v8505_v24 = vunpack.i.h.bf16 %v8503_v14  ;;  %4150 = vadd.xlane.f32.xlu0 %v4149_v30  ;;  %v11147_v42 = vpop.eup %8772  ;;  %v8504_v32 = vunpack.i.l.bf16 %v8503_v14  ;;  %4144 = vadd.xlane.f32.xlu1 %v4143_v58 }
0x1046   : > { %v4152_v49 = vsel %vm1372_vm4, %v11147_v42, 0.0  ;;  %8782 = vpow2.f32 %v4133_v46  ;;  %v11180_v58 = vadd.f32 %v10971_v18, %v11092_v7  ;;  %v11198_v7 = vadd.f32 %v10979_v10, %v11094_v43 }
0x1047   : > { %v8072_v50 = vpack.c.bf16 %v8500_v3, %v8499_v44  ;;  %v8076_v21 = vpack.c.bf16 %v8505_v24, %v8504_v32  ;;  %v11151_v57 = vpop.eup %8774  ;;  %v4112_v3 = vsub.f32 %v11074_v19, %v4100_v53  ;;  %v11192_v19 = vadd.f32 %v10991_v33, %v11096_v11 }
0x1048   : > { %v4158_v23 = vsel %vm1372_vm4, %v11151_v57, 0.0  ;;  %v4794_v46 = vsel %vm1372_vm4, %v11180_v58, -inf  ;;  %v11208_v53 = vadd.f32 %v11031_v47, %v11104_v22  ;;  %v4791_v33 = vsel %vm1372_vm4, %v11198_v7, -inf }
0x1049   : > { %8073 = vmatprep.subr.bf16.mxu1 %v8072_v50  ;;  %4153 = vadd.xlane.f32.xlu1 %v4152_v49  ;;  %v4135_v44 = vmul.f32 1.442695, %v4112_v3  ;;  %v11214_v10 = vadd.f32 %v11011_v13, %v11100_v37  ;;  %v11220_v43 = vadd.f32 %v11051_v5, %v11108_v61  ;;  %v11226_v11 = vadd.f32 %v11039_v59, %v11106_v8 }
0x104a   : > { %8075 = vmatpush3.bf16.msra.mxu1 %v8072_v50  ;;  %v11186_v50 = vadd.f32 %v10999_v62, %v11098_v25  ;;  %v11202_v62 = vadd.f32 %v11019_v31, %v11102_v15  ;;  %v4800_v25 = vsel %vm1372_vm4, %v11192_v19, -inf  ;;  %v4812_v47 = vsel %vm1372_vm4, %v11208_v53, -inf }
0x104b   : > { %v11153_v38 = vpop.eup %8776  ;;  %8077 = vmatprep.subr.bf16.mxu1 %v8076_v21  ;;  %8784 = vpow2.f32 %v4135_v44  ;;  %v4806_v13 = vsel %vm1372_vm4, %v11214_v10, -inf  ;;  %v11232_v37 = vadd.f32 %v11071_v55, %v11112_v12  ;;  %v4818_v5 = vsel %vm1372_vm4, %v11220_v43, -inf }
0x104c   : > { %v4161_v45 = vsel %vm1372_vm4, %v11153_v38, 0.0  ;;  %v11159_v52 = vpop.eup %8778  ;;  %v4797_v18 = vsel %vm1372_vm4, %v11186_v50, -inf  ;;  %v4803_v31 = vsel %vm1372_vm4, %v11202_v62, -inf  ;;  %v11238_v15 = vadd.f32 %v11059_v48, %v11110_v28 }
0x104d   : > { %4162 = vadd.xlane.f32.xlu0 %v4161_v45  ;;  %4159 = vadd.xlane.f32.xlu1 %v4158_v23  ;;  %v4155_v34 = vsel %vm1372_vm4, %v11159_v52, 0.0  ;;  %v11163_v56 = vpop.eup %8780  ;;  %v4809_v59 = vsel %vm1372_vm4, %v11226_v11, -inf  ;;  %v4824_v22 = vsel %vm1372_vm4, %v11232_v37, -inf  ;;  %v11246_v55 = vadd.f32 %v11079_v17, %v11114_v9 }
0x104e   : > { %8079 = vmatpush3.bf16.msra.mxu1 %v8076_v21  ;;  %v4164_v60 = vsel %vm1372_vm4, %v11163_v56, 0.0  ;;  %v4815_v8 = vsel %vm1372_vm4, %v11238_v15, -inf }
0x104f   : > { %v4821_v48 = vsel %vm1372_vm4, %v11246_v55, -inf }
0x1050   : > { %v11167_v14 = vpop.eup %8782 }
0x1051   : > { %4156 = vadd.xlane.f32.xlu1 %v4155_v34  ;;  %v4167_v30 = vsel %vm1372_vm4, %v11167_v14, 0.0 }
0x1055   : > { %4165 = vadd.xlane.f32.xlu1 %v4164_v60  ;;  %v11176_v24 = vpop.eup %8784 }
0x1056   : > { %v4170_v32 = vsel %vm1372_vm4, %v11176_v24, 0.0 }
0x1059   : > { %4168 = vadd.xlane.f32.xlu1 %v4167_v30 }
0x1063   : > { %8507 = vrot.lane.b32.xlu0 %v10830_v63, %s12323_s25 }
0x106a   : > { %8512 = vrot.lane.b32.xlu1 %v10840_v6, %s12323_s25  ;;  %s12325_s25 = smov 48  }
0x1082   : > { %4171 = vadd.xlane.f32.xlu0 %v4170_v32  ;;  %v6668_v32 = vld [vmem:[%s12187_s8 + $0x28] sm:$0xff] }
0x1086   : > { %4795 = vmax.xlane.f32.xlu0 %v4794_v46 }
0x108a   : > { %4798 = vmax.xlane.f32.xlu0 %v4797_v18 }
0x108e   : > { %4801 = vmax.xlane.f32.xlu0 %v4800_v25  ;;  %4792 = vmax.xlane.f32.xlu1 %v4791_v33 }
0x1092   : > { %4804 = vmax.xlane.f32.xlu0 %v4803_v31  ;;  %4813 = vmax.xlane.f32.xlu1 %v4812_v47 }
0x1096   : > { %4807 = vmax.xlane.f32.xlu0 %v4806_v13  ;;  %4819 = vmax.xlane.f32.xlu1 %v4818_v5 }
0x109a   : > { %4810 = vmax.xlane.f32.xlu0 %v4809_v59  ;;  %4825 = vmax.xlane.f32.xlu1 %v4824_v22 }
0x109e   : > { %4816 = vmax.xlane.f32.xlu0 %v4815_v8 }
0x10a2   : > { %4822 = vmax.xlane.f32.xlu0 %v4821_v48 }
0x10ab   : > { %8522 = vrot.lane.b32.xlu1 %v10800_v26, %s12325_s25 }
0x10af   : > { %8532 = vrot.lane.b32.xlu1 %v10820_v16, %s12325_s25 }
0x10b8   : > { %8517 = vrot.lane.b32.xlu0 %v10790_v20, %s12325_s25 }
0x10bc   : > { %8527 = vrot.lane.b32.xlu0 %v10810_v4, %s12325_s25 }
0x10c9   : > { %v4142_v17 = vpop.xlane.xlu1 %4141 }
0x10ca   : > { %v4139_v61 = vpop.xlane.xlu0 %4138 }
0x10cb   : > { %8786 = vrcp.f32 %v4139_v61 }
0x10cc   : > { %8788 = vrcp.f32 %v4142_v17 }
0x10ce   : > { %v4148_v28 = vpop.xlane.xlu1 %4147 }
0x10d2   : > { %v4145_v12 = vpop.xlane.xlu1 %4144  ;;  %v4151_v21 = vpop.xlane.xlu0 %4150 }
0x10d3   : > { %8790 = vrcp.f32 %v4145_v12 }
0x10d4   : > { %8792 = vrcp.f32 %v4148_v28 }
0x10d5   : > { %v8787_v9 = vpop.eup %8786  ;;  %8794 = vrcp.f32 %v4151_v21 }
0x10d6   : > { %v4174_v49 = vmul.f32 %v8787_v9, %v11125_v0  ;;  %v4154_v45 = vpop.xlane.xlu1 %4153  ;;  %v6667_v0 = vld [vmem:[%s12187_s8 + $0x20] sm:$0xff]  ;;  %v8789_v31 = vpop.eup %8788 }
0x10d7   : > { %8796 = vrcp.f32 %v4154_v45  ;;  %v8088_v33 = vpack.c.bf16 %v6668_v32, %v6667_v0  ;;  %v4176_v13 = vmul.f32 %v8789_v31, %v11123_v41 }
0x10d8   : > { %7606 = vmatprep.mubr.msk.f32.mxu1 %vm1372_vm4, %v4174_v49 }
0x10da   : > { %v4163_v26 = vpop.xlane.xlu0 %4162  ;;  %v4160_v16 = vpop.xlane.xlu1 %4159 }
0x10dd   : > { %v8791_v47 = vpop.eup %8790 }
0x10de   : > { %v8508_v23 = vpop.permute.xlu0 %8507  ;;  %v4157_v60 = vpop.xlane.xlu1 %4156  ;;  %v4178_v59 = vmul.f32 %v8791_v47, %v11138_v29 }
0x10df   : > { %v8510_v34 = vunpack.i.h.bf16 %v8508_v23  ;;  %v8509_v20 = vunpack.i.l.bf16 %v8508_v23  ;;  %8798 = vrcp.f32 %v4157_v60  ;;  %v8793_v5 = vpop.eup %8792 }
0x10e0   : > { %8800 = vrcp.f32 %v4160_v16  ;;  %v8795_v22 = vpop.eup %8794  ;;  %v4180_v8 = vmul.f32 %v8793_v5, %v11133_v51 }
0x10e1   : > { %v8080_v30 = vpack.c.bf16 %v8510_v34, %v8509_v20  ;;  %8802 = vrcp.f32 %v4163_v26  ;;  %v8797_v48 = vpop.eup %8796  ;;  %v4182_v17 = vmul.f32 %v8795_v22, %v11140_v54 }
0x10e2   : > { %v4166_v4 = vpop.xlane.xlu1 %4165  ;;  %v4184_v41 = vmul.f32 %v8797_v48, %v11147_v42 }
0x10e3   : > { %8081 = vmatprep.subr.bf16.mxu1 %v8080_v30  ;;  %8804 = vrcp.f32 %v4166_v4 }
0x10e4   : > { %8083 = vmatpush3.bf16.msra.mxu1 %v8080_v30 }
0x10e6   : > { %v4169_v3 = vpop.xlane.xlu1 %4168 }
0x10e7   : > { %8806 = vrcp.f32 %v4169_v3 }
0x10e9   : > { %v8799_v61 = vpop.eup %8798 }
0x10ea   : > { %v8513_v44 = vpop.permute.xlu1 %8512  ;;  %v8801_v29 = vpop.eup %8800  ;;  %v4186_v28 = vmul.f32 %v8799_v61, %v11159_v52 }
0x10eb   : > { %v8515_v46 = vunpack.i.h.bf16 %v8513_v44  ;;  %v8514_v18 = vunpack.i.l.bf16 %v8513_v44  ;;  %v8803_v12 = vpop.eup %8802  ;;  %v4188_v51 = vmul.f32 %v8801_v29, %v11151_v57 }
0x10ec   : > { %v4190_v54 = vmul.f32 %v8803_v12, %v11153_v38 }
0x10ed   : > { %v8084_v25 = vpack.c.bf16 %v8515_v46, %v8514_v18  ;;  %v8805_v9 = vpop.eup %8804 }
0x10ee   : > { %v4192_v42 = vmul.f32 %v8805_v9, %v11163_v56 }
0x10ef   : > { %8085 = vmatprep.subr.bf16.mxu1 %v8084_v25 }
0x10f0   : > { %8087 = vmatpush3.bf16.msra.mxu1 %v8084_v25 }
0x10f1   : > { %8089 = vmatprep.subr.bf16.mxu1 %v8088_v33  ;;  %v8807_v21 = vpop.eup %8806 }
0x10f2   : > { %v4194_v49 = vmul.f32 %v8807_v21, %v11167_v14 }
0x10f3   : > { %7607 = vmatmul.mubr.msk.f32.vlgmr.msra.gmra.mrb[60].mxu1 %vm1372_vm4, %v4176_v13 }
0x10f4   : > { %7609 = vmatprep.mubr.msk.f32.mxu1 %vm1372_vm4, %v4178_v59  ;;  %8091 = vmatpush3.bf16.msra.mxu1 %v8088_v33 }
0x10f7   : > { %7610 = vmatmul.mubr.msk.f32.gmra.mrb[62].mxu1 %vm1372_vm4, %v4180_v8 }
0x10f8   : > { %7612 = vmatprep.mubr.msk.f32.mxu1 %vm1372_vm4, %v4182_v17 }
0x10fb   : > { %7613 = vmatmul.mubr.msk.f32.gmra.mrb[64].mxu1 %vm1372_vm4, %v4184_v41 }
0x10fc   : > { %7615 = vmatprep.mubr.msk.f32.mxu1 %vm1372_vm4, %v4186_v28 }
0x10ff   : > { %7616 = vmatmul.mubr.msk.f32.gmra.mrb[66].mxu1 %vm1372_vm4, %v4188_v51 }
0x1100   : > { %7618 = vmatprep.mubr.msk.f32.mxu1 %vm1372_vm4, %v4190_v54 }
0x1103   : > { %7619 = vmatmul.mubr.msk.f32.gmra.mrb[68].mxu1 %vm1372_vm4, %v4192_v42 }
0x1104   : > { %7621 = vmatprep.mubr.msk.f32.mxu1 %vm1372_vm4, %v4194_v49 }
0x110f   : > { %v4172_v52 = vpop.xlane.xlu0 %4171 }
0x1110   : > { %8808 = vrcp.f32 %v4172_v52 }
0x1113   : > { %v4796_v45 = vpop.xlane.xlu0 %4795 }
0x1114   : > { %v4828_v57 = vsub.f32 %v11180_v58, %v4796_v45 }
0x1116   : > { %v4841_v26 = vmul.f32 1.442695, %v4828_v57 }
0x1117   : > { %v4799_v38 = vpop.xlane.xlu0 %4798 }
0x1118   : > { %8810 = vpow2.f32 %v4841_v26  ;;  %v4829_v23 = vsub.f32 %v11186_v50, %v4799_v38 }
0x111a   : > { %v8809_v16 = vpop.eup %8808  ;;  %v4843_v30 = vmul.f32 1.442695, %v4829_v23 }
0x111b   : > { %v4802_v34 = vpop.xlane.xlu0 %4801  ;;  %v4196_v56 = vmul.f32 %v8809_v16, %v11176_v24  ;;  %v4793_v20 = vpop.xlane.xlu1 %4792 }
0x111c   : > { %v4830_v14 = vsub.f32 %v11192_v19, %v4802_v34  ;;  %v4827_v60 = vsub.f32 %v11198_v7, %v4793_v20 }
0x111d   : > { %7622 = vmatmul.mubr.msk.f32.gmra.mrb[70].mxu1 %vm1372_vm4, %v4196_v56 }
0x111e   : > { %v4845_v4 = vmul.f32 1.442695, %v4830_v14  ;;  %v4839_v3 = vmul.f32 1.442695, %v4827_v60 }
0x111f   : > { %v4805_v58 = vpop.xlane.xlu0 %4804  ;;  %v4814_v0 = vpop.xlane.xlu1 %4813 }
0x1120   : > { %8812 = vpow2.f32 %v4845_v4  ;;  %v4831_v44 = vsub.f32 %v11202_v62, %v4805_v58  ;;  %v4834_v19 = vsub.f32 %v11208_v53, %v4814_v0 }
0x1121   : > { %8814 = vpow2.f32 %v4839_v3 }
0x1122   : > { %v11295_v50 = vpop.eup %8810  ;;  %8816 = vpow2.f32 %v4843_v30  ;;  %v4847_v24 = vmul.f32 1.442695, %v4831_v44  ;;  %v4853_v25 = vmul.f32 1.442695, %v4834_v19 }
0x1123   : > { %v4808_v32 = vpop.xlane.xlu0 %4807  ;;  %v4866_v7 = vsel %vm1372_vm4, %v11295_v50, 0.0  ;;  %v4820_v18 = vpop.xlane.xlu1 %4819 }
0x1124   : > { %8818 = vpow2.f32 %v4847_v24  ;;  %v4832_v46 = vsub.f32 %v11214_v10, %v4808_v32  ;;  %4867 = vadd.xlane.f32.xlu1 %v4866_v7  ;;  %v4836_v53 = vsub.f32 %v11220_v43, %v4820_v18 }
0x1126   : > { %v4849_v33 = vmul.f32 1.442695, %v4832_v46  ;;  %v4857_v43 = vmul.f32 1.442695, %v4836_v53 }
0x1127   : > { %v4811_v62 = vpop.xlane.xlu0 %4810  ;;  %v11307_v59 = vpop.xlane.xlu1 %4825 }
0x1128   : > { %8820 = vpow2.f32 %v4849_v33  ;;  %v4833_v31 = vsub.f32 %v11226_v11, %v4811_v62  ;;  %v4838_v7 = vsub.f32 %v11232_v37, %v11307_v59 }
0x1129   : > { %8822 = vpow2.f32 %v4853_v25 }
0x112a   : > { %v11302_v47 = vpop.eup %8812  ;;  %v4851_v13 = vmul.f32 1.442695, %v4833_v31  ;;  %v4861_v46 = vmul.f32 1.442695, %v4838_v7 }
0x112b   : > { %v11305_v5 = vpop.eup %8814  ;;  %v4817_v22 = vpop.xlane.xlu0 %4816  ;;  %v4872_v10 = vsel %vm1372_vm4, %v11302_v47, 0.0 }
0x112c   : > { %v11311_v8 = vpop.eup %8816  ;;  %v4835_v48 = vsub.f32 %v11238_v15, %v4817_v22  ;;  %4873 = vadd.xlane.f32.xlu1 %v4872_v10  ;;  %v4863_v11 = vsel %vm1372_vm4, %v11305_v5, 0.0  ;;  %8824 = vpow2.f32 %v4851_v13  ;;  %v8523_v12 = vpop.permute.xlu1 %8522 }
0x112d   : > { %4864 = vadd.xlane.f32.xlu0 %v4863_v11  ;;  %v4869_v29 = vsel %vm1372_vm4, %v11311_v8, 0.0  ;;  %v8525_v49 = vunpack.i.h.bf16 %v8523_v12  ;;  %v8524_v52 = vunpack.i.l.bf16 %v8523_v12 }
0x112e   : > { %v11316_v17 = vpop.eup %8818  ;;  %v4855_v61 = vmul.f32 1.442695, %v4835_v48 }
0x112f   : > { %v4823_v41 = vpop.xlane.xlu0 %4822  ;;  %v4875_v28 = vsel %vm1372_vm4, %v11316_v17, 0.0  ;;  %v11333_v23 = vpack.c.bf16 %v8525_v49, %v8524_v52 }
0x1130   : > { %8826 = vpow2.f32 %v4855_v61  ;;  %v4837_v15 = vsub.f32 %v11246_v55, %v4823_v41  ;;  %4870 = vadd.xlane.f32.xlu1 %v4869_v29  ;;  %v8533_v14 = vpop.permute.xlu1 %8532 }
0x1131   : > { %4876 = vadd.xlane.f32.xlu0 %v4875_v28  ;;  %8828 = vpow2.f32 %v4857_v43  ;;  %v8535_v3 = vunpack.i.h.bf16 %v8533_v14  ;;  %v8534_v58 = vunpack.i.l.bf16 %v8533_v14 }
0x1132   : > { %v11323_v51 = vpop.eup %8820  ;;  %v4859_v9 = vmul.f32 1.442695, %v4837_v15 }
0x1133   : > { %v8518_v54 = vpop.permute.xlu0 %8517  ;;  %v4878_v21 = vsel %vm1372_vm4, %v11323_v51, 0.0  ;;  %v11327_v42 = vpop.eup %8822  ;;  %v11349_v19 = vpack.c.bf16 %v8535_v3, %v8534_v58 }
0x1134   : > { %v8520_v45 = vunpack.i.h.bf16 %v8518_v54  ;;  %v8519_v57 = vunpack.i.l.bf16 %v8518_v54  ;;  %4879 = vadd.xlane.f32.xlu1 %v4878_v21  ;;  %8830 = vpow2.f32 %v4859_v9  ;;  %v4884_v38 = vsel %vm1372_vm4, %v11327_v42, 0.0 }
0x1135   : > { %8832 = vpow2.f32 %v4861_v46 }
0x1136   : > { %v8128_v55 = vpack.c.bf16 %v8520_v45, %v8519_v57  ;;  %v11331_v16 = vpop.eup %8824 }
0x1137   : > { %v8528_v26 = vpop.permute.xlu0 %8527  ;;  %v4881_v30 = vsel %vm1372_vm4, %v11331_v16, 0.0 }
0x1138   : > { %v8530_v34 = vunpack.i.h.bf16 %v8528_v26  ;;  %v8529_v56 = vunpack.i.l.bf16 %v8528_v26  ;;  %8129 = vmatprep.subr.bf16.mxu0 %v8128_v55  ;;  %4885 = vadd.xlane.f32.xlu1 %v4884_v38 }
0x1139   : > { %8196 = vmatprep.subr.bf16.mxu1 %v8128_v55  ;;  %8131 = vmatpush3.bf16.msra.mxu0 %v8128_v55 }
0x113a   : > { %v11335_v20 = vpop.eup %8826  ;;  %8133 = vmatprep.subr.bf16.mxu0 %v11333_v23  ;;  %v8136_v44 = vpack.c.bf16 %v8530_v34, %v8529_v56  ;;  %v6717_v34 = vld [vmem:[%s12187_s8 + $0x30] sm:$0xff]  ;;  %v6718_v56 = vld [vmem:[%s12187_s8 + $0x38] sm:$0xff] }
0x113b   : > { %v4887_v60 = vsel %vm1372_vm4, %v11335_v20, 0.0  ;;  %v11342_v4 = vpop.eup %8828 }
0x113c   : > { %4888 = vadd.xlane.f32.xlu0 %v4887_v60  ;;  %4882 = vadd.xlane.f32.xlu1 %v4881_v30  ;;  %v4890_v0 = vsel %vm1372_vm4, %v11342_v4, 0.0  ;;  %v8152_v30 = vpack.c.bf16 %v6718_v56, %v6717_v34 }
0x113d   : > { %8135 = vmatpush3.bf16.msra.mxu0 %v11333_v23 }
0x113e   : > { %8137 = vmatprep.subr.bf16.mxu0 %v8136_v44  ;;  %v11347_v24 = vpop.eup %8830 }
0x113f   : > { %v4893_v32 = vsel %vm1372_vm4, %v11347_v24, 0.0  ;;  %v11361_v18 = vpop.eup %8832 }
0x1140   : > { %4891 = vadd.xlane.f32.xlu1 %v4890_v0  ;;  %v4896_v25 = vsel %vm1372_vm4, %v11361_v18, 0.0 }
0x1141   : > { %8139 = vmatpush3.bf16.msra.mxu0 %v8136_v44 }
0x1142   : > { %8141 = vmatprep.subr.bf16.mxu0 %v11349_v19 }
0x1144   : > { %4894 = vadd.xlane.f32.xlu1 %v4893_v32 }
0x1145   : > { %8143 = vmatpush3.bf16.msra.mxu0 %v11349_v19 }
0x1152   : > { %8537 = vrot.lane.b32.xlu0 %v10830_v63, %s12325_s25 }
0x1155   : > { %8542 = vrot.lane.b32.xlu1 %v10840_v6, %s12325_s25 }
0x1171   : > { %4897 = vadd.xlane.f32.xlu0 %v4896_v25 }
0x11b1   : > { %v4868_v33 = vpop.xlane.xlu1 %4867 }
0x11b9   : > { %v4874_v62 = vpop.xlane.xlu1 %4873 }
0x11ba   : > { %v4865_v31 = vpop.xlane.xlu0 %4864 }
0x11bb   : > { %8834 = vrcp.f32 %v4865_v31 }
0x11bc   : > { %8836 = vrcp.f32 %v4868_v33 }
0x11bd   : > { %v4871_v53 = vpop.xlane.xlu1 %4870 }
0x11be   : > { %v11367_v6 = vpop.xlane.xlu0 %4876  ;;  %8838 = vrcp.f32 %v4871_v53 }
0x11bf   : > { %8840 = vrcp.f32 %v4874_v62 }
0x11c0   : > { %8842 = vrcp.f32 %v11367_v6 }
0x11c1   : > { %v11365_v63 = vpop.xlane.xlu1 %4879 }
0x11c2   : > { %8844 = vrcp.f32 %v11365_v63 }
0x11c5   : > { %v8835_v13 = vpop.eup %8834  ;;  %v11369_v22 = vpop.xlane.xlu1 %4885 }
0x11c6   : > { %v4900_v37 = vmul.f32 %v8835_v13, %v11305_v5  ;;  %v7608_v59 = vpop.f32.mrb[60].mxu1 }
0x11c7   : > { %v4335_v10 = vpop.f32.mrb[61].mxu1 }
0x11c8   : > { %7712 = vmatprep.mubr.msk.f32.mxu0 %vm1372_vm4, %v4900_v37  ;;  %7628 = vmatprep.mubr.msk.f32.mxu1 %vm1198_vm2, %v4335_v10 }
0x11c9   : > { %v11374_v48 = vpop.xlane.xlu0 %4888  ;;  %v4883_v11 = vpop.xlane.xlu1 %4882  ;;  %7629 = vmatmul.mubr.msk.f32.vlgmr.msra.gmra.mrb[72].mxu1 %vm1198_vm2, %v7608_v59 }
0x11ca   : > { %8202 = vmatpush3.bf16.msra.mxu1 %v8128_v55  ;;  %v7611_v43 = vpop.f32.mrb[62].mxu1  ;;  %8846 = vrcp.f32 %v4883_v11 }
0x11cb   : > { %8197 = vmatprep.subr.bf16.mxu1 %v11333_v23  ;;  %v4345_v61 = vpop.f32.mrb[63].mxu1  ;;  %8848 = vrcp.f32 %v11369_v22 }
0x11cc   : > { %7631 = vmatprep.mubr.msk.f32.mxu1 %vm1198_vm2, %v4345_v61  ;;  %8850 = vrcp.f32 %v11374_v48  ;;  %v6630_v61 = vld [vmem:[%s12188_s9 + $0x1] ss:$0 sm:$0xff] }
0x11cd   : > { %v8538_v41 = vpop.permute.xlu0 %8537  ;;  %v4892_v5 = vpop.xlane.xlu1 %4891  ;;  %7632 = vmatmul.mubr.msk.f32.gmra.mrb[74].mxu1 %vm1198_vm2, %v7611_v43 }
0x11ce   : > { %v8540_v29 = vunpack.i.h.bf16 %v8538_v41  ;;  %v8539_v28 = vunpack.i.l.bf16 %v8538_v41  ;;  %8203 = vmatpush3.bf16.msra.mxu1 %v11333_v23  ;;  %v7614_v15 = vpop.f32.mrb[64].mxu1  ;;  %v8837_v23 = vpop.eup %8836  ;;  %8852 = vrcp.f32 %v4892_v5 }
0x11cf   : > { %8198 = vmatprep.subr.bf16.mxu1 %v8136_v44  ;;  %v4355_v9 = vpop.f32.mrb[65].mxu1  ;;  %v8839_v14 = vpop.eup %8838  ;;  %v4902_v60 = vmul.f32 %v8837_v23, %v11295_v50 }
0x11d0   : > { %v8144_v12 = vpack.c.bf16 %v8540_v29, %v8539_v28  ;;  %7634 = vmatprep.mubr.msk.f32.mxu1 %vm1198_vm2, %v4355_v9  ;;  %v8841_v3 = vpop.eup %8840  ;;  %v4904_v58 = vmul.f32 %v8839_v14, %v11311_v8 }
0x11d1   : > { %v4895_v54 = vpop.xlane.xlu1 %4894  ;;  %7635 = vmatmul.mubr.msk.f32.gmra.mrb[76].mxu1 %vm1198_vm2, %v7614_v15  ;;  %v8843_v50 = vpop.eup %8842 }
0x11d2   : > { %8145 = vmatprep.subr.bf16.mxu0 %v8144_v12  ;;  %8204 = vmatpush3.bf16.msra.mxu1 %v8136_v44  ;;  %v7617_v21 = vpop.f32.mrb[66].mxu1  ;;  %v4906_v44 = vmul.f32 %v8841_v3, %v11302_v47  ;;  %8854 = vrcp.f32 %v4895_v54  ;;  %v4908_v47 = vmul.f32 %v8843_v50, %v11316_v17  ;;  %v12330_v50 = vld [vmem:[#allocation24_spill] sm:$0xff] }
0x11d3   : > { %8147 = vmatpush3.bf16.msra.mxu0 %v8144_v12  ;;  %8199 = vmatprep.subr.bf16.mxu1 %v11349_v19  ;;  %v4365_v49 = vpop.f32.mrb[67].mxu1 }
0x11d4   : > { %7637 = vmatprep.mubr.msk.f32.mxu1 %vm1198_vm2, %v4365_v49 }
0x11d5   : > { %v8543_v52 = vpop.permute.xlu1 %8542  ;;  %7638 = vmatmul.mubr.msk.f32.gmra.mrb[78].mxu1 %vm1198_vm2, %v7617_v21 }
0x11d6   : > { %v8545_v45 = vunpack.i.h.bf16 %v8543_v52  ;;  %v8544_v57 = vunpack.i.l.bf16 %v8543_v52  ;;  %8205 = vmatpush3.bf16.msra.mxu1 %v11349_v19  ;;  %v7620_v55 = vpop.f32.mrb[68].mxu1  ;;  %v8845_v19 = vpop.eup %8844 }
0x11d7   : > { %8200 = vmatprep.subr.bf16.mxu1 %v8144_v12  ;;  %v4375_v38 = vpop.f32.mrb[69].mxu1  ;;  %v8847_v32 = vpop.eup %8846  ;;  %v4910_v7 = vmul.f32 %v8845_v19, %v11323_v51 }
0x11d8   : > { %v8148_v26 = vpack.c.bf16 %v8545_v45, %v8544_v57  ;;  %7640 = vmatprep.mubr.msk.f32.mxu1 %vm1198_vm2, %v4375_v38  ;;  %v8849_v46 = vpop.eup %8848  ;;  %v4912_v25 = vmul.f32 %v8847_v32, %v11331_v16  ;;  %v12332_v32 = vld [vmem:[#allocation19_spill] sm:$0xff] }
0x11d9   : > { %7641 = vmatmul.mubr.msk.f32.gmra.mrb[80].mxu1 %vm1198_vm2, %v7620_v55  ;;  %v8851_v33 = vpop.eup %8850  ;;  %v4914_v62 = vmul.f32 %v8849_v46, %v11327_v42 }
0x11da   : > { %8149 = vmatprep.subr.bf16.mxu0 %v8148_v26  ;;  %8206 = vmatpush3.bf16.msra.mxu1 %v8144_v12  ;;  %v8853_v31 = vpop.eup %8852  ;;  %v4916_v17 = vmul.f32 %v8851_v33, %v11335_v20 }
0x11db   : > { %8151 = vmatpush3.bf16.msra.mxu0 %v8148_v26  ;;  %8201 = vmatprep.subr.bf16.mxu1 %v8148_v26  ;;  %v4918_v51 = vmul.f32 %v8853_v31, %v11342_v4 }
0x11dc   : > { %v8855_v53 = vpop.eup %8854 }
0x11dd   : > { %v4920_v16 = vmul.f32 %v8855_v53, %v11347_v24 }
0x11de   : > { %7713 = vmatmul.mubr.msk.f32.vlgmr.msra.gmra.mrb[84].mxu0 %vm1372_vm4, %v4902_v60  ;;  %8207 = vmatpush3.bf16.msra.mxu1 %v8148_v26 }
0x11df   : > { %7715 = vmatprep.mubr.msk.f32.mxu0 %vm1372_vm4, %v4904_v58  ;;  %8153 = vmatprep.subr.bf16.mxu1 %v8152_v30 }
0x11e2   : > { %7716 = vmatmul.mubr.msk.f32.gmra.mrb[86].mxu0 %vm1372_vm4, %v4906_v44 }
0x11f0   : > { %v7623_v8 = vpop.f32.mrb[70].mxu1 }
0x11f1   : > { %v4385_v0 = vpop.f32.mrb[71].mxu1 }
0x11f2   : > { %7643 = vmatprep.mubr.msk.f32.mxu1 %vm1198_vm2, %v4385_v0 }
0x11f3   : > { %7644 = vmatmul.mubr.msk.f32.gmra.mrb[82].mxu1 %vm1198_vm2, %v7623_v8 }
0x11f4   : > { %7718 = vmatprep.mubr.msk.f32.mxu1 %vm1372_vm4, %v4908_v47 }
0x11f7   : > { %7719 = vmatmul.mubr.msk.f32.vlgmr.msra.gmra.mrb[84].mxu1 %vm1372_vm4, %v4910_v7 }
0x11f8   : > { %7721 = vmatprep.mubr.msk.f32.mxu1 %vm1372_vm4, %v4912_v25  ;;  %8155 = vmatpush3.bf16.msra.mxu1 %v8152_v30 }
0x11fb   : > { %7722 = vmatmul.mubr.msk.f32.gmra.mrb[86].mxu1 %vm1372_vm4, %v4914_v62 }
0x11fc   : > { %7724 = vmatprep.mubr.msk.f32.mxu1 %vm1372_vm4, %v4916_v17 }
0x11fe   : > { %v4898_v63 = vpop.xlane.xlu0 %4897 }
0x11ff   : > { %8856 = vrcp.f32 %v4898_v63  ;;  %7725 = vmatmul.mubr.msk.f32.gmra.mrb[88].mxu1 %vm1372_vm4, %v4918_v51  ;;  %v12336_v63 = vld [vmem:[#allocation21_spill] sm:$0xff] }
0x1200   : > { %7727 = vmatprep.mubr.msk.f32.mxu1 %vm1372_vm4, %v4920_v16 }
0x1209   : > { %v8857_v13 = vpop.eup %8856 }
0x120a   : > { %v4922_v42 = vmul.f32 %v8857_v13, %v11361_v18  ;;  %v12338_v13 = vld [vmem:[#allocation22_spill] sm:$0xff] }
0x120c   : > { %7728 = vmatmul.mubr.msk.f32.gmra.mrb[90].mxu1 %vm1372_vm4, %v4922_v42 }
0x12b1   : > { %v7714_v20 = vpop.f32.mrb[84].mxu0 }
0x12b2   : > { %v5061_v6 = vpop.f32.mrb[85].mxu0 }
0x12b3   : > { %7734 = vmatprep.mubr.msk.f32.mxu1 %vm1198_vm2, %v5061_v6 }
0x12b4   : > { %7735 = vmatmul.mubr.msk.f32.vlgmr.msra.gmra.mrb[72].mxu1 %vm1198_vm2, %v7714_v20 }
0x12b5   : > { %v7717_v4 = vpop.f32.mrb[86].mxu0 }
0x12b6   : > { %v5071_v22 = vpop.f32.mrb[87].mxu0 }
0x12b7   : > { %7737 = vmatprep.mubr.msk.f32.mxu1 %vm1198_vm2, %v5071_v22 }
0x12b8   : > { %7738 = vmatmul.mubr.msk.f32.gmra.mrb[74].mxu1 %vm1198_vm2, %v7717_v4 }
0x12ca   : > { %v7720_v24 = vpop.f32.mrb[84].mxu1 }
0x12cb   : > { %v5081_v37 = vpop.f32.mrb[85].mxu1 }
0x12cc   : > { %7740 = vmatprep.mubr.msk.f32.mxu1 %vm1198_vm2, %v5081_v37 }
0x12cd   : > { %7741 = vmatmul.mubr.msk.f32.gmra.mrb[76].mxu1 %vm1198_vm2, %v7720_v24 }
0x12ce   : > { %v7723_v18 = vpop.f32.mrb[86].mxu1 }
0x12cf   : > { %v5091_v59 = vpop.f32.mrb[87].mxu1 }
0x12d0   : > { %7743 = vmatprep.mubr.msk.f32.mxu1 %vm1198_vm2, %v5091_v59 }
0x12d1   : > { %7744 = vmatmul.mubr.msk.f32.gmra.mrb[78].mxu1 %vm1198_vm2, %v7723_v18 }
0x12d2   : > { %v7726_v10 = vpop.f32.mrb[88].mxu1 }
0x12d3   : > { %v5101_v48 = vpop.f32.mrb[89].mxu1 }
0x12d4   : > { %7746 = vmatprep.mubr.msk.f32.mxu1 %vm1198_vm2, %v5101_v48 }
0x12d5   : > { %7747 = vmatmul.mubr.msk.f32.gmra.mrb[80].mxu1 %vm1198_vm2, %v7726_v10 }
0x12df   : > { %v7729_v11 = vpop.f32.mrb[90].mxu1 }
0x12e0   : > { %v5111_v43 = vpop.f32.mrb[91].mxu1 }
0x12e1   : > { %7749 = vmatprep.mubr.msk.f32.mxu1 %vm1198_vm2, %v5111_v43 }
0x12e2   : > { %7750 = vmatmul.mubr.msk.f32.gmra.mrb[82].mxu1 %vm1198_vm2, %v7729_v11 }
0x1387   : > { %v7736_v41 = vpop.f32.mrb[72].mxu1 }
0x1388   : > { %v8220_v5 = vadd.f32 %v7736_v41, %v6630_v61  ;;  %v5225_v29 = vpop.f32.mrb[73].mxu1 }
0x1389   : > { %v8221_v28 = vadd.f32 %v6630_v61, %v5225_v29 }
0x138a   : > { %v11439_v15 = vadd.f32 %v8220_v5, %v10583_v36 }
0x138b   : > { %v11442_v12 = vadd.f32 %v8221_v28, %v10585_v39  ;;  %v7739_v9 = vpop.f32.mrb[74].mxu1 }
0x138c   : > { %v8222_v54 = vadd.f32 %v7739_v9, %v6630_v61  ;;  %v5235_v21 = vpop.f32.mrb[75].mxu1  ;;  %v5315_v49 = vsel %vm788_vm1, %v11439_v15, 0.0 }
0x138d   : > { %v8223_v52 = vadd.f32 %v6630_v61, %v5235_v21  ;;  %5316 = vadd.xlane.f32.xlu0 %v5315_v49  ;;  %v5312_v45 = vsel %vm788_vm1, %v11442_v12, 0.0 }
0x138e   : > { %v11449_v57 = vadd.f32 %v8222_v54, %v10593_v27  ;;  %5313 = vadd.xlane.f32.xlu1 %v5312_v45 }
0x138f   : > { %v11452_v36 = vadd.f32 %v8223_v52, %v10595_v2 }
0x1390   : > { %v5321_v39 = vsel %vm788_vm1, %v11449_v57, 0.0 }
0x1391   : > { %12326 = vst [vmem:[#allocation23_spill] sm:$0xff] %v11452_v36  ;;  %5322 = vadd.xlane.f32.xlu0 %v5321_v39  ;;  %v5318_v55 = vsel %vm788_vm1, %v11452_v36, 0.0 }
0x1395   : > { %5319 = vadd.xlane.f32.xlu0 %v5318_v55 }
0x13a0   : > { %v7742_v26 = vpop.f32.mrb[76].mxu1 }
0x13a1   : > { %v8224_v38 = vadd.f32 %v7742_v26, %v6630_v61  ;;  %v5245_v23 = vpop.f32.mrb[77].mxu1 }
0x13a2   : > { %v8225_v34 = vadd.f32 %v6630_v61, %v5245_v23 }
0x13a3   : > { %v11459_v56 = vadd.f32 %v8224_v38, %v10603_v35 }
0x13a4   : > { %v7745_v27 = vpop.f32.mrb[78].mxu1  ;;  %v11462_v14 = vadd.f32 %v8225_v34, %v10605_v40 }
0x13a5   : > { %12327 = vst [vmem:[#allocation11_spill] sm:$0xff] %v11459_v56  ;;  %v8226_v2 = vadd.f32 %v7745_v27, %v6630_v61  ;;  %v5255_v60 = vpop.f32.mrb[79].mxu1  ;;  %v5327_v30 = vsel %vm788_vm1, %v11459_v56, 0.0 }
0x13a6   : > { %12328 = vst [vmem:[#allocation12_spill] sm:$0xff] %v11462_v14  ;;  %v8227_v3 = vadd.f32 %v6630_v61, %v5255_v60  ;;  %5328 = vadd.xlane.f32.xlu0 %v5327_v30  ;;  %v5324_v40 = vsel %vm788_vm1, %v11462_v14, 0.0 }
0x13a7   : > { %v11467_v58 = vadd.f32 %v8226_v2, %v10613_v1  ;;  %v12334_v1 = vld [vmem:[#allocation20_spill] sm:$0xff] }
0x13a8   : > { %v7748_v44 = vpop.f32.mrb[80].mxu1  ;;  %v11470_v8 = vadd.f32 %v8227_v3, %v12330_v50 }
0x13a9   : > { %12329 = vst [vmem:[#allocation13_spill] sm:$0xff] %v11467_v58  ;;  %v8228_v35 = vadd.f32 %v7748_v44, %v6630_v61  ;;  %v5265_v0 = vpop.f32.mrb[81].mxu1  ;;  %v5333_v19 = vsel %vm788_vm1, %v11467_v58, 0.0 }
0x13aa   : > { %12331 = vst [vmem:[#allocation14_spill] sm:$0xff] %v11470_v8  ;;  %v8229_v47 = vadd.f32 %v6630_v61, %v5265_v0  ;;  %5325 = vadd.xlane.f32.xlu0 %v5324_v40  ;;  %5334 = vadd.xlane.f32.xlu1 %v5333_v19  ;;  %v5330_v25 = vsel %vm788_vm1, %v11470_v8, 0.0 }
0x13ab   : > { %v11477_v7 = vadd.f32 %v8228_v35, %v12332_v32 }
0x13ac   : > { %v11480_v46 = vadd.f32 %v8229_v47, %v12334_v1 }
0x13ad   : > { %12333 = vst [vmem:[#allocation15_spill] sm:$0xff] %v11477_v7  ;;  %v5339_v33 = vsel %vm788_vm1, %v11477_v7, 0.0 }
0x13ae   : > { %12335 = vst [vmem:[#allocation16_spill] sm:$0xff] %v11480_v46  ;;  %5331 = vadd.xlane.f32.xlu0 %v5330_v25  ;;  %5340 = vadd.xlane.f32.xlu1 %v5339_v33  ;;  %v5336_v62 = vsel %vm788_vm1, %v11480_v46, 0.0 }
0x13b2   : > { %5337 = vadd.xlane.f32.xlu0 %v5336_v62 }
0x13b5   : > { %v7751_v31 = vpop.f32.mrb[82].mxu1 }
0x13b6   : > { %v8230_v17 = vadd.f32 %v7751_v31, %v6630_v61  ;;  %v5275_v53 = vpop.f32.mrb[83].mxu1 }
0x13b7   : > { %v8231_v51 = vadd.f32 %v6630_v61, %v5275_v53 }
0x13b8   : > { %v11489_v16 = vadd.f32 %v8230_v17, %v12336_v63  ;;  %v6735_v63 = vld [vmem:[%s12191_s12 + $0x20] sm:$0xff] }
0x13b9   : > { %v11492_v42 = vadd.f32 %v8231_v51, %v12338_v13  ;;  %v6736_v13 = vld [vmem:[%s12191_s12 + $0x28] sm:$0xff] }
0x13ba   : > { %12337 = vst [vmem:[#allocation17_spill] sm:$0xff] %v11489_v16  ;;  %v5345_v20 = vsel %vm788_vm1, %v11489_v16, 0.0 }
0x13bb   : > { %12339 = vst [vmem:[#allocation18_spill] sm:$0xff] %v11492_v42  ;;  %5346 = vadd.xlane.f32.xlu1 %v5345_v20  ;;  %v5342_v6 = vsel %vm788_vm1, %v11492_v42, 0.0  ;;  %v6737_v20 = vld [vmem:[%s12191_s12 + $0x30] sm:$0xff] }
0x13bc   : > { %5343 = vadd.xlane.f32.xlu0 %v5342_v6 }
0x141a   : > { %v5317_v4 = vpop.xlane.xlu0 %5316 }
0x141b   : > { %v5349_v22 = vmul.f32 0.03125, %v5317_v4  ;;  %v5314_v24 = vpop.xlane.xlu1 %5313  ;;  %v8156_v4 = vpack.c.bf16 %v6736_v13, %v6735_v63 }
0x141c   : > { %v5348_v37 = vmul.f32 0.03125, %v5314_v24 }
0x141d   : > { %v11499_v18 = vsub.f32 %v11439_v15, %v5349_v22  ;;  %v6738_v22 = vld [vmem:[%s12191_s12 + $0x38] sm:$0xff]  ;;  %8157 = vmatprep.subr.bf16.mxu0 %v8156_v4 }
0x141e   : > { %v11502_v59 = vsub.f32 %v11442_v12, %v5348_v37  ;;  %v5323_v10 = vpop.xlane.xlu0 %5322  ;;  %v8160_v24 = vpack.c.bf16 %v6738_v22, %v6737_v20  ;;  %8159 = vmatpush3.bf16.msra.mxu0 %v8156_v4 }
0x141f   : > { %v5351_v48 = vmul.f32 0.03125, %v5323_v10  ;;  %v5373_v11 = vmul.f32 %v11499_v18, %v11499_v18 }
0x1420   : > { %v5372_v43 = vmul.f32 %v11502_v59, %v11502_v59  ;;  %8161 = vmatprep.subr.bf16.mxu0 %v8160_v24 }
0x1421   : > { %v11509_v61 = vsub.f32 %v11449_v57, %v5351_v48  ;;  %v5387_v41 = vsel %vm788_vm1, %v5373_v11, 0.0 }
0x1422   : > { %v5320_v5 = vpop.xlane.xlu0 %5319  ;;  %5388 = vadd.xlane.f32.xlu1 %v5387_v41  ;;  %v5384_v29 = vsel %vm788_vm1, %v5372_v43, 0.0  ;;  %8163 = vmatpush3.bf16.msra.mxu0 %v8160_v24 }
0x1423   : > { %v5350_v28 = vmul.f32 0.03125, %v5320_v5  ;;  %5385 = vadd.xlane.f32.xlu0 %v5384_v29  ;;  %v5375_v9 = vmul.f32 %v11509_v61, %v11509_v61 }
0x1425   : > { %v11516_v54 = vsub.f32 %v11452_v36, %v5350_v28  ;;  %v5393_v21 = vsel %vm788_vm1, %v5375_v9, 0.0 }
0x1426   : > { %5394 = vadd.xlane.f32.xlu1 %v5393_v21 }
0x1427   : > { %v5374_v49 = vmul.f32 %v11516_v54, %v11516_v54 }
0x1429   : > { %v5390_v52 = vsel %vm788_vm1, %v5374_v49, 0.0 }
0x142a   : > { %5391 = vadd.xlane.f32.xlu0 %v5390_v52 }
0x1433   : > { %v5329_v45 = vpop.xlane.xlu0 %5328 }
0x1434   : > { %v5353_v39 = vmul.f32 0.03125, %v5329_v45 }
0x1436   : > { %v11523_v55 = vsub.f32 %v11459_v56, %v5353_v39 }
0x1437   : > { %v5326_v26 = vpop.xlane.xlu0 %5325  ;;  %v5335_v38 = vpop.xlane.xlu1 %5334 }
0x1438   : > { %v5352_v23 = vmul.f32 0.03125, %v5326_v26  ;;  %v5355_v34 = vmul.f32 0.03125, %v5335_v38  ;;  %v5377_v27 = vmul.f32 %v11523_v55, %v11523_v55 }
0x143a   : > { %v11528_v2 = vsub.f32 %v11462_v14, %v5352_v23  ;;  %v11531_v60 = vsub.f32 %v11467_v58, %v5355_v34  ;;  %v5399_v30 = vsel %vm788_vm1, %v5377_v27, 0.0 }
0x143b   : > { %v5332_v3 = vpop.xlane.xlu0 %5331  ;;  %v5341_v44 = vpop.xlane.xlu1 %5340  ;;  %5400 = vadd.xlane.f32.xlu1 %v5399_v30 }
0x143c   : > { %v5354_v50 = vmul.f32 0.03125, %v5332_v3  ;;  %v5357_v35 = vmul.f32 0.03125, %v5341_v44  ;;  %v5379_v0 = vmul.f32 %v11531_v60, %v11531_v60  ;;  %v5376_v40 = vmul.f32 %v11528_v2, %v11528_v2 }
0x143e   : > { %v11539_v19 = vsub.f32 %v11470_v8, %v5354_v50  ;;  %v11542_v47 = vsub.f32 %v11477_v7, %v5357_v35  ;;  %v5405_v32 = vsel %vm788_vm1, %v5379_v0, 0.0  ;;  %v5396_v1 = vsel %vm788_vm1, %v5376_v40, 0.0  ;;  %v11585_v35 = vld [vmem:[%s12189_s10 + $0x1] ss:$0 sm:$0xff] }
0x143f   : > { %v5338_v25 = vpop.xlane.xlu0 %5337  ;;  %5406 = vadd.xlane.f32.xlu1 %v5405_v32  ;;  %5397 = vadd.xlane.f32.xlu0 %v5396_v1  ;;  %v11592_v1 = vld [vmem:[%s12190_s11 + $0x1] ss:$0 sm:$0xff] }
0x1440   : > { %v5356_v33 = vmul.f32 0.03125, %v5338_v25  ;;  %v5381_v62 = vmul.f32 %v11542_v47, %v11542_v47  ;;  %v5378_v31 = vmul.f32 %v11539_v19, %v11539_v19 }
0x1442   : > { %v11551_v17 = vsub.f32 %v11480_v46, %v5356_v33  ;;  %v5411_v53 = vsel %vm788_vm1, %v5381_v62, 0.0  ;;  %v5402_v51 = vsel %vm788_vm1, %v5378_v31, 0.0 }
0x1443   : > { %5412 = vadd.xlane.f32.xlu1 %v5411_v53  ;;  %5403 = vadd.xlane.f32.xlu0 %v5402_v51 }
0x1444   : > { %v5380_v6 = vmul.f32 %v11551_v17, %v11551_v17 }
0x1446   : > { %v5408_v37 = vsel %vm788_vm1, %v5380_v6, 0.0 }
0x1447   : > { %5409 = vadd.xlane.f32.xlu0 %v5408_v37 }
0x1448   : > { %v5347_v10 = vpop.xlane.xlu1 %5346 }
0x1449   : > { %v5359_v48 = vmul.f32 0.03125, %v5347_v10  ;;  %v5344_v11 = vpop.xlane.xlu0 %5343 }
0x144a   : > { %v5358_v43 = vmul.f32 0.03125, %v5344_v11 }
0x144b   : > { %v11571_v41 = vsub.f32 %v11489_v16, %v5359_v48 }
0x144c   : > { %v11574_v5 = vsub.f32 %v11492_v42, %v5358_v43 }
0x144d   : > { %v5383_v29 = vmul.f32 %v11571_v41, %v11571_v41 }
0x144e   : > { %v5382_v28 = vmul.f32 %v11574_v5, %v11574_v5 }
0x144f   : > { %v5417_v9 = vsel %vm788_vm1, %v5383_v29, 0.0 }
0x1450   : > { %5418 = vadd.xlane.f32.xlu1 %v5417_v9  ;;  %v5414_v21 = vsel %vm788_vm1, %v5382_v28, 0.0 }
0x1451   : > { %5415 = vadd.xlane.f32.xlu0 %v5414_v21 }
0x14af   : > { %v5389_v49 = vpop.xlane.xlu1 %5388 }
0x14b0   : > { %v5421_v52 = vmul.f32 0.03125, %v5389_v49  ;;  %v5386_v45 = vpop.xlane.xlu0 %5385 }
0x14b1   : > { %v5420_v39 = vmul.f32 0.03125, %v5386_v45 }
0x14b2   : > { %v5433_v26 = vadd.f32 1e-06, %v5421_v52 }
0x14b3   : > { %v5432_v38 = vadd.f32 1e-06, %v5420_v39  ;;  %v5395_v23 = vpop.xlane.xlu1 %5394 }
0x14b4   : > { %8858 = vrsqrt.f32 %v5433_v26  ;;  %v5423_v34 = vmul.f32 0.03125, %v5395_v23 }
0x14b5   : > { %8860 = vrsqrt.f32 %v5432_v38 }
0x14b6   : > { %v5435_v27 = vadd.f32 1e-06, %v5423_v34 }
0x14b7   : > { %v5392_v30 = vpop.xlane.xlu0 %5391 }
0x14b8   : > { %8862 = vrsqrt.f32 %v5435_v27  ;;  %v5422_v3 = vmul.f32 0.03125, %v5392_v30 }
0x14ba   : > { %v5434_v44 = vadd.f32 1e-06, %v5422_v3 }
0x14bc   : > { %8864 = vrsqrt.f32 %v5434_v44 }
0x14be   : > { %v8859_v50 = vpop.eup %8858 }
0x14bf   : > { %v8861_v0 = vpop.eup %8860  ;;  %v5457_v40 = vmul.f32 %v8859_v50, %v11499_v18 }
0x14c0   : > { %v5456_v32 = vmul.f32 %v8861_v0, %v11502_v59 }
0x14c1   : > { %v5475_v25 = vmul.f32 %v11585_v35, %v5457_v40 }
0x14c2   : > { %v8863_v33 = vpop.eup %8862  ;;  %v5474_v62 = vmul.f32 %v11585_v35, %v5456_v32 }
0x14c3   : > { %v5459_v53 = vmul.f32 %v8863_v33, %v11509_v61  ;;  %v5493_v51 = vadd.f32 %v11592_v1, %v5475_v25 }
0x14c4   : > { %v5492_v31 = vadd.f32 %v11592_v1, %v5474_v62 }
0x14c5   : > { %v5477_v13 = vmul.f32 %v11585_v35, %v5459_v53 }
0x14c6   : > { %v8865_v63 = vpop.eup %8864  ;;  %7760 = vmatprep.mubr.msk.f32.mxu0 %vm788_vm1, %v5492_v31 }
0x14c7   : > { %7761 = vmatmul.mubr.msk.f32.vlgmr.msra.gmra.mrb[88].mxu0 %vm788_vm1, %v5493_v51  ;;  %v5458_v18 = vmul.f32 %v8865_v63, %v11516_v54  ;;  %v5495_v37 = vadd.f32 %v11592_v1, %v5477_v13 }
0x14c8   : > { %v5401_v59 = vpop.xlane.xlu1 %5400 }
0x14c9   : > { %v5425_v20 = vmul.f32 0.03125, %v5401_v59  ;;  %v5476_v6 = vmul.f32 %v11585_v35, %v5458_v18 }
0x14cb   : > { %v5437_v4 = vadd.f32 1e-06, %v5425_v20  ;;  %v5494_v22 = vadd.f32 %v11592_v1, %v5476_v6 }
0x14cc   : > { %v5407_v24 = vpop.xlane.xlu1 %5406  ;;  %v5398_v61 = vpop.xlane.xlu0 %5397 }
0x14cd   : > { %8866 = vrsqrt.f32 %v5437_v4  ;;  %v5427_v10 = vmul.f32 0.03125, %v5407_v24  ;;  %v5424_v48 = vmul.f32 0.03125, %v5398_v61  ;;  %7763 = vmatprep.mubr.msk.f32.mxu0 %vm788_vm1, %v5494_v22 }
0x14ce   : > { %7764 = vmatmul.mubr.msk.f32.gmra.mrb[90].mxu0 %vm788_vm1, %v5495_v37 }
0x14cf   : > { %v5439_v54 = vadd.f32 1e-06, %v5427_v10  ;;  %v5436_v11 = vadd.f32 1e-06, %v5424_v48 }
0x14d0   : > { %v5413_v43 = vpop.xlane.xlu1 %5412  ;;  %v5404_v29 = vpop.xlane.xlu0 %5403 }
0x14d1   : > { %8868 = vrsqrt.f32 %v5439_v54  ;;  %v5429_v28 = vmul.f32 0.03125, %v5413_v43  ;;  %v5426_v9 = vmul.f32 0.03125, %v5404_v29  ;;  %v6757_v29 = vld [vmem:[%s12193_s14 + $0xa0] sm:$0xff] }
0x14d2   : > { %8870 = vrsqrt.f32 %v5436_v11  ;;  %v6753_v11 = vld [vmem:[%s12193_s14 + $0x80] sm:$0xff] }
0x14d3   : > { %v5441_v21 = vadd.f32 1e-06, %v5429_v28  ;;  %v5438_v49 = vadd.f32 1e-06, %v5426_v9  ;;  %v6758_v28 = vld [vmem:[%s12193_s14 + $0xa8] sm:$0xff] }
0x14d4   : > { %v5410_v52 = vpop.xlane.xlu0 %5409  ;;  %v8172_v9 = vpack.c.bf16 %v6758_v28, %v6757_v29 }
0x14d5   : > { %8872 = vrsqrt.f32 %v5441_v21  ;;  %v5428_v45 = vmul.f32 0.03125, %v5410_v52  ;;  %v6759_v21 = vld [vmem:[%s12193_s14 + $0xb0] sm:$0xff] }
0x14d6   : > { %8874 = vrsqrt.f32 %v5438_v49  ;;  %v6760_v49 = vld [vmem:[%s12193_s14 + $0xb8] sm:$0xff] }
0x14d7   : > { %v8867_v39 = vpop.eup %8866  ;;  %v5440_v26 = vadd.f32 1e-06, %v5428_v45  ;;  %v8176_v52 = vpack.c.bf16 %v6760_v49, %v6759_v21  ;;  %v6761_v45 = vld [vmem:[%s12193_s14 + $0xc0] sm:$0xff] }
0x14d8   : > { %v5461_v38 = vmul.f32 %v8867_v39, %v11523_v55  ;;  %v6762_v39 = vld [vmem:[%s12193_s14 + $0xc8] sm:$0xff] }
0x14d9   : > { %8876 = vrsqrt.f32 %v5440_v26  ;;  %v8180_v26 = vpack.c.bf16 %v6762_v39, %v6761_v45 }
0x14da   : > { %v5479_v50 = vmul.f32 %v11585_v35, %v5461_v38  ;;  %v6763_v38 = vld [vmem:[%s12193_s14 + $0xd0] sm:$0xff] }
0x14db   : > { %v8869_v23 = vpop.eup %8868 }
0x14dc   : > { %v8871_v34 = vpop.eup %8870  ;;  %v5463_v0 = vmul.f32 %v8869_v23, %v11531_v60  ;;  %v6764_v23 = vld [vmem:[%s12193_s14 + $0xd8] sm:$0xff] }
0x14dd   : > { %v5419_v27 = vpop.xlane.xlu1 %5418  ;;  %v5460_v30 = vmul.f32 %v8871_v34, %v11528_v2  ;;  %v5497_v2 = vadd.f32 %v11592_v1, %v5479_v50  ;;  %v8184_v34 = vpack.c.bf16 %v6764_v23, %v6763_v38  ;;  %v6768_v50 = vld [vmem:[%s12193_s14 + $0xf8] sm:$0xff]  ;;  %v12340_v23 = vmov -1.0  }
0x14de   : > { %v5431_v3 = vmul.f32 0.03125, %v5419_v27  ;;  %v5416_v44 = vpop.xlane.xlu0 %5415  ;;  %v5481_v51 = vmul.f32 %v11585_v35, %v5463_v0  ;;  %v6765_v27 = vld [vmem:[%s12193_s14 + $0xe0] sm:$0xff] }
0x14df   : > { %v8873_v40 = vpop.eup %8872  ;;  %v5430_v32 = vmul.f32 0.03125, %v5416_v44  ;;  %v5478_v25 = vmul.f32 %v11585_v35, %v5460_v30  ;;  %v6766_v30 = vld [vmem:[%s12193_s14 + $0xe8] sm:$0xff]  ;;  %v6767_v44 = vld [vmem:[%s12193_s14 + $0xf0] sm:$0xff] }
0x14e0   : > { %v8875_v33 = vpop.eup %8874  ;;  %v5443_v62 = vadd.f32 1e-06, %v5431_v3  ;;  %v5465_v63 = vmul.f32 %v8873_v40, %v11542_v47  ;;  %v8188_v3 = vpack.c.bf16 %v6766_v30, %v6765_v27  ;;  %v8192_v0 = vpack.c.bf16 %v6768_v50, %v6767_v44  ;;  %v11691_v40 = vld [vmem:[%s12192_s13 + $0x1] ss:$0 sm:$0xff] }
0x14e1   : > { %v5442_v31 = vadd.f32 1e-06, %v5430_v32  ;;  %v5496_v55 = vadd.f32 %v11592_v1, %v5478_v25  ;;  %v5462_v53 = vmul.f32 %v8875_v33, %v11539_v19  ;;  %v5499_v19 = vadd.f32 %v11592_v1, %v5481_v51 }
0x14e2   : > { %8878 = vrsqrt.f32 %v5443_v62  ;;  %v5483_v6 = vmul.f32 %v11585_v35, %v5465_v63 }
0x14e3   : > { %v8877_v18 = vpop.eup %8876  ;;  %8880 = vrsqrt.f32 %v5442_v31  ;;  %7766 = vmatprep.mubr.msk.f32.mxu0 %vm788_vm1, %v5496_v55  ;;  %v5480_v60 = vmul.f32 %v11585_v35, %v5462_v53 }
0x14e4   : > { %7767 = vmatmul.mubr.msk.f32.gmra.mrb[92].mxu0 %vm788_vm1, %v5497_v2  ;;  %v5464_v59 = vmul.f32 %v8877_v18, %v11551_v17  ;;  %v5501_v4 = vadd.f32 %v11592_v1, %v5483_v6 }
0x14e5   : > { %v5498_v13 = vadd.f32 %v11592_v1, %v5480_v60 }
0x14e6   : > { %v5482_v20 = vmul.f32 %v11585_v35, %v5464_v59 }
0x14e7   : > { %7769 = vmatprep.mubr.msk.f32.mxu0 %vm788_vm1, %v5498_v13 }
0x14e8   : > { %7770 = vmatmul.mubr.msk.f32.gmra.mrb[94].mxu0 %vm788_vm1, %v5499_v19  ;;  %v5500_v47 = vadd.f32 %v11592_v1, %v5482_v20 }
0x14ea   : > { %7772 = vmatprep.mubr.msk.f32.mxu0 %vm788_vm1, %v5500_v47 }
0x14ec   : > { %v8879_v22 = vpop.eup %8878  ;;  %7773 = vmatmul.mubr.msk.f32.gmra.mrb[96].mxu0 %vm788_vm1, %v5501_v4 }
0x14ed   : > { %v8881_v17 = vpop.eup %8880  ;;  %v5467_v24 = vmul.f32 %v8879_v22, %v11571_v41  ;;  %v6754_v41 = vld [vmem:[%s12193_s14 + $0x88] sm:$0xff] }
0x14ee   : > { %v5466_v61 = vmul.f32 %v8881_v17, %v11574_v5  ;;  %v8164_v5 = vpack.c.bf16 %v6754_v41, %v6753_v11 }
0x14ef   : > { %v5485_v37 = vmul.f32 %v11585_v35, %v5467_v24 }
0x14f0   : > { %v5484_v10 = vmul.f32 %v11585_v35, %v5466_v61  ;;  %8165 = vmatprep.subr.bf16.mxu1 %v8164_v5  ;;  %v6755_v35 = vld [vmem:[%s12193_s14 + $0x90] sm:$0xff] }
0x14f1   : > { %v5503_v54 = vadd.f32 %v11592_v1, %v5485_v37  ;;  %8167 = vmatpush3.bf16.msra.mxu1 %v8164_v5 }
0x14f2   : > { %v5502_v48 = vadd.f32 %v11592_v1, %v5484_v10  ;;  %v6756_v1 = vld [vmem:[%s12193_s14 + $0x98] sm:$0xff] }
0x14f3   : > { %v8168_v43 = vpack.c.bf16 %v6756_v1, %v6755_v35 }
0x14f4   : > { %7775 = vmatprep.mubr.msk.f32.mxu0 %vm788_vm1, %v5502_v48 }
0x14f5   : > { %7776 = vmatmul.mubr.msk.f32.gmra.mrb[98].mxu0 %vm788_vm1, %v5503_v54  ;;  %8169 = vmatprep.subr.bf16.mxu1 %v8168_v43 }
0x14f6   : > { %8171 = vmatpush3.bf16.msra.mxu1 %v8168_v43 }
0x14f7   : > { %8173 = vmatprep.subr.bf16.mxu1 %v8172_v9 }
0x14fa   : > { %8175 = vmatpush3.bf16.msra.mxu1 %v8172_v9 }
0x14fb   : > { %8177 = vmatprep.subr.bf16.mxu1 %v8176_v52 }
0x14fe   : > { %8179 = vmatpush3.bf16.msra.mxu1 %v8176_v52 }
0x14ff   : > { %8181 = vmatprep.subr.bf16.mxu1 %v8180_v26 }
0x1502   : > { %8183 = vmatpush3.bf16.msra.mxu1 %v8180_v26 }
0x1503   : > { %8185 = vmatprep.subr.bf16.mxu1 %v8184_v34 }
0x1506   : > { %8187 = vmatpush3.bf16.msra.mxu1 %v8184_v34 }
0x1507   : > { %8189 = vmatprep.subr.bf16.mxu1 %v8188_v3 }
0x150a   : > { %8191 = vmatpush3.bf16.msra.mxu1 %v8188_v3 }
0x150b   : > { %8193 = vmatprep.subr.bf16.mxu1 %v8192_v0 }
0x150e   : > { %8195 = vmatpush3.bf16.msra.mxu1 %v8192_v0 }
0x159a   : > { %v7762_v32 = vpop.f32.mrb[88].mxu0 }
0x159b   : > { %v5625_v25 = vadd.f32 %v7762_v32, %v11691_v40  ;;  %v5619_v33 = vpop.f32.mrb[89].mxu0 }
0x159c   : > { %v5620_v62 = vadd.f32 %v11691_v40, %v5619_v33 }
0x159d   : > { %v5691_v31 = vmul.f32 0.70710677, %v5625_v25  ;;  %v11704_v45 = vmul.f32 0.5, %v5625_v25 }
0x159e   : > { %v5690_v55 = vmul.f32 0.70710677, %v5620_v62  ;;  %v11706_v26 = vmul.f32 0.5, %v5620_v62 }
0x159f   : > { %v5727_v53 = vand.u32 2147483647, %v5691_v31  ;;  %vm5703_vm2 = vcmp.ge.f32.partialorder %v5691_v31, 0.0 }
0x15a0   : > { %v5726_v2 = vand.u32 2147483647, %v5690_v55  ;;  %vm5702_vm3 = vcmp.ge.f32.partialorder %v5690_v55, 0.0  ;;  %v11710_v34 = vsel %vm5703_vm2, 1.0, %v12340_v23 }
0x15a1   : > { %v5739_v51 = vmul.f32 0.3275911, %v5727_v53  ;;  %v7765_v63 = vpop.f32.mrb[90].mxu0  ;;  %v5895_v24 = vsub.f32 0.0, %v5727_v53  ;;  %v11713_v27 = vsel %vm5702_vm3, 1.0, %v12340_v23 }
0x15a2   : > { %v5738_v18 = vmul.f32 0.3275911, %v5726_v2  ;;  %v5635_v60 = vadd.f32 %v7765_v63, %v11691_v40  ;;  %v5629_v59 = vpop.f32.mrb[91].mxu0  ;;  %v5894_v5 = vsub.f32 0.0, %v5726_v2 }
0x15a3   : > { %v5751_v13 = vadd.f32 1.0, %v5739_v51  ;;  %v5630_v19 = vadd.f32 %v11691_v40, %v5629_v59  ;;  %v5907_v48 = vmul.f32 %v5895_v24, %v5727_v53 }
0x15a4   : > { %v5750_v20 = vadd.f32 1.0, %v5738_v18  ;;  %v5693_v6 = vmul.f32 0.70710677, %v5635_v60  ;;  %v5906_v49 = vmul.f32 %v5894_v5, %v5726_v2  ;;  %v11716_v0 = vmul.f32 0.5, %v5635_v60 }
0x15a5   : > { %8882 = vrcp.f32 %v5751_v13  ;;  %v5692_v47 = vmul.f32 0.70710677, %v5630_v19  ;;  %v5920_v29 = vmul.f32 1.442695, %v5907_v48  ;;  %v11722_v51 = vmul.f32 0.5, %v5630_v19 }
0x15a6   : > { %8884 = vrcp.f32 %v5750_v20  ;;  %v5729_v4 = vand.u32 2147483647, %v5693_v6  ;;  %v5918_v50 = vmul.f32 1.442695, %v5906_v49  ;;  %vm5705_vm4 = vcmp.ge.f32.partialorder %v5693_v6, 0.0 }
0x15a7   : > { %v5728_v22 = vand.u32 2147483647, %v5692_v47  ;;  %vm5704_vm5 = vcmp.ge.f32.partialorder %v5692_v47, 0.0  ;;  %v11726_v13 = vsel %vm5705_vm4, 1.0, %v12340_v23 }
0x15a8   : > { %v5741_v17 = vmul.f32 0.3275911, %v5729_v4  ;;  %v5897_v35 = vsub.f32 0.0, %v5729_v4  ;;  %v11735_v19 = vsel %vm5704_vm5, 1.0, %v12340_v23 }
0x15a9   : > { %v5740_v61 = vmul.f32 0.3275911, %v5728_v22  ;;  %v5896_v28 = vsub.f32 0.0, %v5728_v22 }
0x15aa   : > { %v5753_v37 = vadd.f32 1.0, %v5741_v17  ;;  %v5909_v52 = vmul.f32 %v5897_v35, %v5729_v4 }
0x15ab   : > { %v5752_v54 = vadd.f32 1.0, %v5740_v61  ;;  %v5908_v30 = vmul.f32 %v5896_v28, %v5728_v22 }
0x15ac   : > { %8886 = vrcp.f32 %v5753_v37  ;;  %v5924_v33 = vmul.f32 1.442695, %v5909_v52 }
0x15ad   : > { %8888 = vrcp.f32 %v5752_v54  ;;  %v5922_v63 = vmul.f32 1.442695, %v5908_v30 }
0x15ae   : > { %8890 = vpow2.f32 %v5920_v29 }
0x15af   : > { %v11697_v10 = vpop.eup %8882  ;;  %8892 = vpow2.f32 %v5918_v50 }
0x15b0   : > { %v11699_v11 = vpop.eup %8884  ;;  %v5787_v41 = vmul.f32 1.0614054, %v11697_v10  ;;  %8894 = vpow2.f32 %v5924_v33 }
0x15b1   : > { %v5786_v1 = vmul.f32 1.0614054, %v11699_v11  ;;  %8896 = vpow2.f32 %v5922_v63 }
0x15b2   : > { %v5799_v43 = vadd.f32 -1.4531521, %v5787_v41 }
0x15b3   : > { %v5798_v9 = vadd.f32 -1.4531521, %v5786_v1 }
0x15b4   : > { %v5811_v21 = vmul.f32 %v11697_v10, %v5799_v43 }
0x15b5   : > { %v5810_v38 = vmul.f32 %v11699_v11, %v5798_v9 }
0x15b6   : > { %v5823_v39 = vadd.f32 1.4214138, %v5811_v21  ;;  %v11720_v31 = vpop.eup %8886 }
0x15b7   : > { %v7768_v3 = vpop.f32.mrb[92].mxu0  ;;  %v5822_v2 = vadd.f32 1.4214138, %v5810_v38  ;;  %v11731_v22 = vpop.eup %8888  ;;  %v5789_v24 = vmul.f32 1.0614054, %v11720_v31 }
0x15b8   : > { %v5835_v44 = vmul.f32 %v11697_v10, %v5823_v39  ;;  %v5645_v32 = vadd.f32 %v7768_v3, %v11691_v40  ;;  %v5639_v25 = vpop.f32.mrb[93].mxu0  ;;  %v11745_v29 = vmul.f32 1.0614054, %v11731_v22  ;;  %v8891_v28 = vpop.eup %8890 }
0x15b9   : > { %v5640_v62 = vadd.f32 %v11691_v40, %v5639_v25  ;;  %v5834_v48 = vmul.f32 %v11699_v11, %v5822_v2  ;;  %v5801_v39 = vadd.f32 -1.4531521, %v5789_v24 }
0x15ba   : > { %v5847_v55 = vadd.f32 -0.28449672, %v5835_v44  ;;  %v5695_v53 = vmul.f32 0.70710677, %v5645_v32  ;;  %v11747_v9 = vmul.f32 0.5, %v5645_v32 }
0x15bb   : > { %v5694_v18 = vmul.f32 0.70710677, %v5640_v62  ;;  %v7771_v59 = vpop.f32.mrb[94].mxu0  ;;  %v11750_v30 = vmul.f32 0.5, %v5640_v62  ;;  %v11764_v62 = vmul.f32 %v11720_v31, %v5801_v39 }
0x15bc   : > { %v5859_v60 = vmul.f32 %v11697_v10, %v5847_v55  ;;  %v5731_v20 = vand.u32 2147483647, %v5695_v53  ;;  %v11729_v6 = vadd.f32 %v7771_v59, %v11691_v40  ;;  %v5649_v4 = vpop.f32.mrb[95].mxu0  ;;  %vm5707_vm6 = vcmp.ge.f32.partialorder %v5695_v53, 0.0 }
0x15bd   : > { %v5730_v17 = vand.u32 2147483647, %v5694_v18  ;;  %v5650_v47 = vadd.f32 %v11691_v40, %v5649_v4  ;;  %vm5706_vm7 = vcmp.ge.f32.partialorder %v5694_v18, 0.0  ;;  %v11758_v2 = vsel %vm5707_vm6, 1.0, %v12340_v23  ;;  %v11769_v4 = vpop.eup %8892 }
0x15be   : > { %v5871_v61 = vadd.f32 0.2548296, %v5859_v60  ;;  %v5899_v37 = vsub.f32 0.0, %v5731_v20  ;;  %v5743_v54 = vmul.f32 0.3275911, %v5731_v20  ;;  %v11767_v18 = vsel %vm5706_vm7, 1.0, %v12340_v23 }
0x15bf   : > { %v5898_v41 = vsub.f32 0.0, %v5730_v17  ;;  %v11740_v5 = vmul.f32 0.70710677, %v11729_v6  ;;  %v5742_v1 = vmul.f32 0.3275911, %v5730_v17  ;;  %v7774_v43 = vpop.f32.mrb[96].mxu0 }
0x15c0   : > { %v5883_v35 = vmul.f32 %v11697_v10, %v5871_v61  ;;  %v5911_v21 = vmul.f32 %v5899_v37, %v5731_v20  ;;  %v5659_v52 = vpop.f32.mrb[97].mxu0  ;;  %v11752_v10 = vadd.f32 -0.28449672, %v5834_v48  ;;  %v5755_v3 = vadd.f32 1.0, %v5743_v54  ;;  %v11776_v37 = vpop.eup %8894 }
0x15c1   : > { %v5733_v49 = vand.u32 2147483647, %v11740_v5  ;;  %v5910_v44 = vmul.f32 %v5898_v41, %v5730_v17  ;;  %v5754_v33 = vadd.f32 1.0, %v5742_v1  ;;  %v5696_v55 = vmul.f32 0.70710677, %v5650_v47  ;;  %v11779_v1 = vpop.eup %8896 }
0x15c2   : > { %v5943_v38 = vmul.f32 %v8891_v28, %v5883_v35  ;;  %v11755_v32 = vadd.f32 %v7774_v43, %v11691_v40  ;;  %v5928_v63 = vmul.f32 1.442695, %v5911_v21  ;;  %v11761_v53 = vadd.f32 %v11691_v40, %v5659_v52 }
0x15c3   : > { %v5901_v50 = vsub.f32 0.0, %v5733_v49  ;;  %v5745_v59 = vmul.f32 0.3275911, %v5733_v49  ;;  %v5732_v20 = vand.u32 2147483647, %v5696_v55  ;;  %8898 = vrcp.f32 %v5755_v3 }
0x15c4   : > { %v5955_v25 = vsub.f32 1.0, %v5943_v38  ;;  %v5926_v17 = vmul.f32 1.442695, %v5910_v44  ;;  %v11771_v24 = vmul.f32 0.5, %v5650_v47  ;;  %v11774_v61 = vmul.f32 0.70710677, %v11755_v32 }
0x15c5   : > { %v5913_v60 = vmul.f32 %v5901_v50, %v5733_v49  ;;  %8900 = vrcp.f32 %v5754_v33  ;;  %v5744_v54 = vmul.f32 0.3275911, %v5732_v20  ;;  %v5900_v41 = vsub.f32 0.0, %v5732_v20 }
0x15c6   : > { %v5967_v48 = vmul.f32 %v5955_v25, %v11710_v34  ;;  %8902 = vpow2.f32 %v5928_v63  ;;  %vm5709_vm8 = vcmp.ge.f32.partialorder %v11740_v5, 0.0  ;;  %v5735_v43 = vand.u32 2147483647, %v11774_v61 }
0x15c7   : > { %v5698_v47 = vmul.f32 0.70710677, %v11761_v53  ;;  %v5757_v21 = vadd.f32 1.0, %v5745_v59  ;;  %v5932_v49 = vmul.f32 1.442695, %v5913_v60  ;;  %v5756_v52 = vadd.f32 1.0, %v5744_v54 }
0x15c8   : > { %v7777_v35 = vpop.f32.mrb[98].mxu0  ;;  %v5912_v39 = vmul.f32 %v5900_v41, %v5732_v20  ;;  %8904 = vpow2.f32 %v5926_v17  ;;  %v5747_v34 = vmul.f32 0.3275911, %v5735_v43  ;;  %v5903_v38 = vsub.f32 0.0, %v5735_v43 }
0x15c9   : > { %v5669_v28 = vpop.f32.mrb[99].mxu0  ;;  %v5734_v3 = vand.u32 2147483647, %v5698_v47  ;;  %v5979_v44 = vadd.f32 1.0, %v5967_v48  ;;  %8906 = vrcp.f32 %v5756_v52  ;;  %v11785_v25 = vadd.f32 %v7777_v35, %v11691_v40 }
0x15ca   : > { %v5930_v50 = vmul.f32 1.442695, %v5912_v39  ;;  %v5759_v33 = vadd.f32 1.0, %v5747_v34  ;;  %v5915_v63 = vmul.f32 %v5903_v38, %v5735_v43  ;;  %8908 = vrcp.f32 %v5757_v21 }
0x15cb   : > { %v5746_v42 = vmul.f32 0.3275911, %v5734_v3  ;;  %v5902_v16 = vsub.f32 0.0, %v5734_v3  ;;  %vm5708_vm9 = vcmp.ge.f32.partialorder %v5696_v55, 0.0  ;;  %v11788_v59 = vmul.f32 0.70710677, %v11785_v25 }
0x15cc   : > { %v11791_v60 = vadd.f32 %v11691_v40, %v5669_v28  ;;  %8910 = vpow2.f32 %v5932_v49  ;;  %v5936_v20 = vmul.f32 1.442695, %v5915_v63  ;;  %v11796_v54 = vsel %vm5709_vm8, 1.0, %v12340_v23 }
0x15cd   : > { %v5758_v17 = vadd.f32 1.0, %v5746_v42  ;;  %v5914_v48 = vmul.f32 %v5902_v16, %v5734_v3  ;;  %8912 = vpow2.f32 %v5930_v50  ;;  %v5737_v41 = vand.u32 2147483647, %v11788_v59  ;;  %v11802_v35 = vpop.eup %8898 }
0x15ce   : > { %v11800_v55 = vmul.f32 0.70710677, %v11791_v60  ;;  %v11805_v40 = vmul.f32 %v5979_v44, %v11704_v45  ;;  %v11808_v43 = vsel %vm5708_vm9, 1.0, %v12340_v23  ;;  %8914 = vrcp.f32 %v5759_v33 }
0x15cf   : > { %v5858_v16 = vmul.f32 %v11699_v11, %v11752_v10  ;;  %v11812_v42 = vpop.eup %8900  ;;  %8916 = vrcp.f32 %v5758_v17  ;;  %v5934_v5 = vmul.f32 1.442695, %v5914_v48  ;;  %v5749_v28 = vmul.f32 0.3275911, %v5737_v41 }
0x15d0   : > { %v5905_v21 = vsub.f32 0.0, %v5737_v41  ;;  %v11814_v49 = vpop.eup %8902  ;;  %8918 = vpow2.f32 %v5936_v20  ;;  %vm5710_vm10 = vcmp.ge.f32.partialorder %v5698_v47, 0.0  ;;  %v5736_v45 = vand.u32 2147483647, %v11800_v55 }
0x15d1   : > { %v5870_v52 = vadd.f32 0.2548296, %v5858_v16  ;;  %v5761_v39 = vadd.f32 1.0, %v5749_v28  ;;  %v5800_v38 = vadd.f32 -1.4531521, %v11745_v29  ;;  %v11826_v47 = vsel %vm5710_vm10, 1.0, %v12340_v23 }
0x15d2   : > { %v5917_v34 = vmul.f32 %v5905_v21, %v5737_v41  ;;  %v5825_v3 = vadd.f32 1.4214138, %v11764_v62  ;;  %v11819_v10 = vpop.eup %8904  ;;  %v5748_v44 = vmul.f32 0.3275911, %v5736_v45  ;;  %v5904_v50 = vsub.f32 0.0, %v5736_v45 }
0x15d3   : > { %v5882_v33 = vmul.f32 %v11699_v11, %v5870_v52  ;;  %v5790_v63 = vmul.f32 1.0614054, %v11812_v42  ;;  %v11823_v17 = vpop.eup %8906  ;;  %8920 = vpow2.f32 %v5934_v5  ;;  %v5812_v20 = vmul.f32 %v11731_v22, %v5800_v38 }
0x15d4   : > { %v5837_v29 = vmul.f32 %v11720_v31, %v5825_v3  ;;  %v5760_v48 = vadd.f32 1.0, %v5748_v44  ;;  %v5916_v62 = vmul.f32 %v5904_v50, %v5736_v45  ;;  %v11831_v28 = vpop.eup %8908  ;;  %8922 = vrcp.f32 %v5761_v39 }
0x15d5   : > { %v5942_v41 = vmul.f32 %v11769_v4, %v5882_v33  ;;  %v5802_v16 = vadd.f32 -1.4531521, %v5790_v63  ;;  %v5824_v11 = vadd.f32 1.4214138, %v5812_v20  ;;  %v5791_v52 = vmul.f32 1.0614054, %v11802_v35 }
0x15d6   : > { %v5849_v21 = vadd.f32 -0.28449672, %v5837_v29  ;;  %v11834_v46 = vpop.eup %8910  ;;  %v11836_v7 = vmul.f32 1.442695, %v5917_v34  ;;  %8924 = vrcp.f32 %v5760_v48  ;;  %v5792_v39 = vmul.f32 1.0614054, %v11823_v17 }
0x15d7   : > { %v5954_v5 = vsub.f32 1.0, %v5942_v41  ;;  %v5814_v38 = vmul.f32 %v11812_v42, %v5802_v16  ;;  %v11839_v3 = vpop.eup %8912  ;;  %v5836_v4 = vmul.f32 %v11731_v22, %v5824_v11  ;;  %v5803_v44 = vadd.f32 -1.4531521, %v5791_v52 }
0x15d8   : > { %v5861_v45 = vmul.f32 %v11720_v31, %v5849_v21  ;;  %v11844_v50 = vpop.eup %8914  ;;  %v11846_v33 = vmul.f32 1.442695, %v5916_v62  ;;  %v5793_v20 = vmul.f32 1.0614054, %v11831_v28  ;;  %v5804_v11 = vadd.f32 -1.4531521, %v5792_v39 }
0x15d9   : > { %v5966_v34 = vmul.f32 %v5954_v5, %v11713_v27  ;;  %v5826_v63 = vadd.f32 1.4214138, %v5814_v38  ;;  %v11850_v29 = vpop.eup %8916  ;;  %v5848_v48 = vadd.f32 -0.28449672, %v5836_v4  ;;  %v5815_v16 = vmul.f32 %v11802_v35, %v5803_v44 }
0x15da   : > { %v5873_v41 = vadd.f32 0.2548296, %v5861_v45  ;;  %v11853_v21 = vpop.eup %8918  ;;  %v5805_v58 = vadd.f32 -1.4531521, %v5793_v20  ;;  %v5794_v62 = vmul.f32 1.0614054, %v11850_v29  ;;  %v5816_v14 = vmul.f32 %v11823_v17, %v5804_v11 }
0x15db   : > { %v5978_v52 = vadd.f32 1.0, %v5966_v34  ;;  %v5838_v8 = vmul.f32 %v11812_v42, %v5826_v63  ;;  %v5860_v27 = vmul.f32 %v11731_v22, %v5848_v48  ;;  %v5827_v38 = vadd.f32 1.4214138, %v5815_v16 }
0x15dc   : > { %v5885_v5 = vmul.f32 %v11720_v31, %v5873_v41  ;;  %v5817_v44 = vmul.f32 %v11831_v28, %v5805_v58  ;;  %v5806_v39 = vadd.f32 -1.4531521, %v5794_v62  ;;  %v5828_v36 = vadd.f32 1.4214138, %v5816_v14 }
0x15dd   : > { %v5990_v4 = vmul.f32 %v5978_v52, %v11706_v26  ;;  %v5850_v45 = vadd.f32 -0.28449672, %v5838_v8  ;;  %v11862_v56 = vpop.eup %8920  ;;  %v5872_v34 = vadd.f32 0.2548296, %v5860_v27  ;;  %v5839_v20 = vmul.f32 %v11802_v35, %v5827_v38 }
0x15de   : > { %v5945_v63 = vmul.f32 %v11776_v37, %v5885_v5  ;;  %v5829_v48 = vadd.f32 1.4214138, %v5817_v44  ;;  %v5818_v41 = vmul.f32 %v11850_v29, %v5806_v39  ;;  %v5795_v26 = vmul.f32 1.0614054, %v11844_v50  ;;  %v11869_v8 = vpop.eup %8922 }
0x15df   : > { %7810 = vmatprep.mubr.f32.mxu1 %v5990_v4  ;;  %v5862_v31 = vmul.f32 %v11812_v42, %v5850_v45  ;;  %v5884_v58 = vmul.f32 %v11731_v22, %v5872_v34  ;;  %v5851_v11 = vadd.f32 -0.28449672, %v5839_v20  ;;  %v5840_v37 = vmul.f32 %v11823_v17, %v5828_v36 }
0x15e0   : > { %7811 = vmatmul.mubr.f32.vlgmr.msra.gmra.mrb[92].mxu1 %v11805_v40  ;;  %v5957_v16 = vsub.f32 1.0, %v5945_v63  ;;  %v11874_v52 = vpop.eup %8924  ;;  %v5841_v62 = vmul.f32 %v11831_v28, %v5829_v48  ;;  %v5830_v27 = vadd.f32 1.4214138, %v5818_v41  ;;  %v5807_v5 = vadd.f32 -1.4531521, %v5795_v26 }
0x15e1   : > { %v5874_v14 = vadd.f32 0.2548296, %v5862_v31  ;;  %v5944_v38 = vmul.f32 %v11779_v1, %v5884_v58  ;;  %v5863_v45 = vmul.f32 %v11802_v35, %v5851_v11  ;;  %v5852_v40 = vadd.f32 -0.28449672, %v5840_v37 }
0x15e2   : > { %v5969_v4 = vmul.f32 %v5957_v16, %v11726_v13  ;;  %v5853_v44 = vadd.f32 -0.28449672, %v5841_v62  ;;  %v5842_v39 = vmul.f32 %v11850_v29, %v5830_v27  ;;  %v5819_v36 = vmul.f32 %v11844_v50, %v5807_v5 }
0x15e3   : > { %v5886_v22 = vmul.f32 %v11812_v42, %v5874_v14  ;;  %v5956_v34 = vsub.f32 1.0, %v5944_v38  ;;  %v5875_v20 = vadd.f32 0.2548296, %v5863_v45  ;;  %v5864_v31 = vmul.f32 %v11823_v17, %v5852_v40 }
0x15e4   : > { %v5981_v63 = vadd.f32 1.0, %v5969_v4  ;;  %v5865_v1 = vmul.f32 %v11831_v28, %v5853_v44  ;;  %v5854_v13 = vadd.f32 -0.28449672, %v5842_v39  ;;  %v5831_v41 = vadd.f32 1.4214138, %v5819_v36 }
0x15e5   : > { %v5946_v48 = vmul.f32 %v11819_v10, %v5886_v22  ;;  %v5968_v26 = vmul.f32 %v5956_v34, %v11735_v19  ;;  %v5887_v58 = vmul.f32 %v11802_v35, %v5875_v20  ;;  %v5876_v16 = vadd.f32 0.2548296, %v5864_v31 }
0x15e6   : > { %v5993_v42 = vmul.f32 %v5981_v63, %v11716_v0  ;;  %v5877_v37 = vadd.f32 0.2548296, %v5865_v1  ;;  %v5866_v14 = vmul.f32 %v11850_v29, %v5854_v13  ;;  %v5843_v62 = vmul.f32 %v11844_v50, %v5831_v41 }
0x15e7   : > { %v5958_v11 = vsub.f32 1.0, %v5946_v48  ;;  %v5980_v27 = vadd.f32 1.0, %v5968_v26  ;;  %v5947_v10 = vmul.f32 %v11814_v49, %v5887_v58  ;;  %v5888_v5 = vmul.f32 %v11823_v17, %v5876_v16 }
0x15e8   : > { %v5796_v38 = vmul.f32 1.0614054, %v11874_v52  ;;  %v5889_v0 = vmul.f32 %v11831_v28, %v5877_v37  ;;  %v5878_v4 = vadd.f32 0.2548296, %v5866_v14  ;;  %v5855_v35 = vadd.f32 -0.28449672, %v5843_v62 }
0x15e9   : > { %v5970_v19 = vmul.f32 %v5958_v11, %v11767_v18  ;;  %v5992_v45 = vmul.f32 %v5980_v27, %v11722_v51  ;;  %v5959_v40 = vsub.f32 1.0, %v5947_v10  ;;  %v5948_v22 = vmul.f32 %v11839_v3, %v5888_v5 }
0x15ea   : > { %v5808_v44 = vadd.f32 -1.4531521, %v5796_v38  ;;  %v5949_v36 = vmul.f32 %v11834_v46, %v5889_v0  ;;  %v5890_v49 = vmul.f32 %v11850_v29, %v5878_v4  ;;  %v5867_v17 = vmul.f32 %v11844_v50, %v5855_v35 }
0x15eb   : > { %v5982_v39 = vadd.f32 1.0, %v5970_v19  ;;  %7813 = vmatprep.mubr.f32.mxu1 %v5992_v45  ;;  %v5971_v18 = vmul.f32 %v5959_v40, %v11758_v2  ;;  %v5960_v34 = vsub.f32 1.0, %v5948_v22  ;;  %v5797_v63 = vmul.f32 1.0614054, %v11869_v8 }
0x15ec   : > { %v5820_v28 = vmul.f32 %v11874_v52, %v5808_v44  ;;  %7814 = vmatmul.mubr.f32.gmra.mrb[94].mxu1 %v5993_v42  ;;  %v5961_v3 = vsub.f32 1.0, %v5949_v36  ;;  %v5950_v20 = vmul.f32 %v11862_v56, %v5890_v49  ;;  %v5879_v31 = vadd.f32 0.2548296, %v5867_v17 }
0x15ed   : > { %v5994_v51 = vmul.f32 %v5982_v39, %v11750_v30  ;;  %v5983_v46 = vadd.f32 1.0, %v5971_v18  ;;  %v5972_v29 = vmul.f32 %v5960_v34, %v11808_v43  ;;  %v5809_v1 = vadd.f32 -1.4531521, %v5797_v63 }
0x15ee   : > { %v5832_v48 = vadd.f32 1.4214138, %v5820_v28  ;;  %8926 = vpow2.f32 %v11846_v33  ;;  %v5973_v2 = vmul.f32 %v5961_v3, %v11796_v54  ;;  %v5962_v13 = vsub.f32 1.0, %v5950_v20 }
0x15ef   : > { %7816 = vmatprep.mubr.f32.mxu1 %v5994_v51  ;;  %v5891_v41 = vmul.f32 %v11844_v50, %v5879_v31  ;;  %v5995_v26 = vmul.f32 %v5983_v46, %v11747_v9  ;;  %v5984_v30 = vadd.f32 1.0, %v5972_v29  ;;  %v5821_v56 = vmul.f32 %v11869_v8, %v5809_v1  ;;  %v12341_v1 = vld [vmem:[#allocation23_spill] sm:$0xff] }
0x15f0   : > { %v5844_v42 = vmul.f32 %v11874_v52, %v5832_v48  ;;  %vm5711_vm11 = vcmp.ge.f32.partialorder %v11774_v61, 0.0  ;;  %v5985_v43 = vadd.f32 1.0, %v5973_v2  ;;  %v5974_v58 = vmul.f32 %v5962_v13, %v11826_v47 }
0x15f1   : > { %v5951_v33 = vmul.f32 %v11853_v21, %v5891_v41  ;;  %v5685_v16 = vmul.f32 0.5, %v11729_v6  ;;  %7817 = vmatmul.mubr.f32.gmra.mrb[96].mxu1 %v5995_v26  ;;  %v5996_v54 = vmul.f32 %v5984_v30, %v11771_v24  ;;  %v5833_v11 = vadd.f32 1.4214138, %v5821_v56  ;;  %v12342_v30 = vld [vmem:[#allocation11_spill] sm:$0xff] }
0x15f2   : > { %v5856_v50 = vadd.f32 -0.28449672, %v5844_v42  ;;  %v5686_v9 = vmul.f32 0.5, %v11761_v53  ;;  %8928 = vpow2.f32 %v11836_v7  ;;  %v5986_v37 = vadd.f32 1.0, %v5974_v58 }
0x15f3   : > { %v5963_v14 = vsub.f32 1.0, %v5951_v33  ;;  %v5723_v61 = vsel %vm5711_vm11, 1.0, %v12340_v23  ;;  %7819 = vmatprep.mubr.f32.mxu1 %v5996_v54  ;;  %v5997_v62 = vmul.f32 %v5985_v43, %v5685_v16  ;;  %v5845_v21 = vmul.f32 %v11869_v8, %v5833_v11  ;;  %v12343_v43 = vld [vmem:[#allocation12_spill] sm:$0xff]  ;;  %v12344_v54 = vld [vmem:[#allocation13_spill] sm:$0xff] }
0x15f4   : > { %v5868_v47 = vmul.f32 %v11874_v52, %v5856_v50  ;;  %v5998_v6 = vmul.f32 %v5986_v37, %v5686_v9  ;;  %v5687_v5 = vmul.f32 0.5, %v11755_v32  ;;  %vm5712_vm12 = vcmp.ge.f32.partialorder %v11800_v55, 0.0  ;;  %v12345_v37 = vld [vmem:[#allocation14_spill] sm:$0xff] }
0x15f5   : > { %v5975_v27 = vmul.f32 %v5963_v14, %v5723_v61  ;;  %7820 = vmatmul.mubr.f32.gmra.mrb[98].mxu1 %v5997_v62  ;;  %v5857_v10 = vadd.f32 -0.28449672, %v5845_v21  ;;  %v5724_v44 = vsel %vm5712_vm12, 1.0, %v12340_v23  ;;  %vm5713_vm13 = vcmp.ge.f32.partialorder %v11788_v59, 0.0  ;;  %v6770_v59 = vld [vmem:[%s12194_s15 + $0x1] ss:$0 sm:$0xff] }
0x15f6   : > { %v5880_v24 = vadd.f32 0.2548296, %v5868_v47  ;;  %7822 = vmatprep.mubr.f32.mxu1 %v5998_v6  ;;  %v5725_v17 = vsel %vm5713_vm13, 1.0, %v12340_v23  ;;  %v5689_v34 = vmul.f32 0.5, %v11785_v25 }
0x15f7   : > { %v5987_v53 = vadd.f32 1.0, %v5975_v27  ;;  %v5869_v38 = vmul.f32 %v11869_v8, %v5857_v10  ;;  %v12346_v27 = vld [vmem:[#allocation15_spill] sm:$0xff] }
0x15f8   : > { %v5892_v7 = vmul.f32 %v11874_v52, %v5880_v24  ;;  %v8927_v19 = vpop.eup %8926  ;;  %v5688_v52 = vmul.f32 0.5, %v11791_v60 }
0x15f9   : > { %v5999_v0 = vmul.f32 %v5987_v53, %v5687_v5  ;;  %v5881_v35 = vadd.f32 0.2548296, %v5869_v38  ;;  %v12347_v53 = vld [vmem:[#allocation16_spill] sm:$0xff] }
0x15fa   : > { %v5952_v4 = vmul.f32 %v8927_v19, %v5892_v7 }
0x15fb   : > { %7823 = vmatmul.mubr.f32.gmra.mrb[100].mxu1 %v5999_v0  ;;  %v5893_v40 = vmul.f32 %v11869_v8, %v5881_v35 }
0x15fc   : > { %v5964_v45 = vsub.f32 1.0, %v5952_v4  ;;  %v8929_v22 = vpop.eup %8928 }
0x15fd   : > { %v5953_v39 = vmul.f32 %v8929_v22, %v5893_v40 }
0x15fe   : > { %v5976_v32 = vmul.f32 %v5964_v45, %v5724_v44  ;;  %v12348_v45 = vld [vmem:[#allocation17_spill] sm:$0xff]  ;;  %v12349_v44 = vld [vmem:[#allocation18_spill] sm:$0xff] }
0x15ff   : > { %v5965_v49 = vsub.f32 1.0, %v5953_v39 }
0x1600   : > { %v5988_v36 = vadd.f32 1.0, %v5976_v32 }
0x1601   : > { %v5977_v18 = vmul.f32 %v5965_v49, %v5725_v17 }
0x1602   : > { %v6000_v55 = vmul.f32 %v5988_v36, %v5688_v52 }
0x1603   : > { %v5989_v28 = vadd.f32 1.0, %v5977_v18 }
0x1604   : > { %7825 = vmatprep.mubr.f32.mxu1 %v6000_v55 }
0x1605   : > { %v6001_v8 = vmul.f32 %v5989_v28, %v5689_v34 }
0x1607   : > { %7826 = vmatmul.mubr.f32.gmra.mrb[102].mxu1 %v6001_v8 }
0x16b3   : > { %v7812_v63 = vpop.f32.mrb[92].mxu1 }
0x16b4   : > { %v6145_v51 = vadd.f32 %v7812_v63, %v11439_v15  ;;  %v6085_v60 = vpop.f32.mrb[93].mxu1 }
0x16b5   : > { %v6144_v3 = vadd.f32 %v6085_v60, %v11442_v12 }
0x16b6   : > { %v6165_v20 = vadd.f32 %v6770_v59, %v6145_v51 }
0x16b7   : > { %v6164_v23 = vadd.f32 %v6770_v59, %v6144_v3 }
0x16b8   : > { %v6181_v31 = vsel %vm788_vm1, %v6165_v20, 0.0 }
0x16b9   : > { %6182 = vadd.xlane.f32.xlu1 %v6181_v31  ;;  %v6178_v25 = vsel %vm788_vm1, %v6164_v23, 0.0 }
0x16ba   : > { %6179 = vadd.xlane.f32.xlu0 %v6178_v25 }
0x16bf   : > { %v7815_v46 = vpop.f32.mrb[94].mxu1 }
0x16c0   : > { %v6147_v29 = vadd.f32 %v7815_v46, %v11449_v57  ;;  %v6095_v48 = vpop.f32.mrb[95].mxu1 }
0x16c1   : > { %v6146_v2 = vadd.f32 %v6095_v48, %v12341_v1 }
0x16c2   : > { %v6167_v13 = vadd.f32 %v6770_v59, %v6147_v29 }
0x16c3   : > { %v6166_v41 = vadd.f32 %v6770_v59, %v6146_v2 }
0x16c4   : > { %v6187_v15 = vsel %vm788_vm1, %v6167_v13, 0.0  ;;  %v7818_v26 = vpop.f32.mrb[96].mxu1 }
0x16c5   : > { %6188 = vadd.xlane.f32.xlu1 %v6187_v15  ;;  %v6184_v12 = vsel %vm788_vm1, %v6166_v41, 0.0  ;;  %v6149_v42 = vadd.f32 %v7818_v26, %v12342_v30  ;;  %v6105_v56 = vpop.f32.mrb[97].mxu1 }
0x16c6   : > { %6185 = vadd.xlane.f32.xlu0 %v6184_v12  ;;  %v6148_v58 = vadd.f32 %v6105_v56, %v12343_v43 }
0x16c7   : > { %v11946_v33 = vadd.f32 %v6770_v59, %v6149_v42 }
0x16c8   : > { %v11948_v57 = vadd.f32 %v6770_v59, %v6148_v58  ;;  %v7821_v16 = vpop.f32.mrb[98].mxu1 }
0x16c9   : > { %v6151_v50 = vadd.f32 %v7821_v16, %v12344_v54  ;;  %v6115_v11 = vpop.f32.mrb[99].mxu1  ;;  %v6193_v9 = vsel %vm788_vm1, %v11946_v33, 0.0 }
0x16ca   : > { %v6150_v14 = vadd.f32 %v6115_v11, %v12345_v37  ;;  %6194 = vadd.xlane.f32.xlu1 %v6193_v9  ;;  %v6190_v61 = vsel %vm788_vm1, %v11948_v57, 0.0 }
0x16cb   : > { %v11956_v62 = vadd.f32 %v6770_v59, %v6151_v50  ;;  %6191 = vadd.xlane.f32.xlu0 %v6190_v61 }
0x16cc   : > { %v11958_v47 = vadd.f32 %v6770_v59, %v6150_v14 }
0x16cd   : > { %v6199_v6 = vsel %vm788_vm1, %v11956_v62, 0.0 }
0x16ce   : > { %v7824_v21 = vpop.f32.mrb[100].mxu1  ;;  %6200 = vadd.xlane.f32.xlu1 %v6199_v6  ;;  %v6196_v5 = vsel %vm788_vm1, %v11958_v47, 0.0 }
0x16cf   : > { %v6153_v24 = vadd.f32 %v7824_v21, %v12346_v27  ;;  %v6125_v10 = vpop.f32.mrb[101].mxu1  ;;  %6197 = vadd.xlane.f32.xlu0 %v6196_v5 }
0x16d0   : > { %v6152_v7 = vadd.f32 %v6125_v10, %v12347_v53 }
0x16d1   : > { %v11966_v38 = vadd.f32 %v6770_v59, %v6153_v24 }
0x16d2   : > { %v11968_v19 = vadd.f32 %v6770_v59, %v6152_v7 }
0x16d3   : > { %v6205_v0 = vsel %vm788_vm1, %v11966_v38, 0.0 }
0x16d4   : > { %6206 = vadd.xlane.f32.xlu1 %v6205_v0  ;;  %v6202_v4 = vsel %vm788_vm1, %v11968_v19, 0.0 }
0x16d5   : > { %6203 = vadd.xlane.f32.xlu0 %v6202_v4 }
0x16da   : > { %v7827_v35 = vpop.f32.mrb[102].mxu1 }
0x16db   : > { %v6155_v40 = vadd.f32 %v7827_v35, %v12348_v45  ;;  %v6135_v22 = vpop.f32.mrb[103].mxu1 }
0x16dc   : > { %v6154_v32 = vadd.f32 %v6135_v22, %v12349_v44 }
0x16dd   : > { %v11976_v39 = vadd.f32 %v6770_v59, %v6155_v40 }
0x16de   : > { %v11978_v52 = vadd.f32 %v6770_v59, %v6154_v32 }
0x16df   : > { %v6211_v36 = vsel %vm788_vm1, %v11976_v39, 0.0 }
0x16e0   : > { %6212 = vadd.xlane.f32.xlu1 %v6211_v36  ;;  %v6208_v49 = vsel %vm788_vm1, %v11978_v52, 0.0 }
0x16e1   : > { %6209 = vadd.xlane.f32.xlu0 %v6208_v49 }
0x1746   : > { %v6183_v17 = vpop.xlane.xlu1 %6182 }
0x1747   : > { %v6215_v55 = vmul.f32 0.03125, %v6183_v17  ;;  %v6180_v18 = vpop.xlane.xlu0 %6179 }
0x1748   : > { %v6214_v34 = vmul.f32 0.03125, %v6180_v18 }
0x1749   : > { %v11984_v28 = vsub.f32 %v6165_v20, %v6215_v55 }
0x174a   : > { %v11986_v8 = vsub.f32 %v6164_v23, %v6214_v34 }
0x174b   : > { %v6239_v63 = vmul.f32 %v11984_v28, %v11984_v28 }
0x174c   : > { %v6238_v59 = vmul.f32 %v11986_v8, %v11986_v8 }
0x174d   : > { %v6253_v51 = vsel %vm788_vm1, %v6239_v63, 0.0 }
0x174e   : > { %6254 = vadd.xlane.f32.xlu1 %v6253_v51  ;;  %v6250_v60 = vsel %vm788_vm1, %v6238_v59, 0.0  ;;  %v12056_v51 = vld [vmem:[%s12195_s16] ss:$0 sm:$0xff] }
0x174f   : > { %6251 = vadd.xlane.f32.xlu0 %v6250_v60 }
0x1752   : > { %v6189_v3 = vpop.xlane.xlu1 %6188 }
0x1753   : > { %v6217_v31 = vmul.f32 0.03125, %v6189_v3  ;;  %v6186_v25 = vpop.xlane.xlu0 %6185 }
0x1754   : > { %v6216_v46 = vmul.f32 0.03125, %v6186_v25 }
0x1755   : > { %v11994_v20 = vsub.f32 %v6167_v13, %v6217_v31 }
0x1756   : > { %v11996_v23 = vsub.f32 %v6166_v41, %v6216_v46  ;;  %v12064_v46 = vld [vmem:[%s12196_s17] ss:$0 sm:$0xff] }
0x1757   : > { %v6241_v29 = vmul.f32 %v11994_v20, %v11994_v20  ;;  %v6195_v48 = vpop.xlane.xlu1 %6194 }
0x1758   : > { %v6240_v1 = vmul.f32 %v11996_v23, %v11996_v23  ;;  %v6219_v2 = vmul.f32 0.03125, %v6195_v48  ;;  %v6192_v15 = vpop.xlane.xlu0 %6191 }
0x1759   : > { %v6259_v26 = vsel %vm788_vm1, %v6241_v29, 0.0  ;;  %v6218_v12 = vmul.f32 0.03125, %v6192_v15 }
0x175a   : > { %6260 = vadd.xlane.f32.xlu1 %v6259_v26  ;;  %v6256_v30 = vsel %vm788_vm1, %v6240_v1, 0.0  ;;  %v12005_v13 = vsub.f32 %v11946_v33, %v6219_v2 }
0x175b   : > { %6257 = vadd.xlane.f32.xlu0 %v6256_v30  ;;  %v12008_v41 = vsub.f32 %v11948_v57, %v6218_v12  ;;  %v6201_v42 = vpop.xlane.xlu1 %6200 }
0x175c   : > { %v6221_v56 = vmul.f32 0.03125, %v6201_v42  ;;  %v6198_v43 = vpop.xlane.xlu0 %6197  ;;  %v6243_v58 = vmul.f32 %v12005_v13, %v12005_v13 }
0x175d   : > { %v6220_v16 = vmul.f32 0.03125, %v6198_v43  ;;  %v6242_v54 = vmul.f32 %v12008_v41, %v12008_v41 }
0x175e   : > { %v12015_v50 = vsub.f32 %v11956_v62, %v6221_v56  ;;  %v6265_v33 = vsel %vm788_vm1, %v6243_v58, 0.0 }
0x175f   : > { %v12019_v11 = vsub.f32 %v11958_v47, %v6220_v16  ;;  %6266 = vadd.xlane.f32.xlu1 %v6265_v33  ;;  %v6262_v57 = vsel %vm788_vm1, %v6242_v54, 0.0 }
0x1760   : > { %6263 = vadd.xlane.f32.xlu0 %v6262_v57  ;;  %v6245_v37 = vmul.f32 %v12015_v50, %v12015_v50 }
0x1761   : > { %v6207_v9 = vpop.xlane.xlu1 %6206  ;;  %v6244_v21 = vmul.f32 %v12019_v11, %v12019_v11 }
0x1762   : > { %v6223_v14 = vmul.f32 0.03125, %v6207_v9  ;;  %v6204_v61 = vpop.xlane.xlu0 %6203  ;;  %v6271_v6 = vsel %vm788_vm1, %v6245_v37, 0.0 }
0x1763   : > { %v6222_v62 = vmul.f32 0.03125, %v6204_v61  ;;  %6272 = vadd.xlane.f32.xlu1 %v6271_v6  ;;  %v6268_v47 = vsel %vm788_vm1, %v6244_v21, 0.0 }
0x1764   : > { %v12028_v27 = vsub.f32 %v11966_v38, %v6223_v14  ;;  %6269 = vadd.xlane.f32.xlu0 %v6268_v47 }
0x1765   : > { %v12032_v24 = vsub.f32 %v11968_v19, %v6222_v62 }
0x1766   : > { %v6247_v10 = vmul.f32 %v12028_v27, %v12028_v27 }
0x1767   : > { %v6246_v5 = vmul.f32 %v12032_v24, %v12032_v24 }
0x1768   : > { %v6277_v53 = vsel %vm788_vm1, %v6247_v10, 0.0 }
0x1769   : > { %6278 = vadd.xlane.f32.xlu1 %v6277_v53  ;;  %v6274_v7 = vsel %vm788_vm1, %v6246_v5, 0.0 }
0x176a   : > { %6275 = vadd.xlane.f32.xlu0 %v6274_v7 }
0x176d   : > { %v6213_v38 = vpop.xlane.xlu1 %6212 }
0x176e   : > { %v6225_v0 = vmul.f32 0.03125, %v6213_v38  ;;  %v6210_v4 = vpop.xlane.xlu0 %6209 }
0x176f   : > { %v6224_v35 = vmul.f32 0.03125, %v6210_v4 }
0x1770   : > { %v12041_v19 = vsub.f32 %v11976_v39, %v6225_v0 }
0x1771   : > { %v12044_v45 = vsub.f32 %v11978_v52, %v6224_v35 }
0x1772   : > { %v6249_v40 = vmul.f32 %v12041_v19, %v12041_v19 }
0x1773   : > { %v6248_v22 = vmul.f32 %v12044_v45, %v12044_v45 }
0x1774   : > { %v6283_v44 = vsel %vm788_vm1, %v6249_v40, 0.0 }
0x1775   : > { %6284 = vadd.xlane.f32.xlu1 %v6283_v44  ;;  %v6280_v32 = vsel %vm788_vm1, %v6248_v22, 0.0 }
0x1776   : > { %6281 = vadd.xlane.f32.xlu0 %v6280_v32 }
0x17db   : > { %v6255_v36 = vpop.xlane.xlu1 %6254 }
0x17dc   : > { %v6287_v39 = vmul.f32 0.03125, %v6255_v36  ;;  %v6252_v49 = vpop.xlane.xlu0 %6251 }
0x17dd   : > { %v6286_v17 = vmul.f32 0.03125, %v6252_v49 }
0x17de   : > { %v6299_v55 = vadd.f32 1e-06, %v6287_v39 }
0x17df   : > { %v6298_v52 = vadd.f32 1e-06, %v6286_v17 }
0x17e0   : > { %8930 = vrsqrt.f32 %v6299_v55 }
0x17e1   : > { %8932 = vrsqrt.f32 %v6298_v52 }
0x17e7   : > { %v6261_v18 = vpop.xlane.xlu1 %6260 }
0x17e8   : > { %v6289_v34 = vmul.f32 0.03125, %v6261_v18  ;;  %v6258_v63 = vpop.xlane.xlu0 %6257 }
0x17e9   : > { %v6288_v60 = vmul.f32 0.03125, %v6258_v63 }
0x17ea   : > { %v8931_v59 = vpop.eup %8930  ;;  %v6301_v25 = vadd.f32 1e-06, %v6289_v34 }
0x17eb   : > { %v8933_v3 = vpop.eup %8932  ;;  %v6323_v31 = vmul.f32 %v8931_v59, %v11984_v28  ;;  %v6300_v48 = vadd.f32 1e-06, %v6288_v60 }
0x17ec   : > { %v6322_v29 = vmul.f32 %v8933_v3, %v11986_v8  ;;  %8934 = vrsqrt.f32 %v6301_v25  ;;  %v6267_v2 = vpop.xlane.xlu1 %6266 }
0x17ed   : > { %v6341_v1 = vmul.f32 %v12056_v51, %v6323_v31  ;;  %8936 = vrsqrt.f32 %v6300_v48  ;;  %v6291_v26 = vmul.f32 0.03125, %v6267_v2  ;;  %v6264_v12 = vpop.xlane.xlu0 %6263 }
0x17ee   : > { %v6340_v15 = vmul.f32 %v12056_v51, %v6322_v29  ;;  %v6290_v30 = vmul.f32 0.03125, %v6264_v12 }
0x17ef   : > { %v6359_v28 = vadd.f32 %v12064_v46, %v6341_v1  ;;  %v6303_v56 = vadd.f32 1e-06, %v6291_v26 }
0x17f0   : > { %v6358_v42 = vadd.f32 %v12064_v46, %v6340_v15  ;;  %v6302_v8 = vadd.f32 1e-06, %v6290_v30  ;;  %v6273_v43 = vpop.xlane.xlu1 %6272 }
0x17f1   : > { %6371 = vst.msk [vmem:[%s12071_s20 + $0x8] sm:$0xff] %vm788_vm1, %v6359_v28  ;;  %8938 = vrsqrt.f32 %v6303_v56  ;;  %v6293_v58 = vmul.f32 0.03125, %v6273_v43  ;;  %v6270_v16 = vpop.xlane.xlu0 %6269 }
0x17f2   : > { %6370 = vst.msk [vmem:[%s12071_s20] sm:$0xff] %vm788_vm1, %v6358_v42  ;;  %8940 = vrsqrt.f32 %v6302_v8  ;;  %v6292_v54 = vmul.f32 0.03125, %v6270_v16 }
0x17f3   : > { %v6305_v33 = vadd.f32 1e-06, %v6293_v58 }
0x17f4   : > { %v6304_v57 = vadd.f32 1e-06, %v6292_v54 }
0x17f5   : > { %8942 = vrsqrt.f32 %v6305_v33 }
0x17f6   : > { %v6279_v9 = vpop.xlane.xlu1 %6278  ;;  %v8935_v37 = vpop.eup %8934  ;;  %8944 = vrsqrt.f32 %v6304_v57 }
0x17f7   : > { %v6295_v14 = vmul.f32 0.03125, %v6279_v9  ;;  %v6276_v61 = vpop.xlane.xlu0 %6275  ;;  %v8937_v21 = vpop.eup %8936  ;;  %v6325_v62 = vmul.f32 %v8935_v37, %v11994_v20 }
0x17f8   : > { %v6294_v6 = vmul.f32 0.03125, %v6276_v61  ;;  %v6324_v47 = vmul.f32 %v8937_v21, %v11996_v23 }
0x17f9   : > { %v6307_v10 = vadd.f32 1e-06, %v6295_v14  ;;  %v6343_v5 = vmul.f32 %v12056_v51, %v6325_v62 }
0x17fa   : > { %v6306_v53 = vadd.f32 1e-06, %v6294_v6  ;;  %v6342_v7 = vmul.f32 %v12056_v51, %v6324_v47 }
0x17fb   : > { %8946 = vrsqrt.f32 %v6307_v10  ;;  %v8939_v38 = vpop.eup %8938  ;;  %v6361_v0 = vadd.f32 %v12064_v46, %v6343_v5 }
0x17fc   : > { %8948 = vrsqrt.f32 %v6306_v53  ;;  %v8941_v4 = vpop.eup %8940  ;;  %v6360_v35 = vadd.f32 %v12064_v46, %v6342_v7  ;;  %v6327_v20 = vmul.f32 %v8939_v38, %v12005_v13 }
0x17fd   : > { %6373 = vst.msk [vmem:[%s12071_s20 + $0x18] sm:$0xff] %vm788_vm1, %v6361_v0  ;;  %v6326_v23 = vmul.f32 %v8941_v4, %v12008_v41 }
0x17fe   : > { %6372 = vst.msk [vmem:[%s12071_s20 + $0x10] sm:$0xff] %vm788_vm1, %v6360_v35  ;;  %v6345_v40 = vmul.f32 %v12056_v51, %v6327_v20 }
0x17ff   : > { %v8943_v22 = vpop.eup %8942  ;;  %v6344_v44 = vmul.f32 %v12056_v51, %v6326_v23 }
0x1800   : > { %v8945_v32 = vpop.eup %8944  ;;  %v6363_v36 = vadd.f32 %v12064_v46, %v6345_v40  ;;  %v6329_v39 = vmul.f32 %v8943_v22, %v12015_v50 }
0x1801   : > { %v6362_v49 = vadd.f32 %v12064_v46, %v6344_v44  ;;  %v6328_v13 = vmul.f32 %v8945_v32, %v12019_v11 }
0x1802   : > { %6375 = vst.msk [vmem:[%s12071_s20 + $0x28] sm:$0xff] %vm788_vm1, %v6363_v36  ;;  %v6347_v41 = vmul.f32 %v12056_v51, %v6329_v39  ;;  %v6285_v17 = vpop.xlane.xlu1 %6284 }
0x1803   : > { %6374 = vst.msk [vmem:[%s12071_s20 + $0x20] sm:$0xff] %vm788_vm1, %v6362_v49  ;;  %v6346_v55 = vmul.f32 %v12056_v51, %v6328_v13  ;;  %v6297_v52 = vmul.f32 0.03125, %v6285_v17  ;;  %v6282_v18 = vpop.xlane.xlu0 %6281 }
0x1804   : > { %v6365_v50 = vadd.f32 %v12064_v46, %v6347_v41  ;;  %v6296_v63 = vmul.f32 0.03125, %v6282_v18 }
0x1805   : > { %v8947_v34 = vpop.eup %8946  ;;  %v6364_v11 = vadd.f32 %v12064_v46, %v6346_v55  ;;  %v6309_v3 = vadd.f32 1e-06, %v6297_v52 }
0x1806   : > { %v8949_v59 = vpop.eup %8948  ;;  %v6331_v60 = vmul.f32 %v8947_v34, %v12028_v27  ;;  %6377 = vst.msk [vmem:[%s12071_s20 + $0x38] sm:$0xff] %vm788_vm1, %v6365_v50  ;;  %v6308_v25 = vadd.f32 1e-06, %v6296_v63 }
0x1807   : > { %v6330_v31 = vmul.f32 %v8949_v59, %v12032_v24  ;;  %6376 = vst.msk [vmem:[%s12071_s20 + $0x30] sm:$0xff] %vm788_vm1, %v6364_v11  ;;  %8950 = vrsqrt.f32 %v6309_v3 }
0x1808   : > { %v6349_v29 = vmul.f32 %v12056_v51, %v6331_v60  ;;  %8952 = vrsqrt.f32 %v6308_v25 }
0x1809   : > { %v6348_v48 = vmul.f32 %v12056_v51, %v6330_v31 }
0x180a   : > { %v6367_v1 = vadd.f32 %v12064_v46, %v6349_v29 }
0x180b   : > { %v6366_v27 = vadd.f32 %v12064_v46, %v6348_v48 }
0x180c   : > { %6379 = vst.msk [vmem:[%s12071_s20 + $0x48] sm:$0xff] %vm788_vm1, %v6367_v1 }
0x180d   : > { %6378 = vst.msk [vmem:[%s12071_s20 + $0x40] sm:$0xff] %vm788_vm1, %v6366_v27 }
0x1811   : > { %v8951_v24 = vpop.eup %8950 }
0x1812   : > { %v8953_v2 = vpop.eup %8952  ;;  %v6333_v15 = vmul.f32 %v8951_v24, %v12041_v19 }
0x1813   : > { %v6332_v26 = vmul.f32 %v8953_v2, %v12044_v45 }
0x1814   : > { %v6351_v12 = vmul.f32 %v12056_v51, %v6333_v15 }
0x1815   : > { %v6350_v28 = vmul.f32 %v12056_v51, %v6332_v26 }
0x1816   : > { %v6369_v30 = vadd.f32 %v12064_v46, %v6351_v12 }
0x1817   : > { %v6368_v42 = vadd.f32 %v12064_v46, %v6350_v28 }
0x1818   : > { %6381 = vst.msk [vmem:[%s12071_s20 + $0x58] sm:$0xff] %vm788_vm1, %v6369_v30 }
0x1819   : > { %6380 = vst.msk [vmem:[%s12071_s20 + $0x50] sm:$0xff] %vm788_vm1, %v6368_v42 }
0x181a   : > { %8979 = shalt.err (!%p8976_p3)
}
0x181b   : > { %s8980_s21 = scalar_lea.hbm %s12130_s30, 1536  ;;  %s8984_s23 = scalar_lea.hbm %s12197_s18, 3072 }
0x181c   : > { %p8981_p4 = scmp.ne.s32.totalorder %s12130_s30, %s8980_s21  ;;  %p8985_p9 = scmp.lt.u32.totalorder %s12130_s30, %s12197_s18 }
0x181d   : > { %p8986_p10 = scmp.lt.u32.totalorder %s8984_s23, %s8980_s21  ;;  %p8988_p12 = scmp.lt.u32.totalorder %s8980_s21, %s12130_s30 }
0x181e   : > { %p8982_p7 = pnand %p8981_p4, %p9172_p5 }
0x181f   : > { %p8987_p11 = por %p8986_p10, %p8985_p9 }
0x1820   : > { %p8983_p8 = pneg %p8982_p7 }
0x1821   : > { %p8989_p13 = por %p8988_p12, %p8987_p11 }
0x1823   : > { %p8990_p0 = pnand %p8989_p13, %p8983_p8 }
0x1825   : > { %8993 = shalt.err (!%p8990_p0)
}
0x1826   : > { %s9037_s3 = smov 128   ;;  %s9038_s27 = smov 8  }
0x1827   : > { %8259 = dma.vmem_to_hbm [thread:$0]  (%p9172_p5), %s12124_s1, 1536, %s12130_s30, %s12138_s0, %s9037_s3, %s9037_s3, %s9038_s27  }
0x1828 PF: > { %s12350_s29 = sld [smem:[#allocation7_spill]]  ;;  %s12351_s20 = sld [smem:[#allocation5_spill]] }
0x182e   : > { %p8265_p1 = scmp.ge.s32.totalorder %s12350_s29, 2  ;;  %s6412_s25 = sand.u32 1, %s12351_s20  }
0x182f   : > { %s6413_s21 = scalar_lea.sflag [#allocation3], %s6412_s25 }
0x1830   : > { %p8262_p2 = pnand %p8265_p1, %p9176_p6 }
0x1832   : > { %9011 = dma.done.wait (!%p8262_p2), %s6413_s21, 1536  }
0x1833   : > { %9013 = vsyncadd (!%p8262_p2), %s6413_s21, 4294965760  ;;  %s12353_s30 = sld [smem:[#allocation8_spill]]  ;;  %s12354_s23 = sld [smem:[#allocation6_spill]] }
0x1834   : > { %s12355_s29 = sld [smem:[#allocation9_spill]]  ;;  %s12356_s27 = smov %s9020_s28 }
0x1839   : > { %p28_p3 = scmp.ge.s32.totalorder %s12353_s30, 4   ;;  %s12357_s28 = smov %s12354_s23 }
0x183b   :  { %30 = sbr.rel (!%p28_p3) target bundleno = 8 (0x8), region = 141 }
0x1842   :  { %6418 = vsyncpa [#allocation3], 1 }
0x1843   :  { %6420 = vsyncpa [#allocation3 + $0x1], 1 }

</bundles_post_ra>
